<compile_context>
chip_gen: v7x
topology: tpu7x:2x2x1
jax: 0.10.0
libtpu: 0.0.40
codegen_flags: <defaults>
</compile_context>

<pallas_src>
import functools

import numpy as np
import jax
import jax.numpy as jnp
from jax import lax
from jax.experimental import pallas as pl
from jax.experimental.pallas import tpu as pltpu

EPS = 1e-5      # PyTorch GroupNorm default eps
GROUPS = 2      # GroupNorm(2, c)


# ----------------------------- in-kernel helpers -----------------------------

def _sum_all(x):
    """Full reduction with keepdims, as chained single-axis sums."""
    s = x
    for ax in range(x.ndim - 1, -1, -1):
        s = jnp.sum(s, axis=ax, keepdims=True)
    return s


def _gn_relu(y, gamma, beta, masks, rows_per_group):
    """GroupNorm(GROUPS, C) + ReLU, fully vectorized.

    y       : [R, ...] value, channel/group structure along axis 0
              (R = C with rows_per_group = C/G, or R = C*T with (C/G)*T).
    gamma, beta, masks[g] : values broadcastable to y, shape [R, 1(,1)].
    """
    n = rows_per_group
    for s in y.shape[1:]:
        n *= s
    inv_n = 1.0 / n

    mean = None
    for g in range(GROUPS):
        blk = y[g * rows_per_group:(g + 1) * rows_per_group]
        part = masks[g] * (_sum_all(blk) * inv_n)
        mean = part if mean is None else mean + part
    d = y - mean

    var = None
    for g in range(GROUPS):
        blk = d[g * rows_per_group:(g + 1) * rows_per_group]
        part = masks[g] * (_sum_all(blk * blk) * inv_n)
        var = part if var is None else var + part

    out = d * lax.rsqrt(var + EPS) * gamma + beta
    return jnp.maximum(out, 0.0)


# --------------------------------- kernel ------------------------------------

def _tfc_tdf_kernel(x_ref, cw_ref, cb_ref, cga_ref, cbe_ref,
                    gmc_ref, gmr_ref,
                    w1_ref, b1_ref, g1_ref, be1_ref,
                    w2_ref, b2_ref, g2_ref, be2_ref,
                    out_ref,
                    xp_scr, colt_scr, conv_scr,
                    *, k, n_layers):
    """Fused TFC (L x Conv+GN+ReLU) + TDF residual for one batch element.

    x_ref    : VMEM [C, T, F]                 (one batch element)
    cw_ref   : VMEM [L, C, k*k*C]   bf16      conv weights, cols = (dh, dw, ci)
    cb_ref   : VMEM [L, C, 1]       f32       conv bias
    cga/cbe  : VMEM [L, C, 1, 1]    f32       conv GN affine
    gmc_ref  : VMEM [G, C, 1, 1]    f32       0/1 group masks over channels
    gmr_ref  : VMEM [G, C*T, 1]     f32       0/1 group masks over (c, t) rows
    w1/w2    : VMEM [F, Fb] / [Fb, F] bf16    TDF Linear weights (transposed)
    b1/b2    : VMEM [1, Fb] / [1, F]  f32
    g1/be1/g2/be2 : VMEM [C*T, 1]   f32       TDF GN affine expanded to rows
    out_ref  : VMEM [C*T, F]        f32
    """
    C, T, F = x_ref.shape
    p = k // 2

    masks_c = [gmc_ref[g] for g in range(GROUPS)]   # each [C, 1, 1]
    masks_r = [gmr_ref[g] for g in range(GROUPS)]   # each [C*T, 1]

    # Pad folded into the kernel: zero the halo, only the centre is rewritten.
    xp_scr[...] = jnp.zeros(xp_scr.shape, xp_scr.dtype)
    xp_scr[:, p:p + T, p:p + F] = x_ref[...]

    act3 = None
    for layer in range(n_layers):
        w_l = cw_ref[layer]                          # [C, k*k*C] bf16
        b_l = cb_ref[layer]                          # [C, 1]     f32
        # Conv2d(C->C, k, stride 1, pad k//2) as MXU matmuls: for each output
        # time-row, build an im2col slab (rows ordered (dh, dw, ci)) and do a
        # single [C, k*k*C] x [k*k*C, F] matmul (bf16 operands, f32 acc).
        for t in range(T):
            for dh in range(k):
                for dw in range(k):
                    tap = dh * k + dw
                    colt_scr[tap * C:(tap + 1) * C, :] = \
                        xp_scr[:, t + dh, dw:dw + F]
            row_t = jnp.dot(w_l, colt_scr[...].astype(jnp.bfloat16),
                            preferred_element_type=jnp.float32) + b_l
            conv_scr[:, t, :] = row_t                # [C, F] f32
        act3 = _gn_relu(conv_scr[...], cga_ref[layer], cbe_ref[layer],
                        masks_c, C // GROUPS)        # [C, T, F] f32
        if layer + 1 < n_layers:
            xp_scr[:, p:p + T, p:p + F] = act3

    # ---- TDF branch + residual on the lane-major [C*T, F] view (F stays the
    # minor dim, so both Linears are plain 2-D MXU matmuls). ----
    act2 = act3.reshape(C * T, F)
    h = jnp.dot(act2.astype(jnp.bfloat16), w1_ref[...],
                preferred_element_type=jnp.float32) + b1_ref[...]
    h = _gn_relu(h, g1_ref[...], be1_ref[...], masks_r, (C // GROUPS) * T)
    y2 = jnp.dot(h.astype(jnp.bfloat16), w2_ref[...],
                 preferred_element_type=jnp.float32) + b2_ref[...]
    y2 = _gn_relu(y2, g2_ref[...], be2_ref[...], masks_r, (C // GROUPS) * T)
    out_ref[...] = act2 + y2


# --------------------------------- wrapper -----------------------------------

def tfc_tdf_forward(x, params, k):
    B, C, T, F = x.shape
    L = len(params["tfc"])
    p = k // 2
    KKC = k * k * C
    cpg = C // GROUPS
    tdf = params["tdf"]
    Fb = tdf["w1"].shape[0]                       # PyTorch Linear weight is [out, in]

    # conv weights -> [L, C_out, (dh, dw, ci)] bf16 slabs for the MXU
    cw = jnp.stack([w.transpose(0, 2, 3, 1).reshape(C, KKC)
                    for (w, _, _, _) in params["tfc"]]).astype(jnp.bfloat16)
    cb = jnp.stack([b for (_, b, _, _) in params["tfc"]])[:, :, None]           # [L,C,1]
    cga = jnp.stack([g for (_, _, g, _) in params["tfc"]])[:, :, None, None]    # [L,C,1,1]
    cbe = jnp.stack([be for (_, _, _, be) in params["tfc"]])[:, :, None, None]  # [L,C,1,1]

    # 0/1 group-membership masks (GN in-kernel = reductions + one FMA)
    gsel = (jnp.arange(C)[None, :] // cpg ==
            jnp.arange(GROUPS)[:, None]).astype(jnp.float32)                    # [G, C]
    gmc = gsel[:, :, None, None]                                                # [G, C, 1, 1]
    gmr = jnp.repeat(gsel, T, axis=1)[:, :, None]                               # [G, C*T, 1]

    # per-(c, t)-row affine params for the TDF GroupNorms
    rows = lambda v: jnp.repeat(v, T)[:, None]                                  # [C*T, 1]

    kern = functools.partial(_tfc_tdf_kernel, k=k, n_layers=L)
    rep2 = lambda b: (0, 0)
    rep3 = lambda b: (0, 0, 0)
    rep4 = lambda b: (0, 0, 0, 0)

    out = pl.pallas_call(
        kern,
        grid=(B,),
        out_shape=jax.ShapeDtypeStruct((B, C * T, F), jnp.float32),
        in_specs=[
            pl.BlockSpec((None, C, T, F), lambda b: (b, 0, 0, 0)),   # x
            pl.BlockSpec((L, C, KKC), rep3),                         # conv W (bf16)
            pl.BlockSpec((L, C, 1), rep3),                           # conv bias
            pl.BlockSpec((L, C, 1, 1), rep4),                        # conv GN gamma
            pl.BlockSpec((L, C, 1, 1), rep4),                        # conv GN beta
            pl.BlockSpec((GROUPS, C, 1, 1), rep4),                   # group masks (C)
            pl.BlockSpec((GROUPS, C * T, 1), rep3),                  # group masks (C*T)
            pl.BlockSpec((F, Fb), rep2),                             # W1^T (bf16)
            pl.BlockSpec((1, Fb), rep2),                             # b1
            pl.BlockSpec((C * T, 1), rep2),                          # TDF GN1 gamma
            pl.BlockSpec((C * T, 1), rep2),                          # TDF GN1 beta
            pl.BlockSpec((Fb, F), rep2),                             # W2^T (bf16)
            pl.BlockSpec((1, F), rep2),                              # b2
            pl.BlockSpec((C * T, 1), rep2),                          # TDF GN2 gamma
            pl.BlockSpec((C * T, 1), rep2),                          # TDF GN2 beta
        ],
        out_specs=pl.BlockSpec((None, C * T, F), lambda b: (b, 0, 0)),
        scratch_shapes=[
            pltpu.VMEM((C, T + 2 * p, F + 2 * p), jnp.float32),      # padded activation
            pltpu.VMEM((KKC, F), jnp.float32),                       # per-row im2col slab
            pltpu.VMEM((C, T, F), jnp.float32),                      # conv output / acc
        ],
        compiler_params=pltpu.CompilerParams(
            dimension_semantics=("parallel",)),                      # v7x: both TCs
    )(
        x, cw, cb, cga, cbe, gmc, gmr,
        tdf["w1"].T.astype(jnp.bfloat16), tdf["b1"].reshape(1, Fb),
        rows(tdf["g1"]), rows(tdf["be1"]),
        tdf["w2"].T.astype(jnp.bfloat16), tdf["b2"].reshape(1, F),
        rows(tdf["g2"]), rows(tdf["be2"]),
    )
    return out.reshape(B, C, T, F)


# ------------------------------ pure-JAX reference ----------------------------

def _ref_gn_relu(x, gamma, beta):
    B, C, T, F = x.shape
    xg = x.reshape(B, GROUPS, C // GROUPS, T, F)
    mean = xg.mean(axis=(2, 3, 4), keepdims=True)
    var = ((xg - mean) ** 2).mean(axis=(2, 3, 4), keepdims=True)
    xn = ((xg - mean) * lax.rsqrt(var + EPS)).reshape(B, C, T, F)
    y = xn * gamma.reshape(1, C, 1, 1) + beta.reshape(1, C, 1, 1)
    return jnp.maximum(y, 0.0)


def ref_forward(x, params, k):
    # Same deliberate bf16 matmul-operand rounding as the kernel (f32 accumulate,
    # GN / elementwise in f32), so the comparison is apples-to-apples.
    p = k // 2
    for (w, b, gamma, beta) in params["tfc"]:
        y = lax.conv_general_dilated(
            x.astype(jnp.bfloat16), w.astype(jnp.bfloat16), (1, 1),
            [(p, p), (p, p)], dimension_numbers=("NCHW", "OIHW", "NCHW"),
            preferred_element_type=jnp.float32)
        x = _ref_gn_relu(y + b.reshape(1, -1, 1, 1), gamma, beta)
    t = params["tdf"]
    h = jnp.einsum("bctf,gf->bctg", x.astype(jnp.bfloat16),
                   t["w1"].astype(jnp.bfloat16),
                   preferred_element_type=jnp.float32) + t["b1"]
    h = _ref_gn_relu(h, t["g1"], t["be1"])
    y = jnp.einsum("bctg,fg->bctf", h.astype(jnp.bfloat16),
                   t["w2"].astype(jnp.bfloat16),
                   preferred_element_type=jnp.float32) + t["b2"]
    y = _ref_gn_relu(y, t["g2"], t["be2"])
    return x + y


# ------------------------------------ main ------------------------------------

if __name__ == "__main__":
    # TFC_TDF(c=4, l=2, f=16, k=3, bn=4, dense=False, bias=True)
    B, C, T, F = 2, 4, 8, 16
    L, K, BN = 2, 3, 4
    Fb = F // BN

    ks = list(jax.random.split(jax.random.PRNGKey(0), 32))
    pop = lambda: ks.pop()

    def nrm(shape, scale=0.2):
        return scale * jax.random.normal(pop(), shape, jnp.float32)

    tfc_params = []
    for _ in range(L):
        tfc_params.append((
            nrm((C, C, K, K)),            # conv weight
            nrm((C,)),                    # conv bias
            1.0 + nrm((C,), 0.1),         # GN gamma
            nrm((C,), 0.1),               # GN beta
        ))
    tdf_params = dict(
        w1=nrm((Fb, F)), b1=nrm((Fb,)),
        g1=1.0 + nrm((C,), 0.1), be1=nrm((C,), 0.1),
        w2=nrm((F, Fb)), b2=nrm((F,)),
        g2=1.0 + nrm((C,), 0.1), be2=nrm((C,), 0.1),
    )
    params = {"tfc": tfc_params, "tdf": tdf_params}

    x = jax.random.normal(pop(), (B, C, T, F), jnp.float32)

    out = tfc_tdf_forward(x, params, K)
    out = jax.block_until_ready(out)
    assert out.shape == (B, C, T, F)

    ref = ref_forward(x, params, K)
    # Matmul operands are deliberately bf16 (documented choice; f32 accumulation)
    # in BOTH the kernel and the reference; remaining mismatch is only f32
    # accumulation-order noise plus rare bf16 rounding flips through the GNs.
    np.testing.assert_allclose(np.asarray(out), np.asarray(ref),
                               rtol=1e-2, atol=1e-2)

    print("KERNEL_OK")
</pallas_src>

<mosaic_0001>
module attributes {stable_mosaic.version = 11 : i64} {
  func.func @_tfc_tdf_kernel(%arg0: i32, %arg1: memref<1x4x8x16xf32, #tpu.memory_space<vmem>>, %arg2: memref<2x4x36xbf16, #tpu.memory_space<vmem>>, %arg3: memref<2x4x1xf32, #tpu.memory_space<vmem>>, %arg4: memref<2x4x1x1xf32, #tpu.memory_space<vmem>>, %arg5: memref<2x4x1x1xf32, #tpu.memory_space<vmem>>, %arg6: memref<2x4x1x1xf32, #tpu.memory_space<vmem>>, %arg7: memref<2x32x1xf32, #tpu.memory_space<vmem>>, %arg8: memref<16x4xbf16, #tpu.memory_space<vmem>>, %arg9: memref<1x4xf32, #tpu.memory_space<vmem>>, %arg10: memref<32x1xf32, #tpu.memory_space<vmem>>, %arg11: memref<32x1xf32, #tpu.memory_space<vmem>>, %arg12: memref<4x16xbf16, #tpu.memory_space<vmem>>, %arg13: memref<1x16xf32, #tpu.memory_space<vmem>>, %arg14: memref<32x1xf32, #tpu.memory_space<vmem>>, %arg15: memref<32x1xf32, #tpu.memory_space<vmem>>, %arg16: memref<1x32x16xf32, #tpu.memory_space<vmem>>, %arg17: memref<4x10x18xf32, #tpu.memory_space<vmem>>, %arg18: memref<36x16xf32, #tpu.memory_space<vmem>>, %arg19: memref<4x8x16xf32, #tpu.memory_space<vmem>>) attributes {dimension_semantics = [#tpu.dimension_semantics<parallel>], iteration_bounds = array<i64: 2>, scalar_prefetch = 0 : i64, scratch_operands = 3 : i64, tpu.core_type = #tpu.core_type<tc>, window_params = [{transform_indices = @transform_0, window_bounds = array<i64: 1, 4, 8, 16>}, {pipeline_mode = #tpu.pipeline_mode<synchronous>, transform_indices = @transform_1, window_bounds = array<i64: 2, 4, 36>}, {pipeline_mode = #tpu.pipeline_mode<synchronous>, transform_indices = @transform_2, window_bounds = array<i64: 2, 4, 1>}, {pipeline_mode = #tpu.pipeline_mode<synchronous>, transform_indices = @transform_3, window_bounds = array<i64: 2, 4, 1, 1>}, {pipeline_mode = #tpu.pipeline_mode<synchronous>, transform_indices = @transform_4, window_bounds = array<i64: 2, 4, 1, 1>}, {pipeline_mode = #tpu.pipeline_mode<synchronous>, transform_indices = @transform_5, window_bounds = array<i64: 2, 4, 1, 1>}, {pipeline_mode = #tpu.pipeline_mode<synchronous>, transform_indices = @transform_6, window_bounds = array<i64: 2, 32, 1>}, {pipeline_mode = #tpu.pipeline_mode<synchronous>, transform_indices = @transform_7, window_bounds = array<i64: 16, 4>}, {pipeline_mode = #tpu.pipeline_mode<synchronous>, transform_indices = @transform_8, window_bounds = array<i64: 1, 4>}, {pipeline_mode = #tpu.pipeline_mode<synchronous>, transform_indices = @transform_9, window_bounds = array<i64: 32, 1>}, {pipeline_mode = #tpu.pipeline_mode<synchronous>, transform_indices = @transform_10, window_bounds = array<i64: 32, 1>}, {pipeline_mode = #tpu.pipeline_mode<synchronous>, transform_indices = @transform_11, window_bounds = array<i64: 4, 16>}, {pipeline_mode = #tpu.pipeline_mode<synchronous>, transform_indices = @transform_12, window_bounds = array<i64: 1, 16>}, {pipeline_mode = #tpu.pipeline_mode<synchronous>, transform_indices = @transform_13, window_bounds = array<i64: 32, 1>}, {pipeline_mode = #tpu.pipeline_mode<synchronous>, transform_indices = @transform_14, window_bounds = array<i64: 32, 1>}, {transform_indices = @transform_15, window_bounds = array<i64: 1, 32, 16>}]} {
    %c0 = arith.constant 0 : index
    %c0_0 = arith.constant 0 : index
    %c0_1 = arith.constant 0 : index
    %c0_2 = arith.constant 0 : index
    %0 = vector.load %arg6[%c0, %c0_0, %c0_1, %c0_2] : memref<2x4x1x1xf32, #tpu.memory_space<vmem>>, vector<1x4x1x1xf32>
    %1 = vector.shape_cast %0 : vector<1x4x1x1xf32> to vector<4x1x1xf32>
    %c1 = arith.constant 1 : index
    %c0_3 = arith.constant 0 : index
    %c0_4 = arith.constant 0 : index
    %c0_5 = arith.constant 0 : index
    %2 = vector.load %arg6[%c1, %c0_3, %c0_4, %c0_5] : memref<2x4x1x1xf32, #tpu.memory_space<vmem>>, vector<1x4x1x1xf32>
    %3 = vector.shape_cast %2 : vector<1x4x1x1xf32> to vector<4x1x1xf32>
    %c0_6 = arith.constant 0 : index
    %c0_7 = arith.constant 0 : index
    %c0_8 = arith.constant 0 : index
    %4 = vector.load %arg7[%c0_6, %c0_7, %c0_8] : memref<2x32x1xf32, #tpu.memory_space<vmem>>, vector<1x32x1xf32>
    %5 = vector.shape_cast %4 : vector<1x32x1xf32> to vector<32x1xf32>
    %c1_9 = arith.constant 1 : index
    %c0_10 = arith.constant 0 : index
    %c0_11 = arith.constant 0 : index
    %6 = vector.load %arg7[%c1_9, %c0_10, %c0_11] : memref<2x32x1xf32, #tpu.memory_space<vmem>>, vector<1x32x1xf32>
    %7 = vector.shape_cast %6 : vector<1x32x1xf32> to vector<32x1xf32>
    %cst = arith.constant 0.000000e+00 : f32
    %8 = vector.broadcast %cst : f32 to vector<4x10x18xf32>
    %c0_12 = arith.constant 0 : index
    %c0_13 = arith.constant 0 : index
    %c0_14 = arith.constant 0 : index
    %9 = vector.load %arg17[%c0_12, %c0_13, %c0_14] : memref<4x10x18xf32, #tpu.memory_space<vmem>>, vector<4x10x18xf32>
    tpu.vector_store %arg17[%c0_12, %c0_13, %c0_14], %8 {strides = array<i32>} : memref<4x10x18xf32, #tpu.memory_space<vmem>>, vector<4x10x18xf32>,
    %c0_15 = arith.constant 0 : index
    %c0_16 = arith.constant 0 : index
    %c0_17 = arith.constant 0 : index
    %c0_18 = arith.constant 0 : index
    %10 = vector.load %arg1[%c0_15, %c0_16, %c0_17, %c0_18] : memref<1x4x8x16xf32, #tpu.memory_space<vmem>>, vector<1x4x8x16xf32>
    %11 = vector.shape_cast %10 : vector<1x4x8x16xf32> to vector<4x8x16xf32>
    %c0_19 = arith.constant 0 : index
    %c1_20 = arith.constant 1 : index
    %c1_21 = arith.constant 1 : index
    %12 = vector.load %arg17[%c0_19, %c1_20, %c1_21] : memref<4x10x18xf32, #tpu.memory_space<vmem>>, vector<4x8x16xf32>
    tpu.vector_store %arg17[%c0_19, %c1_20, %c1_21], %11 {strides = array<i32>} : memref<4x10x18xf32, #tpu.memory_space<vmem>>, vector<4x8x16xf32>,
    %c0_22 = arith.constant 0 : index
    %c0_23 = arith.constant 0 : index
    %c0_24 = arith.constant 0 : index
    %13 = vector.load %arg2[%c0_22, %c0_23, %c0_24] : memref<2x4x36xbf16, #tpu.memory_space<vmem>>, vector<1x4x36xbf16>
    %14 = vector.shape_cast %13 : vector<1x4x36xbf16> to vector<4x36xbf16>
    %c0_25 = arith.constant 0 : index
    %c0_26 = arith.constant 0 : index
    %c0_27 = arith.constant 0 : index
    %15 = vector.load %arg3[%c0_25, %c0_26, %c0_27] : memref<2x4x1xf32, #tpu.memory_space<vmem>>, vector<1x4x1xf32>
    %16 = vector.shape_cast %15 : vector<1x4x1xf32> to vector<4x1xf32>
    %c0_28 = arith.constant 0 : index
    %c0_29 = arith.constant 0 : index
    %c0_30 = arith.constant 0 : index
    %17 = vector.load %arg17[%c0_28, %c0_29, %c0_30] : memref<4x10x18xf32, #tpu.memory_space<vmem>>, vector<4x1x16xf32>
    %18 = vector.shape_cast %17 : vector<4x1x16xf32> to vector<4x16xf32>
    %c0_31 = arith.constant 0 : index
    %c0_32 = arith.constant 0 : index
    %19 = vector.load %arg18[%c0_31, %c0_32] : memref<36x16xf32, #tpu.memory_space<vmem>>, vector<4x16xf32>
    tpu.vector_store %arg18[%c0_31, %c0_32], %18 {strides = array<i32>} : memref<36x16xf32, #tpu.memory_space<vmem>>, vector<4x16xf32>,
    %c0_33 = arith.constant 0 : index
    %c0_34 = arith.constant 0 : index
    %c1_35 = arith.constant 1 : index
    %20 = vector.load %arg17[%c0_33, %c0_34, %c1_35] : memref<4x10x18xf32, #tpu.memory_space<vmem>>, vector<4x1x16xf32>
    %21 = vector.shape_cast %20 : vector<4x1x16xf32> to vector<4x16xf32>
    %c4 = arith.constant 4 : index
    %c0_36 = arith.constant 0 : index
    %22 = vector.load %arg18[%c4, %c0_36] : memref<36x16xf32, #tpu.memory_space<vmem>>, vector<4x16xf32>
    tpu.vector_store %arg18[%c4, %c0_36], %21 {strides = array<i32>} : memref<36x16xf32, #tpu.memory_space<vmem>>, vector<4x16xf32>,
    %c0_37 = arith.constant 0 : index
    %c0_38 = arith.constant 0 : index
    %c2 = arith.constant 2 : index
    %23 = vector.load %arg17[%c0_37, %c0_38, %c2] : memref<4x10x18xf32, #tpu.memory_space<vmem>>, vector<4x1x16xf32>
    %24 = vector.shape_cast %23 : vector<4x1x16xf32> to vector<4x16xf32>
    %c8 = arith.constant 8 : index
    %c0_39 = arith.constant 0 : index
    %25 = vector.load %arg18[%c8, %c0_39] : memref<36x16xf32, #tpu.memory_space<vmem>>, vector<4x16xf32>
    tpu.vector_store %arg18[%c8, %c0_39], %24 {strides = array<i32>} : memref<36x16xf32, #tpu.memory_space<vmem>>, vector<4x16xf32>,
    %c0_40 = arith.constant 0 : index
    %c1_41 = arith.constant 1 : index
    %c0_42 = arith.constant 0 : index
    %26 = vector.load %arg17[%c0_40, %c1_41, %c0_42] : memref<4x10x18xf32, #tpu.memory_space<vmem>>, vector<4x1x16xf32>
    %27 = vector.shape_cast %26 : vector<4x1x16xf32> to vector<4x16xf32>
    %c12 = arith.constant 12 : index
    %c0_43 = arith.constant 0 : index
    %28 = vector.load %arg18[%c12, %c0_43] : memref<36x16xf32, #tpu.memory_space<vmem>>, vector<4x16xf32>
    tpu.vector_store %arg18[%c12, %c0_43], %27 {strides = array<i32>} : memref<36x16xf32, #tpu.memory_space<vmem>>, vector<4x16xf32>,
    %c0_44 = arith.constant 0 : index
    %c1_45 = arith.constant 1 : index
    %c1_46 = arith.constant 1 : index
    %29 = vector.load %arg17[%c0_44, %c1_45, %c1_46] : memref<4x10x18xf32, #tpu.memory_space<vmem>>, vector<4x1x16xf32>
    %30 = vector.shape_cast %29 : vector<4x1x16xf32> to vector<4x16xf32>
    %c16 = arith.constant 16 : index
    %c0_47 = arith.constant 0 : index
    %31 = vector.load %arg18[%c16, %c0_47] : memref<36x16xf32, #tpu.memory_space<vmem>>, vector<4x16xf32>
    tpu.vector_store %arg18[%c16, %c0_47], %30 {strides = array<i32>} : memref<36x16xf32, #tpu.memory_space<vmem>>, vector<4x16xf32>,
    %c0_48 = arith.constant 0 : index
    %c1_49 = arith.constant 1 : index
    %c2_50 = arith.constant 2 : index
    %32 = vector.load %arg17[%c0_48, %c1_49, %c2_50] : memref<4x10x18xf32, #tpu.memory_space<vmem>>, vector<4x1x16xf32>
    %33 = vector.shape_cast %32 : vector<4x1x16xf32> to vector<4x16xf32>
    %c20 = arith.constant 20 : index
    %c0_51 = arith.constant 0 : index
    %34 = vector.load %arg18[%c20, %c0_51] : memref<36x16xf32, #tpu.memory_space<vmem>>, vector<4x16xf32>
    tpu.vector_store %arg18[%c20, %c0_51], %33 {strides = array<i32>} : memref<36x16xf32, #tpu.memory_space<vmem>>, vector<4x16xf32>,
    %c0_52 = arith.constant 0 : index
    %c2_53 = arith.constant 2 : index
    %c0_54 = arith.constant 0 : index
    %35 = vector.load %arg17[%c0_52, %c2_53, %c0_54] : memref<4x10x18xf32, #tpu.memory_space<vmem>>, vector<4x1x16xf32>
    %36 = vector.shape_cast %35 : vector<4x1x16xf32> to vector<4x16xf32>
    %c24 = arith.constant 24 : index
    %c0_55 = arith.constant 0 : index
    %37 = vector.load %arg18[%c24, %c0_55] : memref<36x16xf32, #tpu.memory_space<vmem>>, vector<4x16xf32>
    tpu.vector_store %arg18[%c24, %c0_55], %36 {strides = array<i32>} : memref<36x16xf32, #tpu.memory_space<vmem>>, vector<4x16xf32>,
    %c0_56 = arith.constant 0 : index
    %c2_57 = arith.constant 2 : index
    %c1_58 = arith.constant 1 : index
    %38 = vector.load %arg17[%c0_56, %c2_57, %c1_58] : memref<4x10x18xf32, #tpu.memory_space<vmem>>, vector<4x1x16xf32>
    %39 = vector.shape_cast %38 : vector<4x1x16xf32> to vector<4x16xf32>
    %c28 = arith.constant 28 : index
    %c0_59 = arith.constant 0 : index
    %40 = vector.load %arg18[%c28, %c0_59] : memref<36x16xf32, #tpu.memory_space<vmem>>, vector<4x16xf32>
    tpu.vector_store %arg18[%c28, %c0_59], %39 {strides = array<i32>} : memref<36x16xf32, #tpu.memory_space<vmem>>, vector<4x16xf32>,
    %c0_60 = arith.constant 0 : index
    %c2_61 = arith.constant 2 : index
    %c2_62 = arith.constant 2 : index
    %41 = vector.load %arg17[%c0_60, %c2_61, %c2_62] : memref<4x10x18xf32, #tpu.memory_space<vmem>>, vector<4x1x16xf32>
    %42 = vector.shape_cast %41 : vector<4x1x16xf32> to vector<4x16xf32>
    %c32 = arith.constant 32 : index
    %c0_63 = arith.constant 0 : index
    %43 = vector.load %arg18[%c32, %c0_63] : memref<36x16xf32, #tpu.memory_space<vmem>>, vector<4x16xf32>
    tpu.vector_store %arg18[%c32, %c0_63], %42 {strides = array<i32>} : memref<36x16xf32, #tpu.memory_space<vmem>>, vector<4x16xf32>,
    %c0_64 = arith.constant 0 : index
    %c0_65 = arith.constant 0 : index
    %44 = vector.load %arg18[%c0_64, %c0_65] : memref<36x16xf32, #tpu.memory_space<vmem>>, vector<36x16xf32>
    %45 = arith.truncf %44 : vector<36x16xf32> to vector<36x16xbf16>
    %cst_66 = arith.constant dense<0.000000e+00> : vector<4x16xf32>
    %46 = tpu.matmul %14, %45, %cst_66 {dimension_numbers = #tpu.dot_dimension_numbers<[1], [0], [0], [1], [0, 0, 1, 1], [], []>} : vector<4x36xbf16>, vector<36x16xbf16>, vector<4x16xf32> -> vector<4x16xf32>
    %47 = vector.broadcast %16 : vector<4x1xf32> to vector<4x16xf32>
    %48 = arith.addf %46, %47 : vector<4x16xf32>
    %c0_67 = arith.constant 0 : index
    %c0_68 = arith.constant 0 : index
    %c0_69 = arith.constant 0 : index
    %49 = vector.load %arg19[%c0_67, %c0_68, %c0_69] : memref<4x8x16xf32, #tpu.memory_space<vmem>>, vector<4x1x16xf32>
    %50 = vector.shape_cast %49 : vector<4x1x16xf32> to vector<4x16xf32>
    %51 = vector.shape_cast %48 : vector<4x16xf32> to vector<4x1x16xf32>
    tpu.vector_store %arg19[%c0_67, %c0_68, %c0_69], %51 {strides = array<i32>} : memref<4x8x16xf32, #tpu.memory_space<vmem>>, vector<4x1x16xf32>,
    %c0_70 = arith.constant 0 : index
    %c1_71 = arith.constant 1 : index
    %c0_72 = arith.constant 0 : index
    %52 = vector.load %arg17[%c0_70, %c1_71, %c0_72] : memref<4x10x18xf32, #tpu.memory_space<vmem>>, vector<4x1x16xf32>
    %53 = vector.shape_cast %52 : vector<4x1x16xf32> to vector<4x16xf32>
    %c0_73 = arith.constant 0 : index
    %c0_74 = arith.constant 0 : index
    %54 = vector.load %arg18[%c0_73, %c0_74] : memref<36x16xf32, #tpu.memory_space<vmem>>, vector<4x16xf32>
    tpu.vector_store %arg18[%c0_73, %c0_74], %53 {strides = array<i32>} : memref<36x16xf32, #tpu.memory_space<vmem>>, vector<4x16xf32>,
    %c0_75 = arith.constant 0 : index
    %c1_76 = arith.constant 1 : index
    %c1_77 = arith.constant 1 : index
    %55 = vector.load %arg17[%c0_75, %c1_76, %c1_77] : memref<4x10x18xf32, #tpu.memory_space<vmem>>, vector<4x1x16xf32>
    %56 = vector.shape_cast %55 : vector<4x1x16xf32> to vector<4x16xf32>
    %c4_78 = arith.constant 4 : index
    %c0_79 = arith.constant 0 : index
    %57 = vector.load %arg18[%c4_78, %c0_79] : memref<36x16xf32, #tpu.memory_space<vmem>>, vector<4x16xf32>
    tpu.vector_store %arg18[%c4_78, %c0_79], %56 {strides = array<i32>} : memref<36x16xf32, #tpu.memory_space<vmem>>, vector<4x16xf32>,
    %c0_80 = arith.constant 0 : index
    %c1_81 = arith.constant 1 : index
    %c2_82 = arith.constant 2 : index
    %58 = vector.load %arg17[%c0_80, %c1_81, %c2_82] : memref<4x10x18xf32, #tpu.memory_space<vmem>>, vector<4x1x16xf32>
    %59 = vector.shape_cast %58 : vector<4x1x16xf32> to vector<4x16xf32>
    %c8_83 = arith.constant 8 : index
    %c0_84 = arith.constant 0 : index
    %60 = vector.load %arg18[%c8_83, %c0_84] : memref<36x16xf32, #tpu.memory_space<vmem>>, vector<4x16xf32>
    tpu.vector_store %arg18[%c8_83, %c0_84], %59 {strides = array<i32>} : memref<36x16xf32, #tpu.memory_space<vmem>>, vector<4x16xf32>,
    %c0_85 = arith.constant 0 : index
    %c2_86 = arith.constant 2 : index
    %c0_87 = arith.constant 0 : index
    %61 = vector.load %arg17[%c0_85, %c2_86, %c0_87] : memref<4x10x18xf32, #tpu.memory_space<vmem>>, vector<4x1x16xf32>
    %62 = vector.shape_cast %61 : vector<4x1x16xf32> to vector<4x16xf32>
    %c12_88 = arith.constant 12 : index
    %c0_89 = arith.constant 0 : index
    %63 = vector.load %arg18[%c12_88, %c0_89] : memref<36x16xf32, #tpu.memory_space<vmem>>, vector<4x16xf32>
    tpu.vector_store %arg18[%c12_88, %c0_89], %62 {strides = array<i32>} : memref<36x16xf32, #tpu.memory_space<vmem>>, vector<4x16xf32>,
    %c0_90 = arith.constant 0 : index
    %c2_91 = arith.constant 2 : index
    %c1_92 = arith.constant 1 : index
    %64 = vector.load %arg17[%c0_90, %c2_91, %c1_92] : memref<4x10x18xf32, #tpu.memory_space<vmem>>, vector<4x1x16xf32>
    %65 = vector.shape_cast %64 : vector<4x1x16xf32> to vector<4x16xf32>
    %c16_93 = arith.constant 16 : index
    %c0_94 = arith.constant 0 : index
    %66 = vector.load %arg18[%c16_93, %c0_94] : memref<36x16xf32, #tpu.memory_space<vmem>>, vector<4x16xf32>
    tpu.vector_store %arg18[%c16_93, %c0_94], %65 {strides = array<i32>} : memref<36x16xf32, #tpu.memory_space<vmem>>, vector<4x16xf32>,
    %c0_95 = arith.constant 0 : index
    %c2_96 = arith.constant 2 : index
    %c2_97 = arith.constant 2 : index
    %67 = vector.load %arg17[%c0_95, %c2_96, %c2_97] : memref<4x10x18xf32, #tpu.memory_space<vmem>>, vector<4x1x16xf32>
    %68 = vector.shape_cast %67 : vector<4x1x16xf32> to vector<4x16xf32>
    %c20_98 = arith.constant 20 : index
    %c0_99 = arith.constant 0 : index
    %69 = vector.load %arg18[%c20_98, %c0_99] : memref<36x16xf32, #tpu.memory_space<vmem>>, vector<4x16xf32>
    tpu.vector_store %arg18[%c20_98, %c0_99], %68 {strides = array<i32>} : memref<36x16xf32, #tpu.memory_space<vmem>>, vector<4x16xf32>,
    %c0_100 = arith.constant 0 : index
    %c3 = arith.constant 3 : index
    %c0_101 = arith.constant 0 : index
    %70 = vector.load %arg17[%c0_100, %c3, %c0_101] : memref<4x10x18xf32, #tpu.memory_space<vmem>>, vector<4x1x16xf32>
    %71 = vector.shape_cast %70 : vector<4x1x16xf32> to vector<4x16xf32>
    %c24_102 = arith.constant 24 : index
    %c0_103 = arith.constant 0 : index
    %72 = vector.load %arg18[%c24_102, %c0_103] : memref<36x16xf32, #tpu.memory_space<vmem>>, vector<4x16xf32>
    tpu.vector_store %arg18[%c24_102, %c0_103], %71 {strides = array<i32>} : memref<36x16xf32, #tpu.memory_space<vmem>>, vector<4x16xf32>,
    %c0_104 = arith.constant 0 : index
    %c3_105 = arith.constant 3 : index
    %c1_106 = arith.constant 1 : index
    %73 = vector.load %arg17[%c0_104, %c3_105, %c1_106] : memref<4x10x18xf32, #tpu.memory_space<vmem>>, vector<4x1x16xf32>
    %74 = vector.shape_cast %73 : vector<4x1x16xf32> to vector<4x16xf32>
    %c28_107 = arith.constant 28 : index
    %c0_108 = arith.constant 0 : index
    %75 = vector.load %arg18[%c28_107, %c0_108] : memref<36x16xf32, #tpu.memory_space<vmem>>, vector<4x16xf32>
    tpu.vector_store %arg18[%c28_107, %c0_108], %74 {strides = array<i32>} : memref<36x16xf32, #tpu.memory_space<vmem>>, vector<4x16xf32>,
    %c0_109 = arith.constant 0 : index
    %c3_110 = arith.constant 3 : index
    %c2_111 = arith.constant 2 : index
    %76 = vector.load %arg17[%c0_109, %c3_110, %c2_111] : memref<4x10x18xf32, #tpu.memory_space<vmem>>, vector<4x1x16xf32>
    %77 = vector.shape_cast %76 : vector<4x1x16xf32> to vector<4x16xf32>
    %c32_112 = arith.constant 32 : index
    %c0_113 = arith.constant 0 : index
    %78 = vector.load %arg18[%c32_112, %c0_113] : memref<36x16xf32, #tpu.memory_space<vmem>>, vector<4x16xf32>
    tpu.vector_store %arg18[%c32_112, %c0_113], %77 {strides = array<i32>} : memref<36x16xf32, #tpu.memory_space<vmem>>, vector<4x16xf32>,
    %c0_114 = arith.constant 0 : index
    %c0_115 = arith.constant 0 : index
    %79 = vector.load %arg18[%c0_114, %c0_115] : memref<36x16xf32, #tpu.memory_space<vmem>>, vector<36x16xf32>
    %80 = arith.truncf %79 : vector<36x16xf32> to vector<36x16xbf16>
    %cst_116 = arith.constant dense<0.000000e+00> : vector<4x16xf32>
    %81 = tpu.matmul %14, %80, %cst_116 {dimension_numbers = #tpu.dot_dimension_numbers<[1], [0], [0], [1], [0, 0, 1, 1], [], []>} : vector<4x36xbf16>, vector<36x16xbf16>, vector<4x16xf32> -> vector<4x16xf32>
    %82 = vector.broadcast %16 : vector<4x1xf32> to vector<4x16xf32>
    %83 = arith.addf %81, %82 : vector<4x16xf32>
    %c0_117 = arith.constant 0 : index
    %c1_118 = arith.constant 1 : index
    %c0_119 = arith.constant 0 : index
    %84 = vector.load %arg19[%c0_117, %c1_118, %c0_119] : memref<4x8x16xf32, #tpu.memory_space<vmem>>, vector<4x1x16xf32>
    %85 = vector.shape_cast %84 : vector<4x1x16xf32> to vector<4x16xf32>
    %86 = vector.shape_cast %83 : vector<4x16xf32> to vector<4x1x16xf32>
    tpu.vector_store %arg19[%c0_117, %c1_118, %c0_119], %86 {strides = array<i32>} : memref<4x8x16xf32, #tpu.memory_space<vmem>>, vector<4x1x16xf32>,
    %c0_120 = arith.constant 0 : index
    %c2_121 = arith.constant 2 : index
    %c0_122 = arith.constant 0 : index
    %87 = vector.load %arg17[%c0_120, %c2_121, %c0_122] : memref<4x10x18xf32, #tpu.memory_space<vmem>>, vector<4x1x16xf32>
    %88 = vector.shape_cast %87 : vector<4x1x16xf32> to vector<4x16xf32>
    %c0_123 = arith.constant 0 : index
    %c0_124 = arith.constant 0 : index
    %89 = vector.load %arg18[%c0_123, %c0_124] : memref<36x16xf32, #tpu.memory_space<vmem>>, vector<4x16xf32>
    tpu.vector_store %arg18[%c0_123, %c0_124], %88 {strides = array<i32>} : memref<36x16xf32, #tpu.memory_space<vmem>>, vector<4x16xf32>,
    %c0_125 = arith.constant 0 : index
    %c2_126 = arith.constant 2 : index
    %c1_127 = arith.constant 1 : index
    %90 = vector.load %arg17[%c0_125, %c2_126, %c1_127] : memref<4x10x18xf32, #tpu.memory_space<vmem>>, vector<4x1x16xf32>
    %91 = vector.shape_cast %90 : vector<4x1x16xf32> to vector<4x16xf32>
    %c4_128 = arith.constant 4 : index
    %c0_129 = arith.constant 0 : index
    %92 = vector.load %arg18[%c4_128, %c0_129] : memref<36x16xf32, #tpu.memory_space<vmem>>, vector<4x16xf32>
    tpu.vector_store %arg18[%c4_128, %c0_129], %91 {strides = array<i32>} : memref<36x16xf32, #tpu.memory_space<vmem>>, vector<4x16xf32>,
    %c0_130 = arith.constant 0 : index
    %c2_131 = arith.constant 2 : index
    %c2_132 = arith.constant 2 : index
    %93 = vector.load %arg17[%c0_130, %c2_131, %c2_132] : memref<4x10x18xf32, #tpu.memory_space<vmem>>, vector<4x1x16xf32>
    %94 = vector.shape_cast %93 : vector<4x1x16xf32> to vector<4x16xf32>
    %c8_133 = arith.constant 8 : index
    %c0_134 = arith.constant 0 : index
    %95 = vector.load %arg18[%c8_133, %c0_134] : memref<36x16xf32, #tpu.memory_space<vmem>>, vector<4x16xf32>
    tpu.vector_store %arg18[%c8_133, %c0_134], %94 {strides = array<i32>} : memref<36x16xf32, #tpu.memory_space<vmem>>, vector<4x16xf32>,
    %c0_135 = arith.constant 0 : index
    %c3_136 = arith.constant 3 : index
    %c0_137 = arith.constant 0 : index
    %96 = vector.load %arg17[%c0_135, %c3_136, %c0_137] : memref<4x10x18xf32, #tpu.memory_space<vmem>>, vector<4x1x16xf32>
    %97 = vector.shape_cast %96 : vector<4x1x16xf32> to vector<4x16xf32>
    %c12_138 = arith.constant 12 : index
    %c0_139 = arith.constant 0 : index
    %98 = vector.load %arg18[%c12_138, %c0_139] : memref<36x16xf32, #tpu.memory_space<vmem>>, vector<4x16xf32>
    tpu.vector_store %arg18[%c12_138, %c0_139], %97 {strides = array<i32>} : memref<36x16xf32, #tpu.memory_space<vmem>>, vector<4x16xf32>,
    %c0_140 = arith.constant 0 : index
    %c3_141 = arith.constant 3 : index
    %c1_142 = arith.constant 1 : index
    %99 = vector.load %arg17[%c0_140, %c3_141, %c1_142] : memref<4x10x18xf32, #tpu.memory_space<vmem>>, vector<4x1x16xf32>
    %100 = vector.shape_cast %99 : vector<4x1x16xf32> to vector<4x16xf32>
    %c16_143 = arith.constant 16 : index
    %c0_144 = arith.constant 0 : index
    %101 = vector.load %arg18[%c16_143, %c0_144] : memref<36x16xf32, #tpu.memory_space<vmem>>, vector<4x16xf32>
    tpu.vector_store %arg18[%c16_143, %c0_144], %100 {strides = array<i32>} : memref<36x16xf32, #tpu.memory_space<vmem>>, vector<4x16xf32>,
    %c0_145 = arith.constant 0 : index
    %c3_146 = arith.constant 3 : index
    %c2_147 = arith.constant 2 : index
    %102 = vector.load %arg17[%c0_145, %c3_146, %c2_147] : memref<4x10x18xf32, #tpu.memory_space<vmem>>, vector<4x1x16xf32>
    %103 = vector.shape_cast %102 : vector<4x1x16xf32> to vector<4x16xf32>
    %c20_148 = arith.constant 20 : index
    %c0_149 = arith.constant 0 : index
    %104 = vector.load %arg18[%c20_148, %c0_149] : memref<36x16xf32, #tpu.memory_space<vmem>>, vector<4x16xf32>
    tpu.vector_store %arg18[%c20_148, %c0_149], %103 {strides = array<i32>} : memref<36x16xf32, #tpu.memory_space<vmem>>, vector<4x16xf32>,
    %c0_150 = arith.constant 0 : index
    %c4_151 = arith.constant 4 : index
    %c0_152 = arith.constant 0 : index
    %105 = vector.load %arg17[%c0_150, %c4_151, %c0_152] : memref<4x10x18xf32, #tpu.memory_space<vmem>>, vector<4x1x16xf32>
    %106 = vector.shape_cast %105 : vector<4x1x16xf32> to vector<4x16xf32>
    %c24_153 = arith.constant 24 : index
    %c0_154 = arith.constant 0 : index
    %107 = vector.load %arg18[%c24_153, %c0_154] : memref<36x16xf32, #tpu.memory_space<vmem>>, vector<4x16xf32>
    tpu.vector_store %arg18[%c24_153, %c0_154], %106 {strides = array<i32>} : memref<36x16xf32, #tpu.memory_space<vmem>>, vector<4x16xf32>,
    %c0_155 = arith.constant 0 : index
    %c4_156 = arith.constant 4 : index
    %c1_157 = arith.constant 1 : index
    %108 = vector.load %arg17[%c0_155, %c4_156, %c1_157] : memref<4x10x18xf32, #tpu.memory_space<vmem>>, vector<4x1x16xf32>
    %109 = vector.shape_cast %108 : vector<4x1x16xf32> to vector<4x16xf32>
    %c28_158 = arith.constant 28 : index
    %c0_159 = arith.constant 0 : index
    %110 = vector.load %arg18[%c28_158, %c0_159] : memref<36x16xf32, #tpu.memory_space<vmem>>, vector<4x16xf32>
    tpu.vector_store %arg18[%c28_158, %c0_159], %109 {strides = array<i32>} : memref<36x16xf32, #tpu.memory_space<vmem>>, vector<4x16xf32>,
    %c0_160 = arith.constant 0 : index
    %c4_161 = arith.constant 4 : index
    %c2_162 = arith.constant 2 : index
    %111 = vector.load %arg17[%c0_160, %c4_161, %c2_162] : memref<4x10x18xf32, #tpu.memory_space<vmem>>, vector<4x1x16xf32>
    %112 = vector.shape_cast %111 : vector<4x1x16xf32> to vector<4x16xf32>
    %c32_163 = arith.constant 32 : index
    %c0_164 = arith.constant 0 : index
    %113 = vector.load %arg18[%c32_163, %c0_164] : memref<36x16xf32, #tpu.memory_space<vmem>>, vector<4x16xf32>
    tpu.vector_store %arg18[%c32_163, %c0_164], %112 {strides = array<i32>} : memref<36x16xf32, #tpu.memory_space<vmem>>, vector<4x16xf32>,
    %c0_165 = arith.constant 0 : index
    %c0_166 = arith.constant 0 : index
    %114 = vector.load %arg18[%c0_165, %c0_166] : memref<36x16xf32, #tpu.memory_space<vmem>>, vector<36x16xf32>
    %115 = arith.truncf %114 : vector<36x16xf32> to vector<36x16xbf16>
    %cst_167 = arith.constant dense<0.000000e+00> : vector<4x16xf32>
    %116 = tpu.matmul %14, %115, %cst_167 {dimension_numbers = #tpu.dot_dimension_numbers<[1], [0], [0], [1], [0, 0, 1, 1], [], []>} : vector<4x36xbf16>, vector<36x16xbf16>, vector<4x16xf32> -> vector<4x16xf32>
    %117 = vector.broadcast %16 : vector<4x1xf32> to vector<4x16xf32>
    %118 = arith.addf %116, %117 : vector<4x16xf32>
    %c0_168 = arith.constant 0 : index
    %c2_169 = arith.constant 2 : index
    %c0_170 = arith.constant 0 : index
    %119 = vector.load %arg19[%c0_168, %c2_169, %c0_170] : memref<4x8x16xf32, #tpu.memory_space<vmem>>, vector<4x1x16xf32>
    %120 = vector.shape_cast %119 : vector<4x1x16xf32> to vector<4x16xf32>
    %121 = vector.shape_cast %118 : vector<4x16xf32> to vector<4x1x16xf32>
    tpu.vector_store %arg19[%c0_168, %c2_169, %c0_170], %121 {strides = array<i32>} : memref<4x8x16xf32, #tpu.memory_space<vmem>>, vector<4x1x16xf32>,
    %c0_171 = arith.constant 0 : index
    %c3_172 = arith.constant 3 : index
    %c0_173 = arith.constant 0 : index
    %122 = vector.load %arg17[%c0_171, %c3_172, %c0_173] : memref<4x10x18xf32, #tpu.memory_space<vmem>>, vector<4x1x16xf32>
    %123 = vector.shape_cast %122 : vector<4x1x16xf32> to vector<4x16xf32>
    %c0_174 = arith.constant 0 : index
    %c0_175 = arith.constant 0 : index
    %124 = vector.load %arg18[%c0_174, %c0_175] : memref<36x16xf32, #tpu.memory_space<vmem>>, vector<4x16xf32>
    tpu.vector_store %arg18[%c0_174, %c0_175], %123 {strides = array<i32>} : memref<36x16xf32, #tpu.memory_space<vmem>>, vector<4x16xf32>,
    %c0_176 = arith.constant 0 : index
    %c3_177 = arith.constant 3 : index
    %c1_178 = arith.constant 1 : index
    %125 = vector.load %arg17[%c0_176, %c3_177, %c1_178] : memref<4x10x18xf32, #tpu.memory_space<vmem>>, vector<4x1x16xf32>
    %126 = vector.shape_cast %125 : vector<4x1x16xf32> to vector<4x16xf32>
    %c4_179 = arith.constant 4 : index
    %c0_180 = arith.constant 0 : index
    %127 = vector.load %arg18[%c4_179, %c0_180] : memref<36x16xf32, #tpu.memory_space<vmem>>, vector<4x16xf32>
    tpu.vector_store %arg18[%c4_179, %c0_180], %126 {strides = array<i32>} : memref<36x16xf32, #tpu.memory_space<vmem>>, vector<4x16xf32>,
    %c0_181 = arith.constant 0 : index
    %c3_182 = arith.constant 3 : index
    %c2_183 = arith.constant 2 : index
    %128 = vector.load %arg17[%c0_181, %c3_182, %c2_183] : memref<4x10x18xf32, #tpu.memory_space<vmem>>, vector<4x1x16xf32>
    %129 = vector.shape_cast %128 : vector<4x1x16xf32> to vector<4x16xf32>
    %c8_184 = arith.constant 8 : index
    %c0_185 = arith.constant 0 : index
    %130 = vector.load %arg18[%c8_184, %c0_185] : memref<36x16xf32, #tpu.memory_space<vmem>>, vector<4x16xf32>
    tpu.vector_store %arg18[%c8_184, %c0_185], %129 {strides = array<i32>} : memref<36x16xf32, #tpu.memory_space<vmem>>, vector<4x16xf32>,
    %c0_186 = arith.constant 0 : index
    %c4_187 = arith.constant 4 : index
    %c0_188 = arith.constant 0 : index
    %131 = vector.load %arg17[%c0_186, %c4_187, %c0_188] : memref<4x10x18xf32, #tpu.memory_space<vmem>>, vector<4x1x16xf32>
    %132 = vector.shape_cast %131 : vector<4x1x16xf32> to vector<4x16xf32>
    %c12_189 = arith.constant 12 : index
    %c0_190 = arith.constant 0 : index
    %133 = vector.load %arg18[%c12_189, %c0_190] : memref<36x16xf32, #tpu.memory_space<vmem>>, vector<4x16xf32>
    tpu.vector_store %arg18[%c12_189, %c0_190], %132 {strides = array<i32>} : memref<36x16xf32, #tpu.memory_space<vmem>>, vector<4x16xf32>,
    %c0_191 = arith.constant 0 : index
    %c4_192 = arith.constant 4 : index
    %c1_193 = arith.constant 1 : index
    %134 = vector.load %arg17[%c0_191, %c4_192, %c1_193] : memref<4x10x18xf32, #tpu.memory_space<vmem>>, vector<4x1x16xf32>
    %135 = vector.shape_cast %134 : vector<4x1x16xf32> to vector<4x16xf32>
    %c16_194 = arith.constant 16 : index
    %c0_195 = arith.constant 0 : index
    %136 = vector.load %arg18[%c16_194, %c0_195] : memref<36x16xf32, #tpu.memory_space<vmem>>, vector<4x16xf32>
    tpu.vector_store %arg18[%c16_194, %c0_195], %135 {strides = array<i32>} : memref<36x16xf32, #tpu.memory_space<vmem>>, vector<4x16xf32>,
    %c0_196 = arith.constant 0 : index
    %c4_197 = arith.constant 4 : index
    %c2_198 = arith.constant 2 : index
    %137 = vector.load %arg17[%c0_196, %c4_197, %c2_198] : memref<4x10x18xf32, #tpu.memory_space<vmem>>, vector<4x1x16xf32>
    %138 = vector.shape_cast %137 : vector<4x1x16xf32> to vector<4x16xf32>
    %c20_199 = arith.constant 20 : index
    %c0_200 = arith.constant 0 : index
    %139 = vector.load %arg18[%c20_199, %c0_200] : memref<36x16xf32, #tpu.memory_space<vmem>>, vector<4x16xf32>
    tpu.vector_store %arg18[%c20_199, %c0_200], %138 {strides = array<i32>} : memref<36x16xf32, #tpu.memory_space<vmem>>, vector<4x16xf32>,
    %c0_201 = arith.constant 0 : index
    %c5 = arith.constant 5 : index
    %c0_202 = arith.constant 0 : index
    %140 = vector.load %arg17[%c0_201, %c5, %c0_202] : memref<4x10x18xf32, #tpu.memory_space<vmem>>, vector<4x1x16xf32>
    %141 = vector.shape_cast %140 : vector<4x1x16xf32> to vector<4x16xf32>
    %c24_203 = arith.constant 24 : index
    %c0_204 = arith.constant 0 : index
    %142 = vector.load %arg18[%c24_203, %c0_204] : memref<36x16xf32, #tpu.memory_space<vmem>>, vector<4x16xf32>
    tpu.vector_store %arg18[%c24_203, %c0_204], %141 {strides = array<i32>} : memref<36x16xf32, #tpu.memory_space<vmem>>, vector<4x16xf32>,
    %c0_205 = arith.constant 0 : index
    %c5_206 = arith.constant 5 : index
    %c1_207 = arith.constant 1 : index
    %143 = vector.load %arg17[%c0_205, %c5_206, %c1_207] : memref<4x10x18xf32, #tpu.memory_space<vmem>>, vector<4x1x16xf32>
    %144 = vector.shape_cast %143 : vector<4x1x16xf32> to vector<4x16xf32>
    %c28_208 = arith.constant 28 : index
    %c0_209 = arith.constant 0 : index
    %145 = vector.load %arg18[%c28_208, %c0_209] : memref<36x16xf32, #tpu.memory_space<vmem>>, vector<4x16xf32>
    tpu.vector_store %arg18[%c28_208, %c0_209], %144 {strides = array<i32>} : memref<36x16xf32, #tpu.memory_space<vmem>>, vector<4x16xf32>,
    %c0_210 = arith.constant 0 : index
    %c5_211 = arith.constant 5 : index
    %c2_212 = arith.constant 2 : index
    %146 = vector.load %arg17[%c0_210, %c5_211, %c2_212] : memref<4x10x18xf32, #tpu.memory_space<vmem>>, vector<4x1x16xf32>
    %147 = vector.shape_cast %146 : vector<4x1x16xf32> to vector<4x16xf32>
    %c32_213 = arith.constant 32 : index
    %c0_214 = arith.constant 0 : index
    %148 = vector.load %arg18[%c32_213, %c0_214] : memref<36x16xf32, #tpu.memory_space<vmem>>, vector<4x16xf32>
    tpu.vector_store %arg18[%c32_213, %c0_214], %147 {strides = array<i32>} : memref<36x16xf32, #tpu.memory_space<vmem>>, vector<4x16xf32>,
    %c0_215 = arith.constant 0 : index
    %c0_216 = arith.constant 0 : index
    %149 = vector.load %arg18[%c0_215, %c0_216] : memref<36x16xf32, #tpu.memory_space<vmem>>, vector<36x16xf32>
    %150 = arith.truncf %149 : vector<36x16xf32> to vector<36x16xbf16>
    %cst_217 = arith.constant dense<0.000000e+00> : vector<4x16xf32>
    %151 = tpu.matmul %14, %150, %cst_217 {dimension_numbers = #tpu.dot_dimension_numbers<[1], [0], [0], [1], [0, 0, 1, 1], [], []>} : vector<4x36xbf16>, vector<36x16xbf16>, vector<4x16xf32> -> vector<4x16xf32>
    %152 = vector.broadcast %16 : vector<4x1xf32> to vector<4x16xf32>
    %153 = arith.addf %151, %152 : vector<4x16xf32>
    %c0_218 = arith.constant 0 : index
    %c3_219 = arith.constant 3 : index
    %c0_220 = arith.constant 0 : index
    %154 = vector.load %arg19[%c0_218, %c3_219, %c0_220] : memref<4x8x16xf32, #tpu.memory_space<vmem>>, vector<4x1x16xf32>
    %155 = vector.shape_cast %154 : vector<4x1x16xf32> to vector<4x16xf32>
    %156 = vector.shape_cast %153 : vector<4x16xf32> to vector<4x1x16xf32>
    tpu.vector_store %arg19[%c0_218, %c3_219, %c0_220], %156 {strides = array<i32>} : memref<4x8x16xf32, #tpu.memory_space<vmem>>, vector<4x1x16xf32>,
    %c0_221 = arith.constant 0 : index
    %c4_222 = arith.constant 4 : index
    %c0_223 = arith.constant 0 : index
    %157 = vector.load %arg17[%c0_221, %c4_222, %c0_223] : memref<4x10x18xf32, #tpu.memory_space<vmem>>, vector<4x1x16xf32>
    %158 = vector.shape_cast %157 : vector<4x1x16xf32> to vector<4x16xf32>
    %c0_224 = arith.constant 0 : index
    %c0_225 = arith.constant 0 : index
    %159 = vector.load %arg18[%c0_224, %c0_225] : memref<36x16xf32, #tpu.memory_space<vmem>>, vector<4x16xf32>
    tpu.vector_store %arg18[%c0_224, %c0_225], %158 {strides = array<i32>} : memref<36x16xf32, #tpu.memory_space<vmem>>, vector<4x16xf32>,
    %c0_226 = arith.constant 0 : index
    %c4_227 = arith.constant 4 : index
    %c1_228 = arith.constant 1 : index
    %160 = vector.load %arg17[%c0_226, %c4_227, %c1_228] : memref<4x10x18xf32, #tpu.memory_space<vmem>>, vector<4x1x16xf32>
    %161 = vector.shape_cast %160 : vector<4x1x16xf32> to vector<4x16xf32>
    %c4_229 = arith.constant 4 : index
    %c0_230 = arith.constant 0 : index
    %162 = vector.load %arg18[%c4_229, %c0_230] : memref<36x16xf32, #tpu.memory_space<vmem>>, vector<4x16xf32>
    tpu.vector_store %arg18[%c4_229, %c0_230], %161 {strides = array<i32>} : memref<36x16xf32, #tpu.memory_space<vmem>>, vector<4x16xf32>,
    %c0_231 = arith.constant 0 : index
    %c4_232 = arith.constant 4 : index
    %c2_233 = arith.constant 2 : index
    %163 = vector.load %arg17[%c0_231, %c4_232, %c2_233] : memref<4x10x18xf32, #tpu.memory_space<vmem>>, vector<4x1x16xf32>
    %164 = vector.shape_cast %163 : vector<4x1x16xf32> to vector<4x16xf32>
    %c8_234 = arith.constant 8 : index
    %c0_235 = arith.constant 0 : index
    %165 = vector.load %arg18[%c8_234, %c0_235] : memref<36x16xf32, #tpu.memory_space<vmem>>, vector<4x16xf32>
    tpu.vector_store %arg18[%c8_234, %c0_235], %164 {strides = array<i32>} : memref<36x16xf32, #tpu.memory_space<vmem>>, vector<4x16xf32>,
    %c0_236 = arith.constant 0 : index
    %c5_237 = arith.constant 5 : index
    %c0_238 = arith.constant 0 : index
    %166 = vector.load %arg17[%c0_236, %c5_237, %c0_238] : memref<4x10x18xf32, #tpu.memory_space<vmem>>, vector<4x1x16xf32>
    %167 = vector.shape_cast %166 : vector<4x1x16xf32> to vector<4x16xf32>
    %c12_239 = arith.constant 12 : index
    %c0_240 = arith.constant 0 : index
    %168 = vector.load %arg18[%c12_239, %c0_240] : memref<36x16xf32, #tpu.memory_space<vmem>>, vector<4x16xf32>
    tpu.vector_store %arg18[%c12_239, %c0_240], %167 {strides = array<i32>} : memref<36x16xf32, #tpu.memory_space<vmem>>, vector<4x16xf32>,
    %c0_241 = arith.constant 0 : index
    %c5_242 = arith.constant 5 : index
    %c1_243 = arith.constant 1 : index
    %169 = vector.load %arg17[%c0_241, %c5_242, %c1_243] : memref<4x10x18xf32, #tpu.memory_space<vmem>>, vector<4x1x16xf32>
    %170 = vector.shape_cast %169 : vector<4x1x16xf32> to vector<4x16xf32>
    %c16_244 = arith.constant 16 : index
    %c0_245 = arith.constant 0 : index
    %171 = vector.load %arg18[%c16_244, %c0_245] : memref<36x16xf32, #tpu.memory_space<vmem>>, vector<4x16xf32>
    tpu.vector_store %arg18[%c16_244, %c0_245], %170 {strides = array<i32>} : memref<36x16xf32, #tpu.memory_space<vmem>>, vector<4x16xf32>,
    %c0_246 = arith.constant 0 : index
    %c5_247 = arith.constant 5 : index
    %c2_248 = arith.constant 2 : index
    %172 = vector.load %arg17[%c0_246, %c5_247, %c2_248] : memref<4x10x18xf32, #tpu.memory_space<vmem>>, vector<4x1x16xf32>
    %173 = vector.shape_cast %172 : vector<4x1x16xf32> to vector<4x16xf32>
    %c20_249 = arith.constant 20 : index
    %c0_250 = arith.constant 0 : index
    %174 = vector.load %arg18[%c20_249, %c0_250] : memref<36x16xf32, #tpu.memory_space<vmem>>, vector<4x16xf32>
    tpu.vector_store %arg18[%c20_249, %c0_250], %173 {strides = array<i32>} : memref<36x16xf32, #tpu.memory_space<vmem>>, vector<4x16xf32>,
    %c0_251 = arith.constant 0 : index
    %c6 = arith.constant 6 : index
    %c0_252 = arith.constant 0 : index
    %175 = vector.load %arg17[%c0_251, %c6, %c0_252] : memref<4x10x18xf32, #tpu.memory_space<vmem>>, vector<4x1x16xf32>
    %176 = vector.shape_cast %175 : vector<4x1x16xf32> to vector<4x16xf32>
    %c24_253 = arith.constant 24 : index
    %c0_254 = arith.constant 0 : index
    %177 = vector.load %arg18[%c24_253, %c0_254] : memref<36x16xf32, #tpu.memory_space<vmem>>, vector<4x16xf32>
    tpu.vector_store %arg18[%c24_253, %c0_254], %176 {strides = array<i32>} : memref<36x16xf32, #tpu.memory_space<vmem>>, vector<4x16xf32>,
    %c0_255 = arith.constant 0 : index
    %c6_256 = arith.constant 6 : index
    %c1_257 = arith.constant 1 : index
    %178 = vector.load %arg17[%c0_255, %c6_256, %c1_257] : memref<4x10x18xf32, #tpu.memory_space<vmem>>, vector<4x1x16xf32>
    %179 = vector.shape_cast %178 : vector<4x1x16xf32> to vector<4x16xf32>
    %c28_258 = arith.constant 28 : index
    %c0_259 = arith.constant 0 : index
    %180 = vector.load %arg18[%c28_258, %c0_259] : memref<36x16xf32, #tpu.memory_space<vmem>>, vector<4x16xf32>
    tpu.vector_store %arg18[%c28_258, %c0_259], %179 {strides = array<i32>} : memref<36x16xf32, #tpu.memory_space<vmem>>, vector<4x16xf32>,
    %c0_260 = arith.constant 0 : index
    %c6_261 = arith.constant 6 : index
    %c2_262 = arith.constant 2 : index
    %181 = vector.load %arg17[%c0_260, %c6_261, %c2_262] : memref<4x10x18xf32, #tpu.memory_space<vmem>>, vector<4x1x16xf32>
    %182 = vector.shape_cast %181 : vector<4x1x16xf32> to vector<4x16xf32>
    %c32_263 = arith.constant 32 : index
    %c0_264 = arith.constant 0 : index
    %183 = vector.load %arg18[%c32_263, %c0_264] : memref<36x16xf32, #tpu.memory_space<vmem>>, vector<4x16xf32>
    tpu.vector_store %arg18[%c32_263, %c0_264], %182 {strides = array<i32>} : memref<36x16xf32, #tpu.memory_space<vmem>>, vector<4x16xf32>,
    %c0_265 = arith.constant 0 : index
    %c0_266 = arith.constant 0 : index
    %184 = vector.load %arg18[%c0_265, %c0_266] : memref<36x16xf32, #tpu.memory_space<vmem>>, vector<36x16xf32>
    %185 = arith.truncf %184 : vector<36x16xf32> to vector<36x16xbf16>
    %cst_267 = arith.constant dense<0.000000e+00> : vector<4x16xf32>
    %186 = tpu.matmul %14, %185, %cst_267 {dimension_numbers = #tpu.dot_dimension_numbers<[1], [0], [0], [1], [0, 0, 1, 1], [], []>} : vector<4x36xbf16>, vector<36x16xbf16>, vector<4x16xf32> -> vector<4x16xf32>
    %187 = vector.broadcast %16 : vector<4x1xf32> to vector<4x16xf32>
    %188 = arith.addf %186, %187 : vector<4x16xf32>
    %c0_268 = arith.constant 0 : index
    %c4_269 = arith.constant 4 : index
    %c0_270 = arith.constant 0 : index
    %189 = vector.load %arg19[%c0_268, %c4_269, %c0_270] : memref<4x8x16xf32, #tpu.memory_space<vmem>>, vector<4x1x16xf32>
    %190 = vector.shape_cast %189 : vector<4x1x16xf32> to vector<4x16xf32>
    %191 = vector.shape_cast %188 : vector<4x16xf32> to vector<4x1x16xf32>
    tpu.vector_store %arg19[%c0_268, %c4_269, %c0_270], %191 {strides = array<i32>} : memref<4x8x16xf32, #tpu.memory_space<vmem>>, vector<4x1x16xf32>,
    %c0_271 = arith.constant 0 : index
    %c5_272 = arith.constant 5 : index
    %c0_273 = arith.constant 0 : index
    %192 = vector.load %arg17[%c0_271, %c5_272, %c0_273] : memref<4x10x18xf32, #tpu.memory_space<vmem>>, vector<4x1x16xf32>
    %193 = vector.shape_cast %192 : vector<4x1x16xf32> to vector<4x16xf32>
    %c0_274 = arith.constant 0 : index
    %c0_275 = arith.constant 0 : index
    %194 = vector.load %arg18[%c0_274, %c0_275] : memref<36x16xf32, #tpu.memory_space<vmem>>, vector<4x16xf32>
    tpu.vector_store %arg18[%c0_274, %c0_275], %193 {strides = array<i32>} : memref<36x16xf32, #tpu.memory_space<vmem>>, vector<4x16xf32>,
    %c0_276 = arith.constant 0 : index
    %c5_277 = arith.constant 5 : index
    %c1_278 = arith.constant 1 : index
    %195 = vector.load %arg17[%c0_276, %c5_277, %c1_278] : memref<4x10x18xf32, #tpu.memory_space<vmem>>, vector<4x1x16xf32>
    %196 = vector.shape_cast %195 : vector<4x1x16xf32> to vector<4x16xf32>
    %c4_279 = arith.constant 4 : index
    %c0_280 = arith.constant 0 : index
    %197 = vector.load %arg18[%c4_279, %c0_280] : memref<36x16xf32, #tpu.memory_space<vmem>>, vector<4x16xf32>
    tpu.vector_store %arg18[%c4_279, %c0_280], %196 {strides = array<i32>} : memref<36x16xf32, #tpu.memory_space<vmem>>, vector<4x16xf32>,
    %c0_281 = arith.constant 0 : index
    %c5_282 = arith.constant 5 : index
    %c2_283 = arith.constant 2 : index
    %198 = vector.load %arg17[%c0_281, %c5_282, %c2_283] : memref<4x10x18xf32, #tpu.memory_space<vmem>>, vector<4x1x16xf32>
    %199 = vector.shape_cast %198 : vector<4x1x16xf32> to vector<4x16xf32>
    %c8_284 = arith.constant 8 : index
    %c0_285 = arith.constant 0 : index
    %200 = vector.load %arg18[%c8_284, %c0_285] : memref<36x16xf32, #tpu.memory_space<vmem>>, vector<4x16xf32>
    tpu.vector_store %arg18[%c8_284, %c0_285], %199 {strides = array<i32>} : memref<36x16xf32, #tpu.memory_space<vmem>>, vector<4x16xf32>,
    %c0_286 = arith.constant 0 : index
    %c6_287 = arith.constant 6 : index
    %c0_288 = arith.constant 0 : index
    %201 = vector.load %arg17[%c0_286, %c6_287, %c0_288] : memref<4x10x18xf32, #tpu.memory_space<vmem>>, vector<4x1x16xf32>
    %202 = vector.shape_cast %201 : vector<4x1x16xf32> to vector<4x16xf32>
    %c12_289 = arith.constant 12 : index
    %c0_290 = arith.constant 0 : index
    %203 = vector.load %arg18[%c12_289, %c0_290] : memref<36x16xf32, #tpu.memory_space<vmem>>, vector<4x16xf32>
    tpu.vector_store %arg18[%c12_289, %c0_290], %202 {strides = array<i32>} : memref<36x16xf32, #tpu.memory_space<vmem>>, vector<4x16xf32>,
    %c0_291 = arith.constant 0 : index
    %c6_292 = arith.constant 6 : index
    %c1_293 = arith.constant 1 : index
    %204 = vector.load %arg17[%c0_291, %c6_292, %c1_293] : memref<4x10x18xf32, #tpu.memory_space<vmem>>, vector<4x1x16xf32>
    %205 = vector.shape_cast %204 : vector<4x1x16xf32> to vector<4x16xf32>
    %c16_294 = arith.constant 16 : index
    %c0_295 = arith.constant 0 : index
    %206 = vector.load %arg18[%c16_294, %c0_295] : memref<36x16xf32, #tpu.memory_space<vmem>>, vector<4x16xf32>
    tpu.vector_store %arg18[%c16_294, %c0_295], %205 {strides = array<i32>} : memref<36x16xf32, #tpu.memory_space<vmem>>, vector<4x16xf32>,
    %c0_296 = arith.constant 0 : index
    %c6_297 = arith.constant 6 : index
    %c2_298 = arith.constant 2 : index
    %207 = vector.load %arg17[%c0_296, %c6_297, %c2_298] : memref<4x10x18xf32, #tpu.memory_space<vmem>>, vector<4x1x16xf32>
    %208 = vector.shape_cast %207 : vector<4x1x16xf32> to vector<4x16xf32>
    %c20_299 = arith.constant 20 : index
    %c0_300 = arith.constant 0 : index
    %209 = vector.load %arg18[%c20_299, %c0_300] : memref<36x16xf32, #tpu.memory_space<vmem>>, vector<4x16xf32>
    tpu.vector_store %arg18[%c20_299, %c0_300], %208 {strides = array<i32>} : memref<36x16xf32, #tpu.memory_space<vmem>>, vector<4x16xf32>,
    %c0_301 = arith.constant 0 : index
    %c7 = arith.constant 7 : index
    %c0_302 = arith.constant 0 : index
    %210 = vector.load %arg17[%c0_301, %c7, %c0_302] : memref<4x10x18xf32, #tpu.memory_space<vmem>>, vector<4x1x16xf32>
    %211 = vector.shape_cast %210 : vector<4x1x16xf32> to vector<4x16xf32>
    %c24_303 = arith.constant 24 : index
    %c0_304 = arith.constant 0 : index
    %212 = vector.load %arg18[%c24_303, %c0_304] : memref<36x16xf32, #tpu.memory_space<vmem>>, vector<4x16xf32>
    tpu.vector_store %arg18[%c24_303, %c0_304], %211 {strides = array<i32>} : memref<36x16xf32, #tpu.memory_space<vmem>>, vector<4x16xf32>,
    %c0_305 = arith.constant 0 : index
    %c7_306 = arith.constant 7 : index
    %c1_307 = arith.constant 1 : index
    %213 = vector.load %arg17[%c0_305, %c7_306, %c1_307] : memref<4x10x18xf32, #tpu.memory_space<vmem>>, vector<4x1x16xf32>
    %214 = vector.shape_cast %213 : vector<4x1x16xf32> to vector<4x16xf32>
    %c28_308 = arith.constant 28 : index
    %c0_309 = arith.constant 0 : index
    %215 = vector.load %arg18[%c28_308, %c0_309] : memref<36x16xf32, #tpu.memory_space<vmem>>, vector<4x16xf32>
    tpu.vector_store %arg18[%c28_308, %c0_309], %214 {strides = array<i32>} : memref<36x16xf32, #tpu.memory_space<vmem>>, vector<4x16xf32>,
    %c0_310 = arith.constant 0 : index
    %c7_311 = arith.constant 7 : index
    %c2_312 = arith.constant 2 : index
    %216 = vector.load %arg17[%c0_310, %c7_311, %c2_312] : memref<4x10x18xf32, #tpu.memory_space<vmem>>, vector<4x1x16xf32>
    %217 = vector.shape_cast %216 : vector<4x1x16xf32> to vector<4x16xf32>
    %c32_313 = arith.constant 32 : index
    %c0_314 = arith.constant 0 : index
    %218 = vector.load %arg18[%c32_313, %c0_314] : memref<36x16xf32, #tpu.memory_space<vmem>>, vector<4x16xf32>
    tpu.vector_store %arg18[%c32_313, %c0_314], %217 {strides = array<i32>} : memref<36x16xf32, #tpu.memory_space<vmem>>, vector<4x16xf32>,
    %c0_315 = arith.constant 0 : index
    %c0_316 = arith.constant 0 : index
    %219 = vector.load %arg18[%c0_315, %c0_316] : memref<36x16xf32, #tpu.memory_space<vmem>>, vector<36x16xf32>
    %220 = arith.truncf %219 : vector<36x16xf32> to vector<36x16xbf16>
    %cst_317 = arith.constant dense<0.000000e+00> : vector<4x16xf32>
    %221 = tpu.matmul %14, %220, %cst_317 {dimension_numbers = #tpu.dot_dimension_numbers<[1], [0], [0], [1], [0, 0, 1, 1], [], []>} : vector<4x36xbf16>, vector<36x16xbf16>, vector<4x16xf32> -> vector<4x16xf32>
    %222 = vector.broadcast %16 : vector<4x1xf32> to vector<4x16xf32>
    %223 = arith.addf %221, %222 : vector<4x16xf32>
    %c0_318 = arith.constant 0 : index
    %c5_319 = arith.constant 5 : index
    %c0_320 = arith.constant 0 : index
    %224 = vector.load %arg19[%c0_318, %c5_319, %c0_320] : memref<4x8x16xf32, #tpu.memory_space<vmem>>, vector<4x1x16xf32>
    %225 = vector.shape_cast %224 : vector<4x1x16xf32> to vector<4x16xf32>
    %226 = vector.shape_cast %223 : vector<4x16xf32> to vector<4x1x16xf32>
    tpu.vector_store %arg19[%c0_318, %c5_319, %c0_320], %226 {strides = array<i32>} : memref<4x8x16xf32, #tpu.memory_space<vmem>>, vector<4x1x16xf32>,
    %c0_321 = arith.constant 0 : index
    %c6_322 = arith.constant 6 : index
    %c0_323 = arith.constant 0 : index
    %227 = vector.load %arg17[%c0_321, %c6_322, %c0_323] : memref<4x10x18xf32, #tpu.memory_space<vmem>>, vector<4x1x16xf32>
    %228 = vector.shape_cast %227 : vector<4x1x16xf32> to vector<4x16xf32>
    %c0_324 = arith.constant 0 : index
    %c0_325 = arith.constant 0 : index
    %229 = vector.load %arg18[%c0_324, %c0_325] : memref<36x16xf32, #tpu.memory_space<vmem>>, vector<4x16xf32>
    tpu.vector_store %arg18[%c0_324, %c0_325], %228 {strides = array<i32>} : memref<36x16xf32, #tpu.memory_space<vmem>>, vector<4x16xf32>,
    %c0_326 = arith.constant 0 : index
    %c6_327 = arith.constant 6 : index
    %c1_328 = arith.constant 1 : index
    %230 = vector.load %arg17[%c0_326, %c6_327, %c1_328] : memref<4x10x18xf32, #tpu.memory_space<vmem>>, vector<4x1x16xf32>
    %231 = vector.shape_cast %230 : vector<4x1x16xf32> to vector<4x16xf32>
    %c4_329 = arith.constant 4 : index
    %c0_330 = arith.constant 0 : index
    %232 = vector.load %arg18[%c4_329, %c0_330] : memref<36x16xf32, #tpu.memory_space<vmem>>, vector<4x16xf32>
    tpu.vector_store %arg18[%c4_329, %c0_330], %231 {strides = array<i32>} : memref<36x16xf32, #tpu.memory_space<vmem>>, vector<4x16xf32>,
    %c0_331 = arith.constant 0 : index
    %c6_332 = arith.constant 6 : index
    %c2_333 = arith.constant 2 : index
    %233 = vector.load %arg17[%c0_331, %c6_332, %c2_333] : memref<4x10x18xf32, #tpu.memory_space<vmem>>, vector<4x1x16xf32>
    %234 = vector.shape_cast %233 : vector<4x1x16xf32> to vector<4x16xf32>
    %c8_334 = arith.constant 8 : index
    %c0_335 = arith.constant 0 : index
    %235 = vector.load %arg18[%c8_334, %c0_335] : memref<36x16xf32, #tpu.memory_space<vmem>>, vector<4x16xf32>
    tpu.vector_store %arg18[%c8_334, %c0_335], %234 {strides = array<i32>} : memref<36x16xf32, #tpu.memory_space<vmem>>, vector<4x16xf32>,
    %c0_336 = arith.constant 0 : index
    %c7_337 = arith.constant 7 : index
    %c0_338 = arith.constant 0 : index
    %236 = vector.load %arg17[%c0_336, %c7_337, %c0_338] : memref<4x10x18xf32, #tpu.memory_space<vmem>>, vector<4x1x16xf32>
    %237 = vector.shape_cast %236 : vector<4x1x16xf32> to vector<4x16xf32>
    %c12_339 = arith.constant 12 : index
    %c0_340 = arith.constant 0 : index
    %238 = vector.load %arg18[%c12_339, %c0_340] : memref<36x16xf32, #tpu.memory_space<vmem>>, vector<4x16xf32>
    tpu.vector_store %arg18[%c12_339, %c0_340], %237 {strides = array<i32>} : memref<36x16xf32, #tpu.memory_space<vmem>>, vector<4x16xf32>,
    %c0_341 = arith.constant 0 : index
    %c7_342 = arith.constant 7 : index
    %c1_343 = arith.constant 1 : index
    %239 = vector.load %arg17[%c0_341, %c7_342, %c1_343] : memref<4x10x18xf32, #tpu.memory_space<vmem>>, vector<4x1x16xf32>
    %240 = vector.shape_cast %239 : vector<4x1x16xf32> to vector<4x16xf32>
    %c16_344 = arith.constant 16 : index
    %c0_345 = arith.constant 0 : index
    %241 = vector.load %arg18[%c16_344, %c0_345] : memref<36x16xf32, #tpu.memory_space<vmem>>, vector<4x16xf32>
    tpu.vector_store %arg18[%c16_344, %c0_345], %240 {strides = array<i32>} : memref<36x16xf32, #tpu.memory_space<vmem>>, vector<4x16xf32>,
    %c0_346 = arith.constant 0 : index
    %c7_347 = arith.constant 7 : index
    %c2_348 = arith.constant 2 : index
    %242 = vector.load %arg17[%c0_346, %c7_347, %c2_348] : memref<4x10x18xf32, #tpu.memory_space<vmem>>, vector<4x1x16xf32>
    %243 = vector.shape_cast %242 : vector<4x1x16xf32> to vector<4x16xf32>
    %c20_349 = arith.constant 20 : index
    %c0_350 = arith.constant 0 : index
    %244 = vector.load %arg18[%c20_349, %c0_350] : memref<36x16xf32, #tpu.memory_space<vmem>>, vector<4x16xf32>
    tpu.vector_store %arg18[%c20_349, %c0_350], %243 {strides = array<i32>} : memref<36x16xf32, #tpu.memory_space<vmem>>, vector<4x16xf32>,
    %c0_351 = arith.constant 0 : index
    %c8_352 = arith.constant 8 : index
    %c0_353 = arith.constant 0 : index
    %245 = vector.load %arg17[%c0_351, %c8_352, %c0_353] : memref<4x10x18xf32, #tpu.memory_space<vmem>>, vector<4x1x16xf32>
    %246 = vector.shape_cast %245 : vector<4x1x16xf32> to vector<4x16xf32>
    %c24_354 = arith.constant 24 : index
    %c0_355 = arith.constant 0 : index
    %247 = vector.load %arg18[%c24_354, %c0_355] : memref<36x16xf32, #tpu.memory_space<vmem>>, vector<4x16xf32>
    tpu.vector_store %arg18[%c24_354, %c0_355], %246 {strides = array<i32>} : memref<36x16xf32, #tpu.memory_space<vmem>>, vector<4x16xf32>,
    %c0_356 = arith.constant 0 : index
    %c8_357 = arith.constant 8 : index
    %c1_358 = arith.constant 1 : index
    %248 = vector.load %arg17[%c0_356, %c8_357, %c1_358] : memref<4x10x18xf32, #tpu.memory_space<vmem>>, vector<4x1x16xf32>
    %249 = vector.shape_cast %248 : vector<4x1x16xf32> to vector<4x16xf32>
    %c28_359 = arith.constant 28 : index
    %c0_360 = arith.constant 0 : index
    %250 = vector.load %arg18[%c28_359, %c0_360] : memref<36x16xf32, #tpu.memory_space<vmem>>, vector<4x16xf32>
    tpu.vector_store %arg18[%c28_359, %c0_360], %249 {strides = array<i32>} : memref<36x16xf32, #tpu.memory_space<vmem>>, vector<4x16xf32>,
    %c0_361 = arith.constant 0 : index
    %c8_362 = arith.constant 8 : index
    %c2_363 = arith.constant 2 : index
    %251 = vector.load %arg17[%c0_361, %c8_362, %c2_363] : memref<4x10x18xf32, #tpu.memory_space<vmem>>, vector<4x1x16xf32>
    %252 = vector.shape_cast %251 : vector<4x1x16xf32> to vector<4x16xf32>
    %c32_364 = arith.constant 32 : index
    %c0_365 = arith.constant 0 : index
    %253 = vector.load %arg18[%c32_364, %c0_365] : memref<36x16xf32, #tpu.memory_space<vmem>>, vector<4x16xf32>
    tpu.vector_store %arg18[%c32_364, %c0_365], %252 {strides = array<i32>} : memref<36x16xf32, #tpu.memory_space<vmem>>, vector<4x16xf32>,
    %c0_366 = arith.constant 0 : index
    %c0_367 = arith.constant 0 : index
    %254 = vector.load %arg18[%c0_366, %c0_367] : memref<36x16xf32, #tpu.memory_space<vmem>>, vector<36x16xf32>
    %255 = arith.truncf %254 : vector<36x16xf32> to vector<36x16xbf16>
    %cst_368 = arith.constant dense<0.000000e+00> : vector<4x16xf32>
    %256 = tpu.matmul %14, %255, %cst_368 {dimension_numbers = #tpu.dot_dimension_numbers<[1], [0], [0], [1], [0, 0, 1, 1], [], []>} : vector<4x36xbf16>, vector<36x16xbf16>, vector<4x16xf32> -> vector<4x16xf32>
    %257 = vector.broadcast %16 : vector<4x1xf32> to vector<4x16xf32>
    %258 = arith.addf %256, %257 : vector<4x16xf32>
    %c0_369 = arith.constant 0 : index
    %c6_370 = arith.constant 6 : index
    %c0_371 = arith.constant 0 : index
    %259 = vector.load %arg19[%c0_369, %c6_370, %c0_371] : memref<4x8x16xf32, #tpu.memory_space<vmem>>, vector<4x1x16xf32>
    %260 = vector.shape_cast %259 : vector<4x1x16xf32> to vector<4x16xf32>
    %261 = vector.shape_cast %258 : vector<4x16xf32> to vector<4x1x16xf32>
    tpu.vector_store %arg19[%c0_369, %c6_370, %c0_371], %261 {strides = array<i32>} : memref<4x8x16xf32, #tpu.memory_space<vmem>>, vector<4x1x16xf32>,
    %c0_372 = arith.constant 0 : index
    %c7_373 = arith.constant 7 : index
    %c0_374 = arith.constant 0 : index
    %262 = vector.load %arg17[%c0_372, %c7_373, %c0_374] : memref<4x10x18xf32, #tpu.memory_space<vmem>>, vector<4x1x16xf32>
    %263 = vector.shape_cast %262 : vector<4x1x16xf32> to vector<4x16xf32>
    %c0_375 = arith.constant 0 : index
    %c0_376 = arith.constant 0 : index
    %264 = vector.load %arg18[%c0_375, %c0_376] : memref<36x16xf32, #tpu.memory_space<vmem>>, vector<4x16xf32>
    tpu.vector_store %arg18[%c0_375, %c0_376], %263 {strides = array<i32>} : memref<36x16xf32, #tpu.memory_space<vmem>>, vector<4x16xf32>,
    %c0_377 = arith.constant 0 : index
    %c7_378 = arith.constant 7 : index
    %c1_379 = arith.constant 1 : index
    %265 = vector.load %arg17[%c0_377, %c7_378, %c1_379] : memref<4x10x18xf32, #tpu.memory_space<vmem>>, vector<4x1x16xf32>
    %266 = vector.shape_cast %265 : vector<4x1x16xf32> to vector<4x16xf32>
    %c4_380 = arith.constant 4 : index
    %c0_381 = arith.constant 0 : index
    %267 = vector.load %arg18[%c4_380, %c0_381] : memref<36x16xf32, #tpu.memory_space<vmem>>, vector<4x16xf32>
    tpu.vector_store %arg18[%c4_380, %c0_381], %266 {strides = array<i32>} : memref<36x16xf32, #tpu.memory_space<vmem>>, vector<4x16xf32>,
    %c0_382 = arith.constant 0 : index
    %c7_383 = arith.constant 7 : index
    %c2_384 = arith.constant 2 : index
    %268 = vector.load %arg17[%c0_382, %c7_383, %c2_384] : memref<4x10x18xf32, #tpu.memory_space<vmem>>, vector<4x1x16xf32>
    %269 = vector.shape_cast %268 : vector<4x1x16xf32> to vector<4x16xf32>
    %c8_385 = arith.constant 8 : index
    %c0_386 = arith.constant 0 : index
    %270 = vector.load %arg18[%c8_385, %c0_386] : memref<36x16xf32, #tpu.memory_space<vmem>>, vector<4x16xf32>
    tpu.vector_store %arg18[%c8_385, %c0_386], %269 {strides = array<i32>} : memref<36x16xf32, #tpu.memory_space<vmem>>, vector<4x16xf32>,
    %c0_387 = arith.constant 0 : index
    %c8_388 = arith.constant 8 : index
    %c0_389 = arith.constant 0 : index
    %271 = vector.load %arg17[%c0_387, %c8_388, %c0_389] : memref<4x10x18xf32, #tpu.memory_space<vmem>>, vector<4x1x16xf32>
    %272 = vector.shape_cast %271 : vector<4x1x16xf32> to vector<4x16xf32>
    %c12_390 = arith.constant 12 : index
    %c0_391 = arith.constant 0 : index
    %273 = vector.load %arg18[%c12_390, %c0_391] : memref<36x16xf32, #tpu.memory_space<vmem>>, vector<4x16xf32>
    tpu.vector_store %arg18[%c12_390, %c0_391], %272 {strides = array<i32>} : memref<36x16xf32, #tpu.memory_space<vmem>>, vector<4x16xf32>,
    %c0_392 = arith.constant 0 : index
    %c8_393 = arith.constant 8 : index
    %c1_394 = arith.constant 1 : index
    %274 = vector.load %arg17[%c0_392, %c8_393, %c1_394] : memref<4x10x18xf32, #tpu.memory_space<vmem>>, vector<4x1x16xf32>
    %275 = vector.shape_cast %274 : vector<4x1x16xf32> to vector<4x16xf32>
    %c16_395 = arith.constant 16 : index
    %c0_396 = arith.constant 0 : index
    %276 = vector.load %arg18[%c16_395, %c0_396] : memref<36x16xf32, #tpu.memory_space<vmem>>, vector<4x16xf32>
    tpu.vector_store %arg18[%c16_395, %c0_396], %275 {strides = array<i32>} : memref<36x16xf32, #tpu.memory_space<vmem>>, vector<4x16xf32>,
    %c0_397 = arith.constant 0 : index
    %c8_398 = arith.constant 8 : index
    %c2_399 = arith.constant 2 : index
    %277 = vector.load %arg17[%c0_397, %c8_398, %c2_399] : memref<4x10x18xf32, #tpu.memory_space<vmem>>, vector<4x1x16xf32>
    %278 = vector.shape_cast %277 : vector<4x1x16xf32> to vector<4x16xf32>
    %c20_400 = arith.constant 20 : index
    %c0_401 = arith.constant 0 : index
    %279 = vector.load %arg18[%c20_400, %c0_401] : memref<36x16xf32, #tpu.memory_space<vmem>>, vector<4x16xf32>
    tpu.vector_store %arg18[%c20_400, %c0_401], %278 {strides = array<i32>} : memref<36x16xf32, #tpu.memory_space<vmem>>, vector<4x16xf32>,
    %c0_402 = arith.constant 0 : index
    %c9 = arith.constant 9 : index
    %c0_403 = arith.constant 0 : index
    %280 = vector.load %arg17[%c0_402, %c9, %c0_403] : memref<4x10x18xf32, #tpu.memory_space<vmem>>, vector<4x1x16xf32>
    %281 = vector.shape_cast %280 : vector<4x1x16xf32> to vector<4x16xf32>
    %c24_404 = arith.constant 24 : index
    %c0_405 = arith.constant 0 : index
    %282 = vector.load %arg18[%c24_404, %c0_405] : memref<36x16xf32, #tpu.memory_space<vmem>>, vector<4x16xf32>
    tpu.vector_store %arg18[%c24_404, %c0_405], %281 {strides = array<i32>} : memref<36x16xf32, #tpu.memory_space<vmem>>, vector<4x16xf32>,
    %c0_406 = arith.constant 0 : index
    %c9_407 = arith.constant 9 : index
    %c1_408 = arith.constant 1 : index
    %283 = vector.load %arg17[%c0_406, %c9_407, %c1_408] : memref<4x10x18xf32, #tpu.memory_space<vmem>>, vector<4x1x16xf32>
    %284 = vector.shape_cast %283 : vector<4x1x16xf32> to vector<4x16xf32>
    %c28_409 = arith.constant 28 : index
    %c0_410 = arith.constant 0 : index
    %285 = vector.load %arg18[%c28_409, %c0_410] : memref<36x16xf32, #tpu.memory_space<vmem>>, vector<4x16xf32>
    tpu.vector_store %arg18[%c28_409, %c0_410], %284 {strides = array<i32>} : memref<36x16xf32, #tpu.memory_space<vmem>>, vector<4x16xf32>,
    %c0_411 = arith.constant 0 : index
    %c9_412 = arith.constant 9 : index
    %c2_413 = arith.constant 2 : index
    %286 = vector.load %arg17[%c0_411, %c9_412, %c2_413] : memref<4x10x18xf32, #tpu.memory_space<vmem>>, vector<4x1x16xf32>
    %287 = vector.shape_cast %286 : vector<4x1x16xf32> to vector<4x16xf32>
    %c32_414 = arith.constant 32 : index
    %c0_415 = arith.constant 0 : index
    %288 = vector.load %arg18[%c32_414, %c0_415] : memref<36x16xf32, #tpu.memory_space<vmem>>, vector<4x16xf32>
    tpu.vector_store %arg18[%c32_414, %c0_415], %287 {strides = array<i32>} : memref<36x16xf32, #tpu.memory_space<vmem>>, vector<4x16xf32>,
    %c0_416 = arith.constant 0 : index
    %c0_417 = arith.constant 0 : index
    %289 = vector.load %arg18[%c0_416, %c0_417] : memref<36x16xf32, #tpu.memory_space<vmem>>, vector<36x16xf32>
    %290 = arith.truncf %289 : vector<36x16xf32> to vector<36x16xbf16>
    %cst_418 = arith.constant dense<0.000000e+00> : vector<4x16xf32>
    %291 = tpu.matmul %14, %290, %cst_418 {dimension_numbers = #tpu.dot_dimension_numbers<[1], [0], [0], [1], [0, 0, 1, 1], [], []>} : vector<4x36xbf16>, vector<36x16xbf16>, vector<4x16xf32> -> vector<4x16xf32>
    %292 = vector.broadcast %16 : vector<4x1xf32> to vector<4x16xf32>
    %293 = arith.addf %291, %292 : vector<4x16xf32>
    %c0_419 = arith.constant 0 : index
    %c7_420 = arith.constant 7 : index
    %c0_421 = arith.constant 0 : index
    %294 = vector.load %arg19[%c0_419, %c7_420, %c0_421] : memref<4x8x16xf32, #tpu.memory_space<vmem>>, vector<4x1x16xf32>
    %295 = vector.shape_cast %294 : vector<4x1x16xf32> to vector<4x16xf32>
    %296 = vector.shape_cast %293 : vector<4x16xf32> to vector<4x1x16xf32>
    tpu.vector_store %arg19[%c0_419, %c7_420, %c0_421], %296 {strides = array<i32>} : memref<4x8x16xf32, #tpu.memory_space<vmem>>, vector<4x1x16xf32>,
    %c0_422 = arith.constant 0 : index
    %c0_423 = arith.constant 0 : index
    %c0_424 = arith.constant 0 : index
    %297 = vector.load %arg19[%c0_422, %c0_423, %c0_424] : memref<4x8x16xf32, #tpu.memory_space<vmem>>, vector<4x8x16xf32>
    %c0_425 = arith.constant 0 : index
    %c0_426 = arith.constant 0 : index
    %c0_427 = arith.constant 0 : index
    %c0_428 = arith.constant 0 : index
    %298 = vector.load %arg4[%c0_425, %c0_426, %c0_427, %c0_428] : memref<2x4x1x1xf32, #tpu.memory_space<vmem>>, vector<1x4x1x1xf32>
    %299 = vector.shape_cast %298 : vector<1x4x1x1xf32> to vector<4x1x1xf32>
    %c0_429 = arith.constant 0 : index
    %c0_430 = arith.constant 0 : index
    %c0_431 = arith.constant 0 : index
    %c0_432 = arith.constant 0 : index
    %300 = vector.load %arg5[%c0_429, %c0_430, %c0_431, %c0_432] : memref<2x4x1x1xf32, #tpu.memory_space<vmem>>, vector<1x4x1x1xf32>
    %301 = vector.shape_cast %300 : vector<1x4x1x1xf32> to vector<4x1x1xf32>
    %302 = vector.extract_strided_slice %297 {offsets = [0, 0, 0], sizes = [2, 8, 16], strides = [1, 1, 1]} : vector<4x8x16xf32> to vector<2x8x16xf32>
    %cst_433 = arith.constant dense<0.000000e+00> : vector<2x8xf32>
    %303 = vector.multi_reduction <add>, %302, %cst_433 [2] : vector<2x8x16xf32> to vector<2x8xf32>
    %304 = vector.shape_cast %303 : vector<2x8xf32> to vector<2x8x1xf32>
    %cst_434 = arith.constant dense<0.000000e+00> : vector<2x1xf32>
    %305 = vector.multi_reduction <add>, %304, %cst_434 [1] : vector<2x8x1xf32> to vector<2x1xf32>
    %306 = vector.shape_cast %305 : vector<2x1xf32> to vector<2x1x1xf32>
    %cst_435 = arith.constant dense<0.000000e+00> : vector<1x1xf32>
    %307 = vector.multi_reduction <add>, %306, %cst_435 [0] : vector<2x1x1xf32> to vector<1x1xf32>
    %308 = vector.shape_cast %307 : vector<1x1xf32> to vector<1x1x1xf32>
    %cst_436 = arith.constant 3.906250e-03 : f32
    %309 = vector.broadcast %cst_436 : f32 to vector<1x1x1xf32>
    %310 = arith.mulf %308, %309 : vector<1x1x1xf32>
    %311 = vector.broadcast %310 : vector<1x1x1xf32> to vector<4x1x1xf32>
    %312 = arith.mulf %1, %311 : vector<4x1x1xf32>
    %313 = vector.extract_strided_slice %297 {offsets = [2, 0, 0], sizes = [2, 8, 16], strides = [1, 1, 1]} : vector<4x8x16xf32> to vector<2x8x16xf32>
    %cst_437 = arith.constant dense<0.000000e+00> : vector<2x8xf32>
    %314 = vector.multi_reduction <add>, %313, %cst_437 [2] : vector<2x8x16xf32> to vector<2x8xf32>
    %315 = vector.shape_cast %314 : vector<2x8xf32> to vector<2x8x1xf32>
    %cst_438 = arith.constant dense<0.000000e+00> : vector<2x1xf32>
    %316 = vector.multi_reduction <add>, %315, %cst_438 [1] : vector<2x8x1xf32> to vector<2x1xf32>
    %317 = vector.shape_cast %316 : vector<2x1xf32> to vector<2x1x1xf32>
    %cst_439 = arith.constant dense<0.000000e+00> : vector<1x1xf32>
    %318 = vector.multi_reduction <add>, %317, %cst_439 [0] : vector<2x1x1xf32> to vector<1x1xf32>
    %319 = vector.shape_cast %318 : vector<1x1xf32> to vector<1x1x1xf32>
    %cst_440 = arith.constant 3.906250e-03 : f32
    %320 = vector.broadcast %cst_440 : f32 to vector<1x1x1xf32>
    %321 = arith.mulf %319, %320 : vector<1x1x1xf32>
    %322 = vector.broadcast %321 : vector<1x1x1xf32> to vector<4x1x1xf32>
    %323 = arith.mulf %3, %322 : vector<4x1x1xf32>
    %324 = arith.addf %312, %323 : vector<4x1x1xf32>
    %325 = vector.broadcast %324 : vector<4x1x1xf32> to vector<4x8x16xf32>
    %326 = arith.subf %297, %325 : vector<4x8x16xf32>
    %327 = vector.extract_strided_slice %326 {offsets = [0, 0, 0], sizes = [2, 8, 16], strides = [1, 1, 1]} : vector<4x8x16xf32> to vector<2x8x16xf32>
    %328 = arith.mulf %327, %327 : vector<2x8x16xf32>
    %cst_441 = arith.constant dense<0.000000e+00> : vector<2x8xf32>
    %329 = vector.multi_reduction <add>, %328, %cst_441 [2] : vector<2x8x16xf32> to vector<2x8xf32>
    %330 = vector.shape_cast %329 : vector<2x8xf32> to vector<2x8x1xf32>
    %cst_442 = arith.constant dense<0.000000e+00> : vector<2x1xf32>
    %331 = vector.multi_reduction <add>, %330, %cst_442 [1] : vector<2x8x1xf32> to vector<2x1xf32>
    %332 = vector.shape_cast %331 : vector<2x1xf32> to vector<2x1x1xf32>
    %cst_443 = arith.constant dense<0.000000e+00> : vector<1x1xf32>
    %333 = vector.multi_reduction <add>, %332, %cst_443 [0] : vector<2x1x1xf32> to vector<1x1xf32>
    %334 = vector.shape_cast %333 : vector<1x1xf32> to vector<1x1x1xf32>
    %cst_444 = arith.constant 3.906250e-03 : f32
    %335 = vector.broadcast %cst_444 : f32 to vector<1x1x1xf32>
    %336 = arith.mulf %334, %335 : vector<1x1x1xf32>
    %337 = vector.broadcast %336 : vector<1x1x1xf32> to vector<4x1x1xf32>
    %338 = arith.mulf %1, %337 : vector<4x1x1xf32>
    %339 = vector.extract_strided_slice %326 {offsets = [2, 0, 0], sizes = [2, 8, 16], strides = [1, 1, 1]} : vector<4x8x16xf32> to vector<2x8x16xf32>
    %340 = arith.mulf %339, %339 : vector<2x8x16xf32>
    %cst_445 = arith.constant dense<0.000000e+00> : vector<2x8xf32>
    %341 = vector.multi_reduction <add>, %340, %cst_445 [2] : vector<2x8x16xf32> to vector<2x8xf32>
    %342 = vector.shape_cast %341 : vector<2x8xf32> to vector<2x8x1xf32>
    %cst_446 = arith.constant dense<0.000000e+00> : vector<2x1xf32>
    %343 = vector.multi_reduction <add>, %342, %cst_446 [1] : vector<2x8x1xf32> to vector<2x1xf32>
    %344 = vector.shape_cast %343 : vector<2x1xf32> to vector<2x1x1xf32>
    %cst_447 = arith.constant dense<0.000000e+00> : vector<1x1xf32>
    %345 = vector.multi_reduction <add>, %344, %cst_447 [0] : vector<2x1x1xf32> to vector<1x1xf32>
    %346 = vector.shape_cast %345 : vector<1x1xf32> to vector<1x1x1xf32>
    %cst_448 = arith.constant 3.906250e-03 : f32
    %347 = vector.broadcast %cst_448 : f32 to vector<1x1x1xf32>
    %348 = arith.mulf %346, %347 : vector<1x1x1xf32>
    %349 = vector.broadcast %348 : vector<1x1x1xf32> to vector<4x1x1xf32>
    %350 = arith.mulf %3, %349 : vector<4x1x1xf32>
    %351 = arith.addf %338, %350 : vector<4x1x1xf32>
    %cst_449 = arith.constant 9.99999974E-6 : f32
    %352 = vector.broadcast %cst_449 : f32 to vector<4x1x1xf32>
    %353 = arith.addf %351, %352 : vector<4x1x1xf32>
    %354 = math.rsqrt %353 : vector<4x1x1xf32>
    %355 = vector.broadcast %354 : vector<4x1x1xf32> to vector<4x8x16xf32>
    %356 = arith.mulf %326, %355 : vector<4x8x16xf32>
    %357 = vector.broadcast %299 : vector<4x1x1xf32> to vector<4x8x16xf32>
    %358 = arith.mulf %356, %357 : vector<4x8x16xf32>
    %359 = vector.broadcast %301 : vector<4x1x1xf32> to vector<4x8x16xf32>
    %360 = arith.addf %358, %359 : vector<4x8x16xf32>
    %cst_450 = arith.constant 0.000000e+00 : f32
    %361 = vector.broadcast %cst_450 : f32 to vector<4x8x16xf32>
    %362 = arith.maximumf %360, %361 : vector<4x8x16xf32>
    %c0_451 = arith.constant 0 : index
    %c1_452 = arith.constant 1 : index
    %c1_453 = arith.constant 1 : index
    %363 = vector.load %arg17[%c0_451, %c1_452, %c1_453] : memref<4x10x18xf32, #tpu.memory_space<vmem>>, vector<4x8x16xf32>
    tpu.vector_store %arg17[%c0_451, %c1_452, %c1_453], %362 {strides = array<i32>} : memref<4x10x18xf32, #tpu.memory_space<vmem>>, vector<4x8x16xf32>,
    %c1_454 = arith.constant 1 : index
    %c0_455 = arith.constant 0 : index
    %c0_456 = arith.constant 0 : index
    %364 = vector.load %arg2[%c1_454, %c0_455, %c0_456] : memref<2x4x36xbf16, #tpu.memory_space<vmem>>, vector<1x4x36xbf16>
    %365 = vector.shape_cast %364 : vector<1x4x36xbf16> to vector<4x36xbf16>
    %c1_457 = arith.constant 1 : index
    %c0_458 = arith.constant 0 : index
    %c0_459 = arith.constant 0 : index
    %366 = vector.load %arg3[%c1_457, %c0_458, %c0_459] : memref<2x4x1xf32, #tpu.memory_space<vmem>>, vector<1x4x1xf32>
    %367 = vector.shape_cast %366 : vector<1x4x1xf32> to vector<4x1xf32>
    %c0_460 = arith.constant 0 : index
    %c0_461 = arith.constant 0 : index
    %c0_462 = arith.constant 0 : index
    %368 = vector.load %arg17[%c0_460, %c0_461, %c0_462] : memref<4x10x18xf32, #tpu.memory_space<vmem>>, vector<4x1x16xf32>
    %369 = vector.shape_cast %368 : vector<4x1x16xf32> to vector<4x16xf32>
    %c0_463 = arith.constant 0 : index
    %c0_464 = arith.constant 0 : index
    %370 = vector.load %arg18[%c0_463, %c0_464] : memref<36x16xf32, #tpu.memory_space<vmem>>, vector<4x16xf32>
    tpu.vector_store %arg18[%c0_463, %c0_464], %369 {strides = array<i32>} : memref<36x16xf32, #tpu.memory_space<vmem>>, vector<4x16xf32>,
    %c0_465 = arith.constant 0 : index
    %c0_466 = arith.constant 0 : index
    %c1_467 = arith.constant 1 : index
    %371 = vector.load %arg17[%c0_465, %c0_466, %c1_467] : memref<4x10x18xf32, #tpu.memory_space<vmem>>, vector<4x1x16xf32>
    %372 = vector.shape_cast %371 : vector<4x1x16xf32> to vector<4x16xf32>
    %c4_468 = arith.constant 4 : index
    %c0_469 = arith.constant 0 : index
    %373 = vector.load %arg18[%c4_468, %c0_469] : memref<36x16xf32, #tpu.memory_space<vmem>>, vector<4x16xf32>
    tpu.vector_store %arg18[%c4_468, %c0_469], %372 {strides = array<i32>} : memref<36x16xf32, #tpu.memory_space<vmem>>, vector<4x16xf32>,
    %c0_470 = arith.constant 0 : index
    %c0_471 = arith.constant 0 : index
    %c2_472 = arith.constant 2 : index
    %374 = vector.load %arg17[%c0_470, %c0_471, %c2_472] : memref<4x10x18xf32, #tpu.memory_space<vmem>>, vector<4x1x16xf32>
    %375 = vector.shape_cast %374 : vector<4x1x16xf32> to vector<4x16xf32>
    %c8_473 = arith.constant 8 : index
    %c0_474 = arith.constant 0 : index
    %376 = vector.load %arg18[%c8_473, %c0_474] : memref<36x16xf32, #tpu.memory_space<vmem>>, vector<4x16xf32>
    tpu.vector_store %arg18[%c8_473, %c0_474], %375 {strides = array<i32>} : memref<36x16xf32, #tpu.memory_space<vmem>>, vector<4x16xf32>,
    %c0_475 = arith.constant 0 : index
    %c1_476 = arith.constant 1 : index
    %c0_477 = arith.constant 0 : index
    %377 = vector.load %arg17[%c0_475, %c1_476, %c0_477] : memref<4x10x18xf32, #tpu.memory_space<vmem>>, vector<4x1x16xf32>
    %378 = vector.shape_cast %377 : vector<4x1x16xf32> to vector<4x16xf32>
    %c12_478 = arith.constant 12 : index
    %c0_479 = arith.constant 0 : index
    %379 = vector.load %arg18[%c12_478, %c0_479] : memref<36x16xf32, #tpu.memory_space<vmem>>, vector<4x16xf32>
    tpu.vector_store %arg18[%c12_478, %c0_479], %378 {strides = array<i32>} : memref<36x16xf32, #tpu.memory_space<vmem>>, vector<4x16xf32>,
    %c0_480 = arith.constant 0 : index
    %c1_481 = arith.constant 1 : index
    %c1_482 = arith.constant 1 : index
    %380 = vector.load %arg17[%c0_480, %c1_481, %c1_482] : memref<4x10x18xf32, #tpu.memory_space<vmem>>, vector<4x1x16xf32>
    %381 = vector.shape_cast %380 : vector<4x1x16xf32> to vector<4x16xf32>
    %c16_483 = arith.constant 16 : index
    %c0_484 = arith.constant 0 : index
    %382 = vector.load %arg18[%c16_483, %c0_484] : memref<36x16xf32, #tpu.memory_space<vmem>>, vector<4x16xf32>
    tpu.vector_store %arg18[%c16_483, %c0_484], %381 {strides = array<i32>} : memref<36x16xf32, #tpu.memory_space<vmem>>, vector<4x16xf32>,
    %c0_485 = arith.constant 0 : index
    %c1_486 = arith.constant 1 : index
    %c2_487 = arith.constant 2 : index
    %383 = vector.load %arg17[%c0_485, %c1_486, %c2_487] : memref<4x10x18xf32, #tpu.memory_space<vmem>>, vector<4x1x16xf32>
    %384 = vector.shape_cast %383 : vector<4x1x16xf32> to vector<4x16xf32>
    %c20_488 = arith.constant 20 : index
    %c0_489 = arith.constant 0 : index
    %385 = vector.load %arg18[%c20_488, %c0_489] : memref<36x16xf32, #tpu.memory_space<vmem>>, vector<4x16xf32>
    tpu.vector_store %arg18[%c20_488, %c0_489], %384 {strides = array<i32>} : memref<36x16xf32, #tpu.memory_space<vmem>>, vector<4x16xf32>,
    %c0_490 = arith.constant 0 : index
    %c2_491 = arith.constant 2 : index
    %c0_492 = arith.constant 0 : index
    %386 = vector.load %arg17[%c0_490, %c2_491, %c0_492] : memref<4x10x18xf32, #tpu.memory_space<vmem>>, vector<4x1x16xf32>
    %387 = vector.shape_cast %386 : vector<4x1x16xf32> to vector<4x16xf32>
    %c24_493 = arith.constant 24 : index
    %c0_494 = arith.constant 0 : index
    %388 = vector.load %arg18[%c24_493, %c0_494] : memref<36x16xf32, #tpu.memory_space<vmem>>, vector<4x16xf32>
    tpu.vector_store %arg18[%c24_493, %c0_494], %387 {strides = array<i32>} : memref<36x16xf32, #tpu.memory_space<vmem>>, vector<4x16xf32>,
    %c0_495 = arith.constant 0 : index
    %c2_496 = arith.constant 2 : index
    %c1_497 = arith.constant 1 : index
    %389 = vector.load %arg17[%c0_495, %c2_496, %c1_497] : memref<4x10x18xf32, #tpu.memory_space<vmem>>, vector<4x1x16xf32>
    %390 = vector.shape_cast %389 : vector<4x1x16xf32> to vector<4x16xf32>
    %c28_498 = arith.constant 28 : index
    %c0_499 = arith.constant 0 : index
    %391 = vector.load %arg18[%c28_498, %c0_499] : memref<36x16xf32, #tpu.memory_space<vmem>>, vector<4x16xf32>
    tpu.vector_store %arg18[%c28_498, %c0_499], %390 {strides = array<i32>} : memref<36x16xf32, #tpu.memory_space<vmem>>, vector<4x16xf32>,
    %c0_500 = arith.constant 0 : index
    %c2_501 = arith.constant 2 : index
    %c2_502 = arith.constant 2 : index
    %392 = vector.load %arg17[%c0_500, %c2_501, %c2_502] : memref<4x10x18xf32, #tpu.memory_space<vmem>>, vector<4x1x16xf32>
    %393 = vector.shape_cast %392 : vector<4x1x16xf32> to vector<4x16xf32>
    %c32_503 = arith.constant 32 : index
    %c0_504 = arith.constant 0 : index
    %394 = vector.load %arg18[%c32_503, %c0_504] : memref<36x16xf32, #tpu.memory_space<vmem>>, vector<4x16xf32>
    tpu.vector_store %arg18[%c32_503, %c0_504], %393 {strides = array<i32>} : memref<36x16xf32, #tpu.memory_space<vmem>>, vector<4x16xf32>,
    %c0_505 = arith.constant 0 : index
    %c0_506 = arith.constant 0 : index
    %395 = vector.load %arg18[%c0_505, %c0_506] : memref<36x16xf32, #tpu.memory_space<vmem>>, vector<36x16xf32>
    %396 = arith.truncf %395 : vector<36x16xf32> to vector<36x16xbf16>
    %cst_507 = arith.constant dense<0.000000e+00> : vector<4x16xf32>
    %397 = tpu.matmul %365, %396, %cst_507 {dimension_numbers = #tpu.dot_dimension_numbers<[1], [0], [0], [1], [0, 0, 1, 1], [], []>} : vector<4x36xbf16>, vector<36x16xbf16>, vector<4x16xf32> -> vector<4x16xf32>
    %398 = vector.broadcast %367 : vector<4x1xf32> to vector<4x16xf32>
    %399 = arith.addf %397, %398 : vector<4x16xf32>
    %c0_508 = arith.constant 0 : index
    %c0_509 = arith.constant 0 : index
    %c0_510 = arith.constant 0 : index
    %400 = vector.load %arg19[%c0_508, %c0_509, %c0_510] : memref<4x8x16xf32, #tpu.memory_space<vmem>>, vector<4x1x16xf32>
    %401 = vector.shape_cast %400 : vector<4x1x16xf32> to vector<4x16xf32>
    %402 = vector.shape_cast %399 : vector<4x16xf32> to vector<4x1x16xf32>
    tpu.vector_store %arg19[%c0_508, %c0_509, %c0_510], %402 {strides = array<i32>} : memref<4x8x16xf32, #tpu.memory_space<vmem>>, vector<4x1x16xf32>,
    %c0_511 = arith.constant 0 : index
    %c1_512 = arith.constant 1 : index
    %c0_513 = arith.constant 0 : index
    %403 = vector.load %arg17[%c0_511, %c1_512, %c0_513] : memref<4x10x18xf32, #tpu.memory_space<vmem>>, vector<4x1x16xf32>
    %404 = vector.shape_cast %403 : vector<4x1x16xf32> to vector<4x16xf32>
    %c0_514 = arith.constant 0 : index
    %c0_515 = arith.constant 0 : index
    %405 = vector.load %arg18[%c0_514, %c0_515] : memref<36x16xf32, #tpu.memory_space<vmem>>, vector<4x16xf32>
    tpu.vector_store %arg18[%c0_514, %c0_515], %404 {strides = array<i32>} : memref<36x16xf32, #tpu.memory_space<vmem>>, vector<4x16xf32>,
    %c0_516 = arith.constant 0 : index
    %c1_517 = arith.constant 1 : index
    %c1_518 = arith.constant 1 : index
    %406 = vector.load %arg17[%c0_516, %c1_517, %c1_518] : memref<4x10x18xf32, #tpu.memory_space<vmem>>, vector<4x1x16xf32>
    %407 = vector.shape_cast %406 : vector<4x1x16xf32> to vector<4x16xf32>
    %c4_519 = arith.constant 4 : index
    %c0_520 = arith.constant 0 : index
    %408 = vector.load %arg18[%c4_519, %c0_520] : memref<36x16xf32, #tpu.memory_space<vmem>>, vector<4x16xf32>
    tpu.vector_store %arg18[%c4_519, %c0_520], %407 {strides = array<i32>} : memref<36x16xf32, #tpu.memory_space<vmem>>, vector<4x16xf32>,
    %c0_521 = arith.constant 0 : index
    %c1_522 = arith.constant 1 : index
    %c2_523 = arith.constant 2 : index
    %409 = vector.load %arg17[%c0_521, %c1_522, %c2_523] : memref<4x10x18xf32, #tpu.memory_space<vmem>>, vector<4x1x16xf32>
    %410 = vector.shape_cast %409 : vector<4x1x16xf32> to vector<4x16xf32>
    %c8_524 = arith.constant 8 : index
    %c0_525 = arith.constant 0 : index
    %411 = vector.load %arg18[%c8_524, %c0_525] : memref<36x16xf32, #tpu.memory_space<vmem>>, vector<4x16xf32>
    tpu.vector_store %arg18[%c8_524, %c0_525], %410 {strides = array<i32>} : memref<36x16xf32, #tpu.memory_space<vmem>>, vector<4x16xf32>,
    %c0_526 = arith.constant 0 : index
    %c2_527 = arith.constant 2 : index
    %c0_528 = arith.constant 0 : index
    %412 = vector.load %arg17[%c0_526, %c2_527, %c0_528] : memref<4x10x18xf32, #tpu.memory_space<vmem>>, vector<4x1x16xf32>
    %413 = vector.shape_cast %412 : vector<4x1x16xf32> to vector<4x16xf32>
    %c12_529 = arith.constant 12 : index
    %c0_530 = arith.constant 0 : index
    %414 = vector.load %arg18[%c12_529, %c0_530] : memref<36x16xf32, #tpu.memory_space<vmem>>, vector<4x16xf32>
    tpu.vector_store %arg18[%c12_529, %c0_530], %413 {strides = array<i32>} : memref<36x16xf32, #tpu.memory_space<vmem>>, vector<4x16xf32>,
    %c0_531 = arith.constant 0 : index
    %c2_532 = arith.constant 2 : index
    %c1_533 = arith.constant 1 : index
    %415 = vector.load %arg17[%c0_531, %c2_532, %c1_533] : memref<4x10x18xf32, #tpu.memory_space<vmem>>, vector<4x1x16xf32>
    %416 = vector.shape_cast %415 : vector<4x1x16xf32> to vector<4x16xf32>
    %c16_534 = arith.constant 16 : index
    %c0_535 = arith.constant 0 : index
    %417 = vector.load %arg18[%c16_534, %c0_535] : memref<36x16xf32, #tpu.memory_space<vmem>>, vector<4x16xf32>
    tpu.vector_store %arg18[%c16_534, %c0_535], %416 {strides = array<i32>} : memref<36x16xf32, #tpu.memory_space<vmem>>, vector<4x16xf32>,
    %c0_536 = arith.constant 0 : index
    %c2_537 = arith.constant 2 : index
    %c2_538 = arith.constant 2 : index
    %418 = vector.load %arg17[%c0_536, %c2_537, %c2_538] : memref<4x10x18xf32, #tpu.memory_space<vmem>>, vector<4x1x16xf32>
    %419 = vector.shape_cast %418 : vector<4x1x16xf32> to vector<4x16xf32>
    %c20_539 = arith.constant 20 : index
    %c0_540 = arith.constant 0 : index
    %420 = vector.load %arg18[%c20_539, %c0_540] : memref<36x16xf32, #tpu.memory_space<vmem>>, vector<4x16xf32>
    tpu.vector_store %arg18[%c20_539, %c0_540], %419 {strides = array<i32>} : memref<36x16xf32, #tpu.memory_space<vmem>>, vector<4x16xf32>,
    %c0_541 = arith.constant 0 : index
    %c3_542 = arith.constant 3 : index
    %c0_543 = arith.constant 0 : index
    %421 = vector.load %arg17[%c0_541, %c3_542, %c0_543] : memref<4x10x18xf32, #tpu.memory_space<vmem>>, vector<4x1x16xf32>
    %422 = vector.shape_cast %421 : vector<4x1x16xf32> to vector<4x16xf32>
    %c24_544 = arith.constant 24 : index
    %c0_545 = arith.constant 0 : index
    %423 = vector.load %arg18[%c24_544, %c0_545] : memref<36x16xf32, #tpu.memory_space<vmem>>, vector<4x16xf32>
    tpu.vector_store %arg18[%c24_544, %c0_545], %422 {strides = array<i32>} : memref<36x16xf32, #tpu.memory_space<vmem>>, vector<4x16xf32>,
    %c0_546 = arith.constant 0 : index
    %c3_547 = arith.constant 3 : index
    %c1_548 = arith.constant 1 : index
    %424 = vector.load %arg17[%c0_546, %c3_547, %c1_548] : memref<4x10x18xf32, #tpu.memory_space<vmem>>, vector<4x1x16xf32>
    %425 = vector.shape_cast %424 : vector<4x1x16xf32> to vector<4x16xf32>
    %c28_549 = arith.constant 28 : index
    %c0_550 = arith.constant 0 : index
    %426 = vector.load %arg18[%c28_549, %c0_550] : memref<36x16xf32, #tpu.memory_space<vmem>>, vector<4x16xf32>
    tpu.vector_store %arg18[%c28_549, %c0_550], %425 {strides = array<i32>} : memref<36x16xf32, #tpu.memory_space<vmem>>, vector<4x16xf32>,
    %c0_551 = arith.constant 0 : index
    %c3_552 = arith.constant 3 : index
    %c2_553 = arith.constant 2 : index
    %427 = vector.load %arg17[%c0_551, %c3_552, %c2_553] : memref<4x10x18xf32, #tpu.memory_space<vmem>>, vector<4x1x16xf32>
    %428 = vector.shape_cast %427 : vector<4x1x16xf32> to vector<4x16xf32>
    %c32_554 = arith.constant 32 : index
    %c0_555 = arith.constant 0 : index
    %429 = vector.load %arg18[%c32_554, %c0_555] : memref<36x16xf32, #tpu.memory_space<vmem>>, vector<4x16xf32>
    tpu.vector_store %arg18[%c32_554, %c0_555], %428 {strides = array<i32>} : memref<36x16xf32, #tpu.memory_space<vmem>>, vector<4x16xf32>,
    %c0_556 = arith.constant 0 : index
    %c0_557 = arith.constant 0 : index
    %430 = vector.load %arg18[%c0_556, %c0_557] : memref<36x16xf32, #tpu.memory_space<vmem>>, vector<36x16xf32>
    %431 = arith.truncf %430 : vector<36x16xf32> to vector<36x16xbf16>
    %cst_558 = arith.constant dense<0.000000e+00> : vector<4x16xf32>
    %432 = tpu.matmul %365, %431, %cst_558 {dimension_numbers = #tpu.dot_dimension_numbers<[1], [0], [0], [1], [0, 0, 1, 1], [], []>} : vector<4x36xbf16>, vector<36x16xbf16>, vector<4x16xf32> -> vector<4x16xf32>
    %433 = vector.broadcast %367 : vector<4x1xf32> to vector<4x16xf32>
    %434 = arith.addf %432, %433 : vector<4x16xf32>
    %c0_559 = arith.constant 0 : index
    %c1_560 = arith.constant 1 : index
    %c0_561 = arith.constant 0 : index
    %435 = vector.load %arg19[%c0_559, %c1_560, %c0_561] : memref<4x8x16xf32, #tpu.memory_space<vmem>>, vector<4x1x16xf32>
    %436 = vector.shape_cast %435 : vector<4x1x16xf32> to vector<4x16xf32>
    %437 = vector.shape_cast %434 : vector<4x16xf32> to vector<4x1x16xf32>
    tpu.vector_store %arg19[%c0_559, %c1_560, %c0_561], %437 {strides = array<i32>} : memref<4x8x16xf32, #tpu.memory_space<vmem>>, vector<4x1x16xf32>,
    %c0_562 = arith.constant 0 : index
    %c2_563 = arith.constant 2 : index
    %c0_564 = arith.constant 0 : index
    %438 = vector.load %arg17[%c0_562, %c2_563, %c0_564] : memref<4x10x18xf32, #tpu.memory_space<vmem>>, vector<4x1x16xf32>
    %439 = vector.shape_cast %438 : vector<4x1x16xf32> to vector<4x16xf32>
    %c0_565 = arith.constant 0 : index
    %c0_566 = arith.constant 0 : index
    %440 = vector.load %arg18[%c0_565, %c0_566] : memref<36x16xf32, #tpu.memory_space<vmem>>, vector<4x16xf32>
    tpu.vector_store %arg18[%c0_565, %c0_566], %439 {strides = array<i32>} : memref<36x16xf32, #tpu.memory_space<vmem>>, vector<4x16xf32>,
    %c0_567 = arith.constant 0 : index
    %c2_568 = arith.constant 2 : index
    %c1_569 = arith.constant 1 : index
    %441 = vector.load %arg17[%c0_567, %c2_568, %c1_569] : memref<4x10x18xf32, #tpu.memory_space<vmem>>, vector<4x1x16xf32>
    %442 = vector.shape_cast %441 : vector<4x1x16xf32> to vector<4x16xf32>
    %c4_570 = arith.constant 4 : index
    %c0_571 = arith.constant 0 : index
    %443 = vector.load %arg18[%c4_570, %c0_571] : memref<36x16xf32, #tpu.memory_space<vmem>>, vector<4x16xf32>
    tpu.vector_store %arg18[%c4_570, %c0_571], %442 {strides = array<i32>} : memref<36x16xf32, #tpu.memory_space<vmem>>, vector<4x16xf32>,
    %c0_572 = arith.constant 0 : index
    %c2_573 = arith.constant 2 : index
    %c2_574 = arith.constant 2 : index
    %444 = vector.load %arg17[%c0_572, %c2_573, %c2_574] : memref<4x10x18xf32, #tpu.memory_space<vmem>>, vector<4x1x16xf32>
    %445 = vector.shape_cast %444 : vector<4x1x16xf32> to vector<4x16xf32>
    %c8_575 = arith.constant 8 : index
    %c0_576 = arith.constant 0 : index
    %446 = vector.load %arg18[%c8_575, %c0_576] : memref<36x16xf32, #tpu.memory_space<vmem>>, vector<4x16xf32>
    tpu.vector_store %arg18[%c8_575, %c0_576], %445 {strides = array<i32>} : memref<36x16xf32, #tpu.memory_space<vmem>>, vector<4x16xf32>,
    %c0_577 = arith.constant 0 : index
    %c3_578 = arith.constant 3 : index
    %c0_579 = arith.constant 0 : index
    %447 = vector.load %arg17[%c0_577, %c3_578, %c0_579] : memref<4x10x18xf32, #tpu.memory_space<vmem>>, vector<4x1x16xf32>
    %448 = vector.shape_cast %447 : vector<4x1x16xf32> to vector<4x16xf32>
    %c12_580 = arith.constant 12 : index
    %c0_581 = arith.constant 0 : index
    %449 = vector.load %arg18[%c12_580, %c0_581] : memref<36x16xf32, #tpu.memory_space<vmem>>, vector<4x16xf32>
    tpu.vector_store %arg18[%c12_580, %c0_581], %448 {strides = array<i32>} : memref<36x16xf32, #tpu.memory_space<vmem>>, vector<4x16xf32>,
    %c0_582 = arith.constant 0 : index
    %c3_583 = arith.constant 3 : index
    %c1_584 = arith.constant 1 : index
    %450 = vector.load %arg17[%c0_582, %c3_583, %c1_584] : memref<4x10x18xf32, #tpu.memory_space<vmem>>, vector<4x1x16xf32>
    %451 = vector.shape_cast %450 : vector<4x1x16xf32> to vector<4x16xf32>
    %c16_585 = arith.constant 16 : index
    %c0_586 = arith.constant 0 : index
    %452 = vector.load %arg18[%c16_585, %c0_586] : memref<36x16xf32, #tpu.memory_space<vmem>>, vector<4x16xf32>
    tpu.vector_store %arg18[%c16_585, %c0_586], %451 {strides = array<i32>} : memref<36x16xf32, #tpu.memory_space<vmem>>, vector<4x16xf32>,
    %c0_587 = arith.constant 0 : index
    %c3_588 = arith.constant 3 : index
    %c2_589 = arith.constant 2 : index
    %453 = vector.load %arg17[%c0_587, %c3_588, %c2_589] : memref<4x10x18xf32, #tpu.memory_space<vmem>>, vector<4x1x16xf32>
    %454 = vector.shape_cast %453 : vector<4x1x16xf32> to vector<4x16xf32>
    %c20_590 = arith.constant 20 : index
    %c0_591 = arith.constant 0 : index
    %455 = vector.load %arg18[%c20_590, %c0_591] : memref<36x16xf32, #tpu.memory_space<vmem>>, vector<4x16xf32>
    tpu.vector_store %arg18[%c20_590, %c0_591], %454 {strides = array<i32>} : memref<36x16xf32, #tpu.memory_space<vmem>>, vector<4x16xf32>,
    %c0_592 = arith.constant 0 : index
    %c4_593 = arith.constant 4 : index
    %c0_594 = arith.constant 0 : index
    %456 = vector.load %arg17[%c0_592, %c4_593, %c0_594] : memref<4x10x18xf32, #tpu.memory_space<vmem>>, vector<4x1x16xf32>
    %457 = vector.shape_cast %456 : vector<4x1x16xf32> to vector<4x16xf32>
    %c24_595 = arith.constant 24 : index
    %c0_596 = arith.constant 0 : index
    %458 = vector.load %arg18[%c24_595, %c0_596] : memref<36x16xf32, #tpu.memory_space<vmem>>, vector<4x16xf32>
    tpu.vector_store %arg18[%c24_595, %c0_596], %457 {strides = array<i32>} : memref<36x16xf32, #tpu.memory_space<vmem>>, vector<4x16xf32>,
    %c0_597 = arith.constant 0 : index
    %c4_598 = arith.constant 4 : index
    %c1_599 = arith.constant 1 : index
    %459 = vector.load %arg17[%c0_597, %c4_598, %c1_599] : memref<4x10x18xf32, #tpu.memory_space<vmem>>, vector<4x1x16xf32>
    %460 = vector.shape_cast %459 : vector<4x1x16xf32> to vector<4x16xf32>
    %c28_600 = arith.constant 28 : index
    %c0_601 = arith.constant 0 : index
    %461 = vector.load %arg18[%c28_600, %c0_601] : memref<36x16xf32, #tpu.memory_space<vmem>>, vector<4x16xf32>
    tpu.vector_store %arg18[%c28_600, %c0_601], %460 {strides = array<i32>} : memref<36x16xf32, #tpu.memory_space<vmem>>, vector<4x16xf32>,
    %c0_602 = arith.constant 0 : index
    %c4_603 = arith.constant 4 : index
    %c2_604 = arith.constant 2 : index
    %462 = vector.load %arg17[%c0_602, %c4_603, %c2_604] : memref<4x10x18xf32, #tpu.memory_space<vmem>>, vector<4x1x16xf32>
    %463 = vector.shape_cast %462 : vector<4x1x16xf32> to vector<4x16xf32>
    %c32_605 = arith.constant 32 : index
    %c0_606 = arith.constant 0 : index
    %464 = vector.load %arg18[%c32_605, %c0_606] : memref<36x16xf32, #tpu.memory_space<vmem>>, vector<4x16xf32>
    tpu.vector_store %arg18[%c32_605, %c0_606], %463 {strides = array<i32>} : memref<36x16xf32, #tpu.memory_space<vmem>>, vector<4x16xf32>,
    %c0_607 = arith.constant 0 : index
    %c0_608 = arith.constant 0 : index
    %465 = vector.load %arg18[%c0_607, %c0_608] : memref<36x16xf32, #tpu.memory_space<vmem>>, vector<36x16xf32>
    %466 = arith.truncf %465 : vector<36x16xf32> to vector<36x16xbf16>
    %cst_609 = arith.constant dense<0.000000e+00> : vector<4x16xf32>
    %467 = tpu.matmul %365, %466, %cst_609 {dimension_numbers = #tpu.dot_dimension_numbers<[1], [0], [0], [1], [0, 0, 1, 1], [], []>} : vector<4x36xbf16>, vector<36x16xbf16>, vector<4x16xf32> -> vector<4x16xf32>
    %468 = vector.broadcast %367 : vector<4x1xf32> to vector<4x16xf32>
    %469 = arith.addf %467, %468 : vector<4x16xf32>
    %c0_610 = arith.constant 0 : index
    %c2_611 = arith.constant 2 : index
    %c0_612 = arith.constant 0 : index
    %470 = vector.load %arg19[%c0_610, %c2_611, %c0_612] : memref<4x8x16xf32, #tpu.memory_space<vmem>>, vector<4x1x16xf32>
    %471 = vector.shape_cast %470 : vector<4x1x16xf32> to vector<4x16xf32>
    %472 = vector.shape_cast %469 : vector<4x16xf32> to vector<4x1x16xf32>
    tpu.vector_store %arg19[%c0_610, %c2_611, %c0_612], %472 {strides = array<i32>} : memref<4x8x16xf32, #tpu.memory_space<vmem>>, vector<4x1x16xf32>,
    %c0_613 = arith.constant 0 : index
    %c3_614 = arith.constant 3 : index
    %c0_615 = arith.constant 0 : index
    %473 = vector.load %arg17[%c0_613, %c3_614, %c0_615] : memref<4x10x18xf32, #tpu.memory_space<vmem>>, vector<4x1x16xf32>
    %474 = vector.shape_cast %473 : vector<4x1x16xf32> to vector<4x16xf32>
    %c0_616 = arith.constant 0 : index
    %c0_617 = arith.constant 0 : index
    %475 = vector.load %arg18[%c0_616, %c0_617] : memref<36x16xf32, #tpu.memory_space<vmem>>, vector<4x16xf32>
    tpu.vector_store %arg18[%c0_616, %c0_617], %474 {strides = array<i32>} : memref<36x16xf32, #tpu.memory_space<vmem>>, vector<4x16xf32>,
    %c0_618 = arith.constant 0 : index
    %c3_619 = arith.constant 3 : index
    %c1_620 = arith.constant 1 : index
    %476 = vector.load %arg17[%c0_618, %c3_619, %c1_620] : memref<4x10x18xf32, #tpu.memory_space<vmem>>, vector<4x1x16xf32>
    %477 = vector.shape_cast %476 : vector<4x1x16xf32> to vector<4x16xf32>
    %c4_621 = arith.constant 4 : index
    %c0_622 = arith.constant 0 : index
    %478 = vector.load %arg18[%c4_621, %c0_622] : memref<36x16xf32, #tpu.memory_space<vmem>>, vector<4x16xf32>
    tpu.vector_store %arg18[%c4_621, %c0_622], %477 {strides = array<i32>} : memref<36x16xf32, #tpu.memory_space<vmem>>, vector<4x16xf32>,
    %c0_623 = arith.constant 0 : index
    %c3_624 = arith.constant 3 : index
    %c2_625 = arith.constant 2 : index
    %479 = vector.load %arg17[%c0_623, %c3_624, %c2_625] : memref<4x10x18xf32, #tpu.memory_space<vmem>>, vector<4x1x16xf32>
    %480 = vector.shape_cast %479 : vector<4x1x16xf32> to vector<4x16xf32>
    %c8_626 = arith.constant 8 : index
    %c0_627 = arith.constant 0 : index
    %481 = vector.load %arg18[%c8_626, %c0_627] : memref<36x16xf32, #tpu.memory_space<vmem>>, vector<4x16xf32>
    tpu.vector_store %arg18[%c8_626, %c0_627], %480 {strides = array<i32>} : memref<36x16xf32, #tpu.memory_space<vmem>>, vector<4x16xf32>,
    %c0_628 = arith.constant 0 : index
    %c4_629 = arith.constant 4 : index
    %c0_630 = arith.constant 0 : index
    %482 = vector.load %arg17[%c0_628, %c4_629, %c0_630] : memref<4x10x18xf32, #tpu.memory_space<vmem>>, vector<4x1x16xf32>
    %483 = vector.shape_cast %482 : vector<4x1x16xf32> to vector<4x16xf32>
    %c12_631 = arith.constant 12 : index
    %c0_632 = arith.constant 0 : index
    %484 = vector.load %arg18[%c12_631, %c0_632] : memref<36x16xf32, #tpu.memory_space<vmem>>, vector<4x16xf32>
    tpu.vector_store %arg18[%c12_631, %c0_632], %483 {strides = array<i32>} : memref<36x16xf32, #tpu.memory_space<vmem>>, vector<4x16xf32>,
    %c0_633 = arith.constant 0 : index
    %c4_634 = arith.constant 4 : index
    %c1_635 = arith.constant 1 : index
    %485 = vector.load %arg17[%c0_633, %c4_634, %c1_635] : memref<4x10x18xf32, #tpu.memory_space<vmem>>, vector<4x1x16xf32>
    %486 = vector.shape_cast %485 : vector<4x1x16xf32> to vector<4x16xf32>
    %c16_636 = arith.constant 16 : index
    %c0_637 = arith.constant 0 : index
    %487 = vector.load %arg18[%c16_636, %c0_637] : memref<36x16xf32, #tpu.memory_space<vmem>>, vector<4x16xf32>
    tpu.vector_store %arg18[%c16_636, %c0_637], %486 {strides = array<i32>} : memref<36x16xf32, #tpu.memory_space<vmem>>, vector<4x16xf32>,
    %c0_638 = arith.constant 0 : index
    %c4_639 = arith.constant 4 : index
    %c2_640 = arith.constant 2 : index
    %488 = vector.load %arg17[%c0_638, %c4_639, %c2_640] : memref<4x10x18xf32, #tpu.memory_space<vmem>>, vector<4x1x16xf32>
    %489 = vector.shape_cast %488 : vector<4x1x16xf32> to vector<4x16xf32>
    %c20_641 = arith.constant 20 : index
    %c0_642 = arith.constant 0 : index
    %490 = vector.load %arg18[%c20_641, %c0_642] : memref<36x16xf32, #tpu.memory_space<vmem>>, vector<4x16xf32>
    tpu.vector_store %arg18[%c20_641, %c0_642], %489 {strides = array<i32>} : memref<36x16xf32, #tpu.memory_space<vmem>>, vector<4x16xf32>,
    %c0_643 = arith.constant 0 : index
    %c5_644 = arith.constant 5 : index
    %c0_645 = arith.constant 0 : index
    %491 = vector.load %arg17[%c0_643, %c5_644, %c0_645] : memref<4x10x18xf32, #tpu.memory_space<vmem>>, vector<4x1x16xf32>
    %492 = vector.shape_cast %491 : vector<4x1x16xf32> to vector<4x16xf32>
    %c24_646 = arith.constant 24 : index
    %c0_647 = arith.constant 0 : index
    %493 = vector.load %arg18[%c24_646, %c0_647] : memref<36x16xf32, #tpu.memory_space<vmem>>, vector<4x16xf32>
    tpu.vector_store %arg18[%c24_646, %c0_647], %492 {strides = array<i32>} : memref<36x16xf32, #tpu.memory_space<vmem>>, vector<4x16xf32>,
    %c0_648 = arith.constant 0 : index
    %c5_649 = arith.constant 5 : index
    %c1_650 = arith.constant 1 : index
    %494 = vector.load %arg17[%c0_648, %c5_649, %c1_650] : memref<4x10x18xf32, #tpu.memory_space<vmem>>, vector<4x1x16xf32>
    %495 = vector.shape_cast %494 : vector<4x1x16xf32> to vector<4x16xf32>
    %c28_651 = arith.constant 28 : index
    %c0_652 = arith.constant 0 : index
    %496 = vector.load %arg18[%c28_651, %c0_652] : memref<36x16xf32, #tpu.memory_space<vmem>>, vector<4x16xf32>
    tpu.vector_store %arg18[%c28_651, %c0_652], %495 {strides = array<i32>} : memref<36x16xf32, #tpu.memory_space<vmem>>, vector<4x16xf32>,
    %c0_653 = arith.constant 0 : index
    %c5_654 = arith.constant 5 : index
    %c2_655 = arith.constant 2 : index
    %497 = vector.load %arg17[%c0_653, %c5_654, %c2_655] : memref<4x10x18xf32, #tpu.memory_space<vmem>>, vector<4x1x16xf32>
    %498 = vector.shape_cast %497 : vector<4x1x16xf32> to vector<4x16xf32>
    %c32_656 = arith.constant 32 : index
    %c0_657 = arith.constant 0 : index
    %499 = vector.load %arg18[%c32_656, %c0_657] : memref<36x16xf32, #tpu.memory_space<vmem>>, vector<4x16xf32>
    tpu.vector_store %arg18[%c32_656, %c0_657], %498 {strides = array<i32>} : memref<36x16xf32, #tpu.memory_space<vmem>>, vector<4x16xf32>,
    %c0_658 = arith.constant 0 : index
    %c0_659 = arith.constant 0 : index
    %500 = vector.load %arg18[%c0_658, %c0_659] : memref<36x16xf32, #tpu.memory_space<vmem>>, vector<36x16xf32>
    %501 = arith.truncf %500 : vector<36x16xf32> to vector<36x16xbf16>
    %cst_660 = arith.constant dense<0.000000e+00> : vector<4x16xf32>
    %502 = tpu.matmul %365, %501, %cst_660 {dimension_numbers = #tpu.dot_dimension_numbers<[1], [0], [0], [1], [0, 0, 1, 1], [], []>} : vector<4x36xbf16>, vector<36x16xbf16>, vector<4x16xf32> -> vector<4x16xf32>
    %503 = vector.broadcast %367 : vector<4x1xf32> to vector<4x16xf32>
    %504 = arith.addf %502, %503 : vector<4x16xf32>
    %c0_661 = arith.constant 0 : index
    %c3_662 = arith.constant 3 : index
    %c0_663 = arith.constant 0 : index
    %505 = vector.load %arg19[%c0_661, %c3_662, %c0_663] : memref<4x8x16xf32, #tpu.memory_space<vmem>>, vector<4x1x16xf32>
    %506 = vector.shape_cast %505 : vector<4x1x16xf32> to vector<4x16xf32>
    %507 = vector.shape_cast %504 : vector<4x16xf32> to vector<4x1x16xf32>
    tpu.vector_store %arg19[%c0_661, %c3_662, %c0_663], %507 {strides = array<i32>} : memref<4x8x16xf32, #tpu.memory_space<vmem>>, vector<4x1x16xf32>,
    %c0_664 = arith.constant 0 : index
    %c4_665 = arith.constant 4 : index
    %c0_666 = arith.constant 0 : index
    %508 = vector.load %arg17[%c0_664, %c4_665, %c0_666] : memref<4x10x18xf32, #tpu.memory_space<vmem>>, vector<4x1x16xf32>
    %509 = vector.shape_cast %508 : vector<4x1x16xf32> to vector<4x16xf32>
    %c0_667 = arith.constant 0 : index
    %c0_668 = arith.constant 0 : index
    %510 = vector.load %arg18[%c0_667, %c0_668] : memref<36x16xf32, #tpu.memory_space<vmem>>, vector<4x16xf32>
    tpu.vector_store %arg18[%c0_667, %c0_668], %509 {strides = array<i32>} : memref<36x16xf32, #tpu.memory_space<vmem>>, vector<4x16xf32>,
    %c0_669 = arith.constant 0 : index
    %c4_670 = arith.constant 4 : index
    %c1_671 = arith.constant 1 : index
    %511 = vector.load %arg17[%c0_669, %c4_670, %c1_671] : memref<4x10x18xf32, #tpu.memory_space<vmem>>, vector<4x1x16xf32>
    %512 = vector.shape_cast %511 : vector<4x1x16xf32> to vector<4x16xf32>
    %c4_672 = arith.constant 4 : index
    %c0_673 = arith.constant 0 : index
    %513 = vector.load %arg18[%c4_672, %c0_673] : memref<36x16xf32, #tpu.memory_space<vmem>>, vector<4x16xf32>
    tpu.vector_store %arg18[%c4_672, %c0_673], %512 {strides = array<i32>} : memref<36x16xf32, #tpu.memory_space<vmem>>, vector<4x16xf32>,
    %c0_674 = arith.constant 0 : index
    %c4_675 = arith.constant 4 : index
    %c2_676 = arith.constant 2 : index
    %514 = vector.load %arg17[%c0_674, %c4_675, %c2_676] : memref<4x10x18xf32, #tpu.memory_space<vmem>>, vector<4x1x16xf32>
    %515 = vector.shape_cast %514 : vector<4x1x16xf32> to vector<4x16xf32>
    %c8_677 = arith.constant 8 : index
    %c0_678 = arith.constant 0 : index
    %516 = vector.load %arg18[%c8_677, %c0_678] : memref<36x16xf32, #tpu.memory_space<vmem>>, vector<4x16xf32>
    tpu.vector_store %arg18[%c8_677, %c0_678], %515 {strides = array<i32>} : memref<36x16xf32, #tpu.memory_space<vmem>>, vector<4x16xf32>,
    %c0_679 = arith.constant 0 : index
    %c5_680 = arith.constant 5 : index
    %c0_681 = arith.constant 0 : index
    %517 = vector.load %arg17[%c0_679, %c5_680, %c0_681] : memref<4x10x18xf32, #tpu.memory_space<vmem>>, vector<4x1x16xf32>
    %518 = vector.shape_cast %517 : vector<4x1x16xf32> to vector<4x16xf32>
    %c12_682 = arith.constant 12 : index
    %c0_683 = arith.constant 0 : index
    %519 = vector.load %arg18[%c12_682, %c0_683] : memref<36x16xf32, #tpu.memory_space<vmem>>, vector<4x16xf32>
    tpu.vector_store %arg18[%c12_682, %c0_683], %518 {strides = array<i32>} : memref<36x16xf32, #tpu.memory_space<vmem>>, vector<4x16xf32>,
    %c0_684 = arith.constant 0 : index
    %c5_685 = arith.constant 5 : index
    %c1_686 = arith.constant 1 : index
    %520 = vector.load %arg17[%c0_684, %c5_685, %c1_686] : memref<4x10x18xf32, #tpu.memory_space<vmem>>, vector<4x1x16xf32>
    %521 = vector.shape_cast %520 : vector<4x1x16xf32> to vector<4x16xf32>
    %c16_687 = arith.constant 16 : index
    %c0_688 = arith.constant 0 : index
    %522 = vector.load %arg18[%c16_687, %c0_688] : memref<36x16xf32, #tpu.memory_space<vmem>>, vector<4x16xf32>
    tpu.vector_store %arg18[%c16_687, %c0_688], %521 {strides = array<i32>} : memref<36x16xf32, #tpu.memory_space<vmem>>, vector<4x16xf32>,
    %c0_689 = arith.constant 0 : index
    %c5_690 = arith.constant 5 : index
    %c2_691 = arith.constant 2 : index
    %523 = vector.load %arg17[%c0_689, %c5_690, %c2_691] : memref<4x10x18xf32, #tpu.memory_space<vmem>>, vector<4x1x16xf32>
    %524 = vector.shape_cast %523 : vector<4x1x16xf32> to vector<4x16xf32>
    %c20_692 = arith.constant 20 : index
    %c0_693 = arith.constant 0 : index
    %525 = vector.load %arg18[%c20_692, %c0_693] : memref<36x16xf32, #tpu.memory_space<vmem>>, vector<4x16xf32>
    tpu.vector_store %arg18[%c20_692, %c0_693], %524 {strides = array<i32>} : memref<36x16xf32, #tpu.memory_space<vmem>>, vector<4x16xf32>,
    %c0_694 = arith.constant 0 : index
    %c6_695 = arith.constant 6 : index
    %c0_696 = arith.constant 0 : index
    %526 = vector.load %arg17[%c0_694, %c6_695, %c0_696] : memref<4x10x18xf32, #tpu.memory_space<vmem>>, vector<4x1x16xf32>
    %527 = vector.shape_cast %526 : vector<4x1x16xf32> to vector<4x16xf32>
    %c24_697 = arith.constant 24 : index
    %c0_698 = arith.constant 0 : index
    %528 = vector.load %arg18[%c24_697, %c0_698] : memref<36x16xf32, #tpu.memory_space<vmem>>, vector<4x16xf32>
    tpu.vector_store %arg18[%c24_697, %c0_698], %527 {strides = array<i32>} : memref<36x16xf32, #tpu.memory_space<vmem>>, vector<4x16xf32>,
    %c0_699 = arith.constant 0 : index
    %c6_700 = arith.constant 6 : index
    %c1_701 = arith.constant 1 : index
    %529 = vector.load %arg17[%c0_699, %c6_700, %c1_701] : memref<4x10x18xf32, #tpu.memory_space<vmem>>, vector<4x1x16xf32>
    %530 = vector.shape_cast %529 : vector<4x1x16xf32> to vector<4x16xf32>
    %c28_702 = arith.constant 28 : index
    %c0_703 = arith.constant 0 : index
    %531 = vector.load %arg18[%c28_702, %c0_703] : memref<36x16xf32, #tpu.memory_space<vmem>>, vector<4x16xf32>
    tpu.vector_store %arg18[%c28_702, %c0_703], %530 {strides = array<i32>} : memref<36x16xf32, #tpu.memory_space<vmem>>, vector<4x16xf32>,
    %c0_704 = arith.constant 0 : index
    %c6_705 = arith.constant 6 : index
    %c2_706 = arith.constant 2 : index
    %532 = vector.load %arg17[%c0_704, %c6_705, %c2_706] : memref<4x10x18xf32, #tpu.memory_space<vmem>>, vector<4x1x16xf32>
    %533 = vector.shape_cast %532 : vector<4x1x16xf32> to vector<4x16xf32>
    %c32_707 = arith.constant 32 : index
    %c0_708 = arith.constant 0 : index
    %534 = vector.load %arg18[%c32_707, %c0_708] : memref<36x16xf32, #tpu.memory_space<vmem>>, vector<4x16xf32>
    tpu.vector_store %arg18[%c32_707, %c0_708], %533 {strides = array<i32>} : memref<36x16xf32, #tpu.memory_space<vmem>>, vector<4x16xf32>,
    %c0_709 = arith.constant 0 : index
    %c0_710 = arith.constant 0 : index
    %535 = vector.load %arg18[%c0_709, %c0_710] : memref<36x16xf32, #tpu.memory_space<vmem>>, vector<36x16xf32>
    %536 = arith.truncf %535 : vector<36x16xf32> to vector<36x16xbf16>
    %cst_711 = arith.constant dense<0.000000e+00> : vector<4x16xf32>
    %537 = tpu.matmul %365, %536, %cst_711 {dimension_numbers = #tpu.dot_dimension_numbers<[1], [0], [0], [1], [0, 0, 1, 1], [], []>} : vector<4x36xbf16>, vector<36x16xbf16>, vector<4x16xf32> -> vector<4x16xf32>
    %538 = vector.broadcast %367 : vector<4x1xf32> to vector<4x16xf32>
    %539 = arith.addf %537, %538 : vector<4x16xf32>
    %c0_712 = arith.constant 0 : index
    %c4_713 = arith.constant 4 : index
    %c0_714 = arith.constant 0 : index
    %540 = vector.load %arg19[%c0_712, %c4_713, %c0_714] : memref<4x8x16xf32, #tpu.memory_space<vmem>>, vector<4x1x16xf32>
    %541 = vector.shape_cast %540 : vector<4x1x16xf32> to vector<4x16xf32>
    %542 = vector.shape_cast %539 : vector<4x16xf32> to vector<4x1x16xf32>
    tpu.vector_store %arg19[%c0_712, %c4_713, %c0_714], %542 {strides = array<i32>} : memref<4x8x16xf32, #tpu.memory_space<vmem>>, vector<4x1x16xf32>,
    %c0_715 = arith.constant 0 : index
    %c5_716 = arith.constant 5 : index
    %c0_717 = arith.constant 0 : index
    %543 = vector.load %arg17[%c0_715, %c5_716, %c0_717] : memref<4x10x18xf32, #tpu.memory_space<vmem>>, vector<4x1x16xf32>
    %544 = vector.shape_cast %543 : vector<4x1x16xf32> to vector<4x16xf32>
    %c0_718 = arith.constant 0 : index
    %c0_719 = arith.constant 0 : index
    %545 = vector.load %arg18[%c0_718, %c0_719] : memref<36x16xf32, #tpu.memory_space<vmem>>, vector<4x16xf32>
    tpu.vector_store %arg18[%c0_718, %c0_719], %544 {strides = array<i32>} : memref<36x16xf32, #tpu.memory_space<vmem>>, vector<4x16xf32>,
    %c0_720 = arith.constant 0 : index
    %c5_721 = arith.constant 5 : index
    %c1_722 = arith.constant 1 : index
    %546 = vector.load %arg17[%c0_720, %c5_721, %c1_722] : memref<4x10x18xf32, #tpu.memory_space<vmem>>, vector<4x1x16xf32>
    %547 = vector.shape_cast %546 : vector<4x1x16xf32> to vector<4x16xf32>
    %c4_723 = arith.constant 4 : index
    %c0_724 = arith.constant 0 : index
    %548 = vector.load %arg18[%c4_723, %c0_724] : memref<36x16xf32, #tpu.memory_space<vmem>>, vector<4x16xf32>
    tpu.vector_store %arg18[%c4_723, %c0_724], %547 {strides = array<i32>} : memref<36x16xf32, #tpu.memory_space<vmem>>, vector<4x16xf32>,
    %c0_725 = arith.constant 0 : index
    %c5_726 = arith.constant 5 : index
    %c2_727 = arith.constant 2 : index
    %549 = vector.load %arg17[%c0_725, %c5_726, %c2_727] : memref<4x10x18xf32, #tpu.memory_space<vmem>>, vector<4x1x16xf32>
    %550 = vector.shape_cast %549 : vector<4x1x16xf32> to vector<4x16xf32>
    %c8_728 = arith.constant 8 : index
    %c0_729 = arith.constant 0 : index
    %551 = vector.load %arg18[%c8_728, %c0_729] : memref<36x16xf32, #tpu.memory_space<vmem>>, vector<4x16xf32>
    tpu.vector_store %arg18[%c8_728, %c0_729], %550 {strides = array<i32>} : memref<36x16xf32, #tpu.memory_space<vmem>>, vector<4x16xf32>,
    %c0_730 = arith.constant 0 : index
    %c6_731 = arith.constant 6 : index
    %c0_732 = arith.constant 0 : index
    %552 = vector.load %arg17[%c0_730, %c6_731, %c0_732] : memref<4x10x18xf32, #tpu.memory_space<vmem>>, vector<4x1x16xf32>
    %553 = vector.shape_cast %552 : vector<4x1x16xf32> to vector<4x16xf32>
    %c12_733 = arith.constant 12 : index
    %c0_734 = arith.constant 0 : index
    %554 = vector.load %arg18[%c12_733, %c0_734] : memref<36x16xf32, #tpu.memory_space<vmem>>, vector<4x16xf32>
    tpu.vector_store %arg18[%c12_733, %c0_734], %553 {strides = array<i32>} : memref<36x16xf32, #tpu.memory_space<vmem>>, vector<4x16xf32>,
    %c0_735 = arith.constant 0 : index
    %c6_736 = arith.constant 6 : index
    %c1_737 = arith.constant 1 : index
    %555 = vector.load %arg17[%c0_735, %c6_736, %c1_737] : memref<4x10x18xf32, #tpu.memory_space<vmem>>, vector<4x1x16xf32>
    %556 = vector.shape_cast %555 : vector<4x1x16xf32> to vector<4x16xf32>
    %c16_738 = arith.constant 16 : index
    %c0_739 = arith.constant 0 : index
    %557 = vector.load %arg18[%c16_738, %c0_739] : memref<36x16xf32, #tpu.memory_space<vmem>>, vector<4x16xf32>
    tpu.vector_store %arg18[%c16_738, %c0_739], %556 {strides = array<i32>} : memref<36x16xf32, #tpu.memory_space<vmem>>, vector<4x16xf32>,
    %c0_740 = arith.constant 0 : index
    %c6_741 = arith.constant 6 : index
    %c2_742 = arith.constant 2 : index
    %558 = vector.load %arg17[%c0_740, %c6_741, %c2_742] : memref<4x10x18xf32, #tpu.memory_space<vmem>>, vector<4x1x16xf32>
    %559 = vector.shape_cast %558 : vector<4x1x16xf32> to vector<4x16xf32>
    %c20_743 = arith.constant 20 : index
    %c0_744 = arith.constant 0 : index
    %560 = vector.load %arg18[%c20_743, %c0_744] : memref<36x16xf32, #tpu.memory_space<vmem>>, vector<4x16xf32>
    tpu.vector_store %arg18[%c20_743, %c0_744], %559 {strides = array<i32>} : memref<36x16xf32, #tpu.memory_space<vmem>>, vector<4x16xf32>,
    %c0_745 = arith.constant 0 : index
    %c7_746 = arith.constant 7 : index
    %c0_747 = arith.constant 0 : index
    %561 = vector.load %arg17[%c0_745, %c7_746, %c0_747] : memref<4x10x18xf32, #tpu.memory_space<vmem>>, vector<4x1x16xf32>
    %562 = vector.shape_cast %561 : vector<4x1x16xf32> to vector<4x16xf32>
    %c24_748 = arith.constant 24 : index
    %c0_749 = arith.constant 0 : index
    %563 = vector.load %arg18[%c24_748, %c0_749] : memref<36x16xf32, #tpu.memory_space<vmem>>, vector<4x16xf32>
    tpu.vector_store %arg18[%c24_748, %c0_749], %562 {strides = array<i32>} : memref<36x16xf32, #tpu.memory_space<vmem>>, vector<4x16xf32>,
    %c0_750 = arith.constant 0 : index
    %c7_751 = arith.constant 7 : index
    %c1_752 = arith.constant 1 : index
    %564 = vector.load %arg17[%c0_750, %c7_751, %c1_752] : memref<4x10x18xf32, #tpu.memory_space<vmem>>, vector<4x1x16xf32>
    %565 = vector.shape_cast %564 : vector<4x1x16xf32> to vector<4x16xf32>
    %c28_753 = arith.constant 28 : index
    %c0_754 = arith.constant 0 : index
    %566 = vector.load %arg18[%c28_753, %c0_754] : memref<36x16xf32, #tpu.memory_space<vmem>>, vector<4x16xf32>
    tpu.vector_store %arg18[%c28_753, %c0_754], %565 {strides = array<i32>} : memref<36x16xf32, #tpu.memory_space<vmem>>, vector<4x16xf32>,
    %c0_755 = arith.constant 0 : index
    %c7_756 = arith.constant 7 : index
    %c2_757 = arith.constant 2 : index
    %567 = vector.load %arg17[%c0_755, %c7_756, %c2_757] : memref<4x10x18xf32, #tpu.memory_space<vmem>>, vector<4x1x16xf32>
    %568 = vector.shape_cast %567 : vector<4x1x16xf32> to vector<4x16xf32>
    %c32_758 = arith.constant 32 : index
    %c0_759 = arith.constant 0 : index
    %569 = vector.load %arg18[%c32_758, %c0_759] : memref<36x16xf32, #tpu.memory_space<vmem>>, vector<4x16xf32>
    tpu.vector_store %arg18[%c32_758, %c0_759], %568 {strides = array<i32>} : memref<36x16xf32, #tpu.memory_space<vmem>>, vector<4x16xf32>,
    %c0_760 = arith.constant 0 : index
    %c0_761 = arith.constant 0 : index
    %570 = vector.load %arg18[%c0_760, %c0_761] : memref<36x16xf32, #tpu.memory_space<vmem>>, vector<36x16xf32>
    %571 = arith.truncf %570 : vector<36x16xf32> to vector<36x16xbf16>
    %cst_762 = arith.constant dense<0.000000e+00> : vector<4x16xf32>
    %572 = tpu.matmul %365, %571, %cst_762 {dimension_numbers = #tpu.dot_dimension_numbers<[1], [0], [0], [1], [0, 0, 1, 1], [], []>} : vector<4x36xbf16>, vector<36x16xbf16>, vector<4x16xf32> -> vector<4x16xf32>
    %573 = vector.broadcast %367 : vector<4x1xf32> to vector<4x16xf32>
    %574 = arith.addf %572, %573 : vector<4x16xf32>
    %c0_763 = arith.constant 0 : index
    %c5_764 = arith.constant 5 : index
    %c0_765 = arith.constant 0 : index
    %575 = vector.load %arg19[%c0_763, %c5_764, %c0_765] : memref<4x8x16xf32, #tpu.memory_space<vmem>>, vector<4x1x16xf32>
    %576 = vector.shape_cast %575 : vector<4x1x16xf32> to vector<4x16xf32>
    %577 = vector.shape_cast %574 : vector<4x16xf32> to vector<4x1x16xf32>
    tpu.vector_store %arg19[%c0_763, %c5_764, %c0_765], %577 {strides = array<i32>} : memref<4x8x16xf32, #tpu.memory_space<vmem>>, vector<4x1x16xf32>,
    %c0_766 = arith.constant 0 : index
    %c6_767 = arith.constant 6 : index
    %c0_768 = arith.constant 0 : index
    %578 = vector.load %arg17[%c0_766, %c6_767, %c0_768] : memref<4x10x18xf32, #tpu.memory_space<vmem>>, vector<4x1x16xf32>
    %579 = vector.shape_cast %578 : vector<4x1x16xf32> to vector<4x16xf32>
    %c0_769 = arith.constant 0 : index
    %c0_770 = arith.constant 0 : index
    %580 = vector.load %arg18[%c0_769, %c0_770] : memref<36x16xf32, #tpu.memory_space<vmem>>, vector<4x16xf32>
    tpu.vector_store %arg18[%c0_769, %c0_770], %579 {strides = array<i32>} : memref<36x16xf32, #tpu.memory_space<vmem>>, vector<4x16xf32>,
    %c0_771 = arith.constant 0 : index
    %c6_772 = arith.constant 6 : index
    %c1_773 = arith.constant 1 : index
    %581 = vector.load %arg17[%c0_771, %c6_772, %c1_773] : memref<4x10x18xf32, #tpu.memory_space<vmem>>, vector<4x1x16xf32>
    %582 = vector.shape_cast %581 : vector<4x1x16xf32> to vector<4x16xf32>
    %c4_774 = arith.constant 4 : index
    %c0_775 = arith.constant 0 : index
    %583 = vector.load %arg18[%c4_774, %c0_775] : memref<36x16xf32, #tpu.memory_space<vmem>>, vector<4x16xf32>
    tpu.vector_store %arg18[%c4_774, %c0_775], %582 {strides = array<i32>} : memref<36x16xf32, #tpu.memory_space<vmem>>, vector<4x16xf32>,
    %c0_776 = arith.constant 0 : index
    %c6_777 = arith.constant 6 : index
    %c2_778 = arith.constant 2 : index
    %584 = vector.load %arg17[%c0_776, %c6_777, %c2_778] : memref<4x10x18xf32, #tpu.memory_space<vmem>>, vector<4x1x16xf32>
    %585 = vector.shape_cast %584 : vector<4x1x16xf32> to vector<4x16xf32>
    %c8_779 = arith.constant 8 : index
    %c0_780 = arith.constant 0 : index
    %586 = vector.load %arg18[%c8_779, %c0_780] : memref<36x16xf32, #tpu.memory_space<vmem>>, vector<4x16xf32>
    tpu.vector_store %arg18[%c8_779, %c0_780], %585 {strides = array<i32>} : memref<36x16xf32, #tpu.memory_space<vmem>>, vector<4x16xf32>,
    %c0_781 = arith.constant 0 : index
    %c7_782 = arith.constant 7 : index
    %c0_783 = arith.constant 0 : index
    %587 = vector.load %arg17[%c0_781, %c7_782, %c0_783] : memref<4x10x18xf32, #tpu.memory_space<vmem>>, vector<4x1x16xf32>
    %588 = vector.shape_cast %587 : vector<4x1x16xf32> to vector<4x16xf32>
    %c12_784 = arith.constant 12 : index
    %c0_785 = arith.constant 0 : index
    %589 = vector.load %arg18[%c12_784, %c0_785] : memref<36x16xf32, #tpu.memory_space<vmem>>, vector<4x16xf32>
    tpu.vector_store %arg18[%c12_784, %c0_785], %588 {strides = array<i32>} : memref<36x16xf32, #tpu.memory_space<vmem>>, vector<4x16xf32>,
    %c0_786 = arith.constant 0 : index
    %c7_787 = arith.constant 7 : index
    %c1_788 = arith.constant 1 : index
    %590 = vector.load %arg17[%c0_786, %c7_787, %c1_788] : memref<4x10x18xf32, #tpu.memory_space<vmem>>, vector<4x1x16xf32>
    %591 = vector.shape_cast %590 : vector<4x1x16xf32> to vector<4x16xf32>
    %c16_789 = arith.constant 16 : index
    %c0_790 = arith.constant 0 : index
    %592 = vector.load %arg18[%c16_789, %c0_790] : memref<36x16xf32, #tpu.memory_space<vmem>>, vector<4x16xf32>
    tpu.vector_store %arg18[%c16_789, %c0_790], %591 {strides = array<i32>} : memref<36x16xf32, #tpu.memory_space<vmem>>, vector<4x16xf32>,
    %c0_791 = arith.constant 0 : index
    %c7_792 = arith.constant 7 : index
    %c2_793 = arith.constant 2 : index
    %593 = vector.load %arg17[%c0_791, %c7_792, %c2_793] : memref<4x10x18xf32, #tpu.memory_space<vmem>>, vector<4x1x16xf32>
    %594 = vector.shape_cast %593 : vector<4x1x16xf32> to vector<4x16xf32>
    %c20_794 = arith.constant 20 : index
    %c0_795 = arith.constant 0 : index
    %595 = vector.load %arg18[%c20_794, %c0_795] : memref<36x16xf32, #tpu.memory_space<vmem>>, vector<4x16xf32>
    tpu.vector_store %arg18[%c20_794, %c0_795], %594 {strides = array<i32>} : memref<36x16xf32, #tpu.memory_space<vmem>>, vector<4x16xf32>,
    %c0_796 = arith.constant 0 : index
    %c8_797 = arith.constant 8 : index
    %c0_798 = arith.constant 0 : index
    %596 = vector.load %arg17[%c0_796, %c8_797, %c0_798] : memref<4x10x18xf32, #tpu.memory_space<vmem>>, vector<4x1x16xf32>
    %597 = vector.shape_cast %596 : vector<4x1x16xf32> to vector<4x16xf32>
    %c24_799 = arith.constant 24 : index
    %c0_800 = arith.constant 0 : index
    %598 = vector.load %arg18[%c24_799, %c0_800] : memref<36x16xf32, #tpu.memory_space<vmem>>, vector<4x16xf32>
    tpu.vector_store %arg18[%c24_799, %c0_800], %597 {strides = array<i32>} : memref<36x16xf32, #tpu.memory_space<vmem>>, vector<4x16xf32>,
    %c0_801 = arith.constant 0 : index
    %c8_802 = arith.constant 8 : index
    %c1_803 = arith.constant 1 : index
    %599 = vector.load %arg17[%c0_801, %c8_802, %c1_803] : memref<4x10x18xf32, #tpu.memory_space<vmem>>, vector<4x1x16xf32>
    %600 = vector.shape_cast %599 : vector<4x1x16xf32> to vector<4x16xf32>
    %c28_804 = arith.constant 28 : index
    %c0_805 = arith.constant 0 : index
    %601 = vector.load %arg18[%c28_804, %c0_805] : memref<36x16xf32, #tpu.memory_space<vmem>>, vector<4x16xf32>
    tpu.vector_store %arg18[%c28_804, %c0_805], %600 {strides = array<i32>} : memref<36x16xf32, #tpu.memory_space<vmem>>, vector<4x16xf32>,
    %c0_806 = arith.constant 0 : index
    %c8_807 = arith.constant 8 : index
    %c2_808 = arith.constant 2 : index
    %602 = vector.load %arg17[%c0_806, %c8_807, %c2_808] : memref<4x10x18xf32, #tpu.memory_space<vmem>>, vector<4x1x16xf32>
    %603 = vector.shape_cast %602 : vector<4x1x16xf32> to vector<4x16xf32>
    %c32_809 = arith.constant 32 : index
    %c0_810 = arith.constant 0 : index
    %604 = vector.load %arg18[%c32_809, %c0_810] : memref<36x16xf32, #tpu.memory_space<vmem>>, vector<4x16xf32>
    tpu.vector_store %arg18[%c32_809, %c0_810], %603 {strides = array<i32>} : memref<36x16xf32, #tpu.memory_space<vmem>>, vector<4x16xf32>,
    %c0_811 = arith.constant 0 : index
    %c0_812 = arith.constant 0 : index
    %605 = vector.load %arg18[%c0_811, %c0_812] : memref<36x16xf32, #tpu.memory_space<vmem>>, vector<36x16xf32>
    %606 = arith.truncf %605 : vector<36x16xf32> to vector<36x16xbf16>
    %cst_813 = arith.constant dense<0.000000e+00> : vector<4x16xf32>
    %607 = tpu.matmul %365, %606, %cst_813 {dimension_numbers = #tpu.dot_dimension_numbers<[1], [0], [0], [1], [0, 0, 1, 1], [], []>} : vector<4x36xbf16>, vector<36x16xbf16>, vector<4x16xf32> -> vector<4x16xf32>
    %608 = vector.broadcast %367 : vector<4x1xf32> to vector<4x16xf32>
    %609 = arith.addf %607, %608 : vector<4x16xf32>
    %c0_814 = arith.constant 0 : index
    %c6_815 = arith.constant 6 : index
    %c0_816 = arith.constant 0 : index
    %610 = vector.load %arg19[%c0_814, %c6_815, %c0_816] : memref<4x8x16xf32, #tpu.memory_space<vmem>>, vector<4x1x16xf32>
    %611 = vector.shape_cast %610 : vector<4x1x16xf32> to vector<4x16xf32>
    %612 = vector.shape_cast %609 : vector<4x16xf32> to vector<4x1x16xf32>
    tpu.vector_store %arg19[%c0_814, %c6_815, %c0_816], %612 {strides = array<i32>} : memref<4x8x16xf32, #tpu.memory_space<vmem>>, vector<4x1x16xf32>,
    %c0_817 = arith.constant 0 : index
    %c7_818 = arith.constant 7 : index
    %c0_819 = arith.constant 0 : index
    %613 = vector.load %arg17[%c0_817, %c7_818, %c0_819] : memref<4x10x18xf32, #tpu.memory_space<vmem>>, vector<4x1x16xf32>
    %614 = vector.shape_cast %613 : vector<4x1x16xf32> to vector<4x16xf32>
    %c0_820 = arith.constant 0 : index
    %c0_821 = arith.constant 0 : index
    %615 = vector.load %arg18[%c0_820, %c0_821] : memref<36x16xf32, #tpu.memory_space<vmem>>, vector<4x16xf32>
    tpu.vector_store %arg18[%c0_820, %c0_821], %614 {strides = array<i32>} : memref<36x16xf32, #tpu.memory_space<vmem>>, vector<4x16xf32>,
    %c0_822 = arith.constant 0 : index
    %c7_823 = arith.constant 7 : index
    %c1_824 = arith.constant 1 : index
    %616 = vector.load %arg17[%c0_822, %c7_823, %c1_824] : memref<4x10x18xf32, #tpu.memory_space<vmem>>, vector<4x1x16xf32>
    %617 = vector.shape_cast %616 : vector<4x1x16xf32> to vector<4x16xf32>
    %c4_825 = arith.constant 4 : index
    %c0_826 = arith.constant 0 : index
    %618 = vector.load %arg18[%c4_825, %c0_826] : memref<36x16xf32, #tpu.memory_space<vmem>>, vector<4x16xf32>
    tpu.vector_store %arg18[%c4_825, %c0_826], %617 {strides = array<i32>} : memref<36x16xf32, #tpu.memory_space<vmem>>, vector<4x16xf32>,
    %c0_827 = arith.constant 0 : index
    %c7_828 = arith.constant 7 : index
    %c2_829 = arith.constant 2 : index
    %619 = vector.load %arg17[%c0_827, %c7_828, %c2_829] : memref<4x10x18xf32, #tpu.memory_space<vmem>>, vector<4x1x16xf32>
    %620 = vector.shape_cast %619 : vector<4x1x16xf32> to vector<4x16xf32>
    %c8_830 = arith.constant 8 : index
    %c0_831 = arith.constant 0 : index
    %621 = vector.load %arg18[%c8_830, %c0_831] : memref<36x16xf32, #tpu.memory_space<vmem>>, vector<4x16xf32>
    tpu.vector_store %arg18[%c8_830, %c0_831], %620 {strides = array<i32>} : memref<36x16xf32, #tpu.memory_space<vmem>>, vector<4x16xf32>,
    %c0_832 = arith.constant 0 : index
    %c8_833 = arith.constant 8 : index
    %c0_834 = arith.constant 0 : index
    %622 = vector.load %arg17[%c0_832, %c8_833, %c0_834] : memref<4x10x18xf32, #tpu.memory_space<vmem>>, vector<4x1x16xf32>
    %623 = vector.shape_cast %622 : vector<4x1x16xf32> to vector<4x16xf32>
    %c12_835 = arith.constant 12 : index
    %c0_836 = arith.constant 0 : index
    %624 = vector.load %arg18[%c12_835, %c0_836] : memref<36x16xf32, #tpu.memory_space<vmem>>, vector<4x16xf32>
    tpu.vector_store %arg18[%c12_835, %c0_836], %623 {strides = array<i32>} : memref<36x16xf32, #tpu.memory_space<vmem>>, vector<4x16xf32>,
    %c0_837 = arith.constant 0 : index
    %c8_838 = arith.constant 8 : index
    %c1_839 = arith.constant 1 : index
    %625 = vector.load %arg17[%c0_837, %c8_838, %c1_839] : memref<4x10x18xf32, #tpu.memory_space<vmem>>, vector<4x1x16xf32>
    %626 = vector.shape_cast %625 : vector<4x1x16xf32> to vector<4x16xf32>
    %c16_840 = arith.constant 16 : index
    %c0_841 = arith.constant 0 : index
    %627 = vector.load %arg18[%c16_840, %c0_841] : memref<36x16xf32, #tpu.memory_space<vmem>>, vector<4x16xf32>
    tpu.vector_store %arg18[%c16_840, %c0_841], %626 {strides = array<i32>} : memref<36x16xf32, #tpu.memory_space<vmem>>, vector<4x16xf32>,
    %c0_842 = arith.constant 0 : index
    %c8_843 = arith.constant 8 : index
    %c2_844 = arith.constant 2 : index
    %628 = vector.load %arg17[%c0_842, %c8_843, %c2_844] : memref<4x10x18xf32, #tpu.memory_space<vmem>>, vector<4x1x16xf32>
    %629 = vector.shape_cast %628 : vector<4x1x16xf32> to vector<4x16xf32>
    %c20_845 = arith.constant 20 : index
    %c0_846 = arith.constant 0 : index
    %630 = vector.load %arg18[%c20_845, %c0_846] : memref<36x16xf32, #tpu.memory_space<vmem>>, vector<4x16xf32>
    tpu.vector_store %arg18[%c20_845, %c0_846], %629 {strides = array<i32>} : memref<36x16xf32, #tpu.memory_space<vmem>>, vector<4x16xf32>,
    %c0_847 = arith.constant 0 : index
    %c9_848 = arith.constant 9 : index
    %c0_849 = arith.constant 0 : index
    %631 = vector.load %arg17[%c0_847, %c9_848, %c0_849] : memref<4x10x18xf32, #tpu.memory_space<vmem>>, vector<4x1x16xf32>
    %632 = vector.shape_cast %631 : vector<4x1x16xf32> to vector<4x16xf32>
    %c24_850 = arith.constant 24 : index
    %c0_851 = arith.constant 0 : index
    %633 = vector.load %arg18[%c24_850, %c0_851] : memref<36x16xf32, #tpu.memory_space<vmem>>, vector<4x16xf32>
    tpu.vector_store %arg18[%c24_850, %c0_851], %632 {strides = array<i32>} : memref<36x16xf32, #tpu.memory_space<vmem>>, vector<4x16xf32>,
    %c0_852 = arith.constant 0 : index
    %c9_853 = arith.constant 9 : index
    %c1_854 = arith.constant 1 : index
    %634 = vector.load %arg17[%c0_852, %c9_853, %c1_854] : memref<4x10x18xf32, #tpu.memory_space<vmem>>, vector<4x1x16xf32>
    %635 = vector.shape_cast %634 : vector<4x1x16xf32> to vector<4x16xf32>
    %c28_855 = arith.constant 28 : index
    %c0_856 = arith.constant 0 : index
    %636 = vector.load %arg18[%c28_855, %c0_856] : memref<36x16xf32, #tpu.memory_space<vmem>>, vector<4x16xf32>
    tpu.vector_store %arg18[%c28_855, %c0_856], %635 {strides = array<i32>} : memref<36x16xf32, #tpu.memory_space<vmem>>, vector<4x16xf32>,
    %c0_857 = arith.constant 0 : index
    %c9_858 = arith.constant 9 : index
    %c2_859 = arith.constant 2 : index
    %637 = vector.load %arg17[%c0_857, %c9_858, %c2_859] : memref<4x10x18xf32, #tpu.memory_space<vmem>>, vector<4x1x16xf32>
    %638 = vector.shape_cast %637 : vector<4x1x16xf32> to vector<4x16xf32>
    %c32_860 = arith.constant 32 : index
    %c0_861 = arith.constant 0 : index
    %639 = vector.load %arg18[%c32_860, %c0_861] : memref<36x16xf32, #tpu.memory_space<vmem>>, vector<4x16xf32>
    tpu.vector_store %arg18[%c32_860, %c0_861], %638 {strides = array<i32>} : memref<36x16xf32, #tpu.memory_space<vmem>>, vector<4x16xf32>,
    %c0_862 = arith.constant 0 : index
    %c0_863 = arith.constant 0 : index
    %640 = vector.load %arg18[%c0_862, %c0_863] : memref<36x16xf32, #tpu.memory_space<vmem>>, vector<36x16xf32>
    %641 = arith.truncf %640 : vector<36x16xf32> to vector<36x16xbf16>
    %cst_864 = arith.constant dense<0.000000e+00> : vector<4x16xf32>
    %642 = tpu.matmul %365, %641, %cst_864 {dimension_numbers = #tpu.dot_dimension_numbers<[1], [0], [0], [1], [0, 0, 1, 1], [], []>} : vector<4x36xbf16>, vector<36x16xbf16>, vector<4x16xf32> -> vector<4x16xf32>
    %643 = vector.broadcast %367 : vector<4x1xf32> to vector<4x16xf32>
    %644 = arith.addf %642, %643 : vector<4x16xf32>
    %c0_865 = arith.constant 0 : index
    %c7_866 = arith.constant 7 : index
    %c0_867 = arith.constant 0 : index
    %645 = vector.load %arg19[%c0_865, %c7_866, %c0_867] : memref<4x8x16xf32, #tpu.memory_space<vmem>>, vector<4x1x16xf32>
    %646 = vector.shape_cast %645 : vector<4x1x16xf32> to vector<4x16xf32>
    %647 = vector.shape_cast %644 : vector<4x16xf32> to vector<4x1x16xf32>
    tpu.vector_store %arg19[%c0_865, %c7_866, %c0_867], %647 {strides = array<i32>} : memref<4x8x16xf32, #tpu.memory_space<vmem>>, vector<4x1x16xf32>,
    %c0_868 = arith.constant 0 : index
    %c0_869 = arith.constant 0 : index
    %c0_870 = arith.constant 0 : index
    %648 = vector.load %arg19[%c0_868, %c0_869, %c0_870] : memref<4x8x16xf32, #tpu.memory_space<vmem>>, vector<4x8x16xf32>
    %c1_871 = arith.constant 1 : index
    %c0_872 = arith.constant 0 : index
    %c0_873 = arith.constant 0 : index
    %c0_874 = arith.constant 0 : index
    %649 = vector.load %arg4[%c1_871, %c0_872, %c0_873, %c0_874] : memref<2x4x1x1xf32, #tpu.memory_space<vmem>>, vector<1x4x1x1xf32>
    %650 = vector.shape_cast %649 : vector<1x4x1x1xf32> to vector<4x1x1xf32>
    %c1_875 = arith.constant 1 : index
    %c0_876 = arith.constant 0 : index
    %c0_877 = arith.constant 0 : index
    %c0_878 = arith.constant 0 : index
    %651 = vector.load %arg5[%c1_875, %c0_876, %c0_877, %c0_878] : memref<2x4x1x1xf32, #tpu.memory_space<vmem>>, vector<1x4x1x1xf32>
    %652 = vector.shape_cast %651 : vector<1x4x1x1xf32> to vector<4x1x1xf32>
    %653 = vector.extract_strided_slice %648 {offsets = [0, 0, 0], sizes = [2, 8, 16], strides = [1, 1, 1]} : vector<4x8x16xf32> to vector<2x8x16xf32>
    %cst_879 = arith.constant dense<0.000000e+00> : vector<2x8xf32>
    %654 = vector.multi_reduction <add>, %653, %cst_879 [2] : vector<2x8x16xf32> to vector<2x8xf32>
    %655 = vector.shape_cast %654 : vector<2x8xf32> to vector<2x8x1xf32>
    %cst_880 = arith.constant dense<0.000000e+00> : vector<2x1xf32>
    %656 = vector.multi_reduction <add>, %655, %cst_880 [1] : vector<2x8x1xf32> to vector<2x1xf32>
    %657 = vector.shape_cast %656 : vector<2x1xf32> to vector<2x1x1xf32>
    %cst_881 = arith.constant dense<0.000000e+00> : vector<1x1xf32>
    %658 = vector.multi_reduction <add>, %657, %cst_881 [0] : vector<2x1x1xf32> to vector<1x1xf32>
    %659 = vector.shape_cast %658 : vector<1x1xf32> to vector<1x1x1xf32>
    %cst_882 = arith.constant 3.906250e-03 : f32
    %660 = vector.broadcast %cst_882 : f32 to vector<1x1x1xf32>
    %661 = arith.mulf %659, %660 : vector<1x1x1xf32>
    %662 = vector.broadcast %661 : vector<1x1x1xf32> to vector<4x1x1xf32>
    %663 = arith.mulf %1, %662 : vector<4x1x1xf32>
    %664 = vector.extract_strided_slice %648 {offsets = [2, 0, 0], sizes = [2, 8, 16], strides = [1, 1, 1]} : vector<4x8x16xf32> to vector<2x8x16xf32>
    %cst_883 = arith.constant dense<0.000000e+00> : vector<2x8xf32>
    %665 = vector.multi_reduction <add>, %664, %cst_883 [2] : vector<2x8x16xf32> to vector<2x8xf32>
    %666 = vector.shape_cast %665 : vector<2x8xf32> to vector<2x8x1xf32>
    %cst_884 = arith.constant dense<0.000000e+00> : vector<2x1xf32>
    %667 = vector.multi_reduction <add>, %666, %cst_884 [1] : vector<2x8x1xf32> to vector<2x1xf32>
    %668 = vector.shape_cast %667 : vector<2x1xf32> to vector<2x1x1xf32>
    %cst_885 = arith.constant dense<0.000000e+00> : vector<1x1xf32>
    %669 = vector.multi_reduction <add>, %668, %cst_885 [0] : vector<2x1x1xf32> to vector<1x1xf32>
    %670 = vector.shape_cast %669 : vector<1x1xf32> to vector<1x1x1xf32>
    %cst_886 = arith.constant 3.906250e-03 : f32
    %671 = vector.broadcast %cst_886 : f32 to vector<1x1x1xf32>
    %672 = arith.mulf %670, %671 : vector<1x1x1xf32>
    %673 = vector.broadcast %672 : vector<1x1x1xf32> to vector<4x1x1xf32>
    %674 = arith.mulf %3, %673 : vector<4x1x1xf32>
    %675 = arith.addf %663, %674 : vector<4x1x1xf32>
    %676 = vector.broadcast %675 : vector<4x1x1xf32> to vector<4x8x16xf32>
    %677 = arith.subf %648, %676 : vector<4x8x16xf32>
    %678 = vector.extract_strided_slice %677 {offsets = [0, 0, 0], sizes = [2, 8, 16], strides = [1, 1, 1]} : vector<4x8x16xf32> to vector<2x8x16xf32>
    %679 = arith.mulf %678, %678 : vector<2x8x16xf32>
    %cst_887 = arith.constant dense<0.000000e+00> : vector<2x8xf32>
    %680 = vector.multi_reduction <add>, %679, %cst_887 [2] : vector<2x8x16xf32> to vector<2x8xf32>
    %681 = vector.shape_cast %680 : vector<2x8xf32> to vector<2x8x1xf32>
    %cst_888 = arith.constant dense<0.000000e+00> : vector<2x1xf32>
    %682 = vector.multi_reduction <add>, %681, %cst_888 [1] : vector<2x8x1xf32> to vector<2x1xf32>
    %683 = vector.shape_cast %682 : vector<2x1xf32> to vector<2x1x1xf32>
    %cst_889 = arith.constant dense<0.000000e+00> : vector<1x1xf32>
    %684 = vector.multi_reduction <add>, %683, %cst_889 [0] : vector<2x1x1xf32> to vector<1x1xf32>
    %685 = vector.shape_cast %684 : vector<1x1xf32> to vector<1x1x1xf32>
    %cst_890 = arith.constant 3.906250e-03 : f32
    %686 = vector.broadcast %cst_890 : f32 to vector<1x1x1xf32>
    %687 = arith.mulf %685, %686 : vector<1x1x1xf32>
    %688 = vector.broadcast %687 : vector<1x1x1xf32> to vector<4x1x1xf32>
    %689 = arith.mulf %1, %688 : vector<4x1x1xf32>
    %690 = vector.extract_strided_slice %677 {offsets = [2, 0, 0], sizes = [2, 8, 16], strides = [1, 1, 1]} : vector<4x8x16xf32> to vector<2x8x16xf32>
    %691 = arith.mulf %690, %690 : vector<2x8x16xf32>
    %cst_891 = arith.constant dense<0.000000e+00> : vector<2x8xf32>
    %692 = vector.multi_reduction <add>, %691, %cst_891 [2] : vector<2x8x16xf32> to vector<2x8xf32>
    %693 = vector.shape_cast %692 : vector<2x8xf32> to vector<2x8x1xf32>
    %cst_892 = arith.constant dense<0.000000e+00> : vector<2x1xf32>
    %694 = vector.multi_reduction <add>, %693, %cst_892 [1] : vector<2x8x1xf32> to vector<2x1xf32>
    %695 = vector.shape_cast %694 : vector<2x1xf32> to vector<2x1x1xf32>
    %cst_893 = arith.constant dense<0.000000e+00> : vector<1x1xf32>
    %696 = vector.multi_reduction <add>, %695, %cst_893 [0] : vector<2x1x1xf32> to vector<1x1xf32>
    %697 = vector.shape_cast %696 : vector<1x1xf32> to vector<1x1x1xf32>
    %cst_894 = arith.constant 3.906250e-03 : f32
    %698 = vector.broadcast %cst_894 : f32 to vector<1x1x1xf32>
    %699 = arith.mulf %697, %698 : vector<1x1x1xf32>
    %700 = vector.broadcast %699 : vector<1x1x1xf32> to vector<4x1x1xf32>
    %701 = arith.mulf %3, %700 : vector<4x1x1xf32>
    %702 = arith.addf %689, %701 : vector<4x1x1xf32>
    %cst_895 = arith.constant 9.99999974E-6 : f32
    %703 = vector.broadcast %cst_895 : f32 to vector<4x1x1xf32>
    %704 = arith.addf %702, %703 : vector<4x1x1xf32>
    %705 = math.rsqrt %704 : vector<4x1x1xf32>
    %706 = vector.broadcast %705 : vector<4x1x1xf32> to vector<4x8x16xf32>
    %707 = arith.mulf %677, %706 : vector<4x8x16xf32>
    %708 = vector.broadcast %650 : vector<4x1x1xf32> to vector<4x8x16xf32>
    %709 = arith.mulf %707, %708 : vector<4x8x16xf32>
    %710 = vector.broadcast %652 : vector<4x1x1xf32> to vector<4x8x16xf32>
    %711 = arith.addf %709, %710 : vector<4x8x16xf32>
    %cst_896 = arith.constant 0.000000e+00 : f32
    %712 = vector.broadcast %cst_896 : f32 to vector<4x8x16xf32>
    %713 = arith.maximumf %711, %712 : vector<4x8x16xf32>
    %714 = vector.shape_cast %713 : vector<4x8x16xf32> to vector<32x16xf32>
    %715 = arith.truncf %714 : vector<32x16xf32> to vector<32x16xbf16>
    %c0_897 = arith.constant 0 : index
    %c0_898 = arith.constant 0 : index
    %716 = vector.load %arg8[%c0_897, %c0_898] : memref<16x4xbf16, #tpu.memory_space<vmem>>, vector<16x4xbf16>
    %cst_899 = arith.constant dense<0.000000e+00> : vector<32x4xf32>
    %717 = tpu.matmul %715, %716, %cst_899 {dimension_numbers = #tpu.dot_dimension_numbers<[1], [0], [0], [1], [0, 0, 1, 1], [], []>} : vector<32x16xbf16>, vector<16x4xbf16>, vector<32x4xf32> -> vector<32x4xf32>
    %c0_900 = arith.constant 0 : index
    %c0_901 = arith.constant 0 : index
    %718 = vector.load %arg9[%c0_900, %c0_901] : memref<1x4xf32, #tpu.memory_space<vmem>>, vector<1x4xf32>
    %719 = vector.broadcast %718 : vector<1x4xf32> to vector<32x4xf32>
    %720 = arith.addf %717, %719 : vector<32x4xf32>
    %c0_902 = arith.constant 0 : index
    %c0_903 = arith.constant 0 : index
    %721 = vector.load %arg10[%c0_902, %c0_903] : memref<32x1xf32, #tpu.memory_space<vmem>>, vector<32x1xf32>
    %c0_904 = arith.constant 0 : index
    %c0_905 = arith.constant 0 : index
    %722 = vector.load %arg11[%c0_904, %c0_905] : memref<32x1xf32, #tpu.memory_space<vmem>>, vector<32x1xf32>
    %723 = vector.extract_strided_slice %720 {offsets = [0, 0], sizes = [16, 4], strides = [1, 1]} : vector<32x4xf32> to vector<16x4xf32>
    %cst_906 = arith.constant dense<0.000000e+00> : vector<16xf32>
    %724 = vector.multi_reduction <add>, %723, %cst_906 [1] : vector<16x4xf32> to vector<16xf32>
    %725 = vector.shape_cast %724 : vector<16xf32> to vector<16x1xf32>
    %cst_907 = arith.constant dense<0.000000e+00> : vector<1xf32>
    %726 = vector.multi_reduction <add>, %725, %cst_907 [0] : vector<16x1xf32> to vector<1xf32>
    %727 = vector.shape_cast %726 : vector<1xf32> to vector<1x1xf32>
    %cst_908 = arith.constant 1.562500e-02 : f32
    %728 = vector.broadcast %cst_908 : f32 to vector<1x1xf32>
    %729 = arith.mulf %727, %728 : vector<1x1xf32>
    %730 = vector.broadcast %729 : vector<1x1xf32> to vector<32x1xf32>
    %731 = arith.mulf %5, %730 : vector<32x1xf32>
    %732 = vector.extract_strided_slice %720 {offsets = [16, 0], sizes = [16, 4], strides = [1, 1]} : vector<32x4xf32> to vector<16x4xf32>
    %cst_909 = arith.constant dense<0.000000e+00> : vector<16xf32>
    %733 = vector.multi_reduction <add>, %732, %cst_909 [1] : vector<16x4xf32> to vector<16xf32>
    %734 = vector.shape_cast %733 : vector<16xf32> to vector<16x1xf32>
    %cst_910 = arith.constant dense<0.000000e+00> : vector<1xf32>
    %735 = vector.multi_reduction <add>, %734, %cst_910 [0] : vector<16x1xf32> to vector<1xf32>
    %736 = vector.shape_cast %735 : vector<1xf32> to vector<1x1xf32>
    %cst_911 = arith.constant 1.562500e-02 : f32
    %737 = vector.broadcast %cst_911 : f32 to vector<1x1xf32>
    %738 = arith.mulf %736, %737 : vector<1x1xf32>
    %739 = vector.broadcast %738 : vector<1x1xf32> to vector<32x1xf32>
    %740 = arith.mulf %7, %739 : vector<32x1xf32>
    %741 = arith.addf %731, %740 : vector<32x1xf32>
    %742 = vector.broadcast %741 : vector<32x1xf32> to vector<32x4xf32>
    %743 = arith.subf %720, %742 : vector<32x4xf32>
    %744 = vector.extract_strided_slice %743 {offsets = [0, 0], sizes = [16, 4], strides = [1, 1]} : vector<32x4xf32> to vector<16x4xf32>
    %745 = arith.mulf %744, %744 : vector<16x4xf32>
    %cst_912 = arith.constant dense<0.000000e+00> : vector<16xf32>
    %746 = vector.multi_reduction <add>, %745, %cst_912 [1] : vector<16x4xf32> to vector<16xf32>
    %747 = vector.shape_cast %746 : vector<16xf32> to vector<16x1xf32>
    %cst_913 = arith.constant dense<0.000000e+00> : vector<1xf32>
    %748 = vector.multi_reduction <add>, %747, %cst_913 [0] : vector<16x1xf32> to vector<1xf32>
    %749 = vector.shape_cast %748 : vector<1xf32> to vector<1x1xf32>
    %cst_914 = arith.constant 1.562500e-02 : f32
    %750 = vector.broadcast %cst_914 : f32 to vector<1x1xf32>
    %751 = arith.mulf %749, %750 : vector<1x1xf32>
    %752 = vector.broadcast %751 : vector<1x1xf32> to vector<32x1xf32>
    %753 = arith.mulf %5, %752 : vector<32x1xf32>
    %754 = vector.extract_strided_slice %743 {offsets = [16, 0], sizes = [16, 4], strides = [1, 1]} : vector<32x4xf32> to vector<16x4xf32>
    %755 = arith.mulf %754, %754 : vector<16x4xf32>
    %cst_915 = arith.constant dense<0.000000e+00> : vector<16xf32>
    %756 = vector.multi_reduction <add>, %755, %cst_915 [1] : vector<16x4xf32> to vector<16xf32>
    %757 = vector.shape_cast %756 : vector<16xf32> to vector<16x1xf32>
    %cst_916 = arith.constant dense<0.000000e+00> : vector<1xf32>
    %758 = vector.multi_reduction <add>, %757, %cst_916 [0] : vector<16x1xf32> to vector<1xf32>
    %759 = vector.shape_cast %758 : vector<1xf32> to vector<1x1xf32>
    %cst_917 = arith.constant 1.562500e-02 : f32
    %760 = vector.broadcast %cst_917 : f32 to vector<1x1xf32>
    %761 = arith.mulf %759, %760 : vector<1x1xf32>
    %762 = vector.broadcast %761 : vector<1x1xf32> to vector<32x1xf32>
    %763 = arith.mulf %7, %762 : vector<32x1xf32>
    %764 = arith.addf %753, %763 : vector<32x1xf32>
    %cst_918 = arith.constant 9.99999974E-6 : f32
    %765 = vector.broadcast %cst_918 : f32 to vector<32x1xf32>
    %766 = arith.addf %764, %765 : vector<32x1xf32>
    %767 = math.rsqrt %766 : vector<32x1xf32>
    %768 = vector.broadcast %767 : vector<32x1xf32> to vector<32x4xf32>
    %769 = arith.mulf %743, %768 : vector<32x4xf32>
    %770 = vector.broadcast %721 : vector<32x1xf32> to vector<32x4xf32>
    %771 = arith.mulf %769, %770 : vector<32x4xf32>
    %772 = vector.broadcast %722 : vector<32x1xf32> to vector<32x4xf32>
    %773 = arith.addf %771, %772 : vector<32x4xf32>
    %cst_919 = arith.constant 0.000000e+00 : f32
    %774 = vector.broadcast %cst_919 : f32 to vector<32x4xf32>
    %775 = arith.maximumf %773, %774 : vector<32x4xf32>
    %776 = arith.truncf %775 : vector<32x4xf32> to vector<32x4xbf16>
    %c0_920 = arith.constant 0 : index
    %c0_921 = arith.constant 0 : index
    %777 = vector.load %arg12[%c0_920, %c0_921] : memref<4x16xbf16, #tpu.memory_space<vmem>>, vector<4x16xbf16>
    %cst_922 = arith.constant dense<0.000000e+00> : vector<32x16xf32>
    %778 = tpu.matmul %776, %777, %cst_922 {dimension_numbers = #tpu.dot_dimension_numbers<[1], [0], [0], [1], [0, 0, 1, 1], [], []>} : vector<32x4xbf16>, vector<4x16xbf16>, vector<32x16xf32> -> vector<32x16xf32>
    %c0_923 = arith.constant 0 : index
    %c0_924 = arith.constant 0 : index
    %779 = vector.load %arg13[%c0_923, %c0_924] : memref<1x16xf32, #tpu.memory_space<vmem>>, vector<1x16xf32>
    %780 = vector.broadcast %779 : vector<1x16xf32> to vector<32x16xf32>
    %781 = arith.addf %778, %780 : vector<32x16xf32>
    %c0_925 = arith.constant 0 : index
    %c0_926 = arith.constant 0 : index
    %782 = vector.load %arg14[%c0_925, %c0_926] : memref<32x1xf32, #tpu.memory_space<vmem>>, vector<32x1xf32>
    %c0_927 = arith.constant 0 : index
    %c0_928 = arith.constant 0 : index
    %783 = vector.load %arg15[%c0_927, %c0_928] : memref<32x1xf32, #tpu.memory_space<vmem>>, vector<32x1xf32>
    %784 = vector.extract_strided_slice %781 {offsets = [0, 0], sizes = [16, 16], strides = [1, 1]} : vector<32x16xf32> to vector<16x16xf32>
    %cst_929 = arith.constant dense<0.000000e+00> : vector<16xf32>
    %785 = vector.multi_reduction <add>, %784, %cst_929 [1] : vector<16x16xf32> to vector<16xf32>
    %786 = vector.shape_cast %785 : vector<16xf32> to vector<16x1xf32>
    %cst_930 = arith.constant dense<0.000000e+00> : vector<1xf32>
    %787 = vector.multi_reduction <add>, %786, %cst_930 [0] : vector<16x1xf32> to vector<1xf32>
    %788 = vector.shape_cast %787 : vector<1xf32> to vector<1x1xf32>
    %cst_931 = arith.constant 3.906250e-03 : f32
    %789 = vector.broadcast %cst_931 : f32 to vector<1x1xf32>
    %790 = arith.mulf %788, %789 : vector<1x1xf32>
    %791 = vector.broadcast %790 : vector<1x1xf32> to vector<32x1xf32>
    %792 = arith.mulf %5, %791 : vector<32x1xf32>
    %793 = vector.extract_strided_slice %781 {offsets = [16, 0], sizes = [16, 16], strides = [1, 1]} : vector<32x16xf32> to vector<16x16xf32>
    %cst_932 = arith.constant dense<0.000000e+00> : vector<16xf32>
    %794 = vector.multi_reduction <add>, %793, %cst_932 [1] : vector<16x16xf32> to vector<16xf32>
    %795 = vector.shape_cast %794 : vector<16xf32> to vector<16x1xf32>
    %cst_933 = arith.constant dense<0.000000e+00> : vector<1xf32>
    %796 = vector.multi_reduction <add>, %795, %cst_933 [0] : vector<16x1xf32> to vector<1xf32>
    %797 = vector.shape_cast %796 : vector<1xf32> to vector<1x1xf32>
    %cst_934 = arith.constant 3.906250e-03 : f32
    %798 = vector.broadcast %cst_934 : f32 to vector<1x1xf32>
    %799 = arith.mulf %797, %798 : vector<1x1xf32>
    %800 = vector.broadcast %799 : vector<1x1xf32> to vector<32x1xf32>
    %801 = arith.mulf %7, %800 : vector<32x1xf32>
    %802 = arith.addf %792, %801 : vector<32x1xf32>
    %803 = vector.broadcast %802 : vector<32x1xf32> to vector<32x16xf32>
    %804 = arith.subf %781, %803 : vector<32x16xf32>
    %805 = vector.extract_strided_slice %804 {offsets = [0, 0], sizes = [16, 16], strides = [1, 1]} : vector<32x16xf32> to vector<16x16xf32>
    %806 = arith.mulf %805, %805 : vector<16x16xf32>
    %cst_935 = arith.constant dense<0.000000e+00> : vector<16xf32>
    %807 = vector.multi_reduction <add>, %806, %cst_935 [1] : vector<16x16xf32> to vector<16xf32>
    %808 = vector.shape_cast %807 : vector<16xf32> to vector<16x1xf32>
    %cst_936 = arith.constant dense<0.000000e+00> : vector<1xf32>
    %809 = vector.multi_reduction <add>, %808, %cst_936 [0] : vector<16x1xf32> to vector<1xf32>
    %810 = vector.shape_cast %809 : vector<1xf32> to vector<1x1xf32>
    %cst_937 = arith.constant 3.906250e-03 : f32
    %811 = vector.broadcast %cst_937 : f32 to vector<1x1xf32>
    %812 = arith.mulf %810, %811 : vector<1x1xf32>
    %813 = vector.broadcast %812 : vector<1x1xf32> to vector<32x1xf32>
    %814 = arith.mulf %5, %813 : vector<32x1xf32>
    %815 = vector.extract_strided_slice %804 {offsets = [16, 0], sizes = [16, 16], strides = [1, 1]} : vector<32x16xf32> to vector<16x16xf32>
    %816 = arith.mulf %815, %815 : vector<16x16xf32>
    %cst_938 = arith.constant dense<0.000000e+00> : vector<16xf32>
    %817 = vector.multi_reduction <add>, %816, %cst_938 [1] : vector<16x16xf32> to vector<16xf32>
    %818 = vector.shape_cast %817 : vector<16xf32> to vector<16x1xf32>
    %cst_939 = arith.constant dense<0.000000e+00> : vector<1xf32>
    %819 = vector.multi_reduction <add>, %818, %cst_939 [0] : vector<16x1xf32> to vector<1xf32>
    %820 = vector.shape_cast %819 : vector<1xf32> to vector<1x1xf32>
    %cst_940 = arith.constant 3.906250e-03 : f32
    %821 = vector.broadcast %cst_940 : f32 to vector<1x1xf32>
    %822 = arith.mulf %820, %821 : vector<1x1xf32>
    %823 = vector.broadcast %822 : vector<1x1xf32> to vector<32x1xf32>
    %824 = arith.mulf %7, %823 : vector<32x1xf32>
    %825 = arith.addf %814, %824 : vector<32x1xf32>
    %cst_941 = arith.constant 9.99999974E-6 : f32
    %826 = vector.broadcast %cst_941 : f32 to vector<32x1xf32>
    %827 = arith.addf %825, %826 : vector<32x1xf32>
    %828 = math.rsqrt %827 : vector<32x1xf32>
    %829 = vector.broadcast %828 : vector<32x1xf32> to vector<32x16xf32>
    %830 = arith.mulf %804, %829 : vector<32x16xf32>
    %831 = vector.broadcast %782 : vector<32x1xf32> to vector<32x16xf32>
    %832 = arith.mulf %830, %831 : vector<32x16xf32>
    %833 = vector.broadcast %783 : vector<32x1xf32> to vector<32x16xf32>
    %834 = arith.addf %832, %833 : vector<32x16xf32>
    %cst_942 = arith.constant 0.000000e+00 : f32
    %835 = vector.broadcast %cst_942 : f32 to vector<32x16xf32>
    %836 = arith.maximumf %834, %835 : vector<32x16xf32>
    %837 = arith.addf %714, %836 : vector<32x16xf32>
    %c0_943 = arith.constant 0 : index
    %c0_944 = arith.constant 0 : index
    %c0_945 = arith.constant 0 : index
    %838 = vector.load %arg16[%c0_943, %c0_944, %c0_945] : memref<1x32x16xf32, #tpu.memory_space<vmem>>, vector<1x32x16xf32>
    %839 = vector.shape_cast %838 : vector<1x32x16xf32> to vector<32x16xf32>
    %840 = vector.shape_cast %837 : vector<32x16xf32> to vector<1x32x16xf32>
    tpu.vector_store %arg16[%c0_943, %c0_944, %c0_945], %840 {strides = array<i32>} : memref<1x32x16xf32, #tpu.memory_space<vmem>>, vector<1x32x16xf32>,
    return
  }
  func.func @transform_0(%arg0: i32) -> (i32, i32, i32, i32) {
    %c0_i32 = arith.constant 0 : i32
    %c0_i32_0 = arith.constant 0 : i32
    %c0_i32_1 = arith.constant 0 : i32
    %c0_i32_2 = arith.constant 0 : i32
    return %arg0, %c0_i32, %c0_i32_0, %c0_i32_1 : i32, i32, i32, i32
  }
  func.func @transform_1(%arg0: i32) -> (i32, i32, i32) {
    %c0_i32 = arith.constant 0 : i32
    %c0_i32_0 = arith.constant 0 : i32
    %c0_i32_1 = arith.constant 0 : i32
    %c0_i32_2 = arith.constant 0 : i32
    return %c0_i32, %c0_i32_0, %c0_i32_1 : i32, i32, i32
  }
  func.func @transform_2(%arg0: i32) -> (i32, i32, i32) {
    %c0_i32 = arith.constant 0 : i32
    %c0_i32_0 = arith.constant 0 : i32
    %c0_i32_1 = arith.constant 0 : i32
    %c0_i32_2 = arith.constant 0 : i32
    return %c0_i32, %c0_i32_0, %c0_i32_1 : i32, i32, i32
  }
  func.func @transform_3(%arg0: i32) -> (i32, i32, i32, i32) {
    %c0_i32 = arith.constant 0 : i32
    %c0_i32_0 = arith.constant 0 : i32
    %c0_i32_1 = arith.constant 0 : i32
    %c0_i32_2 = arith.constant 0 : i32
    %c0_i32_3 = arith.constant 0 : i32
    return %c0_i32, %c0_i32_0, %c0_i32_1, %c0_i32_2 : i32, i32, i32, i32
  }
  func.func @transform_4(%arg0: i32) -> (i32, i32, i32, i32) {
    %c0_i32 = arith.constant 0 : i32
    %c0_i32_0 = arith.constant 0 : i32
    %c0_i32_1 = arith.constant 0 : i32
    %c0_i32_2 = arith.constant 0 : i32
    %c0_i32_3 = arith.constant 0 : i32
    return %c0_i32, %c0_i32_0, %c0_i32_1, %c0_i32_2 : i32, i32, i32, i32
  }
  func.func @transform_5(%arg0: i32) -> (i32, i32, i32, i32) {
    %c0_i32 = arith.constant 0 : i32
    %c0_i32_0 = arith.constant 0 : i32
    %c0_i32_1 = arith.constant 0 : i32
    %c0_i32_2 = arith.constant 0 : i32
    %c0_i32_3 = arith.constant 0 : i32
    return %c0_i32, %c0_i32_0, %c0_i32_1, %c0_i32_2 : i32, i32, i32, i32
  }
  func.func @transform_6(%arg0: i32) -> (i32, i32, i32) {
    %c0_i32 = arith.constant 0 : i32
    %c0_i32_0 = arith.constant 0 : i32
    %c0_i32_1 = arith.constant 0 : i32
    %c0_i32_2 = arith.constant 0 : i32
    return %c0_i32, %c0_i32_0, %c0_i32_1 : i32, i32, i32
  }
  func.func @transform_7(%arg0: i32) -> (i32, i32) {
    %c0_i32 = arith.constant 0 : i32
    %c0_i32_0 = arith.constant 0 : i32
    %c0_i32_1 = arith.constant 0 : i32
    return %c0_i32, %c0_i32_0 : i32, i32
  }
  func.func @transform_8(%arg0: i32) -> (i32, i32) {
    %c0_i32 = arith.constant 0 : i32
    %c0_i32_0 = arith.constant 0 : i32
    %c0_i32_1 = arith.constant 0 : i32
    return %c0_i32, %c0_i32_0 : i32, i32
  }
  func.func @transform_9(%arg0: i32) -> (i32, i32) {
    %c0_i32 = arith.constant 0 : i32
    %c0_i32_0 = arith.constant 0 : i32
    %c0_i32_1 = arith.constant 0 : i32
    return %c0_i32, %c0_i32_0 : i32, i32
  }
  func.func @transform_10(%arg0: i32) -> (i32, i32) {
    %c0_i32 = arith.constant 0 : i32
    %c0_i32_0 = arith.constant 0 : i32
    %c0_i32_1 = arith.constant 0 : i32
    return %c0_i32, %c0_i32_0 : i32, i32
  }
  func.func @transform_11(%arg0: i32) -> (i32, i32) {
    %c0_i32 = arith.constant 0 : i32
    %c0_i32_0 = arith.constant 0 : i32
    %c0_i32_1 = arith.constant 0 : i32
    return %c0_i32, %c0_i32_0 : i32, i32
  }
  func.func @transform_12(%arg0: i32) -> (i32, i32) {
    %c0_i32 = arith.constant 0 : i32
    %c0_i32_0 = arith.constant 0 : i32
    %c0_i32_1 = arith.constant 0 : i32
    return %c0_i32, %c0_i32_0 : i32, i32
  }
  func.func @transform_13(%arg0: i32) -> (i32, i32) {
    %c0_i32 = arith.constant 0 : i32
    %c0_i32_0 = arith.constant 0 : i32
    %c0_i32_1 = arith.constant 0 : i32
    return %c0_i32, %c0_i32_0 : i32, i32
  }
  func.func @transform_14(%arg0: i32) -> (i32, i32) {
    %c0_i32 = arith.constant 0 : i32
    %c0_i32_0 = arith.constant 0 : i32
    %c0_i32_1 = arith.constant 0 : i32
    return %c0_i32, %c0_i32_0 : i32, i32
  }
  func.func @transform_15(%arg0: i32) -> (i32, i32, i32) {
    %c0_i32 = arith.constant 0 : i32
    %c0_i32_0 = arith.constant 0 : i32
    %c0_i32_1 = arith.constant 0 : i32
    return %arg0, %c0_i32, %c0_i32_0 : i32, i32, i32
  }
}

</mosaic_0001>

<bundles_post_ra>
// kernel: tpu_custom_call.1
= control target key start
LH: loop header
LB: loop body
LE: loop exit
PB: predicated region body
PF: predicated region fallthrough
CT: control target
= control target key end

     0   :  { %s6095_s18 = smov 0   ;;  %s7628_s0 = inlined_call_operand.vmem [shape: f32[2,4,8,16], index: 0, kind: input, shape index: {}]   ;;  %s7629_s1 = inlined_call_operand.vmem [shape: bf16[2,4,36], index: 1, kind: input, shape index: {}]   ;;  %s7630_s2 = inlined_call_operand.vmem [shape: f32[2,4,1], index: 2, kind: input, shape index: {}]   ;;  %s7631_s3 = inlined_call_operand.vmem [shape: f32[2,4,1,1], index: 3, kind: input, shape index: {}]   ;;  %s7632_s4 = inlined_call_operand.vmem [shape: f32[2,4,1,1], index: 4, kind: input, shape index: {}]   ;;  %s7633_s5 = inlined_call_operand.vmem [shape: f32[2,4,1,1], index: 5, kind: input, shape index: {}]   ;;  %s7634_s6 = inlined_call_operand.vmem [shape: f32[2,32,1], index: 6, kind: input, shape index: {}]   ;;  %s7635_s7 = inlined_call_operand.vmem [shape: bf16[16,4], index: 7, kind: input, shape index: {}]   ;;  %s7636_s8 = inlined_call_operand.vmem [shape: f32[1,4], index: 8, kind: input, shape index: {}]   ;;  %s7637_s9 = inlined_call_operand.vmem [shape: f32[32,1], index: 9, kind: input, shape index: {}]   ;;  %s7638_s10 = inlined_call_operand.vmem [shape: f32[32,1], index: 10, kind: input, shape index: {}]   ;;  %s7639_s11 = inlined_call_operand.vmem [shape: bf16[4,16], index: 11, kind: input, shape index: {}]   ;;  %s7640_s12 = inlined_call_operand.vmem [shape: f32[1,16], index: 12, kind: input, shape index: {}]   ;;  %s7641_s13 = inlined_call_operand.vmem [shape: f32[32,1], index: 13, kind: input, shape index: {}]   ;;  %s7642_s14 = inlined_call_operand.vmem [shape: f32[32,1], index: 14, kind: input, shape index: {}]   ;;  %s7643_s15 = inlined_call_operand.vmem [shape: f32[2,32,16], index: 15, kind: output, shape index: {}]  }
   0x1 LB: > { %s5629_s19 = sadd.s32 4294967295, %s6006_s18   ;;  %p5633_p0 = scmp.ge.s32.totalorder %s6006_s18, 1  ;;  %s6006_s18 = sphi %s6095_s18, %s25_s18  }
   0x2   : > { %p437_p1 = scmp.lt.s32.totalorder %s6006_s18, 3 }
   0x4   : > { %p438_p2 = pnand %p5633_p0, %p437_p1 }
   0x5   : > { %p485_p3 = scmp.lt.s32.totalorder (!%p438_p2), %s5629_s19, 1  ;;  %vm514_vm0 = vcmask (!%p438_p2), 146432   ;;  %v6008_v0 = vmov (!%p438_p2), 0.0   ;;  %vm516_vm1 = vcmask (!%p438_p2), 140288   ;;  %s6009_s24 = smov (!%p438_p2), 1   ;;  %vm560_vm2 = vcmask (!%p438_p2), 1041409  }
   0x6   : > { %441 = sbr.rel (%p438_p2) target bundleno = 4118 (0x1016), region = 80  ;;  %515 = vst.msk [vmem:[#allocation2] sm:$0xff] (!%p438_p2), %vm514_vm0, %v6008_v0  ;;  %518 = vst.msk [vmem:[#allocation2 + $0x10] sm:$0xff] (!%p438_p2), %vm514_vm0, %v6008_v0  ;;  %5769 = vmatprep.subr.bf16.mxu0 (!%p438_p2), %v6008_v0  ;;  %5779 = vmatprep.subr.bf16.mxu1 (!%p438_p2), %v6008_v0  ;;  %vm563_vm3 = vcmask (!%p438_p2), 1042434   ;;  %vm569_vm4 = vcmask (!%p438_p2), 125952   ;;  %vm566_vm5 = vcmask (!%p438_p2), 1043459  }
   0x7   : > { %520 = vst.msk [vmem:[#allocation2 + $0x20] sm:$0xff] (!%p438_p2), %vm514_vm0, %v6008_v0  ;;  %522 = vst.msk [vmem:[#allocation2 + $0x30] sm:$0xff] (!%p438_p2), %vm514_vm0, %v6008_v0  ;;  %s6010_s25 = smov (!%p438_p2), 127   ;;  %s6011_s26 = smov (!%p438_p2), 126   ;;  %vm544_vm6 = vcmask (!%p438_p2), 138248   ;;  %vm6012_vm7 = vmmov (!%p438_p2), 0  }
   0x8   : > { %519 = vst.msk [vmem:[#allocation2 + $0x18] sm:$0x3] (!%p438_p2), %vm516_vm1, %v6008_v0  ;;  %517 = vst.msk [vmem:[#allocation2 + $0x8] sm:$0x3] (!%p438_p2), %vm516_vm1, %v6008_v0  ;;  %5775 = vmatprep.mubr.msk.bf16.mxu0 (!%p438_p2), %vm6012_vm7, %v6008_v0  ;;  %5785 = vmatprep.mubr.msk.bf16.mxu1 (!%p438_p2), %vm6012_vm7, %v6008_v0  ;;  %vm728_vm8 = vcmask (!%p438_p2), 1041408   ;;  %vm724_vm9 = vcmask (!%p438_p2), 293888  }
   0x9   : > { %521 = vst.msk [vmem:[#allocation2 + $0x28] sm:$0x3] (!%p438_p2), %vm516_vm1, %v6008_v0  ;;  %523 = vst.msk [vmem:[#allocation2 + $0x38] sm:$0x3] (!%p438_p2), %vm516_vm1, %v6008_v0  ;;  %vm801_vm10 = vcmask (!%p438_p2), 122880   ;;  %vm2498_vm11 = vcmask (!%p438_p2), 130048  }
   0xa   : > { %vm5105_vm12 = vcmask (!%p438_p2), 31744  }
   0xd   : > { %s7647_s19 = smov (!%p485_p3, %s5629_s19), 1  ;;  %v551_v5 = vld [vmem:[#allocation2] sm:$0x1]  ;;  %v552_v6 = vld [vmem:[#allocation2 + $0x10] sm:$0x1] }
   0xe   : > { %s7644_s20 = sshll.u32 %s7647_s19, 5  ;;  %v553_v7 = vld [vmem:[#allocation2 + $0x20] sm:$0x1]  ;;  %v554_v8 = vld [vmem:[#allocation2 + $0x30] sm:$0x1]  ;;  %v559_v9 = vrot.slane %v552_v6, 7 }
   0xf   : > { %s489_s23 = scalar_lea.vmem %s7628_s0, %s7644_s20  ;;  %v562_v10 = vrot.slane %v553_v7, 6  ;;  %v571_v11 = vld [vmem:[#allocation2] sm:$0x1]  ;;  %v565_v12 = vrot.slane %v554_v8, 5  ;;  %v572_v13 = vld [vmem:[#allocation2 + $0x10] sm:$0x1] }
  0x10   : > { %v525_v1 = vld [vmem:[%s489_s23 + $0x8] sm:$0xff]  ;;  %v524_v2 = vld [vmem:[%s489_s23] sm:$0xff]  ;;  %v526_v3 = vld [vmem:[%s489_s23 + $0x10] sm:$0xff]  ;;  %v561_v15 = vsel %vm560_vm2, %v559_v9, %v551_v5  ;;  %v579_v17 = vrot.slane %v572_v13, 7  ;;  %s7645_s20 = sshll.u32 %s7647_s19, 5 }
  0x11   : > { %534 = vrot.lane.b32.xlu0 %v525_v1, %s6009_s24  ;;  %532 = vrot.lane.b32.xlu1 %v524_v2, %s6009_s24  ;;  %v527_v4 = vld [vmem:[%s489_s23 + $0x18] sm:$0xff]  ;;  %v573_v14 = vld [vmem:[#allocation2 + $0x20] sm:$0x1]  ;;  %v574_v16 = vld [vmem:[#allocation2 + $0x30] sm:$0x1]  ;;  %v564_v19 = vsel %vm563_vm3, %v562_v10, %v561_v15  ;;  %s494_s21 = scalar_lea.vmem %s7643_s15, %s7645_s20 }
  0x12   : > { %v581_v18 = vrot.slane %v573_v14, 6  ;;  %v583_v20 = vrot.slane %v574_v16, 5  ;;  %v567_v21 = vsel %vm566_vm5, %v565_v12, %v564_v19  ;;  %v580_v22 = vsel %vm560_vm2, %v579_v17, %v571_v11  ;;  %v589_v24 = vld [vmem:[#allocation2] sm:$0x1]  ;;  %v590_v25 = vld [vmem:[#allocation2 + $0x10] sm:$0x1] }
  0x13   : > { %570 = vst.msk [vmem:[#allocation3] sm:$0xf] %vm569_vm4, %v567_v21  ;;  %v591_v26 = vld [vmem:[#allocation2 + $0x20] sm:$0x1]  ;;  %v592_v28 = vld [vmem:[#allocation2 + $0x30] sm:$0x1] }
  0x14   : > { %v582_v23 = vsel %vm563_vm3, %v581_v18, %v580_v22  ;;  %v597_v29 = vrot.slane %v590_v25, 7  ;;  %v599_v30 = vrot.slane %v591_v26, 6  ;;  %v601_v31 = vrot.slane %v592_v28, 5 }
  0x15   : > { %536 = vrot.lane.b32.xlu0 %v526_v3, %s6009_s24  ;;  %538 = vrot.lane.b32.xlu1 %v527_v4, %s6009_s24  ;;  %v584_v27 = vsel %vm566_vm5, %v583_v20, %v582_v23 }
  0x16   : > { %v598_v32 = vsel %vm560_vm2, %v597_v29, %v589_v24 }
  0x17   : > { %v600_v33 = vsel %vm563_vm3, %v599_v30, %v598_v32 }
  0x18   : > { %v602_v34 = vsel %vm566_vm5, %v601_v31, %v600_v33 }
  0x19   : > { %585 = vrot.lane.b32.xlu0 %v584_v27, %s6010_s25  ;;  %603 = vrot.lane.b32.xlu1 %v602_v34, %s6011_s26 }
  0x83   : > { %v535_v35 = vpop.permute.xlu0 %534  ;;  %v533_v36 = vpop.permute.xlu1 %532 }
  0x84   : > { %546 = vst.msk [vmem:[#allocation2 + $0x11] sm:$0xff] %vm544_vm6, %v535_v35  ;;  %545 = vst.msk [vmem:[#allocation2 + $0x1] sm:$0xff] %vm544_vm6, %v533_v36 }
  0x87   : > { %v537_v37 = vpop.permute.xlu0 %536  ;;  %v539_v38 = vpop.permute.xlu1 %538 }
  0x88   : > { %547 = vst.msk [vmem:[#allocation2 + $0x21] sm:$0xff] %vm544_vm6, %v537_v37  ;;  %548 = vst.msk [vmem:[#allocation2 + $0x31] sm:$0xff] %vm544_vm6, %v539_v38 }
  0x8b   : > { %v607_v39 = vld [vmem:[#allocation2 + $0x1] sm:$0x1]  ;;  %v608_v40 = vld [vmem:[#allocation2 + $0x11] sm:$0x1]  ;;  %v586_v41 = vpop.permute.xlu0 %585  ;;  %v693_v49 = vld [vmem:[#allocation2 + $0x2] sm:$0x1]  ;;  %v604_v57 = vpop.permute.xlu1 %603 }
  0x8c   : > { %v615_v42 = vrot.slane %v608_v40, 7  ;;  %v641_v43 = vld [vmem:[#allocation2 + $0x1] sm:$0x1]  ;;  %v642_v44 = vld [vmem:[#allocation2 + $0x11] sm:$0x1] }
  0x8d   : > { %588 = vst.msk [vmem:[#allocation3 + $0x4] sm:$0xf] %vm569_vm4, %v586_v41  ;;  %v649_v45 = vrot.slane %v642_v44, 7  ;;  %v623_v46 = vld [vmem:[#allocation2 + $0x1] sm:$0x1] }
  0x8e   : > { %v624_v47 = vld [vmem:[#allocation2 + $0x11] sm:$0x1]  ;;  %v694_v50 = vld [vmem:[#allocation2 + $0x12] sm:$0x1]  ;;  %v616_v54 = vsel %vm560_vm2, %v615_v42, %v607_v39  ;;  %606 = vst.msk [vmem:[#allocation3 + $0x8] sm:$0xf] %vm569_vm4, %v604_v57 }
  0x8f   : > { %v631_v48 = vrot.slane %v624_v47, 7  ;;  %v609_v51 = vld [vmem:[#allocation2 + $0x21] sm:$0x1]  ;;  %v610_v52 = vld [vmem:[#allocation2 + $0x31] sm:$0x1]  ;;  %v650_v60 = vsel %vm560_vm2, %v649_v45, %v641_v43  ;;  %v701_v2 = vrot.slane %v694_v50, 7 }
  0x90   : > { %v643_v53 = vld [vmem:[#allocation2 + $0x21] sm:$0x1]  ;;  %v617_v55 = vrot.slane %v609_v51, 6  ;;  %v619_v56 = vrot.slane %v610_v52, 5  ;;  %v644_v58 = vld [vmem:[#allocation2 + $0x31] sm:$0x1] }
  0x91   : > { %v651_v59 = vrot.slane %v643_v53, 6  ;;  %v653_v61 = vrot.slane %v644_v58, 5  ;;  %v625_v62 = vld [vmem:[#allocation2 + $0x21] sm:$0x1]  ;;  %v626_v63 = vld [vmem:[#allocation2 + $0x31] sm:$0x1]  ;;  %v632_v1 = vsel %vm560_vm2, %v631_v48, %v623_v46  ;;  %v702_v12 = vsel %vm560_vm2, %v701_v2, %v693_v49 }
  0x92   : > { %v675_v3 = vld [vmem:[#allocation2 + $0x2] sm:$0x1]  ;;  %v618_v4 = vsel %vm563_vm3, %v617_v55, %v616_v54  ;;  %v633_v6 = vrot.slane %v625_v62, 6  ;;  %v635_v7 = vrot.slane %v626_v63, 5  ;;  %v696_v9 = vld [vmem:[#allocation2 + $0x32] sm:$0x1] }
  0x93   : > { %v652_v5 = vsel %vm563_vm3, %v651_v59, %v650_v60  ;;  %v695_v8 = vld [vmem:[#allocation2 + $0x22] sm:$0x1]  ;;  %v620_v10 = vsel %vm566_vm5, %v619_v56, %v618_v4  ;;  %v676_v14 = vld [vmem:[#allocation2 + $0x12] sm:$0x1]  ;;  %v705_v17 = vrot.slane %v696_v9, 5 }
  0x94   : > { %v654_v11 = vsel %vm566_vm5, %v653_v61, %v652_v5  ;;  %v703_v13 = vrot.slane %v695_v8, 6  ;;  %v677_v15 = vld [vmem:[#allocation2 + $0x22] sm:$0x1]  ;;  %622 = vst.msk [vmem:[#allocation3 + $0xc] sm:$0xf] %vm569_vm4, %v620_v10  ;;  %v634_v16 = vsel %vm563_vm3, %v633_v6, %v632_v1  ;;  %v683_v19 = vrot.slane %v676_v14, 7 }
  0x95   : > { %655 = vrot.lane.b32.xlu1 %v654_v11, %s6011_s26  ;;  %v678_v18 = vld [vmem:[#allocation2 + $0x32] sm:$0x1]  ;;  %v685_v20 = vrot.slane %v677_v15, 6  ;;  %v636_v21 = vsel %vm566_vm5, %v635_v7, %v634_v16  ;;  %v840_v24 = vld [vmem:[#allocation2 + $0x1] sm:$0x1] }
  0x96   : > { %v704_v22 = vsel %vm563_vm3, %v703_v13, %v702_v12  ;;  %v687_v23 = vrot.slane %v678_v18, 5  ;;  %v841_v25 = vld [vmem:[#allocation2 + $0x11] sm:$0x1]  ;;  %637 = vrot.lane.b32.xlu0 %v636_v21, %s6010_s25  ;;  %v684_v26 = vsel %vm560_vm2, %v683_v19, %v675_v3  ;;  %v842_v27 = vld [vmem:[#allocation2 + $0x21] sm:$0x1] }
  0x97   : > { %v843_v28 = vld [vmem:[#allocation2 + $0x31] sm:$0x1]  ;;  %v848_v29 = vrot.slane %v841_v25, 7  ;;  %v706_v30 = vsel %vm566_vm5, %v705_v17, %v704_v22  ;;  %v686_v31 = vsel %vm563_vm3, %v685_v20, %v684_v26  ;;  %v850_v32 = vrot.slane %v842_v27, 6  ;;  %v822_v34 = vld [vmem:[#allocation2 + $0x1] sm:$0x1] }
  0x98   : > { %v852_v33 = vrot.slane %v843_v28, 5  ;;  %v823_v35 = vld [vmem:[#allocation2 + $0x11] sm:$0x1]  ;;  %v824_v37 = vld [vmem:[#allocation2 + $0x21] sm:$0x1]  ;;  %v688_v40 = vsel %vm566_vm5, %v687_v23, %v686_v31 }
  0x99   : > { %707 = vrot.lane.b32.xlu1 %v706_v30, %s6011_s26  ;;  %v849_v36 = vsel %vm560_vm2, %v848_v29, %v840_v24  ;;  %v825_v38 = vld [vmem:[#allocation2 + $0x31] sm:$0x1]  ;;  %v830_v39 = vrot.slane %v823_v35, 7  ;;  %v832_v42 = vrot.slane %v824_v37, 6  ;;  %v892_v44 = vld [vmem:[#allocation2 + $0x2] sm:$0x1] }
  0x9a   : > { %v851_v41 = vsel %vm563_vm3, %v850_v32, %v849_v36  ;;  %v834_v43 = vrot.slane %v825_v38, 5  ;;  %v893_v45 = vld [vmem:[#allocation2 + $0x12] sm:$0x1]  ;;  %689 = vrot.lane.b32.xlu0 %v688_v40, %s6010_s25  ;;  %v894_v47 = vld [vmem:[#allocation2 + $0x22] sm:$0x1] }
  0x9b   : > { %v831_v46 = vsel %vm560_vm2, %v830_v39, %v822_v34  ;;  %v895_v48 = vld [vmem:[#allocation2 + $0x32] sm:$0x1]  ;;  %v900_v49 = vrot.slane %v893_v45, 7  ;;  %v711_v50 = vld [vmem:[#allocation3] sm:$0xff]  ;;  %v712_v51 = vld [vmem:[#allocation3 + $0x8] sm:$0xff]  ;;  %v853_v52 = vsel %vm566_vm5, %v852_v33, %v851_v41  ;;  %v902_v54 = vrot.slane %v894_v47, 6 }
  0x9c   : > { %v833_v53 = vsel %vm563_vm3, %v832_v42, %v831_v46  ;;  %v904_v55 = vrot.slane %v895_v48, 5  ;;  %v874_v56 = vld [vmem:[#allocation2 + $0x2] sm:$0x1]  ;;  %v716_v58 = vpack.c.bf16 %v712_v51, %v711_v50  ;;  %v875_v60 = vld [vmem:[#allocation2 + $0x12] sm:$0x1] }
  0x9d   : > { %854 = vrot.lane.b32.xlu1 %v853_v52, %s6011_s26  ;;  %v835_v57 = vsel %vm566_vm5, %v834_v43, %v833_v53  ;;  %v901_v59 = vsel %vm560_vm2, %v900_v49, %v892_v44  ;;  %v876_v61 = vld [vmem:[#allocation2 + $0x22] sm:$0x1]  ;;  %v877_v62 = vld [vmem:[#allocation2 + $0x32] sm:$0x1]  ;;  %v882_v1 = vrot.slane %v875_v60, 7 }
  0x9e   : > { %v903_v63 = vsel %vm563_vm3, %v902_v54, %v901_v59  ;;  %v884_v2 = vrot.slane %v876_v61, 6  ;;  %v886_v3 = vrot.slane %v877_v62, 5  ;;  %v944_v4 = vld [vmem:[#allocation2 + $0x3] sm:$0x1]  ;;  %836 = vrot.lane.b32.xlu0 %v835_v57, %s6010_s25  ;;  %5770 = vmatpush3.bf16.msra.mxu0 %v716_v58  ;;  %v945_v6 = vld [vmem:[#allocation2 + $0x13] sm:$0x1] }
  0x9f   : > { %v905_v5 = vsel %vm566_vm5, %v904_v55, %v903_v63  ;;  %v946_v7 = vld [vmem:[#allocation2 + $0x23] sm:$0x1]  ;;  %v947_v8 = vld [vmem:[#allocation2 + $0x33] sm:$0x1]  ;;  %v883_v9 = vsel %vm560_vm2, %v882_v1, %v874_v56  ;;  %v952_v10 = vrot.slane %v945_v6, 7  ;;  %5771 = vmatprep.subr.bf16.mxu0 %v6008_v0 }
  0xa0   : > { %v954_v11 = vrot.slane %v946_v7, 6  ;;  %v956_v12 = vrot.slane %v947_v8, 5  ;;  %v926_v13 = vld [vmem:[#allocation2 + $0x3] sm:$0x1]  ;;  %v885_v14 = vsel %vm563_vm3, %v884_v2, %v883_v9  ;;  %v927_v15 = vld [vmem:[#allocation2 + $0x13] sm:$0x1] }
  0xa1   : > { %906 = vrot.lane.b32.xlu1 %v905_v5, %s6011_s26  ;;  %v928_v16 = vld [vmem:[#allocation2 + $0x23] sm:$0x1]  ;;  %v929_v17 = vld [vmem:[#allocation2 + $0x33] sm:$0x1]  ;;  %v887_v18 = vsel %vm566_vm5, %v886_v3, %v885_v14  ;;  %v953_v19 = vsel %vm560_vm2, %v952_v10, %v944_v4  ;;  %v934_v20 = vrot.slane %v927_v15, 7 }
  0xa2   : > { %v936_v21 = vrot.slane %v928_v16, 6  ;;  %v1080_v22 = vld [vmem:[#allocation2 + $0x2] sm:$0x1]  ;;  %v1081_v23 = vld [vmem:[#allocation2 + $0x12] sm:$0x1]  ;;  %888 = vrot.lane.b32.xlu0 %v887_v18, %s6010_s25  ;;  %v955_v24 = vsel %vm563_vm3, %v954_v11, %v953_v19  ;;  %v938_v25 = vrot.slane %v929_v17, 5 }
  0xa3   : > { %v1082_v26 = vld [vmem:[#allocation2 + $0x22] sm:$0x1]  ;;  %v1083_v27 = vld [vmem:[#allocation2 + $0x32] sm:$0x1]  ;;  %v1088_v28 = vrot.slane %v1081_v23, 7  ;;  %v957_v29 = vsel %vm566_vm5, %v956_v12, %v955_v24  ;;  %v935_v30 = vsel %vm560_vm2, %v934_v20, %v926_v13 }
  0xa4   : > { %v1090_v31 = vrot.slane %v1082_v26, 6  ;;  %v1092_v32 = vrot.slane %v1083_v27, 5  ;;  %v1062_v33 = vld [vmem:[#allocation2 + $0x2] sm:$0x1]  ;;  %v1063_v34 = vld [vmem:[#allocation2 + $0x12] sm:$0x1]  ;;  %v937_v35 = vsel %vm563_vm3, %v936_v21, %v935_v30 }
  0xa5   : > { %958 = vrot.lane.b32.xlu1 %v957_v29, %s6011_s26  ;;  %v1089_v36 = vsel %vm560_vm2, %v1088_v28, %v1080_v22  ;;  %v1064_v37 = vld [vmem:[#allocation2 + $0x22] sm:$0x1]  ;;  %v1065_v38 = vld [vmem:[#allocation2 + $0x32] sm:$0x1]  ;;  %v1070_v39 = vrot.slane %v1063_v34, 7  ;;  %v939_v40 = vsel %vm566_vm5, %v938_v25, %v937_v35 }
  0xa6   : > { %v1091_v41 = vsel %vm563_vm3, %v1090_v31, %v1089_v36  ;;  %v1072_v42 = vrot.slane %v1064_v37, 6  ;;  %v1074_v43 = vrot.slane %v1065_v38, 5  ;;  %v1132_v44 = vld [vmem:[#allocation2 + $0x3] sm:$0x1]  ;;  %v1133_v45 = vld [vmem:[#allocation2 + $0x13] sm:$0x1]  ;;  %940 = vrot.lane.b32.xlu0 %v939_v40, %s6010_s25 }
  0xa7   : > { %v1071_v46 = vsel %vm560_vm2, %v1070_v39, %v1062_v33  ;;  %v1134_v47 = vld [vmem:[#allocation2 + $0x23] sm:$0x1]  ;;  %v1135_v48 = vld [vmem:[#allocation2 + $0x33] sm:$0x1]  ;;  %v1140_v49 = vrot.slane %v1133_v45, 7  ;;  %v1093_v50 = vsel %vm566_vm5, %v1092_v32, %v1091_v41 }
  0xa8   : > { %v1073_v51 = vsel %vm563_vm3, %v1072_v42, %v1071_v46  ;;  %v1142_v52 = vrot.slane %v1134_v47, 6  ;;  %v1144_v53 = vrot.slane %v1135_v48, 5  ;;  %v1114_v54 = vld [vmem:[#allocation2 + $0x3] sm:$0x1]  ;;  %v1115_v55 = vld [vmem:[#allocation2 + $0x13] sm:$0x1] }
  0xa9   : > { %1094 = vrot.lane.b32.xlu1 %v1093_v50, %s6011_s26  ;;  %v1141_v56 = vsel %vm560_vm2, %v1140_v49, %v1132_v44  ;;  %v1116_v57 = vld [vmem:[#allocation2 + $0x23] sm:$0x1]  ;;  %v1117_v58 = vld [vmem:[#allocation2 + $0x33] sm:$0x1]  ;;  %v1122_v59 = vrot.slane %v1115_v55, 7  ;;  %v1075_v60 = vsel %vm566_vm5, %v1074_v43, %v1073_v51 }
  0xaa   : > { %v1143_v61 = vsel %vm563_vm3, %v1142_v52, %v1141_v56  ;;  %v1124_v62 = vrot.slane %v1116_v57, 6  ;;  %v1126_v63 = vrot.slane %v1117_v58, 5  ;;  %v1184_v1 = vld [vmem:[#allocation2 + $0x4] sm:$0x1]  ;;  %v1185_v2 = vld [vmem:[#allocation2 + $0x14] sm:$0x1]  ;;  %1076 = vrot.lane.b32.xlu0 %v1075_v60, %s6010_s25 }
  0xab   : > { %v1123_v3 = vsel %vm560_vm2, %v1122_v59, %v1114_v54  ;;  %v1186_v4 = vld [vmem:[#allocation2 + $0x24] sm:$0x1]  ;;  %v1187_v5 = vld [vmem:[#allocation2 + $0x34] sm:$0x1]  ;;  %v1192_v6 = vrot.slane %v1185_v2, 7  ;;  %v1145_v7 = vsel %vm566_vm5, %v1144_v53, %v1143_v61 }
  0xac   : > { %v1125_v8 = vsel %vm563_vm3, %v1124_v62, %v1123_v3  ;;  %v1194_v9 = vrot.slane %v1186_v4, 6  ;;  %v1196_v10 = vrot.slane %v1187_v5, 5  ;;  %v1166_v11 = vld [vmem:[#allocation2 + $0x4] sm:$0x1]  ;;  %v1167_v12 = vld [vmem:[#allocation2 + $0x14] sm:$0x1] }
  0xad   : > { %1146 = vrot.lane.b32.xlu1 %v1145_v7, %s6011_s26  ;;  %v1193_v13 = vsel %vm560_vm2, %v1192_v6, %v1184_v1  ;;  %v1168_v14 = vld [vmem:[#allocation2 + $0x24] sm:$0x1]  ;;  %v1169_v15 = vld [vmem:[#allocation2 + $0x34] sm:$0x1]  ;;  %v1174_v16 = vrot.slane %v1167_v12, 7  ;;  %v1127_v17 = vsel %vm566_vm5, %v1126_v63, %v1125_v8 }
  0xae   : > { %v1195_v18 = vsel %vm563_vm3, %v1194_v9, %v1193_v13  ;;  %v1176_v19 = vrot.slane %v1168_v14, 6  ;;  %v1178_v20 = vrot.slane %v1169_v15, 5  ;;  %v1320_v21 = vld [vmem:[#allocation2 + $0x3] sm:$0x1]  ;;  %v1321_v22 = vld [vmem:[#allocation2 + $0x13] sm:$0x1]  ;;  %1128 = vrot.lane.b32.xlu0 %v1127_v17, %s6010_s25 }
  0xaf   : > { %v1175_v23 = vsel %vm560_vm2, %v1174_v16, %v1166_v11  ;;  %v1322_v24 = vld [vmem:[#allocation2 + $0x23] sm:$0x1]  ;;  %v1323_v25 = vld [vmem:[#allocation2 + $0x33] sm:$0x1]  ;;  %v1328_v26 = vrot.slane %v1321_v22, 7  ;;  %v1197_v27 = vsel %vm566_vm5, %v1196_v10, %v1195_v18 }
  0xb0   : > { %v1177_v28 = vsel %vm563_vm3, %v1176_v19, %v1175_v23  ;;  %v1330_v29 = vrot.slane %v1322_v24, 6  ;;  %v1332_v30 = vrot.slane %v1323_v25, 5  ;;  %v1302_v31 = vld [vmem:[#allocation2 + $0x3] sm:$0x1]  ;;  %v1303_v32 = vld [vmem:[#allocation2 + $0x13] sm:$0x1] }
  0xb1   : > { %1198 = vrot.lane.b32.xlu1 %v1197_v27, %s6011_s26  ;;  %v1329_v33 = vsel %vm560_vm2, %v1328_v26, %v1320_v21  ;;  %v1304_v34 = vld [vmem:[#allocation2 + $0x23] sm:$0x1]  ;;  %v1305_v35 = vld [vmem:[#allocation2 + $0x33] sm:$0x1]  ;;  %v1310_v36 = vrot.slane %v1303_v32, 7  ;;  %v1179_v37 = vsel %vm566_vm5, %v1178_v20, %v1177_v28 }
  0xb2   : > { %v1331_v38 = vsel %vm563_vm3, %v1330_v29, %v1329_v33  ;;  %v1312_v39 = vrot.slane %v1304_v34, 6  ;;  %v1314_v40 = vrot.slane %v1305_v35, 5  ;;  %v1372_v41 = vld [vmem:[#allocation2 + $0x4] sm:$0x1]  ;;  %v1373_v42 = vld [vmem:[#allocation2 + $0x14] sm:$0x1]  ;;  %1180 = vrot.lane.b32.xlu0 %v1179_v37, %s6010_s25 }
  0xb3   : > { %v1311_v43 = vsel %vm560_vm2, %v1310_v36, %v1302_v31  ;;  %v1374_v44 = vld [vmem:[#allocation2 + $0x24] sm:$0x1]  ;;  %v1375_v45 = vld [vmem:[#allocation2 + $0x34] sm:$0x1]  ;;  %v1380_v46 = vrot.slane %v1373_v42, 7  ;;  %v1333_v47 = vsel %vm566_vm5, %v1332_v30, %v1331_v38 }
  0xb4   : > { %v1313_v48 = vsel %vm563_vm3, %v1312_v39, %v1311_v43  ;;  %v1382_v49 = vrot.slane %v1374_v44, 6  ;;  %v1384_v50 = vrot.slane %v1375_v45, 5  ;;  %v1354_v51 = vld [vmem:[#allocation2 + $0x4] sm:$0x1]  ;;  %v1355_v52 = vld [vmem:[#allocation2 + $0x14] sm:$0x1] }
  0xb5   : > { %1334 = vrot.lane.b32.xlu1 %v1333_v47, %s6011_s26  ;;  %v1381_v53 = vsel %vm560_vm2, %v1380_v46, %v1372_v41  ;;  %v1356_v54 = vld [vmem:[#allocation2 + $0x24] sm:$0x1]  ;;  %v1357_v55 = vld [vmem:[#allocation2 + $0x34] sm:$0x1]  ;;  %v1362_v56 = vrot.slane %v1355_v52, 7  ;;  %v1315_v57 = vsel %vm566_vm5, %v1314_v40, %v1313_v48 }
  0xb6   : > { %v1383_v58 = vsel %vm563_vm3, %v1382_v49, %v1381_v53  ;;  %v1364_v59 = vrot.slane %v1356_v54, 6  ;;  %v1366_v60 = vrot.slane %v1357_v55, 5  ;;  %v1424_v61 = vld [vmem:[#allocation2 + $0x5] sm:$0x1]  ;;  %v1425_v62 = vld [vmem:[#allocation2 + $0x15] sm:$0x1]  ;;  %1316 = vrot.lane.b32.xlu0 %v1315_v57, %s6010_s25 }
  0xb7   : > { %v1363_v63 = vsel %vm560_vm2, %v1362_v56, %v1354_v51  ;;  %v1426_v1 = vld [vmem:[#allocation2 + $0x25] sm:$0x1]  ;;  %v1427_v2 = vld [vmem:[#allocation2 + $0x35] sm:$0x1]  ;;  %v1432_v3 = vrot.slane %v1425_v62, 7  ;;  %v1385_v4 = vsel %vm566_vm5, %v1384_v50, %v1383_v58 }
  0xb8   : > { %v1365_v5 = vsel %vm563_vm3, %v1364_v59, %v1363_v63  ;;  %v1434_v6 = vrot.slane %v1426_v1, 6  ;;  %v1436_v7 = vrot.slane %v1427_v2, 5  ;;  %v1406_v8 = vld [vmem:[#allocation2 + $0x5] sm:$0x1]  ;;  %v1407_v9 = vld [vmem:[#allocation2 + $0x15] sm:$0x1] }
  0xb9   : > { %1386 = vrot.lane.b32.xlu1 %v1385_v4, %s6011_s26  ;;  %v1433_v10 = vsel %vm560_vm2, %v1432_v3, %v1424_v61  ;;  %v1408_v11 = vld [vmem:[#allocation2 + $0x25] sm:$0x1]  ;;  %v1409_v12 = vld [vmem:[#allocation2 + $0x35] sm:$0x1]  ;;  %v1414_v13 = vrot.slane %v1407_v9, 7  ;;  %v1367_v14 = vsel %vm566_vm5, %v1366_v60, %v1365_v5 }
  0xba   : > { %v1435_v15 = vsel %vm563_vm3, %v1434_v6, %v1433_v10  ;;  %v1416_v16 = vrot.slane %v1408_v11, 6  ;;  %v1418_v17 = vrot.slane %v1409_v12, 5  ;;  %v1560_v18 = vld [vmem:[#allocation2 + $0x4] sm:$0x1]  ;;  %v1561_v19 = vld [vmem:[#allocation2 + $0x14] sm:$0x1]  ;;  %1368 = vrot.lane.b32.xlu0 %v1367_v14, %s6010_s25 }
  0xbb   : > { %v1415_v20 = vsel %vm560_vm2, %v1414_v13, %v1406_v8  ;;  %v1562_v21 = vld [vmem:[#allocation2 + $0x24] sm:$0x1]  ;;  %v1563_v22 = vld [vmem:[#allocation2 + $0x34] sm:$0x1]  ;;  %v1568_v23 = vrot.slane %v1561_v19, 7  ;;  %v1437_v24 = vsel %vm566_vm5, %v1436_v7, %v1435_v15 }
  0xbc   : > { %v1417_v25 = vsel %vm563_vm3, %v1416_v16, %v1415_v20  ;;  %v1570_v26 = vrot.slane %v1562_v21, 6  ;;  %v1572_v27 = vrot.slane %v1563_v22, 5  ;;  %v1542_v28 = vld [vmem:[#allocation2 + $0x4] sm:$0x1]  ;;  %v1543_v29 = vld [vmem:[#allocation2 + $0x14] sm:$0x1] }
  0xbd   : > { %1438 = vrot.lane.b32.xlu1 %v1437_v24, %s6011_s26  ;;  %v1569_v30 = vsel %vm560_vm2, %v1568_v23, %v1560_v18  ;;  %v1544_v31 = vld [vmem:[#allocation2 + $0x24] sm:$0x1]  ;;  %v1545_v32 = vld [vmem:[#allocation2 + $0x34] sm:$0x1]  ;;  %v1550_v33 = vrot.slane %v1543_v29, 7  ;;  %v1419_v34 = vsel %vm566_vm5, %v1418_v17, %v1417_v25 }
  0xbe   : > { %v1571_v35 = vsel %vm563_vm3, %v1570_v26, %v1569_v30  ;;  %v1552_v36 = vrot.slane %v1544_v31, 6  ;;  %v1554_v37 = vrot.slane %v1545_v32, 5  ;;  %v1612_v38 = vld [vmem:[#allocation2 + $0x5] sm:$0x1]  ;;  %v1613_v39 = vld [vmem:[#allocation2 + $0x15] sm:$0x1]  ;;  %1420 = vrot.lane.b32.xlu0 %v1419_v34, %s6010_s25 }
  0xbf   : > { %v1551_v40 = vsel %vm560_vm2, %v1550_v33, %v1542_v28  ;;  %v1614_v41 = vld [vmem:[#allocation2 + $0x25] sm:$0x1]  ;;  %v1615_v42 = vld [vmem:[#allocation2 + $0x35] sm:$0x1]  ;;  %v1620_v43 = vrot.slane %v1613_v39, 7  ;;  %v1573_v44 = vsel %vm566_vm5, %v1572_v27, %v1571_v35 }
  0xc0   : > { %v1553_v45 = vsel %vm563_vm3, %v1552_v36, %v1551_v40  ;;  %v1622_v46 = vrot.slane %v1614_v41, 6  ;;  %v1624_v47 = vrot.slane %v1615_v42, 5  ;;  %v1594_v48 = vld [vmem:[#allocation2 + $0x5] sm:$0x1]  ;;  %v1595_v49 = vld [vmem:[#allocation2 + $0x15] sm:$0x1] }
  0xc1   : > { %1574 = vrot.lane.b32.xlu1 %v1573_v44, %s6011_s26  ;;  %v1621_v50 = vsel %vm560_vm2, %v1620_v43, %v1612_v38  ;;  %v1596_v51 = vld [vmem:[#allocation2 + $0x25] sm:$0x1]  ;;  %v1597_v52 = vld [vmem:[#allocation2 + $0x35] sm:$0x1]  ;;  %v1602_v53 = vrot.slane %v1595_v49, 7  ;;  %v1555_v54 = vsel %vm566_vm5, %v1554_v37, %v1553_v45 }
  0xc2   : > { %v1623_v55 = vsel %vm563_vm3, %v1622_v46, %v1621_v50  ;;  %v1604_v56 = vrot.slane %v1596_v51, 6  ;;  %v1606_v57 = vrot.slane %v1597_v52, 5  ;;  %v1664_v58 = vld [vmem:[#allocation2 + $0x6] sm:$0x1]  ;;  %v1665_v59 = vld [vmem:[#allocation2 + $0x16] sm:$0x1]  ;;  %1556 = vrot.lane.b32.xlu0 %v1555_v54, %s6010_s25 }
  0xc3   : > { %v1603_v60 = vsel %vm560_vm2, %v1602_v53, %v1594_v48  ;;  %v1666_v61 = vld [vmem:[#allocation2 + $0x26] sm:$0x1]  ;;  %v1667_v62 = vld [vmem:[#allocation2 + $0x36] sm:$0x1]  ;;  %v1672_v63 = vrot.slane %v1665_v59, 7  ;;  %v1625_v1 = vsel %vm566_vm5, %v1624_v47, %v1623_v55 }
  0xc4   : > { %v1605_v2 = vsel %vm563_vm3, %v1604_v56, %v1603_v60  ;;  %v1674_v3 = vrot.slane %v1666_v61, 6  ;;  %v1676_v4 = vrot.slane %v1667_v62, 5  ;;  %v1646_v5 = vld [vmem:[#allocation2 + $0x6] sm:$0x1]  ;;  %v1647_v6 = vld [vmem:[#allocation2 + $0x16] sm:$0x1] }
  0xc5   : > { %1626 = vrot.lane.b32.xlu1 %v1625_v1, %s6011_s26  ;;  %v1673_v7 = vsel %vm560_vm2, %v1672_v63, %v1664_v58  ;;  %v1648_v8 = vld [vmem:[#allocation2 + $0x26] sm:$0x1]  ;;  %v1649_v9 = vld [vmem:[#allocation2 + $0x36] sm:$0x1]  ;;  %v1654_v10 = vrot.slane %v1647_v6, 7  ;;  %v1607_v11 = vsel %vm566_vm5, %v1606_v57, %v1605_v2 }
  0xc6   : > { %v1675_v12 = vsel %vm563_vm3, %v1674_v3, %v1673_v7  ;;  %v1656_v13 = vrot.slane %v1648_v8, 6  ;;  %v1658_v14 = vrot.slane %v1649_v9, 5  ;;  %v1800_v15 = vld [vmem:[#allocation2 + $0x5] sm:$0x1]  ;;  %v1801_v16 = vld [vmem:[#allocation2 + $0x15] sm:$0x1]  ;;  %1608 = vrot.lane.b32.xlu0 %v1607_v11, %s6010_s25 }
  0xc7   : > { %v1655_v17 = vsel %vm560_vm2, %v1654_v10, %v1646_v5  ;;  %v1802_v18 = vld [vmem:[#allocation2 + $0x25] sm:$0x1]  ;;  %v1803_v19 = vld [vmem:[#allocation2 + $0x35] sm:$0x1]  ;;  %v1808_v20 = vrot.slane %v1801_v16, 7  ;;  %v1677_v21 = vsel %vm566_vm5, %v1676_v4, %v1675_v12 }
  0xc8   : > { %v1657_v22 = vsel %vm563_vm3, %v1656_v13, %v1655_v17  ;;  %v1810_v23 = vrot.slane %v1802_v18, 6  ;;  %v1812_v24 = vrot.slane %v1803_v19, 5  ;;  %v1782_v25 = vld [vmem:[#allocation2 + $0x5] sm:$0x1]  ;;  %v1783_v26 = vld [vmem:[#allocation2 + $0x15] sm:$0x1] }
  0xc9   : > { %1678 = vrot.lane.b32.xlu1 %v1677_v21, %s6011_s26  ;;  %v1809_v27 = vsel %vm560_vm2, %v1808_v20, %v1800_v15  ;;  %v1784_v28 = vld [vmem:[#allocation2 + $0x25] sm:$0x1]  ;;  %v1785_v29 = vld [vmem:[#allocation2 + $0x35] sm:$0x1]  ;;  %v1790_v30 = vrot.slane %v1783_v26, 7  ;;  %v1659_v31 = vsel %vm566_vm5, %v1658_v14, %v1657_v22 }
  0xca   : > { %v1811_v32 = vsel %vm563_vm3, %v1810_v23, %v1809_v27  ;;  %v1792_v33 = vrot.slane %v1784_v28, 6  ;;  %v1794_v34 = vrot.slane %v1785_v29, 5  ;;  %v1852_v35 = vld [vmem:[#allocation2 + $0x6] sm:$0x1]  ;;  %v1853_v36 = vld [vmem:[#allocation2 + $0x16] sm:$0x1]  ;;  %1660 = vrot.lane.b32.xlu0 %v1659_v31, %s6010_s25 }
  0xcb   : > { %v1791_v37 = vsel %vm560_vm2, %v1790_v30, %v1782_v25  ;;  %v1854_v38 = vld [vmem:[#allocation2 + $0x26] sm:$0x1]  ;;  %v1855_v39 = vld [vmem:[#allocation2 + $0x36] sm:$0x1]  ;;  %v1860_v40 = vrot.slane %v1853_v36, 7  ;;  %v1813_v41 = vsel %vm566_vm5, %v1812_v24, %v1811_v32 }
  0xcc   : > { %v1793_v42 = vsel %vm563_vm3, %v1792_v33, %v1791_v37  ;;  %v1862_v43 = vrot.slane %v1854_v38, 6  ;;  %v1864_v44 = vrot.slane %v1855_v39, 5  ;;  %v1834_v45 = vld [vmem:[#allocation2 + $0x6] sm:$0x1]  ;;  %v1835_v46 = vld [vmem:[#allocation2 + $0x16] sm:$0x1] }
  0xcd   : > { %1814 = vrot.lane.b32.xlu1 %v1813_v41, %s6011_s26  ;;  %v1861_v47 = vsel %vm560_vm2, %v1860_v40, %v1852_v35  ;;  %v1836_v48 = vld [vmem:[#allocation2 + $0x26] sm:$0x1]  ;;  %v1837_v49 = vld [vmem:[#allocation2 + $0x36] sm:$0x1]  ;;  %v1842_v50 = vrot.slane %v1835_v46, 7  ;;  %v1795_v51 = vsel %vm566_vm5, %v1794_v34, %v1793_v42 }
  0xce   : > { %v1863_v52 = vsel %vm563_vm3, %v1862_v43, %v1861_v47  ;;  %v1844_v53 = vrot.slane %v1836_v48, 6  ;;  %v1846_v54 = vrot.slane %v1837_v49, 5  ;;  %v1904_v55 = vld [vmem:[#allocation2 + $0x7] sm:$0x1]  ;;  %v1905_v56 = vld [vmem:[#allocation2 + $0x17] sm:$0x1]  ;;  %1796 = vrot.lane.b32.xlu0 %v1795_v51, %s6010_s25 }
  0xcf   : > { %v1843_v57 = vsel %vm560_vm2, %v1842_v50, %v1834_v45  ;;  %v1906_v58 = vld [vmem:[#allocation2 + $0x27] sm:$0x1]  ;;  %v1907_v59 = vld [vmem:[#allocation2 + $0x37] sm:$0x1]  ;;  %v1912_v60 = vrot.slane %v1905_v56, 7  ;;  %v1865_v61 = vsel %vm566_vm5, %v1864_v44, %v1863_v52 }
  0xd0   : > { %v1845_v62 = vsel %vm563_vm3, %v1844_v53, %v1843_v57  ;;  %v1914_v63 = vrot.slane %v1906_v58, 6  ;;  %v1916_v1 = vrot.slane %v1907_v59, 5  ;;  %v1886_v2 = vld [vmem:[#allocation2 + $0x7] sm:$0x1]  ;;  %v1887_v3 = vld [vmem:[#allocation2 + $0x17] sm:$0x1] }
  0xd1   : > { %1866 = vrot.lane.b32.xlu1 %v1865_v61, %s6011_s26  ;;  %v1913_v4 = vsel %vm560_vm2, %v1912_v60, %v1904_v55  ;;  %v1888_v5 = vld [vmem:[#allocation2 + $0x27] sm:$0x1]  ;;  %v1889_v6 = vld [vmem:[#allocation2 + $0x37] sm:$0x1]  ;;  %v1894_v7 = vrot.slane %v1887_v3, 7  ;;  %v1847_v8 = vsel %vm566_vm5, %v1846_v54, %v1845_v62 }
  0xd2   : > { %v1915_v9 = vsel %vm563_vm3, %v1914_v63, %v1913_v4  ;;  %v1896_v10 = vrot.slane %v1888_v5, 6  ;;  %v1898_v11 = vrot.slane %v1889_v6, 5  ;;  %v2040_v12 = vld [vmem:[#allocation2 + $0x6] sm:$0x1]  ;;  %v2041_v13 = vld [vmem:[#allocation2 + $0x16] sm:$0x1]  ;;  %1848 = vrot.lane.b32.xlu0 %v1847_v8, %s6010_s25 }
  0xd3   : > { %v1895_v14 = vsel %vm560_vm2, %v1894_v7, %v1886_v2  ;;  %v2042_v15 = vld [vmem:[#allocation2 + $0x26] sm:$0x1]  ;;  %v2043_v16 = vld [vmem:[#allocation2 + $0x36] sm:$0x1]  ;;  %v2048_v17 = vrot.slane %v2041_v13, 7  ;;  %v1917_v18 = vsel %vm566_vm5, %v1916_v1, %v1915_v9 }
  0xd4   : > { %v1897_v19 = vsel %vm563_vm3, %v1896_v10, %v1895_v14  ;;  %v2050_v20 = vrot.slane %v2042_v15, 6  ;;  %v2052_v21 = vrot.slane %v2043_v16, 5  ;;  %v2022_v22 = vld [vmem:[#allocation2 + $0x6] sm:$0x1]  ;;  %v2023_v23 = vld [vmem:[#allocation2 + $0x16] sm:$0x1] }
  0xd5   : > { %1918 = vrot.lane.b32.xlu1 %v1917_v18, %s6011_s26  ;;  %v2049_v24 = vsel %vm560_vm2, %v2048_v17, %v2040_v12  ;;  %v2024_v25 = vld [vmem:[#allocation2 + $0x26] sm:$0x1]  ;;  %v2025_v26 = vld [vmem:[#allocation2 + $0x36] sm:$0x1]  ;;  %v2030_v27 = vrot.slane %v2023_v23, 7  ;;  %v1899_v28 = vsel %vm566_vm5, %v1898_v11, %v1897_v19 }
  0xd6   : > { %v2051_v29 = vsel %vm563_vm3, %v2050_v20, %v2049_v24  ;;  %v2032_v30 = vrot.slane %v2024_v25, 6  ;;  %v2034_v31 = vrot.slane %v2025_v26, 5  ;;  %v2092_v32 = vld [vmem:[#allocation2 + $0x7] sm:$0x1]  ;;  %v2093_v33 = vld [vmem:[#allocation2 + $0x17] sm:$0x1]  ;;  %1900 = vrot.lane.b32.xlu0 %v1899_v28, %s6010_s25 }
  0xd7   : > { %v2031_v34 = vsel %vm560_vm2, %v2030_v27, %v2022_v22  ;;  %v2094_v35 = vld [vmem:[#allocation2 + $0x27] sm:$0x1]  ;;  %v2095_v36 = vld [vmem:[#allocation2 + $0x37] sm:$0x1]  ;;  %v2100_v37 = vrot.slane %v2093_v33, 7  ;;  %v2053_v38 = vsel %vm566_vm5, %v2052_v21, %v2051_v29 }
  0xd8   : > { %v2033_v39 = vsel %vm563_vm3, %v2032_v30, %v2031_v34  ;;  %v2102_v40 = vrot.slane %v2094_v35, 6  ;;  %v2104_v41 = vrot.slane %v2095_v36, 5  ;;  %v2074_v42 = vld [vmem:[#allocation2 + $0x7] sm:$0x1]  ;;  %v2075_v43 = vld [vmem:[#allocation2 + $0x17] sm:$0x1] }
  0xd9   : > { %v2385_v44 = vld [vmem:[#allocation2 + $0x19] sm:$0x1]  ;;  %2054 = vrot.lane.b32.xlu1 %v2053_v38, %s6011_s26  ;;  %v2101_v45 = vsel %vm560_vm2, %v2100_v37, %v2092_v32  ;;  %v2076_v46 = vld [vmem:[#allocation2 + $0x27] sm:$0x1]  ;;  %v2077_v47 = vld [vmem:[#allocation2 + $0x37] sm:$0x1]  ;;  %v2035_v49 = vsel %vm566_vm5, %v2034_v31, %v2033_v39 }
  0xda   : > { %v2082_v48 = vrot.slane %v2075_v43, 7  ;;  %v2103_v50 = vsel %vm563_vm3, %v2102_v40, %v2101_v45  ;;  %v2084_v51 = vrot.slane %v2076_v46, 6  ;;  %v2086_v52 = vrot.slane %v2077_v47, 5  ;;  %v2144_v53 = vld [vmem:[#allocation2 + $0x8] sm:$0x1]  ;;  %2036 = vrot.lane.b32.xlu0 %v2035_v49, %s6010_s25 }
  0xdb   : > { %v2145_v54 = vld [vmem:[#allocation2 + $0x18] sm:$0x1]  ;;  %v2367_v55 = vld [vmem:[#allocation2 + $0x19] sm:$0x1]  ;;  %v2146_v57 = vld [vmem:[#allocation2 + $0x28] sm:$0x1]  ;;  %v2105_v60 = vsel %vm566_vm5, %v2104_v41, %v2103_v50 }
  0xdc   : > { %v2083_v56 = vsel %vm560_vm2, %v2082_v48, %v2074_v42  ;;  %v2147_v58 = vld [vmem:[#allocation2 + $0x38] sm:$0x1]  ;;  %v2152_v59 = vrot.slane %v2145_v54, 7  ;;  %v2154_v62 = vrot.slane %v2146_v57, 6  ;;  %v2126_v1 = vld [vmem:[#allocation2 + $0x8] sm:$0x1] }
  0xdd   : > { %v2085_v61 = vsel %vm563_vm3, %v2084_v51, %v2083_v56  ;;  %v2156_v63 = vrot.slane %v2147_v58, 5  ;;  %v2127_v2 = vld [vmem:[#allocation2 + $0x18] sm:$0x1]  ;;  %v2384_v3 = vld [vmem:[#allocation2 + $0x9] sm:$0x1]  ;;  %2106 = vrot.lane.b32.xlu1 %v2105_v60, %s6011_s26  ;;  %v2392_v9 = vrot.slane %v2385_v44, 7 }
  0xde   : > { %v2386_v4 = vld [vmem:[#allocation2 + $0x29] sm:$0x1]  ;;  %v2153_v5 = vsel %vm560_vm2, %v2152_v59, %v2144_v53  ;;  %v2128_v6 = vld [vmem:[#allocation2 + $0x28] sm:$0x1]  ;;  %v2129_v7 = vld [vmem:[#allocation2 + $0x38] sm:$0x1]  ;;  %v2087_v10 = vsel %vm566_vm5, %v2086_v52, %v2085_v61 }
  0xdf   : > { %v2134_v8 = vrot.slane %v2127_v2, 7  ;;  %v2155_v11 = vsel %vm563_vm3, %v2154_v62, %v2153_v5  ;;  %v2136_v12 = vrot.slane %v2128_v6, 6  ;;  %v2138_v13 = vrot.slane %v2129_v7, 5  ;;  %v2280_v14 = vld [vmem:[#allocation2 + $0x7] sm:$0x1]  ;;  %2088 = vrot.lane.b32.xlu0 %v2087_v10, %s6010_s25 }
  0xe0   : > { %v2281_v15 = vld [vmem:[#allocation2 + $0x17] sm:$0x1]  ;;  %v2366_v16 = vld [vmem:[#allocation2 + $0x9] sm:$0x1]  ;;  %v2282_v19 = vld [vmem:[#allocation2 + $0x27] sm:$0x1]  ;;  %v2157_v23 = vsel %vm566_vm5, %v2156_v63, %v2155_v11  ;;  %v2393_v34 = vsel %vm560_vm2, %v2392_v9, %v2384_v3 }
  0xe1   : > { %v6305_v17 = vld [vmem:[#allocation2 + $0x29] sm:$0x1]  ;;  %v2135_v18 = vsel %vm560_vm2, %v2134_v8, %v2126_v1  ;;  %v2283_v20 = vld [vmem:[#allocation2 + $0x37] sm:$0x1]  ;;  %v2288_v21 = vrot.slane %v2281_v15, 7  ;;  %v2374_v22 = vrot.slane %v2367_v55, 7  ;;  %2158 = vrot.lane.b32.xlu1 %v2157_v23, %s6011_s26 }
  0xe2   : > { %v2137_v24 = vsel %vm563_vm3, %v2136_v12, %v2135_v18  ;;  %v2290_v25 = vrot.slane %v2282_v19, 6  ;;  %v2292_v26 = vrot.slane %v2283_v20, 5  ;;  %v2262_v27 = vld [vmem:[#allocation2 + $0x7] sm:$0x1]  ;;  %v2263_v28 = vld [vmem:[#allocation2 + $0x17] sm:$0x1] }
  0xe3   : > { %v2387_v29 = vld [vmem:[#allocation2 + $0x39] sm:$0x1]  ;;  %v2289_v30 = vsel %vm560_vm2, %v2288_v21, %v2280_v14  ;;  %v2264_v31 = vld [vmem:[#allocation2 + $0x27] sm:$0x1]  ;;  %v2265_v32 = vld [vmem:[#allocation2 + $0x37] sm:$0x1]  ;;  %v2139_v36 = vsel %vm566_vm5, %v2138_v13, %v2137_v24  ;;  %v2375_v47 = vsel %vm560_vm2, %v2374_v22, %v2366_v16 }
  0xe4   : > { %v2270_v33 = vrot.slane %v2263_v28, 7  ;;  %v2394_v35 = vrot.slane %v2386_v4, 6  ;;  %v2291_v37 = vsel %vm563_vm3, %v2290_v25, %v2289_v30  ;;  %v2272_v38 = vrot.slane %v2264_v31, 6  ;;  %v2332_v40 = vld [vmem:[#allocation2 + $0x8] sm:$0x1]  ;;  %2140 = vrot.lane.b32.xlu0 %v2139_v36, %s6010_s25 }
  0xe5   : > { %v2274_v39 = vrot.slane %v2265_v32, 5  ;;  %v2333_v41 = vld [vmem:[#allocation2 + $0x18] sm:$0x1]  ;;  %v2369_v42 = vld [vmem:[#allocation2 + $0x39] sm:$0x1]  ;;  %v2376_v48 = vrot.slane %v6305_v17, 6  ;;  %v2293_v49 = vsel %vm566_vm5, %v2292_v26, %v2291_v37 }
  0xe6   : > { %v2271_v43 = vsel %vm560_vm2, %v2270_v33, %v2262_v27  ;;  %v2334_v44 = vld [vmem:[#allocation2 + $0x28] sm:$0x1]  ;;  %v2335_v45 = vld [vmem:[#allocation2 + $0x38] sm:$0x1]  ;;  %v2340_v46 = vrot.slane %v2333_v41, 7  ;;  %2294 = vrot.lane.b32.xlu1 %v2293_v49, %s6011_s26  ;;  %v2395_v59 = vsel %vm563_vm3, %v2394_v35, %v2393_v34  ;;  %v2396_v60 = vrot.slane %v2387_v29, 5 }
  0xe7   : > { %v2273_v50 = vsel %vm563_vm3, %v2272_v38, %v2271_v43  ;;  %v2342_v51 = vrot.slane %v2334_v44, 6  ;;  %v2344_v52 = vrot.slane %v2335_v45, 5  ;;  %v2314_v53 = vld [vmem:[#allocation2 + $0x8] sm:$0x1]  ;;  %v2315_v54 = vld [vmem:[#allocation2 + $0x18] sm:$0x1]  ;;  %v2377_v15 = vsel %vm563_vm3, %v2376_v48, %v2375_v47 }
  0xe8   : > { %v2341_v55 = vsel %vm560_vm2, %v2340_v46, %v2332_v40  ;;  %v2316_v56 = vld [vmem:[#allocation2 + $0x28] sm:$0x1]  ;;  %v2317_v57 = vld [vmem:[#allocation2 + $0x38] sm:$0x1]  ;;  %v2322_v58 = vrot.slane %v2315_v54, 7  ;;  %v2275_v61 = vsel %vm566_vm5, %v2274_v39, %v2273_v50  ;;  %v2378_v5 = vrot.slane %v2369_v42, 5 }
  0xe9   : > { %v2343_v62 = vsel %vm563_vm3, %v2342_v51, %v2341_v55  ;;  %v2324_v63 = vrot.slane %v2316_v56, 6  ;;  %v2326_v1 = vrot.slane %v2317_v57, 5  ;;  %v659_v2 = vld [vmem:[#allocation2 + $0x2] sm:$0x1]  ;;  %v660_v3 = vld [vmem:[#allocation2 + $0x12] sm:$0x1]  ;;  %2276 = vrot.lane.b32.xlu0 %v2275_v61, %s6010_s25  ;;  %v2397_v16 = vsel %vm566_vm5, %v2396_v60, %v2395_v59 }
  0xea   : > { %v2323_v4 = vsel %vm560_vm2, %v2322_v58, %v2314_v53  ;;  %v661_v6 = vld [vmem:[#allocation2 + $0x22] sm:$0x1]  ;;  %v662_v7 = vld [vmem:[#allocation2 + $0x32] sm:$0x1]  ;;  %v667_v8 = vrot.slane %v660_v3, 7  ;;  %v2345_v9 = vsel %vm566_vm5, %v2344_v52, %v2343_v62  ;;  %v2379_v32 = vsel %vm566_vm5, %v2378_v5, %v2377_v15 }
  0xeb   : > { %v2325_v10 = vsel %vm563_vm3, %v2324_v63, %v2323_v4  ;;  %v669_v11 = vrot.slane %v661_v6, 6  ;;  %v671_v12 = vrot.slane %v662_v7, 5  ;;  %v806_v13 = vld [vmem:[#allocation2 + $0x1] sm:$0x1]  ;;  %v807_v14 = vld [vmem:[#allocation2 + $0x11] sm:$0x1]  ;;  %2346 = vrot.lane.b32.xlu1 %v2345_v9, %s6011_s26 }
  0xec   : > { %v668_v17 = vsel %vm560_vm2, %v667_v8, %v659_v2  ;;  %v808_v18 = vld [vmem:[#allocation2 + $0x21] sm:$0x1]  ;;  %v809_v19 = vld [vmem:[#allocation2 + $0x31] sm:$0x1]  ;;  %v814_v20 = vrot.slane %v807_v14, 7  ;;  %v2327_v21 = vsel %vm566_vm5, %v2326_v1, %v2325_v10  ;;  %v6013_v40 = vmov 0  }
  0xed   : > { %v670_v22 = vsel %vm563_vm3, %v669_v11, %v668_v17  ;;  %v816_v23 = vrot.slane %v808_v18, 6  ;;  %v818_v24 = vrot.slane %v809_v19, 5  ;;  %v858_v25 = vld [vmem:[#allocation2 + $0x2] sm:$0x1]  ;;  %v859_v26 = vld [vmem:[#allocation2 + $0x12] sm:$0x1]  ;;  %2328 = vrot.lane.b32.xlu0 %v2327_v21, %s6010_s25  ;;  %5958 = vset.pattern.permute.xlu1 %v6013_v40 }
  0xee   : > { %v672_v27 = vsel %vm566_vm5, %v671_v12, %v670_v22  ;;  %v815_v28 = vsel %vm560_vm2, %v814_v20, %v806_v13  ;;  %v860_v29 = vld [vmem:[#allocation2 + $0x22] sm:$0x1]  ;;  %v861_v30 = vld [vmem:[#allocation2 + $0x32] sm:$0x1]  ;;  %v866_v31 = vrot.slane %v859_v26, 7  ;;  %5957 = vset.pattern.permute.xlu0 %v6013_v40 }
  0xef   : > { %674 = vst.msk [vmem:[#allocation3 + $0x18] sm:$0xf] %vm569_vm4, %v672_v27  ;;  %v817_v33 = vsel %vm563_vm3, %v816_v23, %v815_v28  ;;  %v868_v34 = vrot.slane %v860_v29, 6  ;;  %v870_v35 = vrot.slane %v861_v30, 5  ;;  %2398 = vrot.lane.b32.xlu1 %v2397_v16, %s6011_s26  ;;  %v911_v43 = vld [vmem:[#allocation2 + $0x13] sm:$0x1] }
  0xf0   : > { %v819_v36 = vsel %vm566_vm5, %v818_v24, %v817_v33  ;;  %v867_v37 = vsel %vm560_vm2, %v866_v31, %v858_v25  ;;  %v912_v45 = vld [vmem:[#allocation2 + $0x23] sm:$0x1]  ;;  %v1099_v46 = vld [vmem:[#allocation2 + $0x13] sm:$0x1]  ;;  %v918_v49 = vrot.slane %v911_v43, 7 }
  0xf1   : > { %821 = vst.msk [vmem:[#allocation3] sm:$0xf] %vm569_vm4, %v819_v36  ;;  %v869_v38 = vsel %vm563_vm3, %v868_v34, %v867_v37  ;;  %2380 = vrot.lane.b32.xlu0 %v2379_v32, %s6010_s25  ;;  %v910_v48 = vld [vmem:[#allocation2 + $0x3] sm:$0x1]  ;;  %v913_v51 = vld [vmem:[#allocation2 + $0x33] sm:$0x1] }
  0xf2   : > { %v871_v39 = vsel %vm566_vm5, %v870_v35, %v869_v38  ;;  %v1100_v50 = vld [vmem:[#allocation2 + $0x23] sm:$0x1]  ;;  %v920_v52 = vrot.slane %v912_v45, 6  ;;  %v1047_v53 = vld [vmem:[#allocation2 + $0x12] sm:$0x1]  ;;  %v1106_v57 = vrot.slane %v1099_v46, 7  ;;  %v919_v62 = vsel %vm560_vm2, %v918_v49, %v910_v48 }
  0xf3   : > { %873 = vst.msk [vmem:[#allocation3 + $0xc] sm:$0xf] %vm569_vm4, %v871_v39  ;;  %v1048_v55 = vld [vmem:[#allocation2 + $0x22] sm:$0x1]  ;;  %v1098_v56 = vld [vmem:[#allocation2 + $0x3] sm:$0x1] }
  0xf4   : > { %v1101_v58 = vld [vmem:[#allocation2 + $0x33] sm:$0x1]  ;;  %v1108_v59 = vrot.slane %v1100_v50, 6  ;;  %v550_v60 = vld [vmem:[%s7630_s2] sm:$0xf]  ;;  %v922_v63 = vrot.slane %v913_v51, 5  ;;  %v921_v2 = vsel %vm563_vm3, %v920_v52, %v919_v62  ;;  %v1107_v8 = vsel %vm560_vm2, %v1106_v57, %v1098_v56 }
  0xf5   : > { %v1054_v1 = vrot.slane %v1047_v53, 7  ;;  %721 = vperm.xlu0 %5957, %v550_v60   ;;  %v1046_v3 = vld [vmem:[#allocation2 + $0x2] sm:$0x1]  ;;  %v1049_v4 = vld [vmem:[#allocation2 + $0x32] sm:$0x1]  ;;  %v1056_v5 = vrot.slane %v1048_v55, 6 }
  0xf6   : > { %v1110_v9 = vrot.slane %v1101_v58, 5  ;;  %v1109_v11 = vsel %vm563_vm3, %v1108_v59, %v1107_v8  ;;  %v923_v14 = vsel %vm566_vm5, %v922_v63, %v921_v2  ;;  %v1058_v16 = vrot.slane %v1049_v4, 5  ;;  %v1151_v19 = vld [vmem:[#allocation2 + $0x14] sm:$0x1]  ;;  %v1152_v24 = vld [vmem:[#allocation2 + $0x24] sm:$0x1] }
  0xf7   : > { %v1055_v15 = vsel %vm560_vm2, %v1054_v1, %v1046_v3  ;;  %v1339_v25 = vld [vmem:[#allocation2 + $0x14] sm:$0x1]  ;;  %v1150_v29 = vld [vmem:[#allocation2 + $0x4] sm:$0x1]  ;;  %v1158_v30 = vrot.slane %v1151_v19, 7  ;;  %v1160_v34 = vrot.slane %v1152_v24, 6 }
  0xf8   : > { %v1057_v18 = vsel %vm563_vm3, %v1056_v5, %v1055_v15  ;;  %v1111_v23 = vsel %vm566_vm5, %v1110_v9, %v1109_v11  ;;  %v1340_v31 = vld [vmem:[#allocation2 + $0x24] sm:$0x1]  ;;  %v1153_v33 = vld [vmem:[#allocation2 + $0x34] sm:$0x1]  ;;  %v1287_v35 = vld [vmem:[#allocation2 + $0x13] sm:$0x1] }
  0xf9   : > { %v1059_v28 = vsel %vm566_vm5, %v1058_v16, %v1057_v18  ;;  %v6381_v38 = vld [vmem:[%s7629_s1] sm:$0x3]  ;;  %v1288_v39 = vld [vmem:[#allocation2 + $0x23] sm:$0x1]  ;;  %v1346_v40 = vrot.slane %v1339_v25, 7  ;;  %v1348_v43 = vrot.slane %v1340_v31, 6  ;;  %v1159_v45 = vsel %vm560_vm2, %v1158_v30, %v1150_v29 }
  0xfa   : > { %v1162_v46 = vrot.slane %v1153_v33, 5  ;;  %v1161_v48 = vsel %vm563_vm3, %v1160_v34, %v1159_v45  ;;  %v1286_v49 = vld [vmem:[#allocation2 + $0x3] sm:$0x1]  ;;  %v1289_v50 = vld [vmem:[#allocation2 + $0x33] sm:$0x1]  ;;  %v1296_v51 = vrot.slane %v1288_v39, 6 }
  0xfb   : > { %v1298_v62 = vrot.slane %v1289_v50, 5  ;;  %v1391_v2 = vld [vmem:[#allocation2 + $0x15] sm:$0x1]  ;;  %v1527_v18 = vld [vmem:[#allocation2 + $0x14] sm:$0x1] }
  0xfc   : > { %v1163_v60 = vsel %vm566_vm5, %v1162_v46, %v1161_v48  ;;  %v1579_v8 = vld [vmem:[#allocation2 + $0x15] sm:$0x1]  ;;  %v1534_v29 = vrot.slane %v1527_v18, 7  ;;  %v1526_v31 = vld [vmem:[#allocation2 + $0x4] sm:$0x1] }
  0xfd   : > { %v1393_v16 = vld [vmem:[#allocation2 + $0x35] sm:$0x1]  ;;  %v1631_v48 = vld [vmem:[#allocation2 + $0x16] sm:$0x1] }
  0xfe   : > { %v1581_v24 = vld [vmem:[#allocation2 + $0x35] sm:$0x1] }
 0x107   : > { %v656_v41 = vpop.permute.xlu1 %655 }
 0x108   : > { %658 = vst.msk [vmem:[#allocation3 + $0x14] sm:$0xf] %vm569_vm4, %v656_v41  ;;  %v638_v42 = vpop.permute.xlu0 %637  ;;  %v1338_v41 = vld [vmem:[#allocation2 + $0x4] sm:$0x1] }
 0x109   : > { %640 = vst.msk [vmem:[#allocation3 + $0x10] sm:$0xf] %vm569_vm4, %v638_v42  ;;  %v1341_v42 = vld [vmem:[#allocation2 + $0x34] sm:$0x1] }
 0x10a   : > { %v1350_v55 = vrot.slane %v1341_v42, 5 }
 0x10b   : > { %v708_v44 = vpop.permute.xlu1 %707 }
 0x10c   : > { %710 = vst.msk [vmem:[#allocation3 + $0x20] sm:$0xf] %vm569_vm4, %v708_v44  ;;  %v690_v47 = vpop.permute.xlu0 %689 }
 0x10d   : > { %692 = vst.msk [vmem:[#allocation3 + $0x1c] sm:$0xf] %vm569_vm4, %v690_v47  ;;  %v1294_v47 = vrot.slane %v1287_v35, 7 }
 0x10f   : > { %v855_v54 = vpop.permute.xlu1 %854 }
 0x110   : > { %857 = vst.msk [vmem:[#allocation3 + $0x8] sm:$0xf] %vm569_vm4, %v855_v54  ;;  %v837_v61 = vpop.permute.xlu0 %836  ;;  %v713_v6 = vld [vmem:[#allocation3 + $0x10] sm:$0xff]  ;;  %v1347_v54 = vsel %vm560_vm2, %v1346_v40, %v1338_v41 }
 0x111   : > { %839 = vst.msk [vmem:[#allocation3 + $0x4] sm:$0xf] %vm569_vm4, %v837_v61  ;;  %v1349_v57 = vsel %vm563_vm3, %v1348_v43, %v1347_v54  ;;  %v1295_v61 = vsel %vm560_vm2, %v1294_v47, %v1286_v49  ;;  %v1819_v54 = vld [vmem:[#allocation2 + $0x16] sm:$0x1] }
 0x112   : > { %v1297_v1 = vsel %vm563_vm3, %v1296_v51, %v1295_v61 }
 0x113   : > { %v907_v7 = vpop.permute.xlu1 %906  ;;  %v715_v10 = vld [vmem:[#allocation3 + $0x20] sm:$0xf]  ;;  %v1299_v11 = vsel %vm566_vm5, %v1298_v62, %v1297_v1  ;;  %v1633_v62 = vld [vmem:[#allocation2 + $0x36] sm:$0x1]  ;;  %v1767_v1 = vld [vmem:[#allocation2 + $0x15] sm:$0x1] }
 0x114   : > { %909 = vst.msk [vmem:[#allocation3 + $0x14] sm:$0xf] %vm569_vm4, %v907_v7  ;;  %v714_v12 = vld [vmem:[#allocation3 + $0x18] sm:$0xff]  ;;  %v889_v13 = vpop.permute.xlu0 %888  ;;  %v718_v22 = vpack.c.bf16 %v715_v10, %v715_v10  ;;  %v1392_v7 = vld [vmem:[#allocation2 + $0x25] sm:$0x1] }
 0x115   : > { %891 = vst.msk [vmem:[#allocation3 + $0x10] sm:$0xf] %vm569_vm4, %v889_v13  ;;  %v717_v17 = vpack.c.bf16 %v714_v12, %v713_v6  ;;  %925 = vst.msk [vmem:[#allocation3 + $0x18] sm:$0xf] %vm569_vm4, %v923_v14  ;;  %v1351_v6 = vsel %vm566_vm5, %v1350_v55, %v1349_v57  ;;  %v1390_v12 = vld [vmem:[#allocation2 + $0x5] sm:$0x1] }
 0x116   : > { %v730_v36 = vsel %vm728_vm8, %v718_v22, 0  ;;  %v1398_v13 = vrot.slane %v1391_v2, 7  ;;  %v1580_v14 = vld [vmem:[#allocation2 + $0x25] sm:$0x1]  ;;  %v1586_v22 = vrot.slane %v1579_v8, 7 }
 0x117   : > { %v963_v20 = vld [vmem:[#allocation3 + $0x8] sm:$0xff]  ;;  %v959_v21 = vpop.permute.xlu1 %958  ;;  %5772 = vmatpush3.bf16.msra.mxu0 %v717_v17  ;;  %v1400_v17 = vrot.slane %v1392_v7, 6  ;;  %v1588_v25 = vrot.slane %v1580_v14, 6  ;;  %v1821_v7 = vld [vmem:[#allocation2 + $0x36] sm:$0x1] }
 0x118   : > { %961 = vst.msk [vmem:[#allocation3 + $0x20] sm:$0xf] %vm569_vm4, %v959_v21  ;;  %1113 = vst.msk [vmem:[#allocation3 + $0xc] sm:$0xf] %vm569_vm4, %v1111_v23  ;;  %v962_v26 = vld [vmem:[#allocation3] sm:$0xff]  ;;  %v941_v27 = vpop.permute.xlu0 %940  ;;  %5773 = vmatprep.subr.bf16.mxu0 %v6008_v0 }
 0x119   : > { %943 = vst.msk [vmem:[#allocation3 + $0x1c] sm:$0xf] %vm569_vm4, %v941_v27  ;;  %v967_v32 = vpack.c.bf16 %v963_v20, %v962_v26  ;;  %1061 = vst.msk [vmem:[#allocation3] sm:$0xf] %vm569_vm4, %v1059_v28  ;;  %v1528_v21 = vld [vmem:[#allocation2 + $0x24] sm:$0x1]  ;;  %v1399_v27 = vsel %vm560_vm2, %v1398_v13, %v1390_v12 }
 0x11a   : > { %v1578_v23 = vld [vmem:[#allocation2 + $0x5] sm:$0x1]  ;;  %v1402_v28 = vrot.slane %v1393_v16, 5  ;;  %v1401_v30 = vsel %vm563_vm3, %v1400_v17, %v1399_v27  ;;  %v1536_v33 = vrot.slane %v1528_v21, 6  ;;  %v1774_v12 = vrot.slane %v1767_v1, 7 }
 0x11b   : > { %v1095_v37 = vpop.permute.xlu1 %1094  ;;  %5774 = vmatpush3.bf16.msra.mxu0 %v730_v36  ;;  %5780 = vmatpush3.bf16.msra.mxu1 %v967_v32  ;;  %v1529_v32 = vld [vmem:[#allocation2 + $0x34] sm:$0x1]  ;;  %v1587_v36 = vsel %vm560_vm2, %v1586_v22, %v1578_v23  ;;  %v1766_v14 = vld [vmem:[#allocation2 + $0x5] sm:$0x1] }
 0x11c   : > { %1097 = vst.msk [vmem:[#allocation3 + $0x8] sm:$0xf] %vm569_vm4, %v1095_v37  ;;  %v1077_v44 = vpop.permute.xlu0 %1076  ;;  %5781 = vmatprep.subr.bf16.mxu1 %v6008_v0  ;;  %5789 = vmatprep.subr.bf16.mxu0 %v6008_v0  ;;  %v964_v52 = vld [vmem:[#allocation3 + $0x10] sm:$0xff]  ;;  %v1590_v37 = vrot.slane %v1581_v24, 5  ;;  %v1589_v40 = vsel %vm563_vm3, %v1588_v25, %v1587_v36  ;;  %v1403_v43 = vsel %vm566_vm5, %v1402_v28, %v1401_v30  ;;  %v1538_v45 = vrot.slane %v1529_v32, 5 }
 0x11d   : > { %1079 = vst.msk [vmem:[#allocation3 + $0x4] sm:$0xf] %vm569_vm4, %v1077_v44  ;;  %v1535_v44 = vsel %vm560_vm2, %v1534_v29, %v1526_v31  ;;  %v1871_v30 = vld [vmem:[#allocation2 + $0x17] sm:$0x1] }
 0x11e   : > { %5776 = vmatmul.mubr.msk.bf16.vlgmr.msra.gmra.mrb[0].mxu0 %vm724_vm9, %v6381_v38  ;;  %v1537_v47 = vsel %vm563_vm3, %v1536_v33, %v1535_v44  ;;  %v2059_v36 = vld [vmem:[#allocation2 + $0x17] sm:$0x1] }
 0x11f   : > { %v1147_v53 = vpop.permute.xlu1 %1146  ;;  %v966_v56 = vld [vmem:[#allocation3 + $0x20] sm:$0xf]  ;;  %5795 = vmatprep.mubr.msk.bf16.mxu0 %vm6012_vm7, %v6008_v0  ;;  %v1539_v57 = vsel %vm566_vm5, %v1538_v45, %v1537_v47  ;;  %v1873_v45 = vld [vmem:[#allocation2 + $0x37] sm:$0x1]  ;;  %v2007_v47 = vld [vmem:[#allocation2 + $0x16] sm:$0x1] }
 0x120   : > { %1149 = vst.msk [vmem:[#allocation3 + $0x14] sm:$0xf] %vm569_vm4, %v1147_v53  ;;  %v965_v58 = vld [vmem:[#allocation3 + $0x18] sm:$0xff]  ;;  %v1129_v59 = vpop.permute.xlu0 %1128  ;;  %v969_v5 = vpack.c.bf16 %v966_v56, %v966_v56  ;;  %v1632_v53 = vld [vmem:[#allocation2 + $0x26] sm:$0x1] }
 0x121   : > { %1131 = vst.msk [vmem:[#allocation3 + $0x10] sm:$0xf] %vm569_vm4, %v1129_v59  ;;  %v968_v63 = vpack.c.bf16 %v965_v58, %v964_v52  ;;  %1165 = vst.msk [vmem:[#allocation3 + $0x18] sm:$0xf] %vm569_vm4, %v1163_v60  ;;  %v1591_v52 = vsel %vm566_vm5, %v1590_v37, %v1589_v40  ;;  %v1630_v58 = vld [vmem:[#allocation2 + $0x6] sm:$0x1] }
 0x122   : > { %v971_v19 = vsel %vm728_vm8, %v969_v5, 0  ;;  %v1638_v59 = vrot.slane %v1631_v48, 7  ;;  %v1820_v60 = vld [vmem:[#allocation2 + $0x26] sm:$0x1]  ;;  %v1826_v5 = vrot.slane %v1819_v54, 7 }
 0x123   : > { %v1203_v3 = vld [vmem:[#allocation3 + $0x8] sm:$0xff]  ;;  %v1199_v4 = vpop.permute.xlu1 %1198  ;;  %5782 = vmatpush3.bf16.msra.mxu1 %v968_v63  ;;  %v1640_v63 = vrot.slane %v1632_v53, 6  ;;  %v1828_v8 = vrot.slane %v1820_v60, 6  ;;  %v2061_v53 = vld [vmem:[#allocation2 + $0x37] sm:$0x1] }
 0x124   : > { %1201 = vst.msk [vmem:[#allocation3 + $0x20] sm:$0xf] %vm569_vm4, %v1199_v4  ;;  %1353 = vst.msk [vmem:[#allocation3 + $0xc] sm:$0xf] %vm569_vm4, %v1351_v6  ;;  %v1202_v9 = vld [vmem:[#allocation3] sm:$0xff]  ;;  %v1181_v10 = vpop.permute.xlu0 %1180  ;;  %5783 = vmatprep.subr.bf16.mxu1 %v6008_v0 }
 0x125   : > { %1183 = vst.msk [vmem:[#allocation3 + $0x1c] sm:$0xf] %vm569_vm4, %v1181_v10  ;;  %v1207_v15 = vpack.c.bf16 %v1203_v3, %v1202_v9  ;;  %1301 = vst.msk [vmem:[#allocation3] sm:$0xf] %vm569_vm4, %v1299_v11  ;;  %v1768_v4 = vld [vmem:[#allocation2 + $0x25] sm:$0x1]  ;;  %v1639_v10 = vsel %vm560_vm2, %v1638_v59, %v1630_v58 }
 0x126   : > { %v1818_v6 = vld [vmem:[#allocation2 + $0x6] sm:$0x1]  ;;  %v1642_v11 = vrot.slane %v1633_v62, 5  ;;  %v1641_v13 = vsel %vm563_vm3, %v1640_v63, %v1639_v10  ;;  %v1776_v16 = vrot.slane %v1768_v4, 6  ;;  %v2014_v58 = vrot.slane %v2007_v47, 7 }
 0x127   : > { %v1335_v20 = vpop.permute.xlu1 %1334  ;;  %5784 = vmatpush3.bf16.msra.mxu1 %v971_v19  ;;  %5790 = vmatpush3.bf16.msra.mxu0 %v1207_v15  ;;  %v1769_v15 = vld [vmem:[#allocation2 + $0x35] sm:$0x1]  ;;  %v1827_v19 = vsel %vm560_vm2, %v1826_v5, %v1818_v6  ;;  %v2006_v60 = vld [vmem:[#allocation2 + $0x6] sm:$0x1] }
 0x128   : > { %1337 = vst.msk [vmem:[#allocation3 + $0x8] sm:$0xf] %vm569_vm4, %v1335_v20  ;;  %v1317_v26 = vpop.permute.xlu0 %1316  ;;  %5791 = vmatprep.subr.bf16.mxu0 %v6008_v0  ;;  %5799 = vmatprep.subr.bf16.mxu1 %v6008_v0  ;;  %v1204_v34 = vld [vmem:[#allocation3 + $0x10] sm:$0xff]  ;;  %v1830_v20 = vrot.slane %v1821_v7, 5  ;;  %v1829_v22 = vsel %vm563_vm3, %v1828_v8, %v1827_v19  ;;  %v1643_v25 = vsel %vm566_vm5, %v1642_v11, %v1641_v13  ;;  %v1778_v27 = vrot.slane %v1769_v15, 5 }
 0x129   : > { %1319 = vst.msk [vmem:[#allocation3 + $0x4] sm:$0xf] %vm569_vm4, %v1317_v26  ;;  %v1775_v26 = vsel %vm560_vm2, %v1774_v12, %v1766_v14  ;;  %v2111_v13 = vld [vmem:[#allocation2 + $0x18] sm:$0x1] }
 0x12a   : > { %5786 = vmatmul.mubr.msk.bf16.vlgmr.msra.gmra.mrb[0].mxu1 %vm724_vm9, %v6381_v38  ;;  %v1777_v29 = vsel %vm563_vm3, %v1776_v16, %v1775_v26  ;;  %v2299_v19 = vld [vmem:[#allocation2 + $0x18] sm:$0x1] }
 0x12b   : > { %v1387_v35 = vpop.permute.xlu1 %1386  ;;  %v1206_v39 = vld [vmem:[#allocation3 + $0x20] sm:$0xf]  ;;  %5805 = vmatprep.mubr.msk.bf16.mxu1 %vm6012_vm7, %v6008_v0  ;;  %v1779_v40 = vsel %vm566_vm5, %v1778_v27, %v1777_v29  ;;  %v2113_v27 = vld [vmem:[#allocation2 + $0x38] sm:$0x1]  ;;  %v2247_v29 = vld [vmem:[#allocation2 + $0x17] sm:$0x1] }
 0x12c   : > { %1389 = vst.msk [vmem:[#allocation3 + $0x14] sm:$0xf] %vm569_vm4, %v1387_v35  ;;  %v1205_v41 = vld [vmem:[#allocation3 + $0x18] sm:$0xff]  ;;  %v1369_v42 = vpop.permute.xlu0 %1368  ;;  %v1209_v51 = vpack.c.bf16 %v1206_v39, %v1206_v39  ;;  %v1872_v35 = vld [vmem:[#allocation2 + $0x27] sm:$0x1] }
 0x12d   : > { %1371 = vst.msk [vmem:[#allocation3 + $0x10] sm:$0xf] %vm569_vm4, %v1369_v42  ;;  %v1208_v46 = vpack.c.bf16 %v1205_v41, %v1204_v34  ;;  %1405 = vst.msk [vmem:[#allocation3 + $0x18] sm:$0xf] %vm569_vm4, %v1403_v43  ;;  %v1831_v34 = vsel %vm566_vm5, %v1830_v20, %v1829_v22  ;;  %v1870_v41 = vld [vmem:[#allocation2 + $0x7] sm:$0x1] }
 0x12e   : > { %v1211_v2 = vsel %vm728_vm8, %v1209_v51, 0  ;;  %v1878_v42 = vrot.slane %v1871_v30, 7  ;;  %v2060_v43 = vld [vmem:[#allocation2 + $0x27] sm:$0x1]  ;;  %v2066_v51 = vrot.slane %v2059_v36, 7 }
 0x12f   : > { %v1443_v49 = vld [vmem:[#allocation3 + $0x8] sm:$0xff]  ;;  %v1439_v50 = vpop.permute.xlu1 %1438  ;;  %5792 = vmatpush3.bf16.msra.mxu0 %v1208_v46  ;;  %v1880_v46 = vrot.slane %v1872_v35, 6  ;;  %v2068_v54 = vrot.slane %v2060_v43, 6  ;;  %v2301_v35 = vld [vmem:[#allocation2 + $0x38] sm:$0x1] }
 0x130   : > { %1441 = vst.msk [vmem:[#allocation3 + $0x20] sm:$0xf] %vm569_vm4, %v1439_v50  ;;  %1593 = vst.msk [vmem:[#allocation3 + $0xc] sm:$0xf] %vm569_vm4, %v1591_v52  ;;  %v1442_v55 = vld [vmem:[#allocation3] sm:$0xff]  ;;  %v1421_v56 = vpop.permute.xlu0 %1420  ;;  %5793 = vmatprep.subr.bf16.mxu0 %v6008_v0 }
 0x131   : > { %1423 = vst.msk [vmem:[#allocation3 + $0x1c] sm:$0xf] %vm569_vm4, %v1421_v56  ;;  %v1447_v61 = vpack.c.bf16 %v1443_v49, %v1442_v55  ;;  %1541 = vst.msk [vmem:[#allocation3] sm:$0xf] %vm569_vm4, %v1539_v57  ;;  %v2008_v50 = vld [vmem:[#allocation2 + $0x26] sm:$0x1]  ;;  %v1879_v56 = vsel %vm560_vm2, %v1878_v42, %v1870_v41 }
 0x132   : > { %v2058_v52 = vld [vmem:[#allocation2 + $0x7] sm:$0x1]  ;;  %v1882_v57 = vrot.slane %v1873_v45, 5  ;;  %v1881_v59 = vsel %vm563_vm3, %v1880_v46, %v1879_v56  ;;  %v2016_v62 = vrot.slane %v2008_v50, 6  ;;  %v2122_v41 = vrot.slane %v2113_v27, 5 }
 0x133   : > { %v1575_v3 = vpop.permute.xlu1 %1574  ;;  %5794 = vmatpush3.bf16.msra.mxu0 %v1211_v2  ;;  %5800 = vmatpush3.bf16.msra.mxu1 %v1447_v61  ;;  %v2009_v61 = vld [vmem:[#allocation2 + $0x36] sm:$0x1]  ;;  %v2067_v2 = vsel %vm560_vm2, %v2066_v51, %v2058_v52  ;;  %v2254_v42 = vrot.slane %v2247_v29, 7  ;;  %v2249_v45 = vld [vmem:[#allocation2 + $0x37] sm:$0x1]  ;;  %v2310_v50 = vrot.slane %v2301_v35, 5 }
 0x134   : > { %1577 = vst.msk [vmem:[#allocation3 + $0x8] sm:$0xf] %vm569_vm4, %v1575_v3  ;;  %v1557_v9 = vpop.permute.xlu0 %1556  ;;  %5801 = vmatprep.subr.bf16.mxu1 %v6008_v0  ;;  %5809 = vmatprep.subr.bf16.mxu0 %v6008_v0  ;;  %v1444_v17 = vld [vmem:[#allocation3 + $0x10] sm:$0xff]  ;;  %v2070_v3 = vrot.slane %v2061_v53, 5  ;;  %v2069_v5 = vsel %vm563_vm3, %v2068_v54, %v2067_v2  ;;  %v1883_v8 = vsel %vm566_vm5, %v1882_v57, %v1881_v59  ;;  %v2018_v10 = vrot.slane %v2009_v61, 5 }
 0x135   : > { %1559 = vst.msk [vmem:[#allocation3 + $0x4] sm:$0xf] %vm569_vm4, %v1557_v9  ;;  %v2015_v9 = vsel %vm560_vm2, %v2014_v58, %v2006_v60  ;;  %v2352_v53 = vld [vmem:[#allocation2 + $0x29] sm:$0x1]  ;;  %v2258_v59 = vrot.slane %v2249_v45, 5 }
 0x136   : > { %5796 = vmatmul.mubr.msk.bf16.vlgmr.msra.gmra.mrb[4].mxu0 %vm724_vm9, %v6381_v38  ;;  %v2017_v12 = vsel %vm563_vm3, %v2016_v62, %v2015_v9  ;;  %v2804_v60 = vld [vmem:[#allocation2 + $0x10] sm:$0x1]  ;;  %v2350_v61 = vld [vmem:[#allocation2 + $0x9] sm:$0x1] }
 0x137   : > { %v1627_v18 = vpop.permute.xlu1 %1626  ;;  %v1446_v21 = vld [vmem:[#allocation3 + $0x20] sm:$0xf]  ;;  %5815 = vmatprep.mubr.msk.bf16.mxu0 %vm6012_vm7, %v6008_v0  ;;  %v2019_v22 = vsel %vm566_vm5, %v2018_v10, %v2017_v12 }
 0x138   : > { %1629 = vst.msk [vmem:[#allocation3 + $0x14] sm:$0xf] %vm569_vm4, %v1627_v18  ;;  %v1445_v23 = vld [vmem:[#allocation3 + $0x18] sm:$0xff]  ;;  %v1609_v24 = vpop.permute.xlu0 %1608  ;;  %v1449_v33 = vpack.c.bf16 %v1446_v21, %v1446_v21  ;;  %v2112_v18 = vld [vmem:[#allocation2 + $0x28] sm:$0x1] }
 0x139   : > { %1611 = vst.msk [vmem:[#allocation3 + $0x10] sm:$0xf] %vm569_vm4, %v1609_v24  ;;  %v1448_v28 = vpack.c.bf16 %v1445_v23, %v1444_v17  ;;  %1645 = vst.msk [vmem:[#allocation3 + $0x18] sm:$0xf] %vm569_vm4, %v1643_v25  ;;  %v2071_v17 = vsel %vm566_vm5, %v2070_v3, %v2069_v5  ;;  %v2110_v23 = vld [vmem:[#allocation2 + $0x8] sm:$0x1] }
 0x13a   : > { %v1451_v48 = vsel %vm728_vm8, %v1449_v33, 0  ;;  %v2118_v24 = vrot.slane %v2111_v13, 7  ;;  %v2300_v25 = vld [vmem:[#allocation2 + $0x28] sm:$0x1]  ;;  %v2306_v33 = vrot.slane %v2299_v19, 7 }
 0x13b   : > { %v1683_v31 = vld [vmem:[#allocation3 + $0x8] sm:$0xff]  ;;  %v1679_v32 = vpop.permute.xlu1 %1678  ;;  %5802 = vmatpush3.bf16.msra.mxu1 %v1448_v28  ;;  %v2120_v28 = vrot.slane %v2112_v18, 6  ;;  %v2308_v36 = vrot.slane %v2300_v25, 6  ;;  %v2353_v5 = vld [vmem:[#allocation2 + $0x39] sm:$0x1] }
 0x13c   : > { %1681 = vst.msk [vmem:[#allocation3 + $0x20] sm:$0xf] %vm569_vm4, %v1679_v32  ;;  %1833 = vst.msk [vmem:[#allocation3 + $0xc] sm:$0xf] %vm569_vm4, %v1831_v34  ;;  %v1682_v37 = vld [vmem:[#allocation3] sm:$0xff]  ;;  %v1661_v39 = vpop.permute.xlu0 %1660  ;;  %5803 = vmatprep.subr.bf16.mxu1 %v6008_v0 }
 0x13d   : > { %1663 = vst.msk [vmem:[#allocation3 + $0x1c] sm:$0xf] %vm569_vm4, %v1661_v39  ;;  %v1687_v44 = vpack.c.bf16 %v1683_v31, %v1682_v37  ;;  %1781 = vst.msk [vmem:[#allocation3] sm:$0xf] %vm569_vm4, %v1779_v40  ;;  %v2248_v32 = vld [vmem:[#allocation2 + $0x27] sm:$0x1]  ;;  %v2119_v40 = vsel %vm560_vm2, %v2118_v24, %v2110_v23 }
 0x13e   : > { %v2298_v34 = vld [vmem:[#allocation2 + $0x8] sm:$0x1]  ;;  %v2351_v37 = vld [vmem:[#allocation2 + $0x19] sm:$0x1]  ;;  %v2121_v43 = vsel %vm563_vm3, %v2120_v28, %v2119_v40  ;;  %v2256_v46 = vrot.slane %v2248_v32, 6 }
 0x13f   : > { %v1815_v49 = vpop.permute.xlu1 %1814  ;;  %5804 = vmatpush3.bf16.msra.mxu1 %v1451_v48  ;;  %5810 = vmatpush3.bf16.msra.mxu0 %v1687_v44  ;;  %v2246_v44 = vld [vmem:[#allocation2 + $0x7] sm:$0x1]  ;;  %v2358_v54 = vrot.slane %v2351_v37, 7  ;;  %v2123_v57 = vsel %vm566_vm5, %v2122_v41, %v2121_v43  ;;  %v2803_v13 = vld [vmem:[#allocation2] sm:$0x1] }
 0x140   : > { %1817 = vst.msk [vmem:[#allocation3 + $0x8] sm:$0xf] %vm569_vm4, %v1815_v49  ;;  %v1797_v55 = vpop.permute.xlu0 %1796  ;;  %5811 = vmatprep.subr.bf16.mxu0 %v6008_v0  ;;  %5819 = vmatprep.subr.bf16.mxu1 %v6008_v0  ;;  %v1684_v63 = vld [vmem:[#allocation3 + $0x10] sm:$0xff]  ;;  %v2307_v49 = vsel %vm560_vm2, %v2306_v33, %v2298_v34  ;;  %v2255_v58 = vsel %vm560_vm2, %v2254_v42, %v2246_v44 }
 0x141   : > { %1799 = vst.msk [vmem:[#allocation3 + $0x4] sm:$0xf] %vm569_vm4, %v1797_v55  ;;  %v2309_v52 = vsel %vm563_vm3, %v2308_v36, %v2307_v49  ;;  %v2359_v9 = vsel %vm560_vm2, %v2358_v54, %v2350_v61  ;;  %v2806_v18 = vld [vmem:[#allocation2 + $0x30] sm:$0x1]  ;;  %v776_v49 = vlaneseq }
 0x142   : > { %5806 = vmatmul.mubr.msk.bf16.vlgmr.msra.gmra.mrb[4].mxu1 %vm724_vm9, %v6381_v38  ;;  %v2815_v23 = vrot.slane %v2806_v18, 5 }
 0x143   : > { %v1867_v1 = vpop.permute.xlu1 %1866  ;;  %v1686_v4 = vld [vmem:[#allocation3 + $0x20] sm:$0xf]  ;;  %5825 = vmatprep.mubr.msk.bf16.mxu1 %vm6012_vm7, %v6008_v0 }
 0x144   : > { %1869 = vst.msk [vmem:[#allocation3 + $0x14] sm:$0xf] %vm569_vm4, %v1867_v1  ;;  %v1685_v6 = vld [vmem:[#allocation3 + $0x18] sm:$0xff]  ;;  %v1849_v7 = vpop.permute.xlu0 %1848  ;;  %v1689_v16 = vpack.c.bf16 %v1686_v4, %v1686_v4  ;;  %v2311_v4 = vsel %vm566_vm5, %v2310_v50, %v2309_v52 }
 0x145   : > { %1851 = vst.msk [vmem:[#allocation3 + $0x10] sm:$0xf] %vm569_vm4, %v1849_v7  ;;  %v1688_v11 = vpack.c.bf16 %v1685_v6, %v1684_v63  ;;  %1885 = vst.msk [vmem:[#allocation3 + $0x18] sm:$0xf] %vm569_vm4, %v1883_v8  ;;  %v2257_v63 = vsel %vm563_vm3, %v2256_v46, %v2255_v58  ;;  %v2360_v6 = vrot.slane %v2352_v53, 6  ;;  %v2811_v8 = vrot.slane %v2804_v60, 7 }
 0x146   : > { %v1691_v30 = vsel %vm728_vm8, %v1689_v16, 0  ;;  %v2805_v7 = vld [vmem:[#allocation2 + $0x20] sm:$0x1]  ;;  %v2259_v12 = vsel %vm566_vm5, %v2258_v59, %v2257_v63 }
 0x147   : > { %v1923_v14 = vld [vmem:[#allocation3 + $0x8] sm:$0xff]  ;;  %v1919_v15 = vpop.permute.xlu1 %1918  ;;  %5812 = vmatpush3.bf16.msra.mxu0 %v1688_v11  ;;  %v2813_v19 = vrot.slane %v2805_v7, 6 }
 0x148   : > { %1921 = vst.msk [vmem:[#allocation3 + $0x20] sm:$0xf] %vm569_vm4, %v1919_v15  ;;  %2073 = vst.msk [vmem:[#allocation3 + $0xc] sm:$0xf] %vm569_vm4, %v2071_v17  ;;  %v1922_v20 = vld [vmem:[#allocation3] sm:$0xff]  ;;  %v1901_v21 = vpop.permute.xlu0 %1900  ;;  %5813 = vmatprep.subr.bf16.mxu0 %v6008_v0  ;;  %v2362_v15 = vrot.slane %v2353_v5, 5 }
 0x149   : > { %1903 = vst.msk [vmem:[#allocation3 + $0x1c] sm:$0xf] %vm569_vm4, %v1901_v21  ;;  %v1927_v26 = vpack.c.bf16 %v1923_v14, %v1922_v20  ;;  %2021 = vst.msk [vmem:[#allocation3] sm:$0xf] %vm569_vm4, %v2019_v22  ;;  %v2361_v20 = vsel %vm563_vm3, %v2360_v6, %v2359_v9  ;;  %v2812_v21 = vsel %vm560_vm2, %v2811_v8, %v2803_v13 }
 0x14a   : > { %v2363_v24 = vsel %vm566_vm5, %v2362_v15, %v2361_v20  ;;  %v2814_v27 = vsel %vm563_vm3, %v2813_v19, %v2812_v21 }
 0x14b   : > { %v2055_v31 = vpop.permute.xlu1 %2054  ;;  %5814 = vmatpush3.bf16.msra.mxu0 %v1691_v30  ;;  %5820 = vmatpush3.bf16.msra.mxu1 %v1927_v26  ;;  %v2816_v32 = vsel %vm566_vm5, %v2815_v23, %v2814_v27 }
 0x14c   : > { %2057 = vst.msk [vmem:[#allocation3 + $0x8] sm:$0xf] %vm569_vm4, %v2055_v31  ;;  %v2037_v39 = vpop.permute.xlu0 %2036  ;;  %5821 = vmatprep.subr.bf16.mxu1 %v6008_v0  ;;  %5829 = vmatprep.subr.bf16.mxu0 %v6008_v0  ;;  %v1924_v47 = vld [vmem:[#allocation3 + $0x10] sm:$0xff] }
 0x14d   : > { %2039 = vst.msk [vmem:[#allocation3 + $0x4] sm:$0xf] %vm569_vm4, %v2037_v39 }
 0x14e   : > { %5816 = vmatmul.mubr.msk.bf16.vlgmr.msra.gmra.mrb[8].mxu0 %vm724_vm9, %v6381_v38 }
 0x14f   : > { %v2107_v48 = vpop.permute.xlu1 %2106  ;;  %v1926_v51 = vld [vmem:[#allocation3 + $0x20] sm:$0xf]  ;;  %5835 = vmatprep.mubr.msk.bf16.mxu0 %vm6012_vm7, %v6008_v0 }
 0x150   : > { %2109 = vst.msk [vmem:[#allocation3 + $0x14] sm:$0xf] %vm569_vm4, %v2107_v48  ;;  %v1925_v55 = vld [vmem:[#allocation3 + $0x18] sm:$0xff]  ;;  %v1929_v3 = vpack.c.bf16 %v1926_v51, %v1926_v51  ;;  %v6548_v51 = vshrl.u32 %v776_v49, 7 }
 0x151   : > { %v2089_v56 = vpop.permute.xlu0 %2088  ;;  %v1928_v62 = vpack.c.bf16 %v1925_v55, %v1924_v47  ;;  %2125 = vst.msk [vmem:[#allocation3 + $0x18] sm:$0xf] %vm569_vm4, %v2123_v57  ;;  %v6014_v47 = vmov 1966171168  }
 0x152   : > { %2091 = vst.msk [vmem:[#allocation3 + $0x10] sm:$0xf] %vm569_vm4, %v2089_v56  ;;  %v1931_v16 = vsel %vm728_vm8, %v1929_v3, 0  ;;  %v774_v48 = vunpack.c.l.s4 %v6014_v47 }
 0x153   : > { %v2163_v1 = vld [vmem:[#allocation3 + $0x8] sm:$0xff]  ;;  %v2159_v2 = vpop.permute.xlu1 %2158  ;;  %5822 = vmatpush3.bf16.msra.mxu1 %v1928_v62 }
 0x154   : > { %2161 = vst.msk [vmem:[#allocation3 + $0x20] sm:$0xf] %vm569_vm4, %v2159_v2  ;;  %2313 = vst.msk [vmem:[#allocation3 + $0xc] sm:$0xf] %vm569_vm4, %v2311_v4  ;;  %v2162_v10 = vld [vmem:[#allocation3] sm:$0xff]  ;;  %5823 = vmatprep.subr.bf16.mxu1 %v6008_v0  ;;  %v775_v50 = vunpack.c.0.s8 %v774_v48 }
 0x155   : > { %v2167_v14 = vpack.c.bf16 %v2163_v1, %v2162_v10  ;;  %2261 = vst.msk [vmem:[#allocation3] sm:$0xf] %vm569_vm4, %v2259_v12 }
 0x156   : > { %v2141_v11 = vpop.permute.xlu0 %2140  ;;  %v6553_v53 = vsub.s32 %v775_v50, %v6548_v51 }
 0x157   : > { %2143 = vst.msk [vmem:[#allocation3 + $0x1c] sm:$0xf] %vm569_vm4, %v2141_v11  ;;  %5824 = vmatpush3.bf16.msra.mxu1 %v1931_v16  ;;  %5830 = vmatpush3.bf16.msra.mxu0 %v2167_v14 }
 0x158   : > { %v2295_v17 = vpop.permute.xlu1 %2294  ;;  %5831 = vmatprep.subr.bf16.mxu0 %v6008_v0  ;;  %5839 = vmatprep.subr.bf16.mxu1 %v6008_v0 }
 0x159   : > { %2297 = vst.msk [vmem:[#allocation3 + $0x8] sm:$0xf] %vm569_vm4, %v2295_v17  ;;  %v2164_v25 = vld [vmem:[#allocation3 + $0x10] sm:$0xff] }
 0x15a   : > { %5826 = vmatmul.mubr.msk.bf16.vlgmr.msra.gmra.mrb[8].mxu1 %vm724_vm9, %v6381_v38 }
 0x15b   : > { %v2277_v22 = vpop.permute.xlu0 %2276  ;;  %v2166_v28 = vld [vmem:[#allocation3 + $0x20] sm:$0xf]  ;;  %5845 = vmatprep.mubr.msk.bf16.mxu1 %vm6012_vm7, %v6008_v0 }
 0x15c   : > { %2279 = vst.msk [vmem:[#allocation3 + $0x4] sm:$0xf] %vm569_vm4, %v2277_v22  ;;  %v2169_v34 = vpack.c.bf16 %v2166_v28, %v2166_v28 }
 0x15d   : > { %v2347_v26 = vpop.permute.xlu1 %2346 }
 0x15e   : > { %2349 = vst.msk [vmem:[#allocation3 + $0x14] sm:$0xf] %vm569_vm4, %v2347_v26  ;;  %v2165_v29 = vld [vmem:[#allocation3 + $0x18] sm:$0xff]  ;;  %v2171_v40 = vsel %vm728_vm8, %v2169_v34, 0 }
 0x15f   : > { %v2329_v30 = vpop.permute.xlu0 %2328  ;;  %2365 = vst.msk [vmem:[#allocation3 + $0x18] sm:$0xf] %vm569_vm4, %v2363_v24  ;;  %v2168_v31 = vpack.c.bf16 %v2165_v29, %v2164_v25 }
 0x160   : > { %2331 = vst.msk [vmem:[#allocation3 + $0x10] sm:$0xf] %vm569_vm4, %v2329_v30  ;;  %v2403_v33 = vld [vmem:[#allocation3 + $0x8] sm:$0xff] }
 0x161   : > { %v2399_v35 = vpop.permute.xlu1 %2398  ;;  %5832 = vmatpush3.bf16.msra.mxu0 %v2168_v31 }
 0x162   : > { %2401 = vst.msk [vmem:[#allocation3 + $0x20] sm:$0xf] %vm569_vm4, %v2399_v35  ;;  %5833 = vmatprep.subr.bf16.mxu0 %v6008_v0 }
 0x163   : > { %v2402_v36 = vld [vmem:[#allocation3] sm:$0xff]  ;;  %v2381_v37 = vpop.permute.xlu0 %2380 }
 0x164   : > { %2818 = vst.msk [vmem:[#allocation3] sm:$0xf] %vm569_vm4, %v2816_v32  ;;  %2383 = vst.msk [vmem:[#allocation3 + $0x1c] sm:$0xf] %vm569_vm4, %v2381_v37  ;;  %v2407_v39 = vpack.c.bf16 %v2403_v33, %v2402_v36 }
 0x165   : > { %5834 = vmatpush3.bf16.msra.mxu0 %v2171_v40 }
 0x166   : > { %5840 = vmatpush3.bf16.msra.mxu1 %v2407_v39  ;;  %5849 = vmatprep.subr.bf16.mxu0 %v6008_v0 }
 0x167   : > { %5841 = vmatprep.subr.bf16.mxu1 %v6008_v0  ;;  %v2404_v42 = vld [vmem:[#allocation3 + $0x10] sm:$0xff] }
 0x168   : > { %5836 = vmatmul.mubr.msk.bf16.vlgmr.msra.gmra.mrb[12].mxu0 %vm724_vm9, %v6381_v38 }
 0x169   : > { %v2406_v41 = vld [vmem:[#allocation3 + $0x20] sm:$0xf]  ;;  %5855 = vmatprep.mubr.msk.bf16.mxu0 %vm6012_vm7, %v6008_v0 }
 0x16a   : > { %v2409_v44 = vpack.c.bf16 %v2406_v41, %v2406_v41 }
 0x16b   : > { %v2405_v43 = vld [vmem:[#allocation3 + $0x18] sm:$0xff] }
 0x16c   : > { %v2408_v45 = vpack.c.bf16 %v2405_v43, %v2404_v42  ;;  %v2411_v46 = vsel %vm728_vm8, %v2409_v44, 0 }
 0x16e   : > { %5842 = vmatpush3.bf16.msra.mxu1 %v2408_v45 }
 0x16f   : > { %5843 = vmatprep.subr.bf16.mxu1 %v6008_v0 }
 0x172   : > { %5844 = vmatpush3.bf16.msra.mxu1 %v2411_v46 }
 0x173   : > { %5859 = vmatprep.subr.bf16.mxu1 %v6008_v0 }
 0x174   : > { %v6550_v52 = vpop.permute.xlu0 %721 }
 0x175   : > { %5846 = vmatmul.mubr.msk.bf16.vlgmr.msra.gmra.mrb[12].mxu1 %vm724_vm9, %v6381_v38 }
 0x176   : > { %5865 = vmatprep.mubr.msk.bf16.mxu1 %vm6012_vm7, %v6008_v0 }
 0x1f1   : > { %v766_v54 = vpop.f32.mrb[0].mxu0 }
 0x1f2   : > { %v5777_v55 = vpop.f32.mrb[1].mxu0  ;;  %v767_v56 = vadd.f32 %v766_v54, %v6550_v52 }
 0x1f3   : > { %v769_v57 = vpop.f32.mrb[2].mxu0 }
 0x1f4   : > { %v779_v38 = vrot.slane %v767_v56, %v6553_v53  ;;  %v5778_v58 = vpop.f32.mrb[3].mxu0 }
 0x1f6   : > { %v780_v59 = vcombine.high %v779_v38, %v779_v38  ;;  %v787_v60 = vrot.slane %v779_v38, %v6553_v53 }
 0x1f8   : > { %v794_v61 = vrot.slane %v780_v59, %v6553_v53  ;;  %v795_v62 = vcombine.high %v787_v60, %v787_v60  ;;  %802 = vst.msk [vmem:[#allocation4] sm:$0x1] %vm801_vm10, %v787_v60 }
 0x1fa   : > { %v796_v63 = vcombine.high %v794_v61, %v794_v61  ;;  %803 = vst.msk [vmem:[#allocation4 + $0x8] sm:$0x1] %vm801_vm10, %v794_v61  ;;  %804 = vst.msk [vmem:[#allocation4 + $0x10] sm:$0x1] %vm801_vm10, %v795_v62 }
 0x1fc   : > { %805 = vst.msk [vmem:[#allocation4 + $0x18] sm:$0x1] %vm801_vm10, %v796_v63 }
 0x1fd   : > { %v1007_v1 = vpop.f32.mrb[0].mxu1 }
 0x1fe   : > { %v5787_v2 = vpop.f32.mrb[1].mxu1  ;;  %v1008_v3 = vadd.f32 %v1007_v1, %v6550_v52 }
 0x1ff   : > { %v1010_v4 = vpop.f32.mrb[2].mxu1 }
 0x200   : > { %v1020_v5 = vrot.slane %v1008_v3, %v6553_v53  ;;  %v5788_v6 = vpop.f32.mrb[3].mxu1 }
 0x202   : > { %v1021_v7 = vcombine.high %v1020_v5, %v1020_v5  ;;  %v1028_v8 = vrot.slane %v1020_v5, %v6553_v53 }
 0x204   : > { %v1035_v9 = vrot.slane %v1021_v7, %v6553_v53  ;;  %v1036_v10 = vcombine.high %v1028_v8, %v1028_v8  ;;  %1042 = vst.msk [vmem:[#allocation4 + $0x1] sm:$0x1] %vm801_vm10, %v1028_v8 }
 0x206   : > { %v1037_v11 = vcombine.high %v1035_v9, %v1035_v9  ;;  %1043 = vst.msk [vmem:[#allocation4 + $0x9] sm:$0x1] %vm801_vm10, %v1035_v9  ;;  %1044 = vst.msk [vmem:[#allocation4 + $0x11] sm:$0x1] %vm801_vm10, %v1036_v10 }
 0x208   : > { %1045 = vst.msk [vmem:[#allocation4 + $0x19] sm:$0x1] %vm801_vm10, %v1037_v11 }
 0x209   : > { %v1247_v12 = vpop.f32.mrb[4].mxu0 }
 0x20a   : > { %v1248_v13 = vadd.f32 %v1247_v12, %v6550_v52  ;;  %v5797_v14 = vpop.f32.mrb[5].mxu0 }
 0x20b   : > { %v1250_v15 = vpop.f32.mrb[6].mxu0 }
 0x20c   : > { %v1260_v16 = vrot.slane %v1248_v13, %v6553_v53  ;;  %v5798_v17 = vpop.f32.mrb[7].mxu0 }
 0x20e   : > { %v1261_v18 = vcombine.high %v1260_v16, %v1260_v16  ;;  %v1268_v19 = vrot.slane %v1260_v16, %v6553_v53 }
 0x210   : > { %v1275_v20 = vrot.slane %v1261_v18, %v6553_v53  ;;  %v1276_v21 = vcombine.high %v1268_v19, %v1268_v19  ;;  %1282 = vst.msk [vmem:[#allocation4 + $0x2] sm:$0x1] %vm801_vm10, %v1268_v19 }
 0x212   : > { %v1277_v22 = vcombine.high %v1275_v20, %v1275_v20  ;;  %1283 = vst.msk [vmem:[#allocation4 + $0xa] sm:$0x1] %vm801_vm10, %v1275_v20  ;;  %1284 = vst.msk [vmem:[#allocation4 + $0x12] sm:$0x1] %vm801_vm10, %v1276_v21 }
 0x214   : > { %1285 = vst.msk [vmem:[#allocation4 + $0x1a] sm:$0x1] %vm801_vm10, %v1277_v22 }
 0x215   : > { %v1487_v23 = vpop.f32.mrb[4].mxu1 }
 0x216   : > { %v1488_v24 = vadd.f32 %v1487_v23, %v6550_v52  ;;  %v5807_v25 = vpop.f32.mrb[5].mxu1 }
 0x217   : > { %v1490_v26 = vpop.f32.mrb[6].mxu1 }
 0x218   : > { %v1500_v27 = vrot.slane %v1488_v24, %v6553_v53  ;;  %v5808_v28 = vpop.f32.mrb[7].mxu1 }
 0x21a   : > { %v1501_v29 = vcombine.high %v1500_v27, %v1500_v27  ;;  %v1508_v30 = vrot.slane %v1500_v27, %v6553_v53 }
 0x21c   : > { %v1515_v31 = vrot.slane %v1501_v29, %v6553_v53  ;;  %v1516_v32 = vcombine.high %v1508_v30, %v1508_v30  ;;  %1522 = vst.msk [vmem:[#allocation4 + $0x3] sm:$0x1] %vm801_vm10, %v1508_v30 }
 0x21e   : > { %v1517_v33 = vcombine.high %v1515_v31, %v1515_v31  ;;  %1523 = vst.msk [vmem:[#allocation4 + $0xb] sm:$0x1] %vm801_vm10, %v1515_v31  ;;  %1524 = vst.msk [vmem:[#allocation4 + $0x13] sm:$0x1] %vm801_vm10, %v1516_v32 }
 0x220   : > { %1525 = vst.msk [vmem:[#allocation4 + $0x1b] sm:$0x1] %vm801_vm10, %v1517_v33 }
 0x221   : > { %v1727_v34 = vpop.f32.mrb[8].mxu0 }
 0x222   : > { %v1728_v35 = vadd.f32 %v1727_v34, %v6550_v52  ;;  %v5817_v36 = vpop.f32.mrb[9].mxu0 }
 0x223   : > { %v1730_v37 = vpop.f32.mrb[10].mxu0 }
 0x224   : > { %v1740_v39 = vrot.slane %v1728_v35, %v6553_v53  ;;  %v5818_v40 = vpop.f32.mrb[11].mxu0 }
 0x226   : > { %v1741_v41 = vcombine.high %v1740_v39, %v1740_v39  ;;  %v1748_v42 = vrot.slane %v1740_v39, %v6553_v53 }
 0x228   : > { %v1755_v43 = vrot.slane %v1741_v41, %v6553_v53  ;;  %v1756_v44 = vcombine.high %v1748_v42, %v1748_v42  ;;  %1762 = vst.msk [vmem:[#allocation4 + $0x4] sm:$0x1] %vm801_vm10, %v1748_v42 }
 0x22a   : > { %v1757_v45 = vcombine.high %v1755_v43, %v1755_v43  ;;  %1763 = vst.msk [vmem:[#allocation4 + $0xc] sm:$0x1] %vm801_vm10, %v1755_v43  ;;  %1764 = vst.msk [vmem:[#allocation4 + $0x14] sm:$0x1] %vm801_vm10, %v1756_v44 }
 0x22c   : > { %1765 = vst.msk [vmem:[#allocation4 + $0x1c] sm:$0x1] %vm801_vm10, %v1757_v45 }
 0x22d   : > { %v1967_v46 = vpop.f32.mrb[8].mxu1 }
 0x22e   : > { %v1968_v47 = vadd.f32 %v1967_v46, %v6550_v52  ;;  %v5827_v48 = vpop.f32.mrb[9].mxu1 }
 0x22f   : > { %v1970_v49 = vpop.f32.mrb[10].mxu1 }
 0x230   : > { %v1980_v50 = vrot.slane %v1968_v47, %v6553_v53  ;;  %v5828_v54 = vpop.f32.mrb[11].mxu1 }
 0x232   : > { %v1981_v55 = vcombine.high %v1980_v50, %v1980_v50  ;;  %v1988_v56 = vrot.slane %v1980_v50, %v6553_v53 }
 0x234   : > { %v1995_v57 = vrot.slane %v1981_v55, %v6553_v53  ;;  %v1996_v38 = vcombine.high %v1988_v56, %v1988_v56  ;;  %2002 = vst.msk [vmem:[#allocation4 + $0x5] sm:$0x1] %vm801_vm10, %v1988_v56 }
 0x236   : > { %v1997_v58 = vcombine.high %v1995_v57, %v1995_v57  ;;  %2003 = vst.msk [vmem:[#allocation4 + $0xd] sm:$0x1] %vm801_vm10, %v1995_v57  ;;  %2004 = vst.msk [vmem:[#allocation4 + $0x15] sm:$0x1] %vm801_vm10, %v1996_v38 }
 0x238   : > { %2005 = vst.msk [vmem:[#allocation4 + $0x1d] sm:$0x1] %vm801_vm10, %v1997_v58 }
 0x23b   : > { %v2207_v59 = vpop.f32.mrb[12].mxu0 }
 0x23c   : > { %v2208_v60 = vadd.f32 %v2207_v59, %v6550_v52  ;;  %v5837_v61 = vpop.f32.mrb[13].mxu0  ;;  %v6638_v59 = vld [vmem:[%s7633_s5 + $0x1] sm:$0x1] }
 0x23d   : > { %v2210_v62 = vpop.f32.mrb[14].mxu0  ;;  %v6648_v61 = vld [vmem:[%s7633_s5] sm:$0x1] }
 0x23e   : > { %v2220_v63 = vrot.slane %v2208_v60, %v6553_v53  ;;  %v5838_v1 = vpop.f32.mrb[15].mxu0  ;;  %v6643_v60 = vld [vmem:[%s7633_s5 + $0x5] sm:$0x1]  ;;  %v6653_v62 = vld [vmem:[%s7633_s5 + $0x4] sm:$0x1] }
 0x240   : > { %v2221_v2 = vcombine.high %v2220_v63, %v2220_v63  ;;  %v2228_v3 = vrot.slane %v2220_v63, %v6553_v53  ;;  %v6658_v63 = vld [vmem:[%s7633_s5 + $0x6] sm:$0x1] }
 0x242   : > { %v2235_v4 = vrot.slane %v2221_v2, %v6553_v53  ;;  %v2236_v5 = vcombine.high %v2228_v3, %v2228_v3  ;;  %2242 = vst.msk [vmem:[#allocation4 + $0x6] sm:$0x1] %vm801_vm10, %v2228_v3  ;;  %v6662_v3 = vsub.s32 0, %v6548_v51 }
 0x244   : > { %v2237_v6 = vcombine.high %v2235_v4, %v2235_v4  ;;  %2243 = vst.msk [vmem:[#allocation4 + $0xe] sm:$0x1] %vm801_vm10, %v2235_v4  ;;  %2244 = vst.msk [vmem:[#allocation4 + $0x16] sm:$0x1] %vm801_vm10, %v2236_v5  ;;  %v6667_v4 = vld [vmem:[%s7633_s5 + $0x2] sm:$0x1] }
 0x246   : > { %2245 = vst.msk [vmem:[#allocation4 + $0x1e] sm:$0x1] %vm801_vm10, %v2237_v6 }
 0x248   : > { %v2447_v7 = vpop.f32.mrb[12].mxu1 }
 0x249   : > { %v2448_v8 = vadd.f32 %v2447_v7, %v6550_v52  ;;  %v5847_v9 = vpop.f32.mrb[13].mxu1 }
 0x24a   : > { %v2450_v10 = vpop.f32.mrb[14].mxu1  ;;  %v6676_v9 = vld [vmem:[%s7633_s5 + $0x7] sm:$0x1] }
 0x24b   : > { %v2460_v11 = vrot.slane %v2448_v8, %v6553_v53  ;;  %v5848_v12 = vpop.f32.mrb[15].mxu1 }
 0x24c   : > { %v6682_v12 = vld [vmem:[%s7633_s5 + $0x3] sm:$0x1] }
 0x24d   : > { %v2461_v13 = vcombine.high %v2460_v11, %v2460_v11  ;;  %v2468_v14 = vrot.slane %v2460_v11, %v6553_v53 }
 0x24f   : > { %v2475_v15 = vrot.slane %v2461_v13, %v6553_v53  ;;  %v2476_v16 = vcombine.high %v2468_v14, %v2468_v14  ;;  %2482 = vst.msk [vmem:[#allocation4 + $0x7] sm:$0x1] %vm801_vm10, %v2468_v14 }
 0x251   : > { %v2477_v17 = vcombine.high %v2475_v15, %v2475_v15  ;;  %2483 = vst.msk [vmem:[#allocation4 + $0xf] sm:$0x1] %vm801_vm10, %v2475_v15  ;;  %2484 = vst.msk [vmem:[#allocation4 + $0x17] sm:$0x1] %vm801_vm10, %v2476_v16 }
 0x253   : > { %2485 = vst.msk [vmem:[#allocation4 + $0x1f] sm:$0x1] %vm801_vm10, %v2477_v17 }
 0x256   : > { %v6619_v52 = vld [vmem:[#allocation4] sm:$0xff] }
 0x257   : > { %v2499_v18 = vsel %vm2498_vm11, %v6619_v52, 0.0 }
 0x258   : > { %2500 = vadd.xlane.f32.xlu1 %v2499_v18  ;;  %v6623_v19 = vld [vmem:[#allocation4 + $0x8] sm:$0xff]  ;;  %v6625_v20 = vld [vmem:[#allocation4 + $0x10] sm:$0xff] }
 0x259   : > { %v2502_v21 = vsel %vm2498_vm11, %v6623_v19, 0.0  ;;  %v2523_v23 = vsel %vm2498_vm11, %v6625_v20, 0.0 }
 0x25a   : > { %2503 = vadd.xlane.f32.xlu0 %v2502_v21  ;;  %v6629_v22 = vld [vmem:[#allocation4 + $0x18] sm:$0xff] }
 0x25b   : > { %v2526_v24 = vsel %vm2498_vm11, %v6629_v22, 0.0 }
 0x25c   : > { %2524 = vadd.xlane.f32.xlu1 %v2523_v23 }
 0x25e   : > { %2527 = vadd.xlane.f32.xlu0 %v2526_v24 }
 0x2e5   : > { %v2501_v25 = vpop.xlane.xlu1 %2500 }
 0x2e6   : > { %v2505_v26 = vrot.slane %v2501_v25, 4 }
 0x2e7   : > { %v2504_v27 = vpop.xlane.xlu0 %2503 }
 0x2e8   : > { %v2506_v28 = vadd.f32 %v2505_v26, %v2501_v25  ;;  %v2511_v29 = vrot.slane %v2504_v27, 4 }
 0x2e9   : > { %v2525_v30 = vpop.xlane.xlu1 %2524 }
 0x2ea   : > { %v2507_v31 = vrot.slane %v2506_v28, 2  ;;  %v2512_v32 = vadd.f32 %v2511_v29, %v2504_v27  ;;  %v2529_v33 = vrot.slane %v2525_v30, 4 }
 0x2eb   : > { %v2528_v34 = vpop.xlane.xlu0 %2527 }
 0x2ec   : > { %v2508_v35 = vadd.f32 %v2507_v31, %v2506_v28  ;;  %v2513_v36 = vrot.slane %v2512_v32, 2  ;;  %v2530_v37 = vadd.f32 %v2529_v33, %v2525_v30  ;;  %v2535_v39 = vrot.slane %v2528_v34, 4 }
 0x2ee   : > { %v2509_v40 = vrot.slane %v2508_v35, 1  ;;  %v2514_v41 = vadd.f32 %v2513_v36, %v2512_v32  ;;  %v2531_v42 = vrot.slane %v2530_v37, 2  ;;  %v2536_v43 = vadd.f32 %v2535_v39, %v2528_v34  ;;  %v5657_v39 = vld [vmem:[%s7631_s3 + $0x3] ss:$0 sm:$0xff] }
 0x2f0   : > { %v2515_v44 = vrot.slane %v2514_v41, 1  ;;  %v2532_v45 = vadd.f32 %v2531_v42, %v2530_v37  ;;  %v2537_v46 = vrot.slane %v2536_v43, 2  ;;  %v2510_v47 = vadd.f32 %v2509_v40, %v2508_v35  ;;  %v5656_v37 = vld [vmem:[%s7631_s3 + $0x2] ss:$0 sm:$0xff]  ;;  %v5654_v40 = vld [vmem:[%s7631_s3] ss:$0 sm:$0xff] }
 0x2f2   : > { %v2516_v48 = vadd.f32 %v2515_v44, %v2514_v41  ;;  %v2533_v49 = vrot.slane %v2532_v45, 1  ;;  %v2538_v50 = vadd.f32 %v2537_v46, %v2536_v43 }
 0x2f4   : > { %v2517_v54 = vadd.f32 %v2516_v48, %v2510_v47  ;;  %v2539_v55 = vrot.slane %v2538_v50, 1  ;;  %v2534_v56 = vadd.f32 %v2533_v49, %v2532_v45 }
 0x2f6   : > { %v2540_v57 = vadd.f32 %v2539_v55, %v2538_v50  ;;  %v2518_v38 = vmul.f32 0.00390625, %v2517_v54 }
 0x2f8   : > { %v2541_v58 = vadd.f32 %v2540_v57, %v2534_v56  ;;  %v2520_v2 = vmul.f32 %v2518_v38, %v6638_v59  ;;  %v2519_v6 = vmul.f32 %v2518_v38, %v6648_v61  ;;  %v2521_v11 = vmul.f32 %v2518_v38, %v6667_v4 }
 0x2f9   : > { %v2522_v17 = vmul.f32 %v2518_v38, %v6682_v12 }
 0x2fa   : > { %v2542_v1 = vmul.f32 0.00390625, %v2541_v58 }
 0x2fc   : > { %v2544_v5 = vmul.f32 %v6643_v60, %v2542_v1  ;;  %v2543_v7 = vmul.f32 %v6653_v62, %v2542_v1  ;;  %v2545_v8 = vmul.f32 %v6658_v63, %v2542_v1  ;;  %v2546_v16 = vmul.f32 %v6676_v9, %v2542_v1 }
 0x2fe   : > { %v2548_v51 = vadd.f32 %v2544_v5, %v2520_v2  ;;  %v2547_v10 = vadd.f32 %v2543_v7, %v2519_v6  ;;  %v2549_v15 = vadd.f32 %v2545_v8, %v2521_v11  ;;  %v2550_v21 = vadd.f32 %v2546_v16, %v2522_v17 }
 0x300   : > { %v2562_v13 = vrot.slane %v2548_v51, %v6662_v3  ;;  %v2558_v14 = vrot.slane %v2547_v10, %v6662_v3  ;;  %v2566_v18 = vrot.slane %v2549_v15, %v6662_v3  ;;  %v2570_v23 = vrot.slane %v2550_v21, %v6662_v3 }
 0x302   : > { %2576 = vperm.xlu0 %5957, %v2562_v13   ;;  %2572 = vperm.xlu1 %5958, %v2558_v14  }
 0x306   : > { %2580 = vperm.xlu1 %5958, %v2566_v18  }
 0x30a   : > { %2584 = vperm.xlu1 %5958, %v2570_v23  }
 0x381   : > { %v2577_v24 = vpop.permute.xlu0 %2576  ;;  %v2573_v25 = vpop.permute.xlu1 %2572 }
 0x382   : > { %v6691_v26 = vsub.f32 %v6623_v19, %v2577_v24  ;;  %v6694_v27 = vsub.f32 %v6619_v52, %v2573_v25 }
 0x384   : > { %v2592_v28 = vmul.f32 %v6691_v26, %v6691_v26  ;;  %v2591_v29 = vmul.f32 %v6694_v27, %v6694_v27 }
 0x385   : > { %v2581_v30 = vpop.permute.xlu1 %2580 }
 0x386   : > { %v6701_v31 = vsub.f32 %v6625_v20, %v2581_v30  ;;  %v2596_v32 = vsel %vm2498_vm11, %v2592_v28, 0.0  ;;  %v2593_v33 = vsel %vm2498_vm11, %v2591_v29, 0.0 }
 0x387   : > { %2597 = vadd.xlane.f32.xlu1 %v2596_v32  ;;  %2594 = vadd.xlane.f32.xlu0 %v2593_v33 }
 0x388   : > { %v2617_v52 = vmul.f32 %v6701_v31, %v6701_v31 }
 0x389   : > { %v2585_v19 = vpop.permute.xlu1 %2584 }
 0x38a   : > { %v6708_v34 = vsub.f32 %v6629_v22, %v2585_v19  ;;  %v2619_v35 = vsel %vm2498_vm11, %v2617_v52, 0.0  ;;  %v5655_v22 = vld [vmem:[%s7631_s3 + $0x1] ss:$0 sm:$0xff] }
 0x38b   : > { %2620 = vadd.xlane.f32.xlu0 %v2619_v35 }
 0x38c   : > { %v2618_v20 = vmul.f32 %v6708_v34, %v6708_v34 }
 0x38e   : > { %v2622_v36 = vsel %vm2498_vm11, %v2618_v20, 0.0 }
 0x38f   : > { %2623 = vadd.xlane.f32.xlu0 %v2622_v36 }
 0x398   : > { %2724 = vperm.xlu1 %5958, %v5656_v37  }
 0x39c   : > { %2728 = vperm.xlu1 %5958, %v5657_v39  }
 0x3a5   : > { %2720 = vperm.xlu0 %5957, %v5655_v22   ;;  %v5658_v22 = vld [vmem:[%s7632_s4] ss:$0 sm:$0xff] }
 0x3a9   : > { %2716 = vperm.xlu0 %5957, %v5654_v40  }
 0x414   : > { %v2595_v41 = vpop.xlane.xlu0 %2594  ;;  %v2598_v42 = vpop.xlane.xlu1 %2597 }
 0x415   : > { %v2599_v43 = vrot.slane %v2595_v41, 4  ;;  %v2605_v44 = vrot.slane %v2598_v42, 4 }
 0x417   : > { %v2600_v45 = vadd.f32 %v2599_v43, %v2595_v41  ;;  %v2606_v46 = vadd.f32 %v2605_v44, %v2598_v42  ;;  %v5661_v43 = vld [vmem:[%s7632_s4 + $0x3] ss:$0 sm:$0xff] }
 0x418   : > { %v2621_v47 = vpop.xlane.xlu0 %2620 }
 0x419   : > { %v2601_v48 = vrot.slane %v2600_v45, 2  ;;  %v2607_v49 = vrot.slane %v2606_v46, 2  ;;  %v2625_v50 = vrot.slane %v2621_v47, 4 }
 0x41b   : > { %v2602_v54 = vadd.f32 %v2601_v48, %v2600_v45  ;;  %v2608_v55 = vadd.f32 %v2607_v49, %v2606_v46  ;;  %v2626_v56 = vadd.f32 %v2625_v50, %v2621_v47  ;;  %v2725_v45 = vpop.permute.xlu1 %2724 }
 0x41c   : > { %v2624_v57 = vpop.xlane.xlu0 %2623 }
 0x41d   : > { %v2603_v38 = vrot.slane %v2602_v54, 1  ;;  %v2609_v58 = vrot.slane %v2608_v55, 1  ;;  %v2627_v1 = vrot.slane %v2626_v56, 2  ;;  %v2631_v2 = vrot.slane %v2624_v57, 4 }
 0x41f   : > { %v2628_v5 = vadd.f32 %v2627_v1, %v2626_v56  ;;  %v2632_v6 = vadd.f32 %v2631_v2, %v2624_v57  ;;  %v2604_v7 = vadd.f32 %v2603_v38, %v2602_v54  ;;  %v2610_v8 = vadd.f32 %v2609_v58, %v2608_v55  ;;  %v2729_v47 = vpop.permute.xlu1 %2728  ;;  %v2820_v2 = vld [vmem:[#allocation2 + $0x10] sm:$0x1] }
 0x421   : > { %v2633_v51 = vrot.slane %v2632_v6, 2  ;;  %v2629_v10 = vrot.slane %v2628_v5, 1  ;;  %v2611_v13 = vadd.f32 %v2610_v8, %v2604_v7  ;;  %v2821_v8 = vld [vmem:[#allocation2 + $0x20] sm:$0x1] }
 0x423   : > { %v2634_v11 = vadd.f32 %v2633_v51, %v2632_v6  ;;  %v2630_v15 = vadd.f32 %v2629_v10, %v2628_v5  ;;  %v2612_v17 = vmul.f32 0.00390625, %v2611_v13  ;;  %v2827_v51 = vrot.slane %v2820_v2, 7  ;;  %v2822_v13 = vld [vmem:[#allocation2 + $0x30] sm:$0x1] }
 0x424   : > { %v2721_v44 = vpop.permute.xlu0 %2720 }
 0x425   : > { %v2635_v14 = vrot.slane %v2634_v11, 1  ;;  %v2615_v23 = vmul.f32 %v2612_v17, %v6667_v4  ;;  %v2614_v25 = vmul.f32 %v2612_v17, %v6638_v59  ;;  %v2613_v33 = vmul.f32 %v2612_v17, %v6648_v61 }
 0x426   : > { %v2616_v4 = vmul.f32 %v2612_v17, %v6682_v12  ;;  %v5660_v12 = vld [vmem:[%s7632_s4 + $0x2] ss:$0 sm:$0xff] }
 0x427   : > { %v2636_v16 = vadd.f32 %v2635_v14, %v2634_v11  ;;  %v2829_v14 = vrot.slane %v2821_v8, 6 }
 0x428   : > { %v2717_v46 = vpop.permute.xlu0 %2716 }
 0x429   : > { %v2637_v18 = vadd.f32 %v2636_v16, %v2630_v15 }
 0x42b   : > { %v2638_v21 = vmul.f32 0.00390625, %v2637_v18  ;;  %v2839_v18 = vld [vmem:[#allocation2 + $0x20] sm:$0x1] }
 0x42d   : > { %v2641_v24 = vmul.f32 %v6658_v63, %v2638_v21  ;;  %v2640_v28 = vmul.f32 %v6643_v60, %v2638_v21  ;;  %v2639_v29 = vmul.f32 %v6653_v62, %v2638_v21  ;;  %v2642_v20 = vmul.f32 %v6676_v9, %v2638_v21  ;;  %v5659_v9 = vld [vmem:[%s7632_s4 + $0x1] ss:$0 sm:$0xff] }
 0x42f   : > { %v2645_v30 = vadd.f32 %v2641_v24, %v2615_v23  ;;  %v2644_v32 = vadd.f32 %v2640_v28, %v2614_v25  ;;  %v2643_v35 = vadd.f32 %v2639_v29, %v2613_v33  ;;  %v2646_v36 = vadd.f32 %v2642_v20, %v2616_v4  ;;  %v2837_v25 = vld [vmem:[#allocation2] sm:$0x1] }
 0x430   : > { %v2847_v33 = vrot.slane %v2839_v18, 6 }
 0x431   : > { %v2649_v52 = vadd.f32 1e-05, %v2645_v30  ;;  %v2648_v19 = vadd.f32 1e-05, %v2644_v32  ;;  %v2647_v63 = vadd.f32 1e-05, %v2643_v35 }
 0x432   : > { %v2650_v59 = vadd.f32 1e-05, %v2646_v36  ;;  %v2840_v32 = vld [vmem:[#allocation2 + $0x30] sm:$0x1] }
 0x433   : > { %5960 = vrsqrt.f32 %v2649_v52  ;;  %v2849_v4 = vrot.slane %v2840_v32, 5 }
 0x434   : > { %5962 = vrsqrt.f32 %v2648_v19 }
 0x435   : > { %5964 = vrsqrt.f32 %v2647_v63 }
 0x436   : > { %5966 = vrsqrt.f32 %v2650_v59 }
 0x43d   : > { %v5961_v60 = vpop.eup %5960 }
 0x43e   : > { %v5963_v37 = vpop.eup %5962  ;;  %v2670_v62 = vrot.slane %v5961_v60, %v6662_v3 }
 0x43f   : > { %v2666_v61 = vrot.slane %v5963_v37, %v6662_v3  ;;  %v5965_v39 = vpop.eup %5964 }
 0x440   : > { %2684 = vperm.xlu0 %5957, %v2670_v62   ;;  %v2662_v40 = vrot.slane %v5965_v39, %v6662_v3  ;;  %v5967_v41 = vpop.eup %5966  ;;  %v6768_v62 = vld [vmem:[#allocation2 + $0x19] sm:$0x1] }
 0x441   : > { %2680 = vperm.xlu1 %5958, %v2666_v61   ;;  %v2674_v42 = vrot.slane %v5967_v41, %v6662_v3  ;;  %v6771_v61 = vld [vmem:[#allocation2 + $0x29] sm:$0x1] }
 0x444   : > { %2760 = vperm.xlu0 %5957, %v5659_v9   ;;  %v6773_v9 = vld [vmem:[#allocation2 + $0x19] sm:$0x1] }
 0x445   : > { %2764 = vperm.xlu1 %5958, %v5660_v12   ;;  %v6775_v12 = vld [vmem:[#allocation2 + $0x29] sm:$0x1] }
 0x448   : > { %2756 = vperm.xlu0 %5957, %v5658_v22  }
 0x449   : > { %2676 = vperm.xlu1 %5958, %v2662_v40  }
 0x44d   : > { %2688 = vperm.xlu1 %5958, %v2674_v42  }
 0x451   : > { %2768 = vperm.xlu1 %5958, %v5661_v43   ;;  %v4619_v43 = vrot.slane %v6768_v62, 7 }
 0x4bf   : > { %v2685_v48 = vpop.permute.xlu0 %2684 }
 0x4c0   : > { %v2693_v49 = vmul.f32 %v2685_v48, %v6701_v31  ;;  %v2681_v50 = vpop.permute.xlu1 %2680  ;;  %v2819_v31 = vld [vmem:[#allocation2] sm:$0x1] }
 0x4c1   : > { %v2692_v54 = vmul.f32 %v2681_v50, %v6691_v26  ;;  %v2838_v26 = vld [vmem:[#allocation2 + $0x10] sm:$0x1]  ;;  %v2828_v17 = vsel %vm560_vm2, %v2827_v51, %v2819_v31 }
 0x4c2   : > { %v2733_v55 = vmul.f32 %v2725_v45, %v2693_v49  ;;  %v2845_v21 = vrot.slane %v2838_v26, 7  ;;  %v2830_v30 = vsel %vm563_vm3, %v2829_v14, %v2828_v17  ;;  %v4637_v45 = vrot.slane %v6773_v9, 7 }
 0x4c3   : > { %v2761_v56 = vpop.permute.xlu0 %2760  ;;  %v2732_v57 = vmul.f32 %v2721_v44, %v2692_v54  ;;  %v4621_v44 = vrot.slane %v6771_v61, 6  ;;  %v5663_v61 = vld [vmem:[%s7630_s2 + $0x4] sm:$0xf] }
 0x4c4   : > { %v2765_v38 = vpop.permute.xlu1 %2764  ;;  %v2846_v19 = vsel %vm560_vm2, %v2845_v21, %v2837_v25 }
 0x4c5   : > { %v2772_v58 = vadd.f32 %v2761_v56, %v2732_v57  ;;  %v2773_v1 = vadd.f32 %v2765_v38, %v2733_v55 }
 0x4c7   : > { %v2776_v5 = vmax.f32 %v2772_v58, 0.0  ;;  %v2777_v6 = vmax.f32 %v2773_v1, 0.0  ;;  %v2757_v15 = vpop.permute.xlu0 %2756 }
 0x4c8   : > { %v2677_v7 = vpop.permute.xlu1 %2676 }
 0x4c9   : > { %v2691_v10 = vmul.f32 %v2677_v7, %v6694_v27  ;;  %2785 = vrot.lane.b32.xlu0 %v2776_v5, %s6009_s24  ;;  %2787 = vrot.lane.b32.xlu1 %v2777_v6, %s6009_s24  ;;  %v2831_v27 = vrot.slane %v2822_v13, 5 }
 0x4cb   : > { %v2731_v11 = vmul.f32 %v2717_v46, %v2691_v10  ;;  %v2832_v20 = vsel %vm566_vm5, %v2831_v27, %v2830_v30  ;;  %v4639_v46 = vrot.slane %v6775_v12, 6 }
 0x4cc   : > { %v2689_v16 = vpop.permute.xlu1 %2688 }
 0x4cd   : > { %v2694_v23 = vmul.f32 %v2689_v16, %v6708_v34  ;;  %v2771_v24 = vadd.f32 %v2757_v15, %v2731_v11  ;;  %v2848_v34 = vsel %vm563_vm3, %v2847_v33, %v2846_v19 }
 0x4ce   : > { %v2850_v36 = vsel %vm566_vm5, %v2849_v4, %v2848_v34 }
 0x4cf   : > { %v2734_v28 = vmul.f32 %v2729_v47, %v2694_v23  ;;  %v2775_v29 = vmax.f32 %v2771_v24, 0.0 }
 0x4d0   : > { %v2769_v52 = vpop.permute.xlu1 %2768 }
 0x4d1   : > { %v2774_v35 = vadd.f32 %v2769_v52, %v2734_v28  ;;  %2783 = vrot.lane.b32.xlu0 %v2775_v29, %s6009_s24 }
 0x4d3   : > { %v2778_v63 = vmax.f32 %v2774_v35, 0.0 }
 0x4d5   : > { %2789 = vrot.lane.b32.xlu1 %v2778_v63, %s6009_s24  ;;  %2833 = vrot.lane.b32.xlu0 %v2832_v20, %s6010_s25 }
 0x4d9   : > { %2851 = vrot.lane.b32.xlu1 %v2850_v36, %s6011_s26 }
 0x53b   : > { %v2786_v59 = vpop.permute.xlu0 %2785  ;;  %v2788_v60 = vpop.permute.xlu1 %2787 }
 0x53c   : > { %2796 = vst.msk [vmem:[#allocation2 + $0x11] sm:$0xff] %vm544_vm6, %v2786_v59  ;;  %2797 = vst.msk [vmem:[#allocation2 + $0x21] sm:$0xff] %vm544_vm6, %v2788_v60 }
 0x543   : > { %v2784_v37 = vpop.permute.xlu0 %2783  ;;  %v2856_v39 = vld [vmem:[#allocation2 + $0x11] sm:$0x1]  ;;  %v2857_v22 = vld [vmem:[#allocation2 + $0x21] sm:$0x1]  ;;  %v2942_v55 = vld [vmem:[#allocation2 + $0x12] sm:$0x1] }
 0x544   : > { %2795 = vst.msk [vmem:[#allocation2 + $0x1] sm:$0xff] %vm544_vm6, %v2784_v37  ;;  %v2890_v42 = vld [vmem:[#allocation2 + $0x11] sm:$0x1]  ;;  %v2863_v47 = vrot.slane %v2856_v39, 7  ;;  %v2865_v48 = vrot.slane %v2857_v22, 6  ;;  %v2949_v31 = vrot.slane %v2942_v55, 7 }
 0x545   : > { %v2891_v49 = vld [vmem:[#allocation2 + $0x21] sm:$0x1]  ;;  %v2872_v50 = vld [vmem:[#allocation2 + $0x11] sm:$0x1]  ;;  %v2943_v56 = vld [vmem:[#allocation2 + $0x22] sm:$0x1] }
 0x546   : > { %v2873_v54 = vld [vmem:[#allocation2 + $0x21] sm:$0x1]  ;;  %v2924_v57 = vld [vmem:[#allocation2 + $0x12] sm:$0x1]  ;;  %v2925_v38 = vld [vmem:[#allocation2 + $0x22] sm:$0x1] }
 0x547   : > { %v2790_v40 = vpop.permute.xlu1 %2789  ;;  %v2834_v41 = vpop.permute.xlu0 %2833  ;;  %v3086_v58 = vld [vmem:[#allocation2 + $0x11] sm:$0x1]  ;;  %v2897_v7 = vrot.slane %v2890_v42, 7  ;;  %v2899_v8 = vrot.slane %v2891_v49, 6  ;;  %v2879_v51 = vrot.slane %v2872_v50, 7  ;;  %v2881_v10 = vrot.slane %v2873_v54, 6 }
 0x548   : > { %2798 = vst.msk [vmem:[#allocation2 + $0x31] sm:$0xff] %vm544_vm6, %v2790_v40  ;;  %v2951_v26 = vrot.slane %v2943_v56, 6  ;;  %v2931_v11 = vrot.slane %v2924_v57, 7  ;;  %v2933_v13 = vrot.slane %v2925_v38, 6  ;;  %v3093_v18 = vrot.slane %v3086_v58, 7 }
 0x549   : > { %2836 = vst.msk [vmem:[#allocation3 + $0x4] sm:$0xf] %vm569_vm4, %v2834_v41  ;;  %v3068_v21 = vld [vmem:[#allocation2 + $0x11] sm:$0x1]  ;;  %v3087_v32 = vld [vmem:[#allocation2 + $0x21] sm:$0x1] }
 0x54a   : > { %v3069_v37 = vld [vmem:[#allocation2 + $0x21] sm:$0x1]  ;;  %v3075_v42 = vrot.slane %v3068_v21, 7  ;;  %v3139_v54 = vld [vmem:[#allocation2 + $0x22] sm:$0x1]  ;;  %v3095_v56 = vrot.slane %v3087_v32, 6 }
 0x54b   : > { %v2855_v1 = vld [vmem:[#allocation2 + $0x1] sm:$0x1]  ;;  %v2852_v2 = vpop.permute.xlu1 %2851  ;;  %v2941_v17 = vld [vmem:[#allocation2 + $0x2] sm:$0x1]  ;;  %v3120_v58 = vld [vmem:[#allocation2 + $0x12] sm:$0x1] }
 0x54c   : > { %v2889_v5 = vld [vmem:[#allocation2 + $0x1] sm:$0x1]  ;;  %2854 = vst.msk [vmem:[#allocation3 + $0x8] sm:$0xf] %vm569_vm4, %v2852_v2  ;;  %v2864_v14 = vsel %vm560_vm2, %v2863_v47, %v2855_v1  ;;  %v2923_v25 = vld [vmem:[#allocation2 + $0x2] sm:$0x1]  ;;  %v2950_v36 = vsel %vm560_vm2, %v2949_v31, %v2941_v17 }
 0x54d   : > { %v2871_v6 = vld [vmem:[#allocation2 + $0x1] sm:$0x1]  ;;  %v2898_v15 = vsel %vm560_vm2, %v2897_v7, %v2889_v5  ;;  %v2866_v33 = vsel %vm563_vm3, %v2865_v48, %v2864_v14  ;;  %v2932_v22 = vsel %vm560_vm2, %v2931_v11, %v2923_v25  ;;  %v3138_v47 = vld [vmem:[#allocation2 + $0x12] sm:$0x1]  ;;  %v3137_v50 = vld [vmem:[#allocation2 + $0x2] sm:$0x1]  ;;  %v2952_v55 = vsel %vm563_vm3, %v2951_v26, %v2950_v36 }
 0x54e   : > { %v2880_v16 = vsel %vm560_vm2, %v2879_v51, %v2871_v6  ;;  %v2900_v52 = vsel %vm563_vm3, %v2899_v8, %v2898_v15  ;;  %v3085_v4 = vld [vmem:[#allocation2 + $0x1] sm:$0x1]  ;;  %v2934_v2 = vsel %vm563_vm3, %v2933_v13, %v2932_v22  ;;  %v3145_v6 = vrot.slane %v3138_v47, 7  ;;  %v3119_v7 = vld [vmem:[#allocation2 + $0x2] sm:$0x1] }
 0x54f   : > { %v2858_v23 = vld [vmem:[#allocation2 + $0x31] sm:$0x1]  ;;  %v2944_v30 = vld [vmem:[#allocation2 + $0x32] sm:$0x1]  ;;  %v2882_v19 = vsel %vm563_vm3, %v2881_v10, %v2880_v16  ;;  %v3067_v41 = vld [vmem:[#allocation2 + $0x1] sm:$0x1]  ;;  %v3094_v48 = vsel %vm560_vm2, %v3093_v18, %v3085_v4 }
 0x550   : > { %v2892_v24 = vld [vmem:[#allocation2 + $0x31] sm:$0x1]  ;;  %v2867_v27 = vrot.slane %v2858_v23, 5  ;;  %v2926_v20 = vld [vmem:[#allocation2 + $0x32] sm:$0x1]  ;;  %v2953_v59 = vrot.slane %v2944_v30, 5  ;;  %v3076_v5 = vsel %vm560_vm2, %v3075_v42, %v3067_v41  ;;  %v3096_v10 = vsel %vm563_vm3, %v3095_v56, %v3094_v48 }
 0x551   : > { %v2901_v28 = vrot.slane %v2892_v24, 5  ;;  %v2874_v29 = vld [vmem:[#allocation2 + $0x31] sm:$0x1]  ;;  %v2935_v40 = vrot.slane %v2926_v20, 5  ;;  %v3140_v38 = vld [vmem:[#allocation2 + $0x32] sm:$0x1]  ;;  %v3146_v13 = vsel %vm560_vm2, %v3145_v6, %v3137_v50 }
 0x552   : > { %v2883_v35 = vrot.slane %v2874_v29, 5  ;;  %v2868_v63 = vsel %vm566_vm5, %v2867_v27, %v2866_v33  ;;  %v3088_v60 = vld [vmem:[#allocation2 + $0x31] sm:$0x1]  ;;  %v2954_v1 = vsel %vm566_vm5, %v2953_v59, %v2952_v55  ;;  %v3121_v8 = vld [vmem:[#allocation2 + $0x22] sm:$0x1]  ;;  %v3077_v31 = vrot.slane %v3069_v37, 6 }
 0x553   : > { %v2902_v34 = vsel %vm566_vm5, %v2901_v28, %v2900_v52  ;;  %2870 = vst.msk [vmem:[#allocation3 + $0xc] sm:$0xf] %vm569_vm4, %v2868_v63  ;;  %v3070_v49 = vld [vmem:[#allocation2 + $0x31] sm:$0x1]  ;;  %v3097_v57 = vrot.slane %v3088_v60, 5  ;;  %v2936_v51 = vsel %vm566_vm5, %v2935_v40, %v2934_v2  ;;  %v2959_v15 = vld [vmem:[#allocation3] sm:$0xff] }
 0x554   : > { %2903 = vrot.lane.b32.xlu1 %v2902_v34, %s6011_s26  ;;  %v2884_v39 = vsel %vm566_vm5, %v2883_v35, %v2882_v19  ;;  %v3079_v26 = vrot.slane %v3070_v49, 5  ;;  %v3122_v11 = vld [vmem:[#allocation2 + $0x32] sm:$0x1]  ;;  %v3190_v14 = vld [vmem:[#allocation2 + $0x13] sm:$0x1]  ;;  %v3147_v16 = vrot.slane %v3139_v54, 6  ;;  %v3078_v25 = vsel %vm563_vm3, %v3077_v31, %v3076_v5 }
 0x555   : > { %2885 = vrot.lane.b32.xlu0 %v2884_v39, %s6010_s25  ;;  %v3149_v17 = vrot.slane %v3140_v38, 5  ;;  %v3127_v18 = vrot.slane %v3120_v58, 7  ;;  %v3189_v21 = vld [vmem:[#allocation2 + $0x3] sm:$0x1]  ;;  %v3098_v24 = vsel %vm566_vm5, %v3097_v57, %v3096_v10  ;;  %v3192_v27 = vld [vmem:[#allocation2 + $0x33] sm:$0x1] }
 0x556   : > { %v3191_v23 = vld [vmem:[#allocation2 + $0x23] sm:$0x1]  ;;  %v3172_v28 = vld [vmem:[#allocation2 + $0x13] sm:$0x1]  ;;  %v3129_v33 = vrot.slane %v3121_v8, 6  ;;  %v3131_v52 = vrot.slane %v3122_v11, 5  ;;  %v3080_v20 = vsel %vm566_vm5, %v3079_v26, %v3078_v25  ;;  %v3148_v63 = vsel %vm563_vm3, %v3147_v16, %v3146_v13 }
 0x557   : > { %v3173_v29 = vld [vmem:[#allocation2 + $0x23] sm:$0x1]  ;;  %v3128_v32 = vsel %vm560_vm2, %v3127_v18, %v3119_v7  ;;  %v3197_v19 = vrot.slane %v3190_v14, 7  ;;  %v3174_v34 = vld [vmem:[#allocation2 + $0x33] sm:$0x1]  ;;  %v3199_v60 = vrot.slane %v3191_v23, 6  ;;  %v3150_v40 = vsel %vm566_vm5, %v3149_v17, %v3148_v63 }
 0x558   : > { %2955 = vrot.lane.b32.xlu1 %v2954_v1, %s6011_s26  ;;  %v3171_v35 = vld [vmem:[#allocation2 + $0x3] sm:$0x1]  ;;  %v3326_v36 = vld [vmem:[#allocation2 + $0x12] sm:$0x1]  ;;  %v3327_v59 = vld [vmem:[#allocation2 + $0x22] sm:$0x1]  ;;  %v3130_v41 = vsel %vm563_vm3, %v3129_v33, %v3128_v32 }
 0x559   : > { %2937 = vrot.lane.b32.xlu0 %v2936_v51, %s6010_s25  ;;  %v3201_v37 = vrot.slane %v3192_v27, 5  ;;  %v3179_v39 = vrot.slane %v3172_v28, 7  ;;  %v3181_v22 = vrot.slane %v3173_v29, 6  ;;  %v3198_v42 = vsel %vm560_vm2, %v3197_v19, %v3189_v21  ;;  %v3325_v47 = vld [vmem:[#allocation2 + $0x2] sm:$0x1] }
 0x55a   : > { %v2960_v30 = vld [vmem:[#allocation3 + $0x8] sm:$0xff]  ;;  %v3328_v48 = vld [vmem:[#allocation2 + $0x32] sm:$0x1]  ;;  %v3183_v54 = vrot.slane %v3174_v34, 5  ;;  %v3333_v55 = vrot.slane %v3326_v36, 7  ;;  %v3335_v56 = vrot.slane %v3327_v59, 6  ;;  %v3132_v38 = vsel %vm566_vm5, %v3131_v52, %v3130_v41 }
 0x55b   : > { %v2964_v4 = vpack.c.bf16 %v2960_v30, %v2959_v15  ;;  %v3308_v49 = vld [vmem:[#allocation2 + $0x12] sm:$0x1]  ;;  %v3180_v50 = vsel %vm560_vm2, %v3179_v39, %v3171_v35  ;;  %v3309_v57 = vld [vmem:[#allocation2 + $0x22] sm:$0x1]  ;;  %v3378_v1 = vld [vmem:[#allocation2 + $0x13] sm:$0x1]  ;;  %v3200_v5 = vsel %vm563_vm3, %v3199_v60, %v3198_v42 }
 0x55c   : > { %3099 = vrot.lane.b32.xlu1 %v3098_v24, %s6011_s26  ;;  %v3310_v58 = vld [vmem:[#allocation2 + $0x32] sm:$0x1]  ;;  %v3379_v2 = vld [vmem:[#allocation2 + $0x23] sm:$0x1]  ;;  %v3334_v6 = vsel %vm560_vm2, %v3333_v55, %v3325_v47  ;;  %v3337_v7 = vrot.slane %v3328_v48, 5  ;;  %v3315_v51 = vrot.slane %v3308_v49, 7  ;;  %v3202_v31 = vsel %vm566_vm5, %v3201_v37, %v3200_v5 }
 0x55d   : > { %3081 = vrot.lane.b32.xlu0 %v3080_v20, %s6010_s25  ;;  %5850 = vmatpush3.bf16.msra.mxu0 %v2964_v4  ;;  %v3307_v8 = vld [vmem:[#allocation2 + $0x2] sm:$0x1]  ;;  %v3377_v10 = vld [vmem:[#allocation2 + $0x3] sm:$0x1]  ;;  %v3182_v26 = vsel %vm563_vm3, %v3181_v22, %v3180_v50  ;;  %v3380_v11 = vld [vmem:[#allocation2 + $0x33] sm:$0x1]  ;;  %v3336_v23 = vsel %vm563_vm3, %v3335_v56, %v3334_v6 }
 0x55e   : > { %5851 = vmatprep.subr.bf16.mxu0 %v6008_v0  ;;  %v3360_v14 = vld [vmem:[#allocation2 + $0x13] sm:$0x1]  ;;  %v3361_v15 = vld [vmem:[#allocation2 + $0x23] sm:$0x1]  ;;  %v3317_v13 = vrot.slane %v3309_v57, 6  ;;  %v3319_v16 = vrot.slane %v3310_v58, 5  ;;  %v3184_v21 = vsel %vm566_vm5, %v3183_v54, %v3182_v26  ;;  %v3316_v24 = vsel %vm560_vm2, %v3315_v51, %v3307_v8 }
 0x55f   : > { %v3385_v17 = vrot.slane %v3378_v1, 7  ;;  %v3387_v18 = vrot.slane %v3379_v2, 6  ;;  %v3359_v25 = vld [vmem:[#allocation2 + $0x3] sm:$0x1]  ;;  %v3362_v27 = vld [vmem:[#allocation2 + $0x33] sm:$0x1]  ;;  %v3338_v19 = vsel %vm566_vm5, %v3337_v7, %v3336_v23 }
 0x560   : > { %3151 = vrot.lane.b32.xlu1 %v3150_v40, %s6011_s26  ;;  %v3430_v28 = vld [vmem:[#allocation2 + $0x14] sm:$0x1]  ;;  %v3389_v30 = vrot.slane %v3380_v11, 5  ;;  %v3367_v32 = vrot.slane %v3360_v14, 7  ;;  %v3369_v33 = vrot.slane %v3361_v15, 6  ;;  %v3318_v63 = vsel %vm563_vm3, %v3317_v13, %v3316_v24 }
 0x561   : > { %3133 = vrot.lane.b32.xlu0 %v3132_v38, %s6010_s25  ;;  %v3386_v29 = vsel %vm560_vm2, %v3385_v17, %v3377_v10  ;;  %v3431_v52 = vld [vmem:[#allocation2 + $0x24] sm:$0x1]  ;;  %v3432_v35 = vld [vmem:[#allocation2 + $0x34] sm:$0x1]  ;;  %v3371_v36 = vrot.slane %v3362_v27, 5  ;;  %v3437_v60 = vrot.slane %v3430_v28, 7  ;;  %v3320_v39 = vsel %vm566_vm5, %v3319_v16, %v3318_v63 }
 0x562   : > { %v3412_v20 = vld [vmem:[#allocation2 + $0x14] sm:$0x1]  ;;  %v3413_v4 = vld [vmem:[#allocation2 + $0x24] sm:$0x1]  ;;  %v3368_v34 = vsel %vm560_vm2, %v3367_v32, %v3359_v25  ;;  %v3388_v22 = vsel %vm563_vm3, %v3387_v18, %v3386_v29  ;;  %v3566_v41 = vld [vmem:[#allocation2 + $0x13] sm:$0x1] }
 0x563   : > { %v3429_v59 = vld [vmem:[#allocation2 + $0x4] sm:$0x1]  ;;  %v3414_v40 = vld [vmem:[#allocation2 + $0x34] sm:$0x1]  ;;  %v3567_v42 = vld [vmem:[#allocation2 + $0x23] sm:$0x1]  ;;  %v3390_v54 = vsel %vm566_vm5, %v3389_v30, %v3388_v22  ;;  %v3370_v55 = vsel %vm563_vm3, %v3369_v33, %v3368_v34 }
 0x564   : > { %3203 = vrot.lane.b32.xlu1 %v3202_v31, %s6011_s26  ;;  %v3411_v37 = vld [vmem:[#allocation2 + $0x4] sm:$0x1]  ;;  %v3439_v47 = vrot.slane %v3431_v52, 6  ;;  %v3441_v48 = vrot.slane %v3432_v35, 5  ;;  %v3419_v49 = vrot.slane %v3412_v20, 7  ;;  %v3421_v50 = vrot.slane %v3413_v4, 6 }
 0x565   : > { %3185 = vrot.lane.b32.xlu0 %v3184_v21, %s6010_s25  ;;  %v3438_v56 = vsel %vm560_vm2, %v3437_v60, %v3429_v59  ;;  %v3565_v57 = vld [vmem:[#allocation2 + $0x3] sm:$0x1]  ;;  %v3568_v38 = vld [vmem:[#allocation2 + $0x33] sm:$0x1]  ;;  %v3423_v2 = vrot.slane %v3414_v40, 5  ;;  %v3573_v5 = vrot.slane %v3566_v41, 7  ;;  %v3372_v8 = vsel %vm566_vm5, %v3371_v36, %v3370_v55 }
 0x566   : > { %v3548_v58 = vld [vmem:[#allocation2 + $0x13] sm:$0x1]  ;;  %v3420_v1 = vsel %vm560_vm2, %v3419_v49, %v3411_v37  ;;  %v3575_v6 = vrot.slane %v3567_v42, 6  ;;  %v3549_v7 = vld [vmem:[#allocation2 + $0x23] sm:$0x1]  ;;  %v3440_v26 = vsel %vm563_vm3, %v3439_v47, %v3438_v56  ;;  %v3577_v14 = vrot.slane %v3568_v38, 5 }
 0x567   : > { %v3550_v51 = vld [vmem:[#allocation2 + $0x33] sm:$0x1]  ;;  %v3618_v10 = vld [vmem:[#allocation2 + $0x14] sm:$0x1]  ;;  %v3619_v31 = vld [vmem:[#allocation2 + $0x24] sm:$0x1]  ;;  %v3574_v11 = vsel %vm560_vm2, %v3573_v5, %v3565_v57  ;;  %v3442_v17 = vsel %vm566_vm5, %v3441_v48, %v3440_v26  ;;  %v3422_v18 = vsel %vm563_vm3, %v3421_v50, %v3420_v1 }
 0x568   : > { %3339 = vrot.lane.b32.xlu1 %v3338_v19, %s6011_s26  ;;  %v3547_v15 = vld [vmem:[#allocation2 + $0x3] sm:$0x1]  ;;  %v3555_v13 = vrot.slane %v3548_v58, 7  ;;  %v3617_v16 = vld [vmem:[#allocation2 + $0x4] sm:$0x1]  ;;  %v3557_v25 = vrot.slane %v3549_v7, 6  ;;  %v3424_v30 = vsel %vm566_vm5, %v3423_v2, %v3422_v18  ;;  %v3576_v32 = vsel %vm563_vm3, %v3575_v6, %v3574_v11 }
 0x569   : > { %3321 = vrot.lane.b32.xlu0 %v3320_v39, %s6010_s25  ;;  %v3620_v21 = vld [vmem:[#allocation2 + $0x34] sm:$0x1]  ;;  %v3601_v24 = vld [vmem:[#allocation2 + $0x24] sm:$0x1]  ;;  %v3559_v27 = vrot.slane %v3550_v51, 5  ;;  %v3625_v28 = vrot.slane %v3618_v10, 7  ;;  %v3578_v59 = vsel %vm566_vm5, %v3577_v14, %v3576_v32 }
 0x56a   : > { %v3600_v23 = vld [vmem:[#allocation2 + $0x14] sm:$0x1]  ;;  %v3627_v29 = vrot.slane %v3619_v31, 6  ;;  %v3556_v33 = vsel %vm560_vm2, %v3555_v13, %v3547_v15  ;;  %v3599_v52 = vld [vmem:[#allocation2 + $0x4] sm:$0x1]  ;;  %v3629_v4 = vrot.slane %v3620_v21, 5 }
 0x56b   : > { %v3602_v19 = vld [vmem:[#allocation2 + $0x34] sm:$0x1]  ;;  %v3670_v35 = vld [vmem:[#allocation2 + $0x15] sm:$0x1]  ;;  %v3626_v20 = vsel %vm560_vm2, %v3625_v28, %v3617_v16  ;;  %v3607_v63 = vrot.slane %v3600_v23, 7  ;;  %v3609_v34 = vrot.slane %v3601_v24, 6  ;;  %v3558_v22 = vsel %vm563_vm3, %v3557_v25, %v3556_v33 }
 0x56c   : > { %3391 = vrot.lane.b32.xlu1 %v3390_v54, %s6011_s26  ;;  %v3671_v36 = vld [vmem:[#allocation2 + $0x25] sm:$0x1]  ;;  %v3672_v60 = vld [vmem:[#allocation2 + $0x35] sm:$0x1]  ;;  %v3611_v41 = vrot.slane %v3602_v19, 5  ;;  %v3677_v47 = vrot.slane %v3670_v35, 7  ;;  %v3560_v49 = vsel %vm566_vm5, %v3559_v27, %v3558_v22  ;;  %v3628_v50 = vsel %vm563_vm3, %v3627_v29, %v3626_v20 }
 0x56d   : > { %3373 = vrot.lane.b32.xlu0 %v3372_v8, %s6010_s25  ;;  %v3652_v37 = vld [vmem:[#allocation2 + $0x15] sm:$0x1]  ;;  %v3653_v39 = vld [vmem:[#allocation2 + $0x25] sm:$0x1]  ;;  %v3608_v40 = vsel %vm560_vm2, %v3607_v63, %v3599_v52  ;;  %v3806_v55 = vld [vmem:[#allocation2 + $0x14] sm:$0x1]  ;;  %v3630_v2 = vsel %vm566_vm5, %v3629_v4, %v3628_v50 }
 0x56e   : > { %v3669_v42 = vld [vmem:[#allocation2 + $0x5] sm:$0x1]  ;;  %v3654_v54 = vld [vmem:[#allocation2 + $0x35] sm:$0x1]  ;;  %v3807_v56 = vld [vmem:[#allocation2 + $0x24] sm:$0x1]  ;;  %v3610_v5 = vsel %vm563_vm3, %v3609_v34, %v3608_v40 }
 0x56f   : > { %v3651_v48 = vld [vmem:[#allocation2 + $0x5] sm:$0x1]  ;;  %v3679_v57 = vrot.slane %v3671_v36, 6  ;;  %v3681_v38 = vrot.slane %v3672_v60, 5  ;;  %v3659_v58 = vrot.slane %v3652_v37, 7  ;;  %v3661_v1 = vrot.slane %v3653_v39, 6 }
 0x570   : > { %3443 = vrot.lane.b32.xlu1 %v3442_v17, %s6011_s26  ;;  %v3678_v6 = vsel %vm560_vm2, %v3677_v47, %v3669_v42  ;;  %v3805_v7 = vld [vmem:[#allocation2 + $0x4] sm:$0x1]  ;;  %v3808_v8 = vld [vmem:[#allocation2 + $0x34] sm:$0x1]  ;;  %v3663_v31 = vrot.slane %v3654_v54, 5  ;;  %v3813_v26 = vrot.slane %v3806_v55, 7  ;;  %v3612_v15 = vsel %vm566_vm5, %v3611_v41, %v3610_v5 }
 0x571   : > { %3425 = vrot.lane.b32.xlu0 %v3424_v30, %s6010_s25  ;;  %v3788_v51 = vld [vmem:[#allocation2 + $0x14] sm:$0x1]  ;;  %v3660_v10 = vsel %vm560_vm2, %v3659_v58, %v3651_v48  ;;  %v3815_v11 = vrot.slane %v3807_v56, 6  ;;  %v3789_v14 = vld [vmem:[#allocation2 + $0x24] sm:$0x1]  ;;  %v3680_v18 = vsel %vm563_vm3, %v3679_v57, %v3678_v6  ;;  %v3817_v23 = vrot.slane %v3808_v8, 5 }
 0x572   : > { %v3790_v13 = vld [vmem:[#allocation2 + $0x34] sm:$0x1]  ;;  %v3858_v16 = vld [vmem:[#allocation2 + $0x15] sm:$0x1]  ;;  %v3859_v17 = vld [vmem:[#allocation2 + $0x25] sm:$0x1]  ;;  %v3814_v21 = vsel %vm560_vm2, %v3813_v26, %v3805_v7  ;;  %v3682_v28 = vsel %vm566_vm5, %v3681_v38, %v3680_v18  ;;  %v3662_v29 = vsel %vm563_vm3, %v3661_v1, %v3660_v10 }
 0x573   : > { %v3787_v24 = vld [vmem:[#allocation2 + $0x4] sm:$0x1]  ;;  %v3795_v25 = vrot.slane %v3788_v51, 7  ;;  %v3857_v27 = vld [vmem:[#allocation2 + $0x5] sm:$0x1]  ;;  %v3797_v52 = vrot.slane %v3789_v14, 6  ;;  %v3664_v4 = vsel %vm566_vm5, %v3663_v31, %v3662_v29  ;;  %v3816_v63 = vsel %vm563_vm3, %v3815_v11, %v3814_v21 }
 0x574   : > { %3579 = vrot.lane.b32.xlu1 %v3578_v59, %s6011_s26  ;;  %v3860_v30 = vld [vmem:[#allocation2 + $0x35] sm:$0x1]  ;;  %v3841_v33 = vld [vmem:[#allocation2 + $0x25] sm:$0x1]  ;;  %v3799_v19 = vrot.slane %v3790_v13, 5  ;;  %v3865_v35 = vrot.slane %v3858_v16, 7  ;;  %v3818_v42 = vsel %vm566_vm5, %v3817_v23, %v3816_v63 }
 0x575   : > { %3561 = vrot.lane.b32.xlu0 %v3560_v49, %s6010_s25  ;;  %v3840_v32 = vld [vmem:[#allocation2 + $0x15] sm:$0x1]  ;;  %v3867_v20 = vrot.slane %v3859_v17, 6  ;;  %v3796_v34 = vsel %vm560_vm2, %v3795_v25, %v3787_v24  ;;  %v3839_v36 = vld [vmem:[#allocation2 + $0x5] sm:$0x1]  ;;  %v3869_v39 = vrot.slane %v3860_v30, 5 }
 0x576   : > { %v3842_v59 = vld [vmem:[#allocation2 + $0x35] sm:$0x1]  ;;  %v3910_v60 = vld [vmem:[#allocation2 + $0x16] sm:$0x1]  ;;  %v3866_v37 = vsel %vm560_vm2, %v3865_v35, %v3857_v27  ;;  %v3847_v22 = vrot.slane %v3840_v32, 7  ;;  %v3849_v40 = vrot.slane %v3841_v33, 6  ;;  %v3798_v50 = vsel %vm563_vm3, %v3797_v52, %v3796_v34 }
 0x577   : > { %v3909_v41 = vld [vmem:[#allocation2 + $0x6] sm:$0x1]  ;;  %v3912_v48 = vld [vmem:[#allocation2 + $0x36] sm:$0x1]  ;;  %v3851_v55 = vrot.slane %v3842_v59, 5  ;;  %v3917_v56 = vrot.slane %v3910_v60, 7  ;;  %v3800_v58 = vsel %vm566_vm5, %v3799_v19, %v3798_v50  ;;  %v3868_v1 = vsel %vm563_vm3, %v3867_v20, %v3866_v37 }
 0x578   : > { %3631 = vrot.lane.b32.xlu1 %v3630_v2, %s6011_s26  ;;  %v3911_v47 = vld [vmem:[#allocation2 + $0x26] sm:$0x1]  ;;  %v3892_v49 = vld [vmem:[#allocation2 + $0x16] sm:$0x1]  ;;  %v3848_v54 = vsel %vm560_vm2, %v3847_v22, %v3839_v36  ;;  %v4046_v5 = vld [vmem:[#allocation2 + $0x15] sm:$0x1]  ;;  %v3870_v7 = vsel %vm566_vm5, %v3869_v39, %v3868_v1 }
 0x579   : > { %3613 = vrot.lane.b32.xlu0 %v3612_v15, %s6010_s25  ;;  %v3891_v57 = vld [vmem:[#allocation2 + $0x6] sm:$0x1]  ;;  %v3894_v2 = vld [vmem:[#allocation2 + $0x36] sm:$0x1]  ;;  %v4047_v6 = vld [vmem:[#allocation2 + $0x25] sm:$0x1]  ;;  %v3850_v26 = vsel %vm563_vm3, %v3849_v40, %v3848_v54  ;;  %v3918_v11 = vsel %vm560_vm2, %v3917_v56, %v3909_v41 }
 0x57a   : > { %v3893_v38 = vld [vmem:[#allocation2 + $0x26] sm:$0x1]  ;;  %v3919_v8 = vrot.slane %v3911_v47, 6  ;;  %v3899_v51 = vrot.slane %v3892_v49, 7  ;;  %v4048_v10 = vld [vmem:[#allocation2 + $0x35] sm:$0x1]  ;;  %v3852_v24 = vsel %vm566_vm5, %v3851_v55, %v3850_v26 }
 0x57b   : > { %v4028_v31 = vld [vmem:[#allocation2 + $0x15] sm:$0x1]  ;;  %v3921_v14 = vrot.slane %v3912_v48, 5  ;;  %v3901_v15 = vrot.slane %v3893_v38, 6  ;;  %v4045_v13 = vld [vmem:[#allocation2 + $0x5] sm:$0x1] }
 0x57c   : > { %3683 = vrot.lane.b32.xlu1 %v3682_v28, %s6011_s26  ;;  %v3900_v16 = vsel %vm560_vm2, %v3899_v51, %v3891_v57  ;;  %v3903_v17 = vrot.slane %v3894_v2, 5  ;;  %v4053_v18 = vrot.slane %v4046_v5, 7  ;;  %v4055_v21 = vrot.slane %v4047_v6, 6  ;;  %v4027_v23 = vld [vmem:[#allocation2 + $0x5] sm:$0x1] }
 0x57d   : > { %3665 = vrot.lane.b32.xlu0 %v3664_v4, %s6010_s25  ;;  %v4057_v25 = vrot.slane %v4048_v10, 5  ;;  %v4029_v27 = vld [vmem:[#allocation2 + $0x25] sm:$0x1]  ;;  %v4030_v28 = vld [vmem:[#allocation2 + $0x35] sm:$0x1]  ;;  %v4035_v29 = vrot.slane %v4028_v31, 7  ;;  %v3920_v30 = vsel %vm563_vm3, %v3919_v8, %v3918_v11  ;;  %v3902_v35 = vsel %vm563_vm3, %v3901_v15, %v3900_v16 }
 0x57e   : > { %v4098_v32 = vld [vmem:[#allocation2 + $0x16] sm:$0x1]  ;;  %v4099_v33 = vld [vmem:[#allocation2 + $0x26] sm:$0x1]  ;;  %v3922_v19 = vsel %vm566_vm5, %v3921_v14, %v3920_v30  ;;  %v3904_v34 = vsel %vm566_vm5, %v3903_v17, %v3902_v35  ;;  %v4054_v36 = vsel %vm560_vm2, %v4053_v18, %v4045_v13  ;;  %v4037_v59 = vrot.slane %v4029_v27, 6 }
 0x57f   : > { %v4100_v52 = vld [vmem:[#allocation2 + $0x36] sm:$0x1]  ;;  %v4097_v20 = vld [vmem:[#allocation2 + $0x6] sm:$0x1]  ;;  %v4039_v60 = vrot.slane %v4030_v28, 5  ;;  %v4036_v22 = vsel %vm560_vm2, %v4035_v29, %v4027_v23  ;;  %v4105_v40 = vrot.slane %v4098_v32, 7  ;;  %v4056_v55 = vsel %vm563_vm3, %v4055_v21, %v4054_v36 }
 0x580   : > { %3819 = vrot.lane.b32.xlu1 %v3818_v42, %s6011_s26  ;;  %v4080_v4 = vld [vmem:[#allocation2 + $0x16] sm:$0x1]  ;;  %v4081_v63 = vld [vmem:[#allocation2 + $0x26] sm:$0x1]  ;;  %v4150_v39 = vld [vmem:[#allocation2 + $0x17] sm:$0x1]  ;;  %v4058_v5 = vsel %vm566_vm5, %v4057_v25, %v4056_v55  ;;  %v4038_v6 = vsel %vm563_vm3, %v4037_v59, %v4036_v22 }
 0x581   : > { %3801 = vrot.lane.b32.xlu0 %v3800_v58, %s6010_s25  ;;  %v4082_v37 = vld [vmem:[#allocation2 + $0x36] sm:$0x1]  ;;  %v4107_v41 = vrot.slane %v4099_v33, 6  ;;  %v4109_v42 = vrot.slane %v4100_v52, 5  ;;  %v4079_v47 = vld [vmem:[#allocation2 + $0x6] sm:$0x1]  ;;  %v4106_v56 = vsel %vm560_vm2, %v4105_v40, %v4097_v20  ;;  %v4040_v31 = vsel %vm566_vm5, %v4039_v60, %v4038_v6 }
 0x582   : > { %v4087_v48 = vrot.slane %v4080_v4, 7  ;;  %v4089_v49 = vrot.slane %v4081_v63, 6  ;;  %v4151_v50 = vld [vmem:[#allocation2 + $0x27] sm:$0x1]  ;;  %v4152_v54 = vld [vmem:[#allocation2 + $0x37] sm:$0x1] }
 0x583   : > { %v4091_v57 = vrot.slane %v4082_v37, 5  ;;  %v4149_v38 = vld [vmem:[#allocation2 + $0x7] sm:$0x1]  ;;  %v4157_v58 = vrot.slane %v4150_v39, 7  ;;  %v4132_v1 = vld [vmem:[#allocation2 + $0x17] sm:$0x1]  ;;  %v4108_v13 = vsel %vm563_vm3, %v4107_v41, %v4106_v56 }
 0x584   : > { %3871 = vrot.lane.b32.xlu1 %v3870_v7, %s6011_s26  ;;  %v4133_v2 = vld [vmem:[#allocation2 + $0x27] sm:$0x1]  ;;  %v4088_v7 = vsel %vm560_vm2, %v4087_v48, %v4079_v47  ;;  %v4134_v51 = vld [vmem:[#allocation2 + $0x37] sm:$0x1]  ;;  %v4286_v10 = vld [vmem:[#allocation2 + $0x16] sm:$0x1]  ;;  %v4110_v23 = vsel %vm566_vm5, %v4109_v42, %v4108_v13 }
 0x585   : > { %3853 = vrot.lane.b32.xlu0 %v3852_v24, %s6010_s25  ;;  %v4131_v8 = vld [vmem:[#allocation2 + $0x7] sm:$0x1]  ;;  %v4159_v26 = vrot.slane %v4151_v50, 6  ;;  %v4161_v11 = vrot.slane %v4152_v54, 5  ;;  %v4287_v14 = vld [vmem:[#allocation2 + $0x26] sm:$0x1]  ;;  %v4090_v24 = vsel %vm563_vm3, %v4089_v49, %v4088_v7  ;;  %v4158_v30 = vsel %vm560_vm2, %v4157_v58, %v4149_v38 }
 0x586   : > { %v4288_v15 = vld [vmem:[#allocation2 + $0x36] sm:$0x1]  ;;  %v4139_v16 = vrot.slane %v4132_v1, 7  ;;  %v4141_v17 = vrot.slane %v4133_v2, 6  ;;  %v4269_v21 = vld [vmem:[#allocation2 + $0x26] sm:$0x1]  ;;  %v4092_v20 = vsel %vm566_vm5, %v4091_v57, %v4090_v24 }
 0x587   : > { %v4268_v18 = vld [vmem:[#allocation2 + $0x16] sm:$0x1]  ;;  %v4143_v25 = vrot.slane %v4134_v51, 5  ;;  %v4285_v27 = vld [vmem:[#allocation2 + $0x6] sm:$0x1]  ;;  %v4293_v28 = vrot.slane %v4286_v10, 7  ;;  %v4160_v39 = vsel %vm563_vm3, %v4159_v26, %v4158_v30 }
 0x588   : > { %3923 = vrot.lane.b32.xlu1 %v3922_v19, %s6011_s26  ;;  %v4267_v29 = vld [vmem:[#allocation2 + $0x6] sm:$0x1]  ;;  %v4140_v32 = vsel %vm560_vm2, %v4139_v16, %v4131_v8  ;;  %v4295_v33 = vrot.slane %v4287_v14, 6  ;;  %v4297_v52 = vrot.slane %v4288_v15, 5  ;;  %v4270_v19 = vld [vmem:[#allocation2 + $0x36] sm:$0x1]  ;;  %v4162_v48 = vsel %vm566_vm5, %v4161_v11, %v4160_v39 }
 0x589   : > { %3905 = vrot.lane.b32.xlu0 %v3904_v34, %s6010_s25  ;;  %v4338_v35 = vld [vmem:[#allocation2 + $0x17] sm:$0x1]  ;;  %v4275_v4 = vrot.slane %v4268_v18, 7  ;;  %v4277_v63 = vrot.slane %v4269_v21, 6  ;;  %v4337_v34 = vld [vmem:[#allocation2 + $0x7] sm:$0x1]  ;;  %v4142_v22 = vsel %vm563_vm3, %v4141_v17, %v4140_v32  ;;  %v4294_v50 = vsel %vm560_vm2, %v4293_v28, %v4285_v27 }
 0x58a   : > { %v4339_v36 = vld [vmem:[#allocation2 + $0x27] sm:$0x1]  ;;  %v4340_v59 = vld [vmem:[#allocation2 + $0x37] sm:$0x1]  ;;  %v4279_v40 = vrot.slane %v4270_v19, 5  ;;  %v4345_v41 = vrot.slane %v4338_v35, 7  ;;  %v4144_v49 = vsel %vm566_vm5, %v4143_v25, %v4142_v22 }
 0x58b   : > { %v4320_v60 = vld [vmem:[#allocation2 + $0x17] sm:$0x1]  ;;  %v4321_v37 = vld [vmem:[#allocation2 + $0x27] sm:$0x1]  ;;  %v4390_v47 = vld [vmem:[#allocation2 + $0x18] sm:$0x1]  ;;  %v4276_v54 = vsel %vm560_vm2, %v4275_v4, %v4267_v29 }
 0x58c   : > { %4059 = vrot.lane.b32.xlu1 %v4058_v5, %s6011_s26  ;;  %v4322_v42 = vld [vmem:[#allocation2 + $0x37] sm:$0x1]  ;;  %v4319_v55 = vld [vmem:[#allocation2 + $0x7] sm:$0x1]  ;;  %v4391_v56 = vld [vmem:[#allocation2 + $0x28] sm:$0x1]  ;;  %v4346_v6 = vsel %vm560_vm2, %v4345_v41, %v4337_v34  ;;  %v4278_v17 = vsel %vm563_vm3, %v4277_v63, %v4276_v54 }
 0x58d   : > { %4041 = vrot.lane.b32.xlu0 %v4040_v31, %s6010_s25  ;;  %v4392_v57 = vld [vmem:[#allocation2 + $0x38] sm:$0x1]  ;;  %v4347_v38 = vrot.slane %v4339_v36, 6  ;;  %v4349_v58 = vrot.slane %v4340_v59, 5  ;;  %v4327_v1 = vrot.slane %v4320_v60, 7  ;;  %v4329_v2 = vrot.slane %v4321_v37, 6 }
 0x58e   : > { %v4389_v5 = vld [vmem:[#allocation2 + $0x8] sm:$0x1]  ;;  %v4331_v7 = vrot.slane %v4322_v42, 5  ;;  %v4397_v8 = vrot.slane %v4390_v47, 7  ;;  %v4372_v51 = vld [vmem:[#allocation2 + $0x18] sm:$0x1]  ;;  %v4296_v31 = vsel %vm563_vm3, %v4295_v33, %v4294_v50  ;;  %v4280_v25 = vsel %vm566_vm5, %v4279_v40, %v4278_v17 }
 0x58f   : > { %v4526_v10 = vld [vmem:[#allocation2 + $0x17] sm:$0x1]  ;;  %v4328_v26 = vsel %vm560_vm2, %v4327_v1, %v4319_v55  ;;  %v4399_v11 = vrot.slane %v4391_v56, 6  ;;  %v4401_v14 = vrot.slane %v4392_v57, 5  ;;  %v4371_v15 = vld [vmem:[#allocation2 + $0x8] sm:$0x1]  ;;  %v4298_v16 = vsel %vm566_vm5, %v4297_v52, %v4296_v31 }
 0x590   : > { %4111 = vrot.lane.b32.xlu1 %v4110_v23, %s6011_s26  ;;  %v4373_v13 = vld [vmem:[#allocation2 + $0x28] sm:$0x1]  ;;  %v4398_v18 = vsel %vm560_vm2, %v4397_v8, %v4389_v5  ;;  %v4374_v21 = vld [vmem:[#allocation2 + $0x38] sm:$0x1]  ;;  %v4525_v23 = vld [vmem:[#allocation2 + $0x7] sm:$0x1]  ;;  %v4348_v27 = vsel %vm563_vm3, %v4347_v38, %v4346_v6  ;;  %v4330_v19 = vsel %vm563_vm3, %v4329_v2, %v4328_v26 }
 0x591   : > { %4093 = vrot.lane.b32.xlu0 %v4092_v20, %s6010_s25  ;;  %v4527_v24 = vld [vmem:[#allocation2 + $0x27] sm:$0x1]  ;;  %v4379_v28 = vrot.slane %v4372_v51, 7  ;;  %v4528_v29 = vld [vmem:[#allocation2 + $0x37] sm:$0x1]  ;;  %v4533_v30 = vrot.slane %v4526_v10, 7  ;;  %v4350_v52 = vsel %vm566_vm5, %v4349_v58, %v4348_v27  ;;  %v4332_v63 = vsel %vm566_vm5, %v4331_v7, %v4330_v19 }
 0x592   : > { %v4508_v32 = vld [vmem:[#allocation2 + $0x17] sm:$0x1]  ;;  %v4611_v33 = vld [vmem:[#allocation2 + $0x9] sm:$0x1]  ;;  %v4509_v35 = vld [vmem:[#allocation2 + $0x27] sm:$0x1]  ;;  %v4400_v34 = vsel %vm563_vm3, %v4399_v11, %v4398_v18 }
 0x593   : > { %v4510_v20 = vld [vmem:[#allocation2 + $0x37] sm:$0x1]  ;;  %v6939_v4 = vld [vmem:[#allocation2 + $0x18] sm:$0x1]  ;;  %v4381_v36 = vrot.slane %v4373_v13, 6  ;;  %v4383_v59 = vrot.slane %v4374_v21, 5  ;;  %v4380_v39 = vsel %vm560_vm2, %v4379_v28, %v4371_v15  ;;  %v4534_v22 = vsel %vm560_vm2, %v4533_v30, %v4525_v23 }
 0x594   : > { %4163 = vrot.lane.b32.xlu1 %v4162_v48, %s6011_s26  ;;  %v4507_v60 = vld [vmem:[#allocation2 + $0x7] sm:$0x1]  ;;  %v4629_v37 = vld [vmem:[#allocation2 + $0x9] sm:$0x1]  ;;  %v4537_v40 = vrot.slane %v4528_v29, 5  ;;  %v4515_v41 = vrot.slane %v4508_v32, 7  ;;  %v4402_v55 = vsel %vm566_vm5, %v4401_v14, %v4400_v34  ;;  %v6957_v38 = vsel %vm560_vm2, %v4619_v43, %v4611_v33 }
 0x595   : > { %4145 = vrot.lane.b32.xlu0 %v4144_v49, %s6010_s25  ;;  %v6945_v42 = vld [vmem:[#allocation2 + $0x28] sm:$0x1]  ;;  %v4535_v47 = vrot.slane %v4527_v24, 6  ;;  %v4517_v48 = vrot.slane %v4509_v35, 6  ;;  %v4519_v49 = vrot.slane %v4510_v20, 5  ;;  %v4585_v54 = vrot.slane %v6939_v4, 7 }
 0x596   : > { %v6948_v50 = vld [vmem:[#allocation2 + $0x38] sm:$0x1]  ;;  %v4516_v56 = vsel %vm560_vm2, %v4515_v41, %v4507_v60  ;;  %v4638_v58 = vsel %vm560_vm2, %v4637_v45, %v4629_v37  ;;  %v2907_v1 = vld [vmem:[#allocation2 + $0x2] sm:$0x1]  ;;  %v2908_v2 = vld [vmem:[#allocation2 + $0x12] sm:$0x1]  ;;  %v4382_v6 = vsel %vm563_vm3, %v4381_v36, %v4380_v39 }
 0x597   : > { %v4560_v57 = vld [vmem:[#allocation2 + $0x18] sm:$0x1]  ;;  %v2909_v5 = vld [vmem:[#allocation2 + $0x22] sm:$0x1]  ;;  %v4536_v7 = vsel %vm563_vm3, %v4535_v47, %v4534_v22  ;;  %v4577_v8 = vld [vmem:[#allocation2 + $0x8] sm:$0x1]  ;;  %v4384_v43 = vsel %vm566_vm5, %v4383_v59, %v4382_v6 }
 0x598   : > { %4299 = vrot.lane.b32.xlu1 %v4298_v16, %s6011_s26  ;;  %v4587_v51 = vrot.slane %v6945_v42, 6  ;;  %v2910_v10 = vld [vmem:[#allocation2 + $0x32] sm:$0x1]  ;;  %v2915_v31 = vrot.slane %v2908_v2, 7  ;;  %v3051_v62 = vld [vmem:[#allocation2 + $0x1] sm:$0x1]  ;;  %v4538_v26 = vsel %vm566_vm5, %v4537_v40, %v4536_v7  ;;  %v4518_v16 = vsel %vm563_vm3, %v4517_v48, %v4516_v56 }
 0x599   : > { %4281 = vrot.lane.b32.xlu0 %v4280_v25, %s6010_s25  ;;  %v4559_v9 = vld [vmem:[#allocation2 + $0x8] sm:$0x1]  ;;  %v4562_v11 = vld [vmem:[#allocation2 + $0x38] sm:$0x1]  ;;  %v2917_v45 = vrot.slane %v2909_v5, 6  ;;  %v2919_v14 = vrot.slane %v2910_v10, 5  ;;  %v4520_v27 = vsel %vm566_vm5, %v4519_v49, %v4518_v16  ;;  %v4586_v34 = vsel %vm560_vm2, %v4585_v54, %v4577_v8 }
 0x59a   : > { %v3052_v15 = vld [vmem:[#allocation2 + $0x11] sm:$0x1]  ;;  %v3053_v13 = vld [vmem:[#allocation2 + $0x21] sm:$0x1]  ;;  %v4589_v17 = vrot.slane %v6948_v50, 5  ;;  %v2916_v21 = vsel %vm560_vm2, %v2915_v31, %v2907_v1  ;;  %v4567_v19 = vrot.slane %v4560_v57, 7  ;;  %v4588_v49 = vsel %vm563_vm3, %v4587_v51, %v4586_v34 }
 0x59b   : > { %v4632_v18 = vld [vmem:[#allocation2 + $0x39] sm:$0x1]  ;;  %v3054_v23 = vld [vmem:[#allocation2 + $0x31] sm:$0x1]  ;;  %v3059_v24 = vrot.slane %v3052_v15, 7  ;;  %v2918_v28 = vsel %vm563_vm3, %v2917_v45, %v2916_v21  ;;  %v3061_v29 = vrot.slane %v3053_v13, 6  ;;  %v4640_v54 = vsel %vm563_vm3, %v4639_v46, %v4638_v58 }
 0x59c   : > { %4351 = vrot.lane.b32.xlu1 %v4350_v52, %s6011_s26  ;;  %v3103_v25 = vld [vmem:[#allocation2 + $0x2] sm:$0x1]  ;;  %v3063_v30 = vrot.slane %v3054_v23, 5  ;;  %v3104_v32 = vld [vmem:[#allocation2 + $0x12] sm:$0x1]  ;;  %v2920_v35 = vsel %vm566_vm5, %v2919_v14, %v2918_v28  ;;  %v4568_v39 = vsel %vm560_vm2, %v4567_v19, %v4559_v9  ;;  %v4571_v22 = vrot.slane %v4562_v11, 5 }
 0x59d   : > { %4333 = vrot.lane.b32.xlu0 %v4332_v63, %s6010_s25  ;;  %v3105_v33 = vld [vmem:[#allocation2 + $0x22] sm:$0x1]  ;;  %v4561_v52 = vld [vmem:[#allocation2 + $0x28] sm:$0x1]  ;;  %v3060_v20 = vsel %vm560_vm2, %v3059_v24, %v3051_v62  ;;  %v3106_v4 = vld [vmem:[#allocation2 + $0x32] sm:$0x1]  ;;  %v4590_v56 = vsel %vm566_vm5, %v4589_v17, %v4588_v49  ;;  %v4622_v1 = vsel %vm563_vm3, %v4621_v44, %v6957_v38 }
 0x59e   : > { %v3111_v63 = vrot.slane %v3104_v32, 7  ;;  %v4614_v36 = vld [vmem:[#allocation2 + $0x39] sm:$0x1]  ;;  %2922 = vst.msk [vmem:[#allocation3 + $0x18] sm:$0xf] %vm569_vm4, %v2920_v35  ;;  %v3062_v59 = vsel %vm563_vm3, %v3061_v29, %v3060_v20  ;;  %v3113_v60 = vrot.slane %v3105_v33, 6 }
 0x59f   : > { %v3115_v37 = vrot.slane %v3106_v4, 5  ;;  %v3064_v40 = vsel %vm566_vm5, %v3063_v30, %v3062_v59  ;;  %v4569_v42 = vrot.slane %v4561_v52, 6  ;;  %v4641_v47 = vrot.slane %v4632_v18, 5  ;;  %v3156_v5 = vld [vmem:[#allocation2 + $0x13] sm:$0x1] }
 0x5a0   : > { %4403 = vrot.lane.b32.xlu1 %v4402_v55, %s6011_s26  ;;  %v3112_v41 = vsel %vm560_vm2, %v3111_v63, %v3103_v25  ;;  %3066 = vst.msk [vmem:[#allocation3] sm:$0xf] %vm569_vm4, %v3064_v40  ;;  %v4623_v50 = vrot.slane %v4614_v36, 5  ;;  %v3158_v7 = vld [vmem:[#allocation2 + $0x33] sm:$0x1]  ;;  %v3163_v10 = vrot.slane %v3156_v5, 7 }
 0x5a1   : > { %4385 = vrot.lane.b32.xlu0 %v4384_v43, %s6010_s25  ;;  %v3114_v48 = vsel %vm563_vm3, %v3113_v60, %v3112_v41  ;;  %v4570_v57 = vsel %vm563_vm3, %v4569_v42, %v4568_v39  ;;  %v4642_v12 = vsel %vm566_vm5, %v4641_v47, %v4640_v54  ;;  %v3155_v8 = vld [vmem:[#allocation2 + $0x3] sm:$0x1]  ;;  %v3344_v31 = vld [vmem:[#allocation2 + $0x13] sm:$0x1]  ;;  %v3167_v43 = vrot.slane %v3158_v7, 5 }
 0x5a2   : > { %v3116_v55 = vsel %vm566_vm5, %v3115_v37, %v3114_v48  ;;  %v4572_v2 = vsel %vm566_vm5, %v4571_v22, %v4570_v57  ;;  %v4624_v46 = vsel %vm566_vm5, %v4623_v50, %v4622_v1  ;;  %v3157_v51 = vld [vmem:[#allocation2 + $0x23] sm:$0x1]  ;;  %v3164_v11 = vsel %vm560_vm2, %v3163_v10, %v3155_v8  ;;  %v3291_v45 = vld [vmem:[#allocation2 + $0x2] sm:$0x1]  ;;  %v3346_v15 = vld [vmem:[#allocation2 + $0x33] sm:$0x1] }
 0x5a3   : > { %3118 = vst.msk [vmem:[#allocation3 + $0xc] sm:$0xf] %vm569_vm4, %v3116_v55  ;;  %v3343_v14 = vld [vmem:[#allocation2 + $0x3] sm:$0x1]  ;;  %v3165_v13 = vrot.slane %v3157_v51, 6  ;;  %v3351_v18 = vrot.slane %v3344_v31, 7 }
 0x5a4   : > { %4539 = vrot.lane.b32.xlu1 %v4538_v26, %s6011_s26  ;;  %v3292_v26 = vld [vmem:[#allocation2 + $0x12] sm:$0x1]  ;;  %v3345_v17 = vld [vmem:[#allocation2 + $0x23] sm:$0x1]  ;;  %v3293_v21 = vld [vmem:[#allocation2 + $0x22] sm:$0x1] }
 0x5a5   : > { %4521 = vrot.lane.b32.xlu0 %v4520_v27, %s6010_s25  ;;  %v3294_v16 = vld [vmem:[#allocation2 + $0x32] sm:$0x1]  ;;  %v3299_v23 = vrot.slane %v3292_v26, 7  ;;  %v3166_v28 = vsel %vm563_vm3, %v3165_v13, %v3164_v11  ;;  %v3352_v29 = vsel %vm560_vm2, %v3351_v18, %v3343_v14  ;;  %v3355_v30 = vrot.slane %v3346_v15, 5  ;;  %v3396_v22 = vld [vmem:[#allocation2 + $0x14] sm:$0x1] }
 0x5a6   : > { %v3168_v52 = vsel %vm566_vm5, %v3167_v43, %v3166_v28  ;;  %v3303_v35 = vrot.slane %v3294_v16, 5  ;;  %v3353_v20 = vrot.slane %v3345_v17, 6  ;;  %v3301_v63 = vrot.slane %v3293_v21, 6  ;;  %v3398_v47 = vld [vmem:[#allocation2 + $0x34] sm:$0x1] }
 0x5a7   : > { %v3300_v19 = vsel %vm560_vm2, %v3299_v23, %v3291_v45  ;;  %v3395_v49 = vld [vmem:[#allocation2 + $0x4] sm:$0x1]  ;;  %v3403_v55 = vrot.slane %v3396_v22, 7  ;;  %v7035_v1 = vld [vmem:[%s7629_s1 + $0x2] sm:$0x3] }
 0x5a8   : > { %4591 = vrot.lane.b32.xlu1 %v4590_v56, %s6011_s26  ;;  %v3354_v36 = vsel %vm563_vm3, %v3353_v20, %v3352_v29  ;;  %v3302_v37 = vsel %vm563_vm3, %v3301_v63, %v3300_v19  ;;  %v3397_v54 = vld [vmem:[#allocation2 + $0x24] sm:$0x1]  ;;  %v3584_v56 = vld [vmem:[#allocation2 + $0x14] sm:$0x1]  ;;  %v3533_v51 = vld [vmem:[#allocation2 + $0x23] sm:$0x1] }
 0x5a9   : > { %4573 = vrot.lane.b32.xlu0 %v4572_v2, %s6010_s25  ;;  %v3356_v39 = vsel %vm566_vm5, %v3355_v30, %v3354_v36  ;;  %v3304_v42 = vsel %vm566_vm5, %v3303_v35, %v3302_v37  ;;  %v3407_v2 = vrot.slane %v3398_v47, 5  ;;  %v3405_v5 = vrot.slane %v3397_v54, 6  ;;  %v3585_v7 = vld [vmem:[#allocation2 + $0x24] sm:$0x1]  ;;  %v3636_v30 = vld [vmem:[#allocation2 + $0x15] sm:$0x1] }
 0x5aa   : > { %v3591_v8 = vrot.slane %v3584_v56, 7  ;;  %v3593_v17 = vrot.slane %v3585_v7, 6  ;;  %v3541_v21 = vrot.slane %v3533_v51, 6  ;;  %v3638_v19 = vld [vmem:[#allocation2 + $0x35] sm:$0x1] }
 0x5ab   : > { %v3635_v20 = vld [vmem:[#allocation2 + $0x5] sm:$0x1]  ;;  %v3824_v36 = vld [vmem:[#allocation2 + $0x15] sm:$0x1]  ;;  %v3772_v37 = vld [vmem:[#allocation2 + $0x14] sm:$0x1] }
 0x5ac   : > { %4643 = vrot.lane.b32.xlu1 %v4642_v12, %s6011_s26  ;;  %v3532_v12 = vld [vmem:[#allocation2 + $0x13] sm:$0x1]  ;;  %v3637_v63 = vld [vmem:[#allocation2 + $0x25] sm:$0x1]  ;;  %v3773_v54 = vld [vmem:[#allocation2 + $0x24] sm:$0x1] }
 0x5ad   : > { %4625 = vrot.lane.b32.xlu0 %v4624_v46, %s6010_s25  ;;  %v3539_v10 = vrot.slane %v3532_v12, 7  ;;  %v3645_v47 = vrot.slane %v3637_v63, 6  ;;  %v3781_v51 = vrot.slane %v3773_v54, 6  ;;  %v4013_v63 = vld [vmem:[#allocation2 + $0x25] sm:$0x1] }
 0x5ae   : > { %v4021_v54 = vrot.slane %v4013_v63, 6 }
 0x5b1   : > { %2969 = vperm.xlu0 %5957, %v5663_v61   ;;  %v3404_v61 = vsel %vm560_vm2, %v3403_v55, %v3395_v49  ;;  %v3825_v49 = vld [vmem:[#allocation2 + $0x25] sm:$0x1]  ;;  %v3779_v55 = vrot.slane %v3772_v37, 7 }
 0x5b2   : > { %v3406_v26 = vsel %vm563_vm3, %v3405_v5, %v3404_v61  ;;  %v3833_v7 = vrot.slane %v3825_v49, 6 }
 0x5b3   : > { %v3408_v15 = vsel %vm566_vm5, %v3407_v2, %v3406_v26 }
 0x5c6   : > { %v2904_v44 = vpop.permute.xlu1 %2903 }
 0x5c7   : > { %v2886_v38 = vpop.permute.xlu0 %2885  ;;  %2906 = vst.msk [vmem:[#allocation3 + $0x14] sm:$0xf] %vm569_vm4, %v2904_v44  ;;  %v3531_v44 = vld [vmem:[#allocation2 + $0x3] sm:$0x1] }
 0x5c8   : > { %2888 = vst.msk [vmem:[#allocation3 + $0x10] sm:$0xf] %vm569_vm4, %v2886_v38  ;;  %v3583_v38 = vld [vmem:[#allocation2 + $0x4] sm:$0x1]  ;;  %v3540_v13 = vsel %vm560_vm2, %v3539_v10, %v3531_v44 }
 0x5c9   : > { %v3542_v28 = vsel %vm563_vm3, %v3541_v21, %v3540_v13  ;;  %v3878_v13 = vld [vmem:[#allocation2 + $0x36] sm:$0x1]  ;;  %v3877_v21 = vld [vmem:[#allocation2 + $0x26] sm:$0x1] }
 0x5ca   : > { %v2956_v58 = vpop.permute.xlu1 %2955 }
 0x5cb   : > { %v2938_v6 = vpop.permute.xlu0 %2937  ;;  %2958 = vst.msk [vmem:[#allocation3 + $0x20] sm:$0xf] %vm569_vm4, %v2956_v58  ;;  %v3586_v58 = vld [vmem:[#allocation2 + $0x34] sm:$0x1] }
 0x5cc   : > { %2940 = vst.msk [vmem:[#allocation3 + $0x1c] sm:$0xf] %vm569_vm4, %v2938_v6  ;;  %v3534_v6 = vld [vmem:[#allocation2 + $0x33] sm:$0x1]  ;;  %v3595_v11 = vrot.slane %v3586_v58, 5 }
 0x5cd   : > { %v3543_v16 = vrot.slane %v3534_v6, 5 }
 0x5ce   : > { %v3100_v62 = vpop.permute.xlu1 %3099 }
 0x5cf   : > { %v3082_v9 = vpop.permute.xlu0 %3081  ;;  %3102 = vst.msk [vmem:[#allocation3 + $0x8] sm:$0xf] %vm569_vm4, %v3100_v62  ;;  %v2961_v24 = vld [vmem:[#allocation3 + $0x10] sm:$0xff] }
 0x5d0   : > { %3084 = vst.msk [vmem:[#allocation3 + $0x4] sm:$0xf] %vm569_vm4, %v3082_v9  ;;  %v3592_v9 = vsel %vm560_vm2, %v3591_v8, %v3583_v38 }
 0x5d2   : > { %v3152_v25 = vpop.permute.xlu1 %3151  ;;  %v2963_v27 = vld [vmem:[#allocation3 + $0x20] sm:$0xf] }
 0x5d3   : > { %v2962_v32 = vld [vmem:[#allocation3 + $0x18] sm:$0xff]  ;;  %v3134_v33 = vpop.permute.xlu0 %3133  ;;  %3154 = vst.msk [vmem:[#allocation3 + $0x14] sm:$0xf] %vm569_vm4, %v3152_v25  ;;  %v2966_v34 = vpack.c.bf16 %v2963_v27, %v2963_v27 }
 0x5d4   : > { %3136 = vst.msk [vmem:[#allocation3 + $0x10] sm:$0xf] %vm569_vm4, %v3134_v33  ;;  %v2965_v4 = vpack.c.bf16 %v2962_v32, %v2961_v24  ;;  %3170 = vst.msk [vmem:[#allocation3 + $0x18] sm:$0xf] %vm569_vm4, %v3168_v52  ;;  %v3594_v24 = vsel %vm563_vm3, %v3593_v17, %v3592_v9  ;;  %v3544_v52 = vsel %vm566_vm5, %v3543_v16, %v3542_v28  ;;  %v3875_v17 = vld [vmem:[#allocation2 + $0x6] sm:$0x1] }
 0x5d5   : > { %v2976_v50 = vsel %vm728_vm8, %v2966_v34, 0  ;;  %v3596_v29 = vsel %vm566_vm5, %v3595_v11, %v3594_v24  ;;  %v3643_v34 = vrot.slane %v3636_v30, 7  ;;  %v3876_v11 = vld [vmem:[#allocation2 + $0x16] sm:$0x1]  ;;  %v4012_v28 = vld [vmem:[#allocation2 + $0x15] sm:$0x1] }
 0x5d6   : > { %5852 = vmatpush3.bf16.msra.mxu0 %v2965_v4  ;;  %v3204_v59 = vpop.permute.xlu1 %3203  ;;  %v3208_v60 = vld [vmem:[#allocation3 + $0x8] sm:$0xff]  ;;  %v4064_v24 = vld [vmem:[#allocation2 + $0x16] sm:$0x1] }
 0x5d7   : > { %v3186_v40 = vpop.permute.xlu0 %3185  ;;  %5853 = vmatprep.subr.bf16.mxu0 %v6008_v0  ;;  %3206 = vst.msk [vmem:[#allocation3 + $0x20] sm:$0xf] %vm569_vm4, %v3204_v59  ;;  %v3207_v41 = vld [vmem:[#allocation3] sm:$0xff]  ;;  %3358 = vst.msk [vmem:[#allocation3 + $0xc] sm:$0xf] %vm569_vm4, %v3356_v39  ;;  %v3644_v22 = vsel %vm560_vm2, %v3643_v34, %v3635_v20  ;;  %v4019_v34 = vrot.slane %v4012_v28, 7 }
 0x5d8   : > { %3188 = vst.msk [vmem:[#allocation3 + $0x1c] sm:$0xf] %vm569_vm4, %v3186_v40  ;;  %v3212_v48 = vpack.c.bf16 %v3208_v60, %v3207_v41  ;;  %3306 = vst.msk [vmem:[#allocation3] sm:$0xf] %vm569_vm4, %v3304_v42  ;;  %v3647_v60 = vrot.slane %v3638_v19, 5  ;;  %v3646_v12 = vsel %vm563_vm3, %v3645_v47, %v3644_v22  ;;  %v3885_v19 = vrot.slane %v3877_v21, 6 }
 0x5d9   : > { %v3771_v40 = vld [vmem:[#allocation2 + $0x4] sm:$0x1]  ;;  %v3823_v41 = vld [vmem:[#allocation2 + $0x5] sm:$0x1]  ;;  %v3826_v42 = vld [vmem:[#allocation2 + $0x35] sm:$0x1] }
 0x5da   : > { %5854 = vmatpush3.bf16.msra.mxu0 %v2976_v50  ;;  %5860 = vmatpush3.bf16.msra.mxu1 %v3212_v48  ;;  %v3340_v57 = vpop.permute.xlu1 %3339  ;;  %v3774_v48 = vld [vmem:[#allocation2 + $0x34] sm:$0x1]  ;;  %v3831_v50 = vrot.slane %v3824_v36, 7  ;;  %v3835_v61 = vrot.slane %v3826_v42, 5  ;;  %v3648_v58 = vsel %vm566_vm5, %v3647_v60, %v3646_v12  ;;  %v3780_v5 = vsel %vm560_vm2, %v3779_v55, %v3771_v40  ;;  %v4065_v20 = vld [vmem:[#allocation2 + $0x26] sm:$0x1] }
 0x5db   : > { %v3322_v46 = vpop.permute.xlu0 %3321  ;;  %3342 = vst.msk [vmem:[#allocation3 + $0x8] sm:$0xf] %vm569_vm4, %v3340_v57  ;;  %5861 = vmatprep.subr.bf16.mxu1 %v6008_v0  ;;  %5869 = vmatprep.subr.bf16.mxu0 %v6008_v0  ;;  %v3209_v31 = vld [vmem:[#allocation3 + $0x10] sm:$0xff]  ;;  %v3783_v6 = vrot.slane %v3774_v48, 5  ;;  %v3782_v26 = vsel %vm563_vm3, %v3781_v51, %v3780_v5  ;;  %v4073_v49 = vrot.slane %v4065_v20, 6 }
 0x5dc   : > { %3324 = vst.msk [vmem:[#allocation3 + $0x4] sm:$0xf] %vm569_vm4, %v3322_v46  ;;  %v3832_v46 = vsel %vm560_vm2, %v3831_v50, %v3823_v41  ;;  %v4118_v5 = vld [vmem:[#allocation2 + $0x37] sm:$0x1]  ;;  %v4117_v51 = vld [vmem:[#allocation2 + $0x27] sm:$0x1] }
 0x5dd   : > { %5856 = vmatmul.mubr.msk.bf16.vlgmr.msra.gmra.mrb[16].mxu0 %vm724_vm9, %v7035_v1  ;;  %v4253_v21 = vld [vmem:[#allocation2 + $0x26] sm:$0x1] }
 0x5de   : > { %v3392_v62 = vpop.permute.xlu1 %3391  ;;  %v3211_v43 = vld [vmem:[#allocation3 + $0x20] sm:$0xf]  ;;  %5875 = vmatprep.mubr.msk.bf16.mxu0 %vm6012_vm7, %v6008_v0  ;;  %v4261_v63 = vrot.slane %v4253_v21, 6 }
 0x5df   : > { %v3374_v45 = vpop.permute.xlu0 %3373  ;;  %3394 = vst.msk [vmem:[#allocation3 + $0x14] sm:$0xf] %vm569_vm4, %v3392_v62  ;;  %v3210_v14 = vld [vmem:[#allocation3 + $0x18] sm:$0xff]  ;;  %v3214_v23 = vpack.c.bf16 %v3211_v43, %v3211_v43 }
 0x5e0   : > { %3376 = vst.msk [vmem:[#allocation3 + $0x10] sm:$0xf] %vm569_vm4, %v3374_v45  ;;  %v3213_v18 = vpack.c.bf16 %v3210_v14, %v3209_v31  ;;  %3410 = vst.msk [vmem:[#allocation3 + $0x18] sm:$0xf] %vm569_vm4, %v3408_v15  ;;  %v3834_v31 = vsel %vm563_vm3, %v3833_v7, %v3832_v46  ;;  %v3784_v15 = vsel %vm566_vm5, %v3783_v6, %v3782_v26  ;;  %v4115_v7 = vld [vmem:[#allocation2 + $0x7] sm:$0x1] }
 0x5e1   : > { %v3216_v4 = vsel %vm728_vm8, %v3214_v23, 0  ;;  %v3836_v9 = vsel %vm566_vm5, %v3835_v61, %v3834_v31  ;;  %v3883_v23 = vrot.slane %v3876_v11, 7  ;;  %v4116_v61 = vld [vmem:[#allocation2 + $0x17] sm:$0x1]  ;;  %v4252_v26 = vld [vmem:[#allocation2 + $0x16] sm:$0x1] }
 0x5e2   : > { %5862 = vmatpush3.bf16.msra.mxu1 %v3213_v18  ;;  %v3444_v25 = vpop.permute.xlu1 %3443  ;;  %v3448_v27 = vld [vmem:[#allocation3 + $0x8] sm:$0xff]  ;;  %v4304_v31 = vld [vmem:[#allocation2 + $0x17] sm:$0x1] }
 0x5e3   : > { %v3426_v32 = vpop.permute.xlu0 %3425  ;;  %5863 = vmatprep.subr.bf16.mxu1 %v6008_v0  ;;  %3446 = vst.msk [vmem:[#allocation3 + $0x20] sm:$0xf] %vm569_vm4, %v3444_v25  ;;  %v3447_v33 = vld [vmem:[#allocation3] sm:$0xff]  ;;  %3598 = vst.msk [vmem:[#allocation3 + $0xc] sm:$0xf] %vm569_vm4, %v3596_v29  ;;  %v3884_v30 = vsel %vm560_vm2, %v3883_v23, %v3875_v17  ;;  %v4259_v23 = vrot.slane %v4252_v26, 7 }
 0x5e4   : > { %3428 = vst.msk [vmem:[#allocation3 + $0x1c] sm:$0xf] %vm569_vm4, %v3426_v32  ;;  %v3452_v35 = vpack.c.bf16 %v3448_v27, %v3447_v33  ;;  %3546 = vst.msk [vmem:[#allocation3] sm:$0xf] %vm569_vm4, %v3544_v52  ;;  %v3887_v27 = vrot.slane %v3878_v13, 5  ;;  %v3886_v37 = vsel %vm563_vm3, %v3885_v19, %v3884_v30  ;;  %v4125_v13 = vrot.slane %v4117_v51, 6 }
 0x5e5   : > { %v4011_v32 = vld [vmem:[#allocation2 + $0x5] sm:$0x1]  ;;  %v4063_v33 = vld [vmem:[#allocation2 + $0x6] sm:$0x1]  ;;  %v4066_v52 = vld [vmem:[#allocation2 + $0x36] sm:$0x1] }
 0x5e6   : > { %5864 = vmatpush3.bf16.msra.mxu1 %v3216_v4  ;;  %5870 = vmatpush3.bf16.msra.mxu0 %v3452_v35  ;;  %v3580_v59 = vpop.permute.xlu1 %3579  ;;  %v4014_v35 = vld [vmem:[#allocation2 + $0x35] sm:$0x1]  ;;  %v4071_v4 = vrot.slane %v4064_v24, 7  ;;  %v4075_v22 = vrot.slane %v4066_v52, 5  ;;  %v3888_v42 = vsel %vm566_vm5, %v3887_v27, %v3886_v37  ;;  %v4020_v47 = vsel %vm560_vm2, %v4019_v34, %v4011_v32  ;;  %v4305_v17 = vld [vmem:[#allocation2 + $0x27] sm:$0x1] }
 0x5e7   : > { %v3562_v39 = vpop.permute.xlu0 %3561  ;;  %3582 = vst.msk [vmem:[#allocation3 + $0x8] sm:$0xf] %vm569_vm4, %v3580_v59  ;;  %5871 = vmatprep.subr.bf16.mxu0 %v6008_v0  ;;  %5879 = vmatprep.subr.bf16.mxu1 %v6008_v0  ;;  %v3449_v57 = vld [vmem:[#allocation3 + $0x10] sm:$0xff]  ;;  %v4023_v48 = vrot.slane %v4014_v35, 5  ;;  %v4022_v12 = vsel %vm563_vm3, %v4021_v54, %v4020_v47  ;;  %v4313_v20 = vrot.slane %v4305_v17, 6 }
 0x5e8   : > { %3564 = vst.msk [vmem:[#allocation3 + $0x4] sm:$0xf] %vm569_vm4, %v3562_v39  ;;  %v4072_v39 = vsel %vm560_vm2, %v4071_v4, %v4063_v33  ;;  %v4358_v47 = vld [vmem:[#allocation2 + $0x38] sm:$0x1]  ;;  %v4357_v54 = vld [vmem:[#allocation2 + $0x28] sm:$0x1] }
 0x5e9   : > { %5866 = vmatmul.mubr.msk.bf16.vlgmr.msra.gmra.mrb[16].mxu1 %vm724_vm9, %v7035_v1 }
 0x5ea   : > { %v3632_v56 = vpop.permute.xlu1 %3631  ;;  %v3451_v2 = vld [vmem:[#allocation3 + $0x20] sm:$0xf]  ;;  %5885 = vmatprep.mubr.msk.bf16.mxu1 %vm6012_vm7, %v6008_v0 }
 0x5eb   : > { %v3614_v44 = vpop.permute.xlu0 %3613  ;;  %v3450_v38 = vld [vmem:[#allocation3 + $0x18] sm:$0xff]  ;;  %3634 = vst.msk [vmem:[#allocation3 + $0x14] sm:$0xf] %vm569_vm4, %v3632_v56  ;;  %v3454_v10 = vpack.c.bf16 %v3451_v2, %v3451_v2  ;;  %v4074_v56 = vsel %vm563_vm3, %v4073_v49, %v4072_v39  ;;  %v4355_v49 = vld [vmem:[#allocation2 + $0x8] sm:$0x1] }
 0x5ec   : > { %v3453_v8 = vpack.c.bf16 %v3450_v38, %v3449_v57  ;;  %3616 = vst.msk [vmem:[#allocation3 + $0x10] sm:$0xf] %vm569_vm4, %v3614_v44  ;;  %3650 = vst.msk [vmem:[#allocation3 + $0x18] sm:$0xf] %vm569_vm4, %v3648_v58  ;;  %v4076_v46 = vsel %vm566_vm5, %v4075_v22, %v4074_v56  ;;  %v4024_v58 = vsel %vm566_vm5, %v4023_v48, %v4022_v12  ;;  %v4356_v22 = vld [vmem:[#allocation2 + $0x18] sm:$0x1] }
 0x5ed   : > { %v3456_v18 = vsel %vm728_vm8, %v3454_v10, 0  ;;  %v4123_v10 = vrot.slane %v4116_v61, 7  ;;  %v4544_v56 = vld [vmem:[#allocation2 + $0x18] sm:$0x1]  ;;  %v4367_v12 = vrot.slane %v4358_v47, 5 }
 0x5ee   : > { %5872 = vmatpush3.bf16.msra.mxu0 %v3453_v8  ;;  %v3684_v62 = vpop.permute.xlu1 %3683  ;;  %v3688_v43 = vld [vmem:[#allocation3 + $0x8] sm:$0xff]  ;;  %v4551_v51 = vrot.slane %v4544_v56, 7 }
 0x5ef   : > { %v3666_v45 = vpop.permute.xlu0 %3665  ;;  %5873 = vmatprep.subr.bf16.mxu0 %v6008_v0  ;;  %3686 = vst.msk [vmem:[#allocation3 + $0x20] sm:$0xf] %vm569_vm4, %v3684_v62  ;;  %v3687_v14 = vld [vmem:[#allocation3] sm:$0xff]  ;;  %3838 = vst.msk [vmem:[#allocation3 + $0xc] sm:$0xf] %vm569_vm4, %v3836_v9  ;;  %v4124_v11 = vsel %vm560_vm2, %v4123_v10, %v4115_v7 }
 0x5f0   : > { %3668 = vst.msk [vmem:[#allocation3 + $0x1c] sm:$0xf] %vm569_vm4, %v3666_v45  ;;  %v3692_v16 = vpack.c.bf16 %v3688_v43, %v3687_v14  ;;  %3786 = vst.msk [vmem:[#allocation3] sm:$0xf] %vm569_vm4, %v3784_v15  ;;  %v4127_v43 = vrot.slane %v4118_v5, 5  ;;  %v4126_v28 = vsel %vm563_vm3, %v4125_v13, %v4124_v11 }
 0x5f1   : > { %v4251_v45 = vld [vmem:[#allocation2 + $0x6] sm:$0x1]  ;;  %v4303_v14 = vld [vmem:[#allocation2 + $0x7] sm:$0x1]  ;;  %v4306_v15 = vld [vmem:[#allocation2 + $0x37] sm:$0x1] }
 0x5f2   : > { %5874 = vmatpush3.bf16.msra.mxu0 %v3456_v18  ;;  %5880 = vmatpush3.bf16.msra.mxu1 %v3692_v16  ;;  %v3820_v25 = vpop.permute.xlu1 %3819  ;;  %v4254_v16 = vld [vmem:[#allocation2 + $0x36] sm:$0x1]  ;;  %v4311_v18 = vrot.slane %v4304_v31, 7  ;;  %v4315_v30 = vrot.slane %v4306_v15, 5  ;;  %v4128_v52 = vsel %vm566_vm5, %v4127_v43, %v4126_v28  ;;  %v4260_v19 = vsel %vm560_vm2, %v4259_v23, %v4251_v45  ;;  %v4546_v5 = vld [vmem:[#allocation2 + $0x38] sm:$0x1] }
 0x5f3   : > { %v3802_v29 = vpop.permute.xlu0 %3801  ;;  %3822 = vst.msk [vmem:[#allocation3 + $0x8] sm:$0xf] %vm569_vm4, %v3820_v25  ;;  %5881 = vmatprep.subr.bf16.mxu1 %v6008_v0  ;;  %5889 = vmatprep.subr.bf16.mxu0 %v6008_v0  ;;  %v3689_v59 = vld [vmem:[#allocation3 + $0x10] sm:$0xff]  ;;  %v4263_v35 = vrot.slane %v4254_v16, 5  ;;  %v4262_v37 = vsel %vm563_vm3, %v4261_v63, %v4260_v19  ;;  %v4493_v10 = vld [vmem:[#allocation2 + $0x27] sm:$0x1] }
 0x5f4   : > { %3804 = vst.msk [vmem:[#allocation3 + $0x4] sm:$0xf] %vm569_vm4, %v3802_v29  ;;  %v4312_v29 = vsel %vm560_vm2, %v4311_v18, %v4303_v14  ;;  %v4494_v7 = vld [vmem:[#allocation2 + $0x37] sm:$0x1]  ;;  %v4555_v14 = vrot.slane %v4546_v5, 5 }
 0x5f5   : > { %5876 = vmatmul.mubr.msk.bf16.vlgmr.msra.gmra.mrb[20].mxu0 %vm724_vm9, %v7035_v1  ;;  %v4597_v15 = vld [vmem:[#allocation2 + $0x29] sm:$0x1]  ;;  %v4503_v21 = vrot.slane %v4494_v7, 5 }
 0x5f6   : > { %v3872_v36 = vpop.permute.xlu1 %3871  ;;  %v3691_v60 = vld [vmem:[#allocation3 + $0x20] sm:$0xf]  ;;  %5895 = vmatprep.mubr.msk.bf16.mxu0 %vm6012_vm7, %v6008_v0 }
 0x5f7   : > { %v3854_v40 = vpop.permute.xlu0 %3853  ;;  %v3690_v41 = vld [vmem:[#allocation3 + $0x18] sm:$0xff]  ;;  %3874 = vst.msk [vmem:[#allocation3 + $0x14] sm:$0xf] %vm569_vm4, %v3872_v36  ;;  %v3694_v55 = vpack.c.bf16 %v3691_v60, %v3691_v60  ;;  %v4314_v36 = vsel %vm563_vm3, %v4313_v20, %v4312_v29 }
 0x5f8   : > { %v3693_v50 = vpack.c.bf16 %v3690_v41, %v3689_v59  ;;  %3856 = vst.msk [vmem:[#allocation3 + $0x10] sm:$0xf] %vm569_vm4, %v3854_v40  ;;  %3890 = vst.msk [vmem:[#allocation3 + $0x18] sm:$0xf] %vm569_vm4, %v3888_v42  ;;  %v4316_v39 = vsel %vm566_vm5, %v4315_v30, %v4314_v36  ;;  %v4264_v42 = vsel %vm566_vm5, %v4263_v35, %v4262_v37  ;;  %v4598_v30 = vld [vmem:[#allocation2 + $0x39] sm:$0x1] }
 0x5f9   : > { %v3696_v8 = vsel %vm728_vm8, %v3694_v55, 0  ;;  %v4363_v55 = vrot.slane %v4356_v22, 7 }
 0x5fa   : > { %5882 = vmatpush3.bf16.msra.mxu1 %v3693_v50  ;;  %v3924_v57 = vpop.permute.xlu1 %3923  ;;  %v3928_v2 = vld [vmem:[#allocation3 + $0x8] sm:$0xff] }
 0x5fb   : > { %v3906_v44 = vpop.permute.xlu0 %3905  ;;  %5883 = vmatprep.subr.bf16.mxu1 %v6008_v0  ;;  %3926 = vst.msk [vmem:[#allocation3 + $0x20] sm:$0xf] %vm569_vm4, %v3924_v57  ;;  %v3927_v38 = vld [vmem:[#allocation3] sm:$0xff]  ;;  %4078 = vst.msk [vmem:[#allocation3 + $0xc] sm:$0xf] %vm569_vm4, %v4076_v46 }
 0x5fc   : > { %3908 = vst.msk [vmem:[#allocation3 + $0x1c] sm:$0xf] %vm569_vm4, %v3906_v44  ;;  %v3932_v6 = vpack.c.bf16 %v3928_v2, %v3927_v38  ;;  %4026 = vst.msk [vmem:[#allocation3] sm:$0xf] %vm569_vm4, %v4024_v58  ;;  %v4596_v57 = vld [vmem:[#allocation2 + $0x19] sm:$0x1]  ;;  %v4364_v44 = vsel %vm560_vm2, %v4363_v55, %v4355_v49 }
 0x5fd   : > { %v4492_v46 = vld [vmem:[#allocation2 + $0x17] sm:$0x1]  ;;  %v4491_v38 = vld [vmem:[#allocation2 + $0x7] sm:$0x1]  ;;  %v4543_v58 = vld [vmem:[#allocation2 + $0x8] sm:$0x1] }
 0x5fe   : > { %5884 = vmatpush3.bf16.msra.mxu1 %v3696_v8  ;;  %5890 = vmatpush3.bf16.msra.mxu0 %v3932_v6  ;;  %v4060_v62 = vpop.permute.xlu1 %4059  ;;  %v4365_v6 = vrot.slane %v4357_v54, 6  ;;  %v4545_v8 = vld [vmem:[#allocation2 + $0x28] sm:$0x1]  ;;  %v4499_v31 = vrot.slane %v4492_v46, 7  ;;  %v4552_v45 = vsel %vm560_vm2, %v4551_v51, %v4543_v58 }
 0x5ff   : > { %v4042_v9 = vpop.permute.xlu0 %4041  ;;  %4062 = vst.msk [vmem:[#allocation3 + $0x8] sm:$0xf] %vm569_vm4, %v4060_v62  ;;  %5891 = vmatprep.subr.bf16.mxu0 %v6008_v0  ;;  %5899 = vmatprep.subr.bf16.mxu1 %v6008_v0  ;;  %v3929_v25 = vld [vmem:[#allocation3 + $0x10] sm:$0xff]  ;;  %v4603_v62 = vrot.slane %v4596_v57, 7  ;;  %v4553_v23 = vrot.slane %v4545_v8, 6 }
 0x600   : > { %4044 = vst.msk [vmem:[#allocation3 + $0x4] sm:$0xf] %vm569_vm4, %v4042_v9  ;;  %v4366_v11 = vsel %vm563_vm3, %v4365_v6, %v4364_v44  ;;  %v4500_v18 = vsel %vm560_vm2, %v4499_v31, %v4491_v38 }
 0x601   : > { %5886 = vmatmul.mubr.msk.bf16.vlgmr.msra.gmra.mrb[20].mxu1 %vm724_vm9, %v7035_v1  ;;  %v4368_v17 = vsel %vm566_vm5, %v4367_v12, %v4366_v11  ;;  %v4554_v29 = vsel %vm563_vm3, %v4553_v23, %v4552_v45 }
 0x602   : > { %v4112_v24 = vpop.permute.xlu1 %4111  ;;  %v3931_v27 = vld [vmem:[#allocation3 + $0x20] sm:$0xf]  ;;  %5905 = vmatprep.mubr.msk.bf16.mxu1 %vm6012_vm7, %v6008_v0  ;;  %v4556_v35 = vsel %vm566_vm5, %v4555_v14, %v4554_v29 }
 0x603   : > { %v4094_v32 = vpop.permute.xlu0 %4093  ;;  %v3930_v33 = vld [vmem:[#allocation3 + $0x18] sm:$0xff]  ;;  %4114 = vst.msk [vmem:[#allocation3 + $0x14] sm:$0xf] %vm569_vm4, %v4112_v24  ;;  %v3934_v34 = vpack.c.bf16 %v3931_v27, %v3931_v27  ;;  %v4595_v24 = vld [vmem:[#allocation2 + $0x9] sm:$0x1]  ;;  %v4501_v27 = vrot.slane %v4493_v10, 6 }
 0x604   : > { %v3933_v4 = vpack.c.bf16 %v3930_v33, %v3929_v25  ;;  %4096 = vst.msk [vmem:[#allocation3 + $0x10] sm:$0xf] %vm569_vm4, %v4094_v32  ;;  %4130 = vst.msk [vmem:[#allocation3 + $0x18] sm:$0xf] %vm569_vm4, %v4128_v52  ;;  %v4605_v32 = vrot.slane %v4597_v15, 6  ;;  %v4604_v20 = vsel %vm560_vm2, %v4603_v62, %v4595_v24 }
 0x605   : > { %v3936_v50 = vsel %vm728_vm8, %v3934_v34, 0  ;;  %v4502_v19 = vsel %vm563_vm3, %v4501_v27, %v4500_v18 }
 0x606   : > { %5892 = vmatpush3.bf16.msra.mxu0 %v3933_v4  ;;  %v4164_v59 = vpop.permute.xlu1 %4163  ;;  %v4168_v60 = vld [vmem:[#allocation3 + $0x8] sm:$0xff]  ;;  %v4504_v34 = vsel %vm566_vm5, %v4503_v21, %v4502_v19  ;;  %v4606_v37 = vsel %vm563_vm3, %v4605_v32, %v4604_v20 }
 0x607   : > { %v4146_v40 = vpop.permute.xlu0 %4145  ;;  %5893 = vmatprep.subr.bf16.mxu0 %v6008_v0  ;;  %4166 = vst.msk [vmem:[#allocation3 + $0x20] sm:$0xf] %vm569_vm4, %v4164_v59  ;;  %v4167_v41 = vld [vmem:[#allocation3] sm:$0xff]  ;;  %4318 = vst.msk [vmem:[#allocation3 + $0xc] sm:$0xf] %vm569_vm4, %v4316_v39  ;;  %v4607_v59 = vrot.slane %v4598_v30, 5 }
 0x608   : > { %4148 = vst.msk [vmem:[#allocation3 + $0x1c] sm:$0xf] %vm569_vm4, %v4146_v40  ;;  %v4172_v48 = vpack.c.bf16 %v4168_v60, %v4167_v41  ;;  %4266 = vst.msk [vmem:[#allocation3] sm:$0xf] %vm569_vm4, %v4264_v42 }
 0x609   : > { %v4608_v40 = vsel %vm566_vm5, %v4607_v59, %v4606_v37 }
 0x60a   : > { %5894 = vmatpush3.bf16.msra.mxu0 %v3936_v50  ;;  %5900 = vmatpush3.bf16.msra.mxu1 %v4172_v48  ;;  %v4300_v2 = vpop.permute.xlu1 %4299 }
 0x60b   : > { %v4282_v61 = vpop.permute.xlu0 %4281  ;;  %4302 = vst.msk [vmem:[#allocation3 + $0x8] sm:$0xf] %vm569_vm4, %v4300_v2  ;;  %5901 = vmatprep.subr.bf16.mxu1 %v6008_v0  ;;  %5909 = vmatprep.subr.bf16.mxu0 %v6008_v0  ;;  %v4169_v26 = vld [vmem:[#allocation3 + $0x10] sm:$0xff] }
 0x60c   : > { %4284 = vst.msk [vmem:[#allocation3 + $0x4] sm:$0xf] %vm569_vm4, %v4282_v61 }
 0x60d   : > { %5896 = vmatmul.mubr.msk.bf16.vlgmr.msra.gmra.mrb[24].mxu0 %vm724_vm9, %v7035_v1 }
 0x60e   : > { %v4352_v43 = vpop.permute.xlu1 %4351  ;;  %v4171_v9 = vld [vmem:[#allocation3 + $0x20] sm:$0xf]  ;;  %5915 = vmatprep.mubr.msk.bf16.mxu0 %vm6012_vm7, %v6008_v0 }
 0x60f   : > { %v4334_v13 = vpop.permute.xlu0 %4333  ;;  %v4170_v16 = vld [vmem:[#allocation3 + $0x18] sm:$0xff]  ;;  %4354 = vst.msk [vmem:[#allocation3 + $0x14] sm:$0xf] %vm569_vm4, %v4352_v43  ;;  %v4174_v28 = vpack.c.bf16 %v4171_v9, %v4171_v9 }
 0x610   : > { %v4173_v25 = vpack.c.bf16 %v4170_v16, %v4169_v26  ;;  %4336 = vst.msk [vmem:[#allocation3 + $0x10] sm:$0xf] %vm569_vm4, %v4334_v13  ;;  %4370 = vst.msk [vmem:[#allocation3 + $0x18] sm:$0xf] %vm569_vm4, %v4368_v17 }
 0x611   : > { %v4176_v60 = vsel %vm728_vm8, %v4174_v28, 0 }
 0x612   : > { %5902 = vmatpush3.bf16.msra.mxu1 %v4173_v25  ;;  %v4404_v33 = vpop.permute.xlu1 %4403  ;;  %v4408_v52 = vld [vmem:[#allocation3 + $0x8] sm:$0xff] }
 0x613   : > { %v4386_v4 = vpop.permute.xlu0 %4385  ;;  %5903 = vmatprep.subr.bf16.mxu1 %v6008_v0  ;;  %4406 = vst.msk [vmem:[#allocation3 + $0x20] sm:$0xf] %vm569_vm4, %v4404_v33  ;;  %v4407_v63 = vld [vmem:[#allocation3] sm:$0xff]  ;;  %4558 = vst.msk [vmem:[#allocation3 + $0xc] sm:$0xf] %vm569_vm4, %v4556_v35 }
 0x614   : > { %4388 = vst.msk [vmem:[#allocation3 + $0x1c] sm:$0xf] %vm569_vm4, %v4386_v4  ;;  %v4412_v36 = vpack.c.bf16 %v4408_v52, %v4407_v63  ;;  %4506 = vst.msk [vmem:[#allocation3] sm:$0xf] %vm569_vm4, %v4504_v34 }
 0x616   : > { %5904 = vmatpush3.bf16.msra.mxu1 %v4176_v60  ;;  %5910 = vmatpush3.bf16.msra.mxu0 %v4412_v36  ;;  %v4540_v39 = vpop.permute.xlu1 %4539 }
 0x617   : > { %v4522_v22 = vpop.permute.xlu0 %4521  ;;  %4542 = vst.msk [vmem:[#allocation3 + $0x8] sm:$0xf] %vm569_vm4, %v4540_v39  ;;  %5911 = vmatprep.subr.bf16.mxu0 %v6008_v0  ;;  %5919 = vmatprep.subr.bf16.mxu1 %v6008_v0  ;;  %v4409_v42 = vld [vmem:[#allocation3 + $0x10] sm:$0xff] }
 0x618   : > { %4524 = vst.msk [vmem:[#allocation3 + $0x4] sm:$0xf] %vm569_vm4, %v4522_v22 }
 0x619   : > { %5906 = vmatmul.mubr.msk.bf16.vlgmr.msra.gmra.mrb[24].mxu1 %vm724_vm9, %v7035_v1 }
 0x61a   : > { %v4592_v41 = vpop.permute.xlu1 %4591  ;;  %v4411_v47 = vld [vmem:[#allocation3 + $0x20] sm:$0xf]  ;;  %5925 = vmatprep.mubr.msk.bf16.mxu1 %vm6012_vm7, %v6008_v0 }
 0x61b   : > { %v4574_v48 = vpop.permute.xlu0 %4573  ;;  %v4410_v49 = vld [vmem:[#allocation3 + $0x18] sm:$0xff]  ;;  %4594 = vst.msk [vmem:[#allocation3 + $0x14] sm:$0xf] %vm569_vm4, %v4592_v41  ;;  %v4414_v54 = vpack.c.bf16 %v4411_v47, %v4411_v47 }
 0x61c   : > { %v4413_v50 = vpack.c.bf16 %v4410_v49, %v4409_v42  ;;  %4576 = vst.msk [vmem:[#allocation3 + $0x10] sm:$0xf] %vm569_vm4, %v4574_v48  ;;  %4610 = vst.msk [vmem:[#allocation3 + $0x18] sm:$0xf] %vm569_vm4, %v4608_v40 }
 0x61d   : > { %v4416_v46 = vsel %vm728_vm8, %v4414_v54, 0 }
 0x61e   : > { %5912 = vmatpush3.bf16.msra.mxu0 %v4413_v50  ;;  %v4648_v55 = vld [vmem:[#allocation3 + $0x8] sm:$0xff]  ;;  %v4644_v56 = vpop.permute.xlu1 %4643 }
 0x61f   : > { %v4626_v57 = vpop.permute.xlu0 %4625  ;;  %5913 = vmatprep.subr.bf16.mxu0 %v6008_v0  ;;  %v4647_v2 = vld [vmem:[#allocation3] sm:$0xff]  ;;  %4646 = vst.msk [vmem:[#allocation3 + $0x20] sm:$0xf] %vm569_vm4, %v4644_v56 }
 0x620   : > { %4628 = vst.msk [vmem:[#allocation3 + $0x1c] sm:$0xf] %vm569_vm4, %v4626_v57  ;;  %v4652_v12 = vpack.c.bf16 %v4648_v55, %v4647_v2 }
 0x622   : > { %5914 = vmatpush3.bf16.msra.mxu0 %v4416_v46  ;;  %5920 = vmatpush3.bf16.msra.mxu1 %v4652_v12 }
 0x623   : > { %5921 = vmatprep.subr.bf16.mxu1 %v6008_v0  ;;  %v4649_v44 = vld [vmem:[#allocation3 + $0x10] sm:$0xff] }
 0x625   : > { %5916 = vmatmul.mubr.msk.bf16.vlgmr.msra.gmra.mrb[28].mxu0 %vm724_vm9, %v7035_v1 }
 0x626   : > { %v4651_v61 = vld [vmem:[#allocation3 + $0x20] sm:$0xf] }
 0x627   : > { %v4650_v38 = vld [vmem:[#allocation3 + $0x18] sm:$0xff]  ;;  %v4654_v58 = vpack.c.bf16 %v4651_v61, %v4651_v61 }
 0x628   : > { %v4653_v5 = vpack.c.bf16 %v4650_v38, %v4649_v44 }
 0x629   : > { %v4656_v6 = vsel %vm728_vm8, %v4654_v58, 0 }
 0x62a   : > { %5922 = vmatpush3.bf16.msra.mxu1 %v4653_v5 }
 0x62b   : > { %5923 = vmatprep.subr.bf16.mxu1 %v6008_v0 }
 0x62e   : > { %5924 = vmatpush3.bf16.msra.mxu1 %v4656_v6 }
 0x630   : > { %v7192_v7 = vpop.permute.xlu0 %2969 }
 0x631   : > { %5926 = vmatmul.mubr.msk.bf16.vlgmr.msra.gmra.mrb[28].mxu1 %vm724_vm9, %v7035_v1 }
 0x6b0   : > { %v3012_v8 = vpop.f32.mrb[16].mxu0 }
 0x6b1   : > { %v3013_v51 = vadd.f32 %v3012_v8, %v7192_v7  ;;  %v5857_v10 = vpop.f32.mrb[17].mxu0 }
 0x6b2   : > { %v3015_v31 = vpop.f32.mrb[18].mxu0 }
 0x6b3   : > { %v3025_v62 = vrot.slane %v3013_v51, %v6553_v53  ;;  %v5858_v43 = vpop.f32.mrb[19].mxu0 }
 0x6b5   : > { %v3026_v26 = vcombine.high %v3025_v62, %v3025_v62  ;;  %v3033_v9 = vrot.slane %v3025_v62, %v6553_v53 }
 0x6b7   : > { %v3040_v0 = vrot.slane %v3026_v26, %v6553_v53  ;;  %v3041_v11 = vcombine.high %v3033_v9, %v3033_v9  ;;  %3047 = vst.msk [vmem:[#allocation4] sm:$0x1] %vm801_vm10, %v3033_v9 }
 0x6b9   : > { %v3042_v45 = vcombine.high %v3040_v0, %v3040_v0  ;;  %3048 = vst.msk [vmem:[#allocation4 + $0x8] sm:$0x1] %vm801_vm10, %v3040_v0  ;;  %3049 = vst.msk [vmem:[#allocation4 + $0x10] sm:$0x1] %vm801_vm10, %v3041_v11 }
 0x6bb   : > { %3050 = vst.msk [vmem:[#allocation4 + $0x18] sm:$0x1] %vm801_vm10, %v3042_v45 }
 0x6bc   : > { %v3252_v1 = vpop.f32.mrb[16].mxu1 }
 0x6bd   : > { %v3253_v14 = vadd.f32 %v3252_v1, %v7192_v7  ;;  %v5867_v15 = vpop.f32.mrb[17].mxu1 }
 0x6be   : > { %v3255_v13 = vpop.f32.mrb[18].mxu1 }
 0x6bf   : > { %v3265_v16 = vrot.slane %v3253_v14, %v6553_v53  ;;  %v5868_v17 = vpop.f32.mrb[19].mxu1 }
 0x6c1   : > { %v3266_v18 = vcombine.high %v3265_v16, %v3265_v16  ;;  %v3273_v21 = vrot.slane %v3265_v16, %v6553_v53 }
 0x6c3   : > { %v3280_v23 = vrot.slane %v3266_v18, %v6553_v53  ;;  %v3281_v24 = vcombine.high %v3273_v21, %v3273_v21  ;;  %3287 = vst.msk [vmem:[#allocation4 + $0x1] sm:$0x1] %vm801_vm10, %v3273_v21 }
 0x6c5   : > { %v3282_v25 = vcombine.high %v3280_v23, %v3280_v23  ;;  %3288 = vst.msk [vmem:[#allocation4 + $0x9] sm:$0x1] %vm801_vm10, %v3280_v23  ;;  %3289 = vst.msk [vmem:[#allocation4 + $0x11] sm:$0x1] %vm801_vm10, %v3281_v24 }
 0x6c7   : > { %3290 = vst.msk [vmem:[#allocation4 + $0x19] sm:$0x1] %vm801_vm10, %v3282_v25 }
 0x6c8   : > { %v3492_v27 = vpop.f32.mrb[20].mxu0 }
 0x6c9   : > { %v3493_v28 = vadd.f32 %v3492_v27, %v7192_v7  ;;  %v5877_v29 = vpop.f32.mrb[21].mxu0 }
 0x6ca   : > { %v3495_v30 = vpop.f32.mrb[22].mxu0 }
 0x6cb   : > { %v3505_v32 = vrot.slane %v3493_v28, %v6553_v53  ;;  %v5878_v33 = vpop.f32.mrb[23].mxu0 }
 0x6cd   : > { %v3506_v52 = vcombine.high %v3505_v32, %v3505_v32  ;;  %v3513_v19 = vrot.slane %v3505_v32, %v6553_v53 }
 0x6cf   : > { %v3520_v35 = vrot.slane %v3506_v52, %v6553_v53  ;;  %v3521_v20 = vcombine.high %v3513_v19, %v3513_v19  ;;  %3527 = vst.msk [vmem:[#allocation4 + $0x2] sm:$0x1] %vm801_vm10, %v3513_v19 }
 0x6d1   : > { %v3522_v4 = vcombine.high %v3520_v35, %v3520_v35  ;;  %3528 = vst.msk [vmem:[#allocation4 + $0xa] sm:$0x1] %vm801_vm10, %v3520_v35  ;;  %3529 = vst.msk [vmem:[#allocation4 + $0x12] sm:$0x1] %vm801_vm10, %v3521_v20 }
 0x6d3   : > { %3530 = vst.msk [vmem:[#allocation4 + $0x1a] sm:$0x1] %vm801_vm10, %v3522_v4 }
 0x6d4   : > { %v3732_v63 = vpop.f32.mrb[20].mxu1 }
 0x6d5   : > { %v3733_v34 = vadd.f32 %v3732_v63, %v7192_v7  ;;  %v5887_v36 = vpop.f32.mrb[21].mxu1 }
 0x6d6   : > { %v3735_v59 = vpop.f32.mrb[22].mxu1 }
 0x6d7   : > { %v3745_v60 = vrot.slane %v3733_v34, %v6553_v53  ;;  %v5888_v37 = vpop.f32.mrb[23].mxu1 }
 0x6d9   : > { %v3746_v39 = vcombine.high %v3745_v60, %v3745_v60  ;;  %v3753_v22 = vrot.slane %v3745_v60, %v6553_v53 }
 0x6db   : > { %v3760_v40 = vrot.slane %v3746_v39, %v6553_v53  ;;  %v3761_v41 = vcombine.high %v3753_v22, %v3753_v22  ;;  %3767 = vst.msk [vmem:[#allocation4 + $0x3] sm:$0x1] %vm801_vm10, %v3753_v22 }
 0x6dd   : > { %v3762_v42 = vcombine.high %v3760_v40, %v3760_v40  ;;  %3768 = vst.msk [vmem:[#allocation4 + $0xb] sm:$0x1] %vm801_vm10, %v3760_v40  ;;  %3769 = vst.msk [vmem:[#allocation4 + $0x13] sm:$0x1] %vm801_vm10, %v3761_v41 }
 0x6df   : > { %3770 = vst.msk [vmem:[#allocation4 + $0x1b] sm:$0x1] %vm801_vm10, %v3762_v42 }
 0x6e0   : > { %v3972_v47 = vpop.f32.mrb[24].mxu0 }
 0x6e1   : > { %v3973_v48 = vadd.f32 %v3972_v47, %v7192_v7  ;;  %v5897_v49 = vpop.f32.mrb[25].mxu0 }
 0x6e2   : > { %v3975_v50 = vpop.f32.mrb[26].mxu0 }
 0x6e3   : > { %v3985_v54 = vrot.slane %v3973_v48, %v6553_v53  ;;  %v5898_v55 = vpop.f32.mrb[27].mxu0 }
 0x6e5   : > { %v3986_v56 = vcombine.high %v3985_v54, %v3985_v54  ;;  %v3993_v57 = vrot.slane %v3985_v54, %v6553_v53 }
 0x6e7   : > { %v4000_v2 = vrot.slane %v3986_v56, %v6553_v53  ;;  %v4001_v12 = vcombine.high %v3993_v57, %v3993_v57  ;;  %4007 = vst.msk [vmem:[#allocation4 + $0x4] sm:$0x1] %vm801_vm10, %v3993_v57 }
 0x6e9   : > { %v4002_v46 = vcombine.high %v4000_v2, %v4000_v2  ;;  %4008 = vst.msk [vmem:[#allocation4 + $0xc] sm:$0x1] %vm801_vm10, %v4000_v2  ;;  %4009 = vst.msk [vmem:[#allocation4 + $0x14] sm:$0x1] %vm801_vm10, %v4001_v12 }
 0x6eb   : > { %4010 = vst.msk [vmem:[#allocation4 + $0x1c] sm:$0x1] %vm801_vm10, %v4002_v46 }
 0x6ec   : > { %v4212_v61 = vpop.f32.mrb[24].mxu1 }
 0x6ed   : > { %v4213_v44 = vadd.f32 %v4212_v61, %v7192_v7  ;;  %v5907_v38 = vpop.f32.mrb[25].mxu1 }
 0x6ee   : > { %v4215_v58 = vpop.f32.mrb[26].mxu1 }
 0x6ef   : > { %v4225_v5 = vrot.slane %v4213_v44, %v6553_v53  ;;  %v5908_v6 = vpop.f32.mrb[27].mxu1 }
 0x6f1   : > { %v4226_v8 = vcombine.high %v4225_v5, %v4225_v5  ;;  %v4233_v51 = vrot.slane %v4225_v5, %v6553_v53 }
 0x6f3   : > { %v4240_v10 = vrot.slane %v4226_v8, %v6553_v53  ;;  %v4241_v31 = vcombine.high %v4233_v51, %v4233_v51  ;;  %4247 = vst.msk [vmem:[#allocation4 + $0x5] sm:$0x1] %vm801_vm10, %v4233_v51 }
 0x6f5   : > { %v4242_v62 = vcombine.high %v4240_v10, %v4240_v10  ;;  %4248 = vst.msk [vmem:[#allocation4 + $0xd] sm:$0x1] %vm801_vm10, %v4240_v10  ;;  %4249 = vst.msk [vmem:[#allocation4 + $0x15] sm:$0x1] %vm801_vm10, %v4241_v31 }
 0x6f7   : > { %4250 = vst.msk [vmem:[#allocation4 + $0x1d] sm:$0x1] %vm801_vm10, %v4242_v62  ;;  %v7277_v62 = vld [vmem:[%s7633_s5 + $0x1] sm:$0x1] }
 0x6f8   : > { %v4452_v43 = vpop.f32.mrb[28].mxu0 }
 0x6f9   : > { %v4453_v26 = vadd.f32 %v4452_v43, %v7192_v7  ;;  %v5917_v9 = vpop.f32.mrb[29].mxu0 }
 0x6fa   : > { %v4455_v0 = vpop.f32.mrb[30].mxu0 }
 0x6fb   : > { %v4465_v11 = vrot.slane %v4453_v26, %v6553_v53  ;;  %v5918_v45 = vpop.f32.mrb[31].mxu0  ;;  %v7283_v26 = vld [vmem:[%s7633_s5] sm:$0x1]  ;;  %v7289_v0 = vld [vmem:[%s7633_s5 + $0x5] sm:$0x1] }
 0x6fc   : > { %v7295_v45 = vld [vmem:[%s7633_s5 + $0x4] sm:$0x1] }
 0x6fd   : > { %v4466_v1 = vcombine.high %v4465_v11, %v4465_v11  ;;  %v4473_v14 = vrot.slane %v4465_v11, %v6553_v53 }
 0x6ff   : > { %v4480_v15 = vrot.slane %v4466_v1, %v6553_v53  ;;  %v4481_v13 = vcombine.high %v4473_v14, %v4473_v14  ;;  %4487 = vst.msk [vmem:[#allocation4 + $0x6] sm:$0x1] %vm801_vm10, %v4473_v14  ;;  %v7301_v14 = vld [vmem:[%s7633_s5 + $0x6] sm:$0x1] }
 0x701   : > { %v4482_v16 = vcombine.high %v4480_v15, %v4480_v15  ;;  %4488 = vst.msk [vmem:[#allocation4 + $0xe] sm:$0x1] %vm801_vm10, %v4480_v15  ;;  %4489 = vst.msk [vmem:[#allocation4 + $0x16] sm:$0x1] %vm801_vm10, %v4481_v13  ;;  %v7307_v13 = vld [vmem:[%s7633_s5 + $0x7] sm:$0x1] }
 0x703   : > { %4490 = vst.msk [vmem:[#allocation4 + $0x1e] sm:$0x1] %vm801_vm10, %v4482_v16 }
 0x704   : > { %v4692_v17 = vpop.f32.mrb[28].mxu1 }
 0x705   : > { %v4693_v18 = vadd.f32 %v4692_v17, %v7192_v7  ;;  %v5927_v21 = vpop.f32.mrb[29].mxu1 }
 0x706   : > { %v4695_v23 = vpop.f32.mrb[30].mxu1  ;;  %v7313_v21 = vld [vmem:[%s7633_s5 + $0x2] sm:$0x1] }
 0x707   : > { %v4705_v24 = vrot.slane %v4693_v18, %v6553_v53  ;;  %v5928_v25 = vpop.f32.mrb[31].mxu1 }
 0x709   : > { %v4706_v27 = vcombine.high %v4705_v24, %v4705_v24  ;;  %v4713_v28 = vrot.slane %v4705_v24, %v6553_v53  ;;  %v7319_v24 = vld [vmem:[%s7633_s5 + $0x3] sm:$0x1] }
 0x70b   : > { %v4720_v29 = vrot.slane %v4706_v27, %v6553_v53  ;;  %v4721_v30 = vcombine.high %v4713_v28, %v4713_v28  ;;  %4727 = vst.msk [vmem:[#allocation4 + $0x7] sm:$0x1] %vm801_vm10, %v4713_v28 }
 0x70d   : > { %v4722_v32 = vcombine.high %v4720_v29, %v4720_v29  ;;  %4728 = vst.msk [vmem:[#allocation4 + $0xf] sm:$0x1] %vm801_vm10, %v4720_v29  ;;  %4729 = vst.msk [vmem:[#allocation4 + $0x17] sm:$0x1] %vm801_vm10, %v4721_v30 }
 0x70f   : > { %4730 = vst.msk [vmem:[#allocation4 + $0x1f] sm:$0x1] %vm801_vm10, %v4722_v32 }
 0x712   : > { %v7258_v7 = vld [vmem:[#allocation4] sm:$0xff] }
 0x713   : > { %v4745_v33 = vsel %vm2498_vm11, %v7258_v7, 0.0 }
 0x714   : > { %4746 = vadd.xlane.f32.xlu1 %v4745_v33  ;;  %v7262_v52 = vld [vmem:[#allocation4 + $0x8] sm:$0xff]  ;;  %v7268_v35 = vld [vmem:[#allocation4 + $0x10] sm:$0xff] }
 0x715   : > { %v4748_v53 = vsel %vm2498_vm11, %v7262_v52, 0.0  ;;  %v4769_v4 = vsel %vm2498_vm11, %v7268_v35, 0.0 }
 0x716   : > { %4749 = vadd.xlane.f32.xlu0 %v4748_v53  ;;  %v7266_v19 = vld [vmem:[#allocation4 + $0x18] sm:$0xff] }
 0x717   : > { %v4772_v20 = vsel %vm2498_vm11, %v7266_v19, 0.0 }
 0x718   : > { %4773 = vadd.xlane.f32.xlu1 %v4772_v20 }
 0x71a   : > { %4770 = vadd.xlane.f32.xlu0 %v4769_v4 }
 0x7a1   : > { %v4747_v63 = vpop.xlane.xlu1 %4746 }
 0x7a2   : > { %v4751_v34 = vrot.slane %v4747_v63, 4 }
 0x7a3   : > { %v4750_v36 = vpop.xlane.xlu0 %4749 }
 0x7a4   : > { %v4752_v59 = vadd.f32 %v4751_v34, %v4747_v63  ;;  %v4757_v60 = vrot.slane %v4750_v36, 4 }
 0x7a5   : > { %v4774_v37 = vpop.xlane.xlu1 %4773 }
 0x7a6   : > { %v4753_v39 = vrot.slane %v4752_v59, 2  ;;  %v4758_v22 = vadd.f32 %v4757_v60, %v4750_v36  ;;  %v4781_v40 = vrot.slane %v4774_v37, 4 }
 0x7a7   : > { %v4771_v41 = vpop.xlane.xlu0 %4770 }
 0x7a8   : > { %v4754_v42 = vadd.f32 %v4753_v39, %v4752_v59  ;;  %v4759_v47 = vrot.slane %v4758_v22, 2  ;;  %v4782_v48 = vadd.f32 %v4781_v40, %v4774_v37  ;;  %v4775_v49 = vrot.slane %v4771_v41, 4 }
 0x7aa   : > { %v4755_v50 = vrot.slane %v4754_v42, 1  ;;  %v4760_v54 = vadd.f32 %v4759_v47, %v4758_v22  ;;  %v4783_v55 = vrot.slane %v4782_v48, 2  ;;  %v4776_v56 = vadd.f32 %v4775_v49, %v4771_v41  ;;  %v5681_v47 = vld [vmem:[%s7631_s3 + $0x5] ss:$0 sm:$0xff]  ;;  %v5683_v49 = vld [vmem:[%s7631_s3 + $0x7] ss:$0 sm:$0xff] }
 0x7ac   : > { %v4761_v57 = vrot.slane %v4760_v54, 1  ;;  %v4784_v2 = vadd.f32 %v4783_v55, %v4782_v48  ;;  %v4777_v12 = vrot.slane %v4776_v56, 2  ;;  %v4756_v46 = vadd.f32 %v4755_v50, %v4754_v42  ;;  %v5682_v42 = vld [vmem:[%s7631_s3 + $0x6] ss:$0 sm:$0xff]  ;;  %v5684_v48 = vld [vmem:[%s7632_s4 + $0x4] ss:$0 sm:$0xff] }
 0x7ad   : > { %v5685_v50 = vld [vmem:[%s7632_s4 + $0x5] ss:$0 sm:$0xff] }
 0x7ae   : > { %v4762_v61 = vadd.f32 %v4761_v57, %v4760_v54  ;;  %v4785_v44 = vrot.slane %v4784_v2, 1  ;;  %v4778_v38 = vadd.f32 %v4777_v12, %v4776_v56 }
 0x7b0   : > { %v4763_v58 = vadd.f32 %v4762_v61, %v4756_v46  ;;  %v4779_v5 = vrot.slane %v4778_v38, 1  ;;  %v4786_v6 = vadd.f32 %v4785_v44, %v4784_v2 }
 0x7b2   : > { %v4780_v8 = vadd.f32 %v4779_v5, %v4778_v38  ;;  %v4764_v51 = vmul.f32 0.00390625, %v4763_v58 }
 0x7b4   : > { %v4787_v10 = vadd.f32 %v4786_v6, %v4780_v8  ;;  %v4766_v43 = vmul.f32 %v7277_v62, %v4764_v51  ;;  %v4765_v9 = vmul.f32 %v7283_v26, %v4764_v51  ;;  %v4767_v23 = vmul.f32 %v7313_v21, %v4764_v51 }
 0x7b5   : > { %v4768_v25 = vmul.f32 %v7319_v24, %v4764_v51 }
 0x7b6   : > { %v4788_v31 = vmul.f32 0.00390625, %v4787_v10 }
 0x7b8   : > { %v4790_v11 = vmul.f32 %v7289_v0, %v4788_v31  ;;  %v4789_v1 = vmul.f32 %v7295_v45, %v4788_v31  ;;  %v4791_v15 = vmul.f32 %v7301_v14, %v4788_v31  ;;  %v4792_v16 = vmul.f32 %v7307_v13, %v4788_v31 }
 0x7ba   : > { %v4794_v17 = vadd.f32 %v4790_v11, %v4766_v43  ;;  %v4793_v18 = vadd.f32 %v4789_v1, %v4765_v9  ;;  %v4795_v29 = vadd.f32 %v4791_v15, %v4767_v23  ;;  %v4796_v30 = vadd.f32 %v4792_v16, %v4768_v25 }
 0x7bc   : > { %v4808_v27 = vrot.slane %v4794_v17, %v6662_v3  ;;  %v4804_v28 = vrot.slane %v4793_v18, %v6662_v3  ;;  %v4812_v32 = vrot.slane %v4795_v29, %v6662_v3  ;;  %v4816_v33 = vrot.slane %v4796_v30, %v6662_v3 }
 0x7be   : > { %4822 = vperm.xlu1 %5958, %v4808_v27   ;;  %4818 = vperm.xlu0 %5957, %v4804_v28  }
 0x7c2   : > { %4826 = vperm.xlu1 %5958, %v4812_v32   ;;  %4830 = vperm.xlu0 %5957, %v4816_v33  }
 0x83d   : > { %v4823_v53 = vpop.permute.xlu1 %4822  ;;  %v4819_v20 = vpop.permute.xlu0 %4818 }
 0x83e   : > { %v7327_v4 = vsub.f32 %v7262_v52, %v4823_v53  ;;  %v7330_v63 = vsub.f32 %v7258_v7, %v4819_v20 }
 0x840   : > { %v4838_v34 = vmul.f32 %v7327_v4, %v7327_v4  ;;  %v4837_v36 = vmul.f32 %v7330_v63, %v7330_v63 }
 0x841   : > { %v4827_v59 = vpop.permute.xlu1 %4826  ;;  %v4831_v60 = vpop.permute.xlu0 %4830 }
 0x842   : > { %v7337_v37 = vsub.f32 %v7268_v35, %v4827_v59  ;;  %v7340_v39 = vsub.f32 %v7266_v19, %v4831_v60  ;;  %v4842_v52 = vsel %vm2498_vm11, %v4838_v34, 0.0  ;;  %v4839_v22 = vsel %vm2498_vm11, %v4837_v36, 0.0  ;;  %v5680_v19 = vld [vmem:[%s7631_s3 + $0x4] ss:$0 sm:$0xff] }
 0x843   : > { %4843 = vadd.xlane.f32.xlu0 %v4842_v52  ;;  %4840 = vadd.xlane.f32.xlu1 %v4839_v22 }
 0x844   : > { %v4863_v7 = vmul.f32 %v7337_v37, %v7337_v37  ;;  %v4864_v40 = vmul.f32 %v7340_v39, %v7340_v39 }
 0x846   : > { %v4865_v41 = vsel %vm2498_vm11, %v4863_v7, 0.0  ;;  %v4868_v35 = vsel %vm2498_vm11, %v4864_v40, 0.0 }
 0x847   : > { %4866 = vadd.xlane.f32.xlu0 %v4865_v41  ;;  %4869 = vadd.xlane.f32.xlu1 %v4868_v35 }
 0x858   : > { %4962 = vperm.xlu1 %5958, %v5680_v19  }
 0x85c   : > { %4970 = vperm.xlu1 %5958, %v5682_v42  }
 0x85d   : > { %4966 = vperm.xlu0 %5957, %v5681_v47  }
 0x860   : > { %5002 = vperm.xlu1 %5958, %v5684_v48   ;;  %v5686_v48 = vld [vmem:[%s7632_s4 + $0x6] ss:$0 sm:$0xff] }
 0x861   : > { %4974 = vperm.xlu0 %5957, %v5683_v49   ;;  %v5687_v49 = vld [vmem:[%s7632_s4 + $0x7] ss:$0 sm:$0xff] }
 0x865   : > { %5006 = vperm.xlu0 %5957, %v5685_v50   ;;  %v5959_v50 = vld [vmem:[%s7635_s7] sm:$0xff]  }
 0x866   : > { %5929 = vmatprep.subr.bf16.mxu0 %v5959_v50 }
 0x867   : > { %5930 = vmatpush3.bf16.msra.mxu0 %v5959_v50  ;;  %v7433_v50 = vld [vmem:[%s7634_s6 + $0x28] sm:$0xff] }
 0x8d0   : > { %v4841_v54 = vpop.xlane.xlu1 %4840  ;;  %v4844_v55 = vpop.xlane.xlu0 %4843 }
 0x8d1   : > { %v4845_v56 = vrot.slane %v4841_v54, 4  ;;  %v4851_v57 = vrot.slane %v4844_v55, 4 }
 0x8d3   : > { %v4846_v2 = vadd.f32 %v4845_v56, %v4841_v54  ;;  %v4852_v12 = vadd.f32 %v4851_v57, %v4844_v55 }
 0x8d4   : > { %v4870_v46 = vpop.xlane.xlu1 %4869  ;;  %v4867_v61 = vpop.xlane.xlu0 %4866 }
 0x8d5   : > { %v4847_v44 = vrot.slane %v4846_v2, 2  ;;  %v4853_v38 = vrot.slane %v4852_v12, 2  ;;  %v4877_v58 = vrot.slane %v4870_v46, 4  ;;  %v4871_v5 = vrot.slane %v4867_v61, 4 }
 0x8d7   : > { %v4848_v6 = vadd.f32 %v4847_v44, %v4846_v2  ;;  %v4854_v8 = vadd.f32 %v4853_v38, %v4852_v12  ;;  %v4878_v51 = vadd.f32 %v4877_v58, %v4870_v46  ;;  %v4872_v10 = vadd.f32 %v4871_v5, %v4867_v61 }
 0x8d8   : > { %v4963_v54 = vpop.permute.xlu1 %4962 }
 0x8d9   : > { %v4849_v31 = vrot.slane %v4848_v6, 1  ;;  %v4855_v43 = vrot.slane %v4854_v8, 1  ;;  %v4879_v9 = vrot.slane %v4878_v51, 2  ;;  %v4873_v11 = vrot.slane %v4872_v10, 2 }
 0x8db   : > { %v4850_v1 = vadd.f32 %v4849_v31, %v4848_v6  ;;  %v4856_v15 = vadd.f32 %v4855_v43, %v4854_v8  ;;  %v4880_v16 = vadd.f32 %v4879_v9, %v4878_v51  ;;  %v4874_v17 = vadd.f32 %v4873_v11, %v4872_v10 }
 0x8dc   : > { %v4971_v55 = vpop.permute.xlu1 %4970 }
 0x8dd   : > { %v4857_v18 = vadd.f32 %v4856_v15, %v4850_v1  ;;  %v4881_v23 = vrot.slane %v4880_v16, 1  ;;  %v4875_v25 = vrot.slane %v4874_v17, 1 }
 0x8df   : > { %v4882_v27 = vadd.f32 %v4881_v23, %v4880_v16  ;;  %v4876_v28 = vadd.f32 %v4875_v25, %v4874_v17  ;;  %v4858_v29 = vmul.f32 0.00390625, %v4857_v18  ;;  %v5688_v23 = vld [vmem:[%s7636_s8] ss:$0 sm:$0xff] }
 0x8e0   : > { %v5003_v57 = vpop.permute.xlu1 %5002 }
 0x8e1   : > { %v4883_v30 = vadd.f32 %v4882_v27, %v4876_v28  ;;  %v4859_v33 = vmul.f32 %v7283_v26, %v4858_v29  ;;  %v4860_v53 = vmul.f32 %v7277_v62, %v4858_v29  ;;  %v4861_v20 = vmul.f32 %v7313_v21, %v4858_v29 }
 0x8e2   : > { %v4862_v34 = vmul.f32 %v7319_v24, %v4858_v29 }
 0x8e3   : > { %v4884_v32 = vmul.f32 0.00390625, %v4883_v30 }
 0x8e5   : > { %v4885_v36 = vmul.f32 %v7295_v45, %v4884_v32  ;;  %v4886_v59 = vmul.f32 %v7289_v0, %v4884_v32  ;;  %v4887_v60 = vmul.f32 %v7301_v14, %v4884_v32  ;;  %v4888_v52 = vmul.f32 %v7307_v13, %v4884_v32 }
 0x8e7   : > { %v4889_v22 = vadd.f32 %v4885_v36, %v4859_v33  ;;  %v4890_v7 = vadd.f32 %v4886_v59, %v4860_v53  ;;  %v4891_v40 = vadd.f32 %v4887_v60, %v4861_v20  ;;  %v4892_v41 = vadd.f32 %v4888_v52, %v4862_v34 }
 0x8e9   : > { %v4893_v35 = vadd.f32 1e-05, %v4889_v22  ;;  %v4894_v26 = vadd.f32 1e-05, %v4890_v7  ;;  %v4895_v19 = vadd.f32 1e-05, %v4891_v40 }
 0x8ea   : > { %v4896_v62 = vadd.f32 1e-05, %v4892_v41 }
 0x8eb   : > { %5968 = vrsqrt.f32 %v4894_v26 }
 0x8ec   : > { %5970 = vrsqrt.f32 %v4893_v35 }
 0x8ed   : > { %5972 = vrsqrt.f32 %v4895_v19 }
 0x8ee   : > { %5974 = vrsqrt.f32 %v4896_v62 }
 0x8f5   : > { %v5969_v21 = vpop.eup %5968 }
 0x8f6   : > { %v5971_v45 = vpop.eup %5970  ;;  %v4912_v0 = vrot.slane %v5969_v21, %v6662_v3 }
 0x8f7   : > { %v5973_v24 = vpop.eup %5972  ;;  %v4908_v14 = vrot.slane %v5971_v45, %v6662_v3 }
 0x8f8   : > { %v5975_v13 = vpop.eup %5974  ;;  %4926 = vperm.xlu1 %5958, %v4912_v0   ;;  %v4916_v42 = vrot.slane %v5973_v24, %v6662_v3 }
 0x8f9   : > { %4922 = vperm.xlu0 %5957, %v4908_v14   ;;  %v4920_v47 = vrot.slane %v5975_v13, %v6662_v3  ;;  %v4967_v3 = vpop.permute.xlu0 %4966 }
 0x8fc   : > { %4930 = vperm.xlu1 %5958, %v4916_v42  }
 0x8fd   : > { %4934 = vperm.xlu0 %5957, %v4920_v47   ;;  %v4975_v56 = vpop.permute.xlu0 %4974 }
 0x900   : > { %5010 = vperm.xlu1 %5958, %v5686_v48  }
 0x901   : > { %5014 = vperm.xlu0 %5957, %v5687_v49   ;;  %v5007_v2 = vpop.permute.xlu0 %5006  ;;  %v7428_v49 = vld [vmem:[%s7634_s6 + $0x8] sm:$0xff] }
 0x977   : > { %v4927_v12 = vpop.permute.xlu1 %4926 }
 0x978   : > { %v4938_v46 = vmul.f32 %v4927_v12, %v7327_v4  ;;  %v4923_v61 = vpop.permute.xlu0 %4922 }
 0x979   : > { %v4937_v44 = vmul.f32 %v4923_v61, %v7330_v63 }
 0x97a   : > { %v4978_v38 = vmul.f32 %v4967_v3, %v4938_v46  ;;  %v7443_v3 = vld [vmem:[%s7634_s6 + $0x20] sm:$0xff] }
 0x97b   : > { %v4977_v58 = vmul.f32 %v4963_v54, %v4937_v44  ;;  %v4931_v5 = vpop.permute.xlu1 %4930  ;;  %v7438_v54 = vld [vmem:[%s7634_s6] sm:$0xff]  ;;  %v7462_v44 = vld [vmem:[%s7634_s6 + $0x10] sm:$0xff] }
 0x97c   : > { %v7391_v6 = vadd.f32 %v5007_v2, %v4978_v38  ;;  %v4939_v8 = vmul.f32 %v4931_v5, %v7337_v37  ;;  %v4935_v51 = vpop.permute.xlu0 %4934  ;;  %v7467_v38 = vld [vmem:[%s7634_s6 + $0x18] sm:$0xff] }
 0x97d   : > { %v7394_v10 = vadd.f32 %v5003_v57, %v4977_v58  ;;  %v4940_v31 = vmul.f32 %v4935_v51, %v7340_v39  ;;  %v7453_v57 = vld [vmem:[%s7634_s6 + $0x38] sm:$0xff] }
 0x97e   : > { %v5022_v43 = vmax.f32 %v7391_v6, 0.0  ;;  %v4979_v9 = vmul.f32 %v4971_v55, %v4939_v8 }
 0x97f   : > { %v5021_v4 = vmax.f32 %v7394_v10, 0.0  ;;  %v5011_v11 = vpop.permute.xlu1 %5010  ;;  %v4980_v1 = vmul.f32 %v4975_v56, %v4940_v31  ;;  %v7448_v56 = vld [vmem:[%s7634_s6 + $0x30] sm:$0xff] }
 0x980   : > { %v7399_v63 = vadd.f32 %v5011_v11, %v4979_v9  ;;  %v5015_v15 = vpop.permute.xlu0 %5014 }
 0x981   : > { %v5025_v37 = vpack.c.bf16 %v5022_v43, %v5021_v4  ;;  %v7405_v16 = vadd.f32 %v5015_v15, %v4980_v1 }
 0x982   : > { %v5023_v17 = vmax.f32 %v7399_v63, 0.0 }
 0x983   : > { %v5024_v39 = vmax.f32 %v7405_v16, 0.0  ;;  %5931 = vmatprep.mubr.msk.bf16.mxu0 %vm2498_vm11, %v5025_v37 }
 0x985   : > { %v5026_v18 = vpack.c.bf16 %v5024_v39, %v5023_v17 }
 0x987   : > { %5932 = vmatmul.mubr.msk.bf16.vlgmr.msra.gmra.mrb[32].mxu0 %vm2498_vm11, %v5026_v18 }
 0xa5a   : > { %v5933_v25 = vpop.f32.mrb[32].mxu0 }
 0xa5b   : > { %v5082_v27 = vpop.f32.mrb[33].mxu0  ;;  %v5091_v20 = vadd.f32 %v5933_v25, %v5688_v23 }
 0xa5c   : > { %v5083_v28 = vadd.f32 %v5688_v23, %v5082_v27  ;;  %v5934_v29 = vpop.f32.mrb[34].mxu0 }
 0xa5d   : > { %v5085_v30 = vpop.f32.mrb[35].mxu0  ;;  %v7418_v32 = vadd.f32 %v5934_v29, %v5688_v23  ;;  %v5124_v59 = vsel %vm5105_vm12, %v5091_v20, 0.0 }
 0xa5e   : > { %v5086_v33 = vadd.f32 %v5688_v23, %v5085_v30  ;;  %v5106_v53 = vsel %vm5105_vm12, %v5083_v28, 0.0 }
 0xa5f   : > { %5107 = vadd.xlane.f32.xlu1 %v5106_v53  ;;  %v5127_v36 = vsel %vm5105_vm12, %v7418_v32, 0.0 }
 0xa60   : > { %v5109_v34 = vsel %vm5105_vm12, %v5086_v33, 0.0 }
 0xa61   : > { %5110 = vadd.xlane.f32.xlu0 %v5109_v34 }
 0xa63   : > { %5128 = vadd.xlane.f32.xlu1 %v5127_v36 }
 0xa65   : > { %5125 = vadd.xlane.f32.xlu0 %v5124_v59 }
 0xaec   : > { %v5108_v60 = vpop.xlane.xlu1 %5107 }
 0xaee   : > { %v5111_v52 = vpop.xlane.xlu0 %5110 }
 0xaef   : > { %v5112_v22 = vadd.f32 %v5111_v52, %v5108_v60  ;;  %v5099_v52 = vld [vmem:[%s7637_s9 + $0x10] sm:$0xff] }
 0xaf0   : > { %v5129_v40 = vpop.xlane.xlu1 %5128 }
 0xaf1   : > { %v5113_v7 = vrot.slane %v5112_v22, 4 }
 0xaf2   : > { %v5126_v41 = vpop.xlane.xlu0 %5125 }
 0xaf3   : > { %v5114_v35 = vadd.f32 %v5113_v7, %v5112_v22  ;;  %v5130_v26 = vadd.f32 %v5129_v40, %v5126_v41  ;;  %v5098_v22 = vld [vmem:[%s7637_s9 + $0x8] sm:$0xff]  ;;  %v5101_v7 = vld [vmem:[%s7638_s10] sm:$0xff]  ;;  %v5100_v40 = vld [vmem:[%s7637_s9 + $0x18] sm:$0xff] }
 0xaf4   : > { %v5102_v41 = vld [vmem:[%s7638_s10 + $0x8] sm:$0xff] }
 0xaf5   : > { %v5115_v19 = vrot.slane %v5114_v35, 2  ;;  %v5131_v62 = vrot.slane %v5130_v26, 4 }
 0xaf7   : > { %v5116_v21 = vadd.f32 %v5115_v19, %v5114_v35  ;;  %v5132_v45 = vadd.f32 %v5131_v62, %v5130_v26 }
 0xaf9   : > { %v5117_v0 = vrot.slane %v5116_v21, 1  ;;  %v5133_v24 = vrot.slane %v5132_v45, 2 }
 0xafb   : > { %v5118_v14 = vadd.f32 %v5117_v0, %v5116_v21  ;;  %v5134_v13 = vadd.f32 %v5133_v24, %v5132_v45 }
 0xafd   : > { %v5135_v42 = vrot.slane %v5134_v13, 1  ;;  %v5119_v47 = vmul.f32 0.015625, %v5118_v14 }
 0xaff   : > { %v5136_v48 = vadd.f32 %v5135_v42, %v5134_v13  ;;  %v5121_v2 = vmul.f32 %v5119_v47, %v7428_v49  ;;  %v5120_v46 = vmul.f32 %v5119_v47, %v7438_v54  ;;  %v5122_v31 = vmul.f32 %v5119_v47, %v7462_v44 }
 0xb00   : > { %v5123_v9 = vmul.f32 %v5119_v47, %v7467_v38 }
 0xb01   : > { %v5137_v55 = vmul.f32 0.015625, %v5136_v48 }
 0xb03   : > { %v5139_v12 = vmul.f32 %v7433_v50, %v5137_v55  ;;  %v5138_v61 = vmul.f32 %v7443_v3, %v5137_v55  ;;  %v5140_v8 = vmul.f32 %v7448_v56, %v5137_v55  ;;  %v5141_v51 = vmul.f32 %v7453_v57, %v5137_v55 }
 0xb05   : > { %v5143_v58 = vadd.f32 %v5139_v12, %v5121_v2  ;;  %v5142_v5 = vadd.f32 %v5138_v61, %v5120_v46  ;;  %v5144_v11 = vadd.f32 %v5140_v8, %v5122_v31  ;;  %v5145_v1 = vadd.f32 %v5141_v51, %v5123_v9 }
 0xb07   : > { %5153 = vperm.xlu1 %5958, %v5143_v58   ;;  %5148 = vperm.xlu0 %5957, %v5142_v5  }
 0xb0b   : > { %5158 = vperm.xlu1 %5958, %v5144_v11   ;;  %5163 = vperm.xlu0 %5957, %v5145_v1  }
 0xb86   : > { %v5154_v15 = vpop.permute.xlu1 %5153  ;;  %v5149_v37 = vpop.permute.xlu0 %5148 }
 0xb87   : > { %v7473_v18 = vsub.f32 %v5086_v33, %v5154_v15  ;;  %v7475_v23 = vsub.f32 %v5083_v28, %v5149_v37 }
 0xb89   : > { %v5171_v25 = vmul.f32 %v7473_v18, %v7473_v18  ;;  %v5170_v27 = vmul.f32 %v7475_v23, %v7475_v23 }
 0xb8a   : > { %v5159_v29 = vpop.permute.xlu1 %5158  ;;  %v5164_v30 = vpop.permute.xlu0 %5163 }
 0xb8b   : > { %v7481_v53 = vsub.f32 %v5091_v20, %v5159_v29  ;;  %v7484_v34 = vsub.f32 %v7418_v32, %v5164_v30  ;;  %v5175_v36 = vsel %vm5105_vm12, %v5171_v25, 0.0  ;;  %v5172_v33 = vsel %vm5105_vm12, %v5170_v27, 0.0  ;;  %v5097_v32 = vld [vmem:[%s7637_s9] sm:$0xff] }
 0xb8c   : > { %5176 = vadd.xlane.f32.xlu0 %v5175_v36  ;;  %5173 = vadd.xlane.f32.xlu1 %v5172_v33 }
 0xb8d   : > { %v5190_v28 = vmul.f32 %v7481_v53, %v7481_v53  ;;  %v5191_v59 = vmul.f32 %v7484_v34, %v7484_v34 }
 0xb8f   : > { %v5192_v60 = vsel %vm5105_vm12, %v5190_v28, 0.0  ;;  %v5195_v20 = vsel %vm5105_vm12, %v5191_v59, 0.0 }
 0xb90   : > { %5193 = vadd.xlane.f32.xlu0 %v5192_v60  ;;  %5196 = vadd.xlane.f32.xlu1 %v5195_v20 }
 0xba1   : > { %5248 = vperm.xlu1 %5958, %v5097_v32  }
 0xba5   : > { %5258 = vperm.xlu1 %5958, %v5099_v52  }
 0xba6   : > { %5253 = vperm.xlu0 %5957, %v5098_v22   ;;  %v5104_v22 = vld [vmem:[%s7638_s10 + $0x18] sm:$0xff] }
 0xba9   : > { %5272 = vperm.xlu1 %5958, %v5101_v7   ;;  %v5103_v7 = vld [vmem:[%s7638_s10 + $0x10] sm:$0xff] }
 0xbaa   : > { %5263 = vperm.xlu0 %5957, %v5100_v40   ;;  %v5300_v40 = vld [vmem:[%s7639_s11] sm:$0x3] }
 0xbab   : > { %5941 = vmatprep.subr.msk.bf16.mxu1 %vm728_vm8, %v5300_v40 }
 0xbae   : > { %5277 = vperm.xlu0 %5957, %v5102_v41   ;;  %v5315_v41 = vsel %vm728_vm8, %v5300_v40, 0 }
 0xbaf   : > { %5936 = vmatpush3.bf16.msra.mxu1 %v5315_v41 }
 0xc19   : > { %v5174_v35 = vpop.xlane.xlu1 %5173  ;;  %v5177_v26 = vpop.xlane.xlu0 %5176 }
 0xc1a   : > { %v5178_v19 = vadd.f32 %v5177_v26, %v5174_v35 }
 0xc1c   : > { %v5179_v62 = vrot.slane %v5178_v19, 4 }
 0xc1d   : > { %v5197_v21 = vpop.xlane.xlu1 %5196  ;;  %v5194_v45 = vpop.xlane.xlu0 %5193 }
 0xc1e   : > { %v5180_v0 = vadd.f32 %v5179_v62, %v5178_v19  ;;  %v5198_v24 = vadd.f32 %v5197_v21, %v5194_v45 }
 0xc20   : > { %v5181_v14 = vrot.slane %v5180_v0, 2  ;;  %v5199_v13 = vrot.slane %v5198_v24, 4 }
 0xc21   : > { %v5249_v26 = vpop.permute.xlu1 %5248 }
 0xc22   : > { %v5182_v42 = vadd.f32 %v5181_v14, %v5180_v0  ;;  %v5200_v47 = vadd.f32 %v5199_v13, %v5198_v24 }
 0xc24   : > { %v5183_v48 = vrot.slane %v5182_v42, 1  ;;  %v5201_v55 = vrot.slane %v5200_v47, 2 }
 0xc25   : > { %v5254_v35 = vpop.permute.xlu0 %5253  ;;  %v5259_v62 = vpop.permute.xlu1 %5258 }
 0xc26   : > { %v5184_v2 = vadd.f32 %v5183_v48, %v5182_v42  ;;  %v5202_v12 = vadd.f32 %v5201_v55, %v5200_v47 }
 0xc28   : > { %v5203_v46 = vrot.slane %v5202_v12, 1  ;;  %v5185_v61 = vmul.f32 0.015625, %v5184_v2 }
 0xc29   : > { %v5264_v19 = vpop.permute.xlu0 %5263  ;;  %v5273_v45 = vpop.permute.xlu1 %5272 }
 0xc2a   : > { %v5204_v58 = vadd.f32 %v5203_v46, %v5202_v12  ;;  %v5186_v8 = vmul.f32 %v5185_v61, %v7438_v54  ;;  %v5187_v51 = vmul.f32 %v5185_v61, %v7428_v49  ;;  %v5189_v31 = vmul.f32 %v5185_v61, %v7467_v38 }
 0xc2b   : > { %v5188_v37 = vmul.f32 %v5185_v61, %v7462_v44 }
 0xc2c   : > { %v5205_v5 = vmul.f32 0.015625, %v5204_v58 }
 0xc2d   : > { %v5278_v21 = vpop.permute.xlu0 %5277 }
 0xc2e   : > { %v5206_v9 = vmul.f32 %v7443_v3, %v5205_v5  ;;  %v5207_v11 = vmul.f32 %v7433_v50, %v5205_v5  ;;  %v5208_v1 = vmul.f32 %v7448_v56, %v5205_v5  ;;  %v5209_v15 = vmul.f32 %v7453_v57, %v5205_v5 }
 0xc30   : > { %v5210_v25 = vadd.f32 %v5206_v9, %v5186_v8  ;;  %v5211_v27 = vadd.f32 %v5207_v11, %v5187_v51  ;;  %v5213_v29 = vadd.f32 %v5209_v15, %v5189_v31  ;;  %v5212_v30 = vadd.f32 %v5208_v1, %v5188_v37 }
 0xc32   : > { %v5214_v36 = vadd.f32 1e-05, %v5210_v25  ;;  %v5215_v33 = vadd.f32 1e-05, %v5211_v27  ;;  %v5217_v28 = vadd.f32 1e-05, %v5213_v29 }
 0xc33   : > { %v5216_v59 = vadd.f32 1e-05, %v5212_v30 }
 0xc34   : > { %5976 = vrsqrt.f32 %v5214_v36 }
 0xc35   : > { %5978 = vrsqrt.f32 %v5215_v33 }
 0xc36   : > { %5980 = vrsqrt.f32 %v5217_v28 }
 0xc37   : > { %5982 = vrsqrt.f32 %v5216_v59 }
 0xc3e   : > { %v5977_v60 = vpop.eup %5976 }
 0xc3f   : > { %v5979_v20 = vpop.eup %5978  ;;  %5224 = vperm.xlu0 %5957, %v5977_v60  }
 0xc40   : > { %5229 = vperm.xlu1 %5958, %v5979_v20   ;;  %v5981_v32 = vpop.eup %5980 }
 0xc41   : > { %v5983_v52 = vpop.eup %5982 }
 0xc43   : > { %5239 = vperm.xlu0 %5957, %v5981_v32  }
 0xc44   : > { %5234 = vperm.xlu1 %5958, %v5983_v52  }
 0xc47   : > { %5287 = vperm.xlu0 %5957, %v5104_v22  }
 0xc48   : > { %5282 = vperm.xlu1 %5958, %v5103_v7  }
 0xcbe   : > { %v5225_v0 = vpop.permute.xlu0 %5224 }
 0xcbf   : > { %v5230_v24 = vpop.permute.xlu1 %5229  ;;  %v5242_v14 = vmul.f32 %v5225_v0, %v7475_v23 }
 0xcc0   : > { %v5243_v13 = vmul.f32 %v5230_v24, %v7473_v18 }
 0xcc1   : > { %v5266_v42 = vmul.f32 %v5249_v26, %v5242_v14 }
 0xcc2   : > { %v5267_v47 = vmul.f32 %v5254_v35, %v5243_v13  ;;  %v5240_v48 = vpop.permute.xlu0 %5239 }
 0xcc3   : > { %v5290_v55 = vadd.f32 %v5273_v45, %v5266_v42  ;;  %v5235_v2 = vpop.permute.xlu1 %5234  ;;  %v5245_v12 = vmul.f32 %v5240_v48, %v7484_v34 }
 0xcc4   : > { %v5291_v46 = vadd.f32 %v5278_v21, %v5267_v47  ;;  %v5244_v61 = vmul.f32 %v5235_v2, %v7481_v53  ;;  %v5692_v53 = vld [vmem:[%s7640_s12] ss:$0 sm:$0xff] }
 0xcc5   : > { %v5294_v58 = vmax.f32 %v5290_v55, 0.0  ;;  %v5269_v5 = vmul.f32 %v5264_v19, %v5245_v12 }
 0xcc6   : > { %v5295_v8 = vmax.f32 %v5291_v46, 0.0  ;;  %v5268_v51 = vmul.f32 %v5259_v62, %v5244_v61  ;;  %v5288_v31 = vpop.permute.xlu0 %5287 }
 0xcc7   : > { %v5283_v9 = vpop.permute.xlu1 %5282  ;;  %v5293_v11 = vadd.f32 %v5288_v31, %v5269_v5 }
 0xcc8   : > { %v5298_v23 = vpack.c.bf16 %v5295_v8, %v5294_v58  ;;  %v5292_v1 = vadd.f32 %v5283_v9, %v5268_v51 }
 0xcc9   : > { %v5297_v18 = vmax.f32 %v5293_v11, 0.0 }
 0xcca   : > { %v5296_v15 = vmax.f32 %v5292_v1, 0.0  ;;  %5937 = vmatprep.mubr.msk.bf16.mxu1 %vm5105_vm12, %v5298_v23 }
 0xccc   : > { %v5299_v37 = vpack.c.bf16 %v5297_v18, %v5296_v15 }
 0xcce   : > { %5938 = vmatmul.mubr.msk.bf16.vlgmr.msra.gmra.mrb[32].mxu1 %vm5105_vm12, %v5299_v37 }
 0xda1   : > { %v5939_v34 = vpop.f32.mrb[32].mxu1 }
 0xda2   : > { %v5351_v25 = vpop.f32.mrb[33].mxu1  ;;  %v5360_v59 = vadd.f32 %v5939_v34, %v5692_v53 }
 0xda3   : > { %v5352_v27 = vadd.f32 %v5692_v53, %v5351_v25  ;;  %v5940_v29 = vpop.f32.mrb[34].mxu1 }
 0xda4   : > { %v5354_v30 = vpop.f32.mrb[35].mxu1  ;;  %v5363_v36 = vadd.f32 %v5940_v29, %v5692_v53  ;;  %v5392_v32 = vsel %vm2498_vm11, %v5360_v59, 0.0 }
 0xda5   : > { %v5355_v33 = vadd.f32 %v5692_v53, %v5354_v30  ;;  %v5374_v28 = vsel %vm2498_vm11, %v5352_v27, 0.0 }
 0xda6   : > { %5375 = vadd.xlane.f32.xlu1 %v5374_v28  ;;  %v5395_v20 = vsel %vm2498_vm11, %v5363_v36, 0.0 }
 0xda7   : > { %v5377_v60 = vsel %vm2498_vm11, %v5355_v33, 0.0 }
 0xda8   : > { %5378 = vadd.xlane.f32.xlu0 %v5377_v60 }
 0xdaa   : > { %5396 = vadd.xlane.f32.xlu1 %v5395_v20 }
 0xdac   : > { %5393 = vadd.xlane.f32.xlu0 %v5392_v32 }
 0xe33   : > { %v5376_v52 = vpop.xlane.xlu1 %5375 }
 0xe35   : > { %v5379_v22 = vpop.xlane.xlu0 %5378 }
 0xe36   : > { %v5380_v7 = vadd.f32 %v5379_v22, %v5376_v52 }
 0xe37   : > { %v5397_v41 = vpop.xlane.xlu1 %5396 }
 0xe38   : > { %v5381_v40 = vrot.slane %v5380_v7, 4 }
 0xe39   : > { %v5394_v35 = vpop.xlane.xlu0 %5393 }
 0xe3a   : > { %v5382_v26 = vadd.f32 %v5381_v40, %v5380_v7  ;;  %v5398_v19 = vadd.f32 %v5397_v41, %v5394_v35  ;;  %v5367_v7 = vld [vmem:[%s7641_s13 + $0x8] sm:$0xff]  ;;  %v5370_v40 = vld [vmem:[%s7642_s14] sm:$0xff]  ;;  %v5369_v41 = vld [vmem:[%s7641_s13 + $0x18] sm:$0xff] }
 0xe3b   : > { %v5371_v35 = vld [vmem:[%s7642_s14 + $0x8] sm:$0xff] }
 0xe3c   : > { %v5383_v62 = vrot.slane %v5382_v26, 2  ;;  %v5399_v21 = vrot.slane %v5398_v19, 4 }
 0xe3e   : > { %v5384_v45 = vadd.f32 %v5383_v62, %v5382_v26  ;;  %v5400_v0 = vadd.f32 %v5399_v21, %v5398_v19 }
 0xe40   : > { %v5385_v24 = vrot.slane %v5384_v45, 1  ;;  %v5401_v14 = vrot.slane %v5400_v0, 2 }
 0xe42   : > { %v5386_v13 = vadd.f32 %v5385_v24, %v5384_v45  ;;  %v5402_v42 = vadd.f32 %v5401_v14, %v5400_v0 }
 0xe44   : > { %v5403_v47 = vrot.slane %v5402_v42, 1  ;;  %v5387_v48 = vmul.f32 0.00390625, %v5386_v13 }
 0xe46   : > { %v5404_v55 = vadd.f32 %v5403_v47, %v5402_v42  ;;  %v5389_v12 = vmul.f32 %v5387_v48, %v7428_v49  ;;  %v5388_v61 = vmul.f32 %v5387_v48, %v7438_v54  ;;  %v5390_v9 = vmul.f32 %v5387_v48, %v7462_v44 }
 0xe47   : > { %v5391_v11 = vmul.f32 %v5387_v48, %v7467_v38 }
 0xe48   : > { %v5405_v2 = vmul.f32 0.00390625, %v5404_v55 }
 0xe4a   : > { %v5407_v46 = vmul.f32 %v7433_v50, %v5405_v2  ;;  %v5406_v58 = vmul.f32 %v7443_v3, %v5405_v2  ;;  %v5408_v51 = vmul.f32 %v7448_v56, %v5405_v2  ;;  %v5409_v31 = vmul.f32 %v7453_v57, %v5405_v2 }
 0xe4c   : > { %v5411_v5 = vadd.f32 %v5407_v46, %v5389_v12  ;;  %v5410_v8 = vadd.f32 %v5406_v58, %v5388_v61  ;;  %v5412_v23 = vadd.f32 %v5408_v51, %v5390_v9  ;;  %v5413_v1 = vadd.f32 %v5409_v31, %v5391_v11 }
 0xe4e   : > { %5421 = vperm.xlu1 %5958, %v5411_v5   ;;  %5416 = vperm.xlu0 %5957, %v5410_v8  }
 0xe52   : > { %5426 = vperm.xlu1 %5958, %v5412_v23   ;;  %5431 = vperm.xlu0 %5957, %v5413_v1  }
 0xecd   : > { %v5422_v18 = vpop.permute.xlu1 %5421  ;;  %v5417_v15 = vpop.permute.xlu0 %5416 }
 0xece   : > { %v7552_v37 = vsub.f32 %v5355_v33, %v5422_v18  ;;  %v7554_v53 = vsub.f32 %v5352_v27, %v5417_v15 }
 0xed0   : > { %v5439_v34 = vmul.f32 %v7552_v37, %v7552_v37  ;;  %v5438_v25 = vmul.f32 %v7554_v53, %v7554_v53 }
 0xed1   : > { %v5427_v29 = vpop.permute.xlu1 %5426  ;;  %v5432_v30 = vpop.permute.xlu0 %5431 }
 0xed2   : > { %v7560_v28 = vsub.f32 %v5360_v59, %v5427_v29  ;;  %v7562_v60 = vsub.f32 %v5363_v36, %v5432_v30  ;;  %v5443_v20 = vsel %vm2498_vm11, %v5439_v34, 0.0  ;;  %v5440_v32 = vsel %vm2498_vm11, %v5438_v25, 0.0  ;;  %v5366_v36 = vld [vmem:[%s7641_s13] sm:$0xff]  ;;  %v5368_v59 = vld [vmem:[%s7641_s13 + $0x10] sm:$0xff] }
 0xed3   : > { %5444 = vadd.xlane.f32.xlu0 %v5443_v20  ;;  %5441 = vadd.xlane.f32.xlu1 %v5440_v32 }
 0xed4   : > { %v5458_v27 = vmul.f32 %v7560_v28, %v7560_v28  ;;  %v5459_v33 = vmul.f32 %v7562_v60, %v7562_v60 }
 0xed6   : > { %v5460_v52 = vsel %vm2498_vm11, %v5458_v27, 0.0  ;;  %v5463_v22 = vsel %vm2498_vm11, %v5459_v33, 0.0 }
 0xed7   : > { %5461 = vadd.xlane.f32.xlu0 %v5460_v52  ;;  %5464 = vadd.xlane.f32.xlu1 %v5463_v22 }
 0xee8   : > { %5516 = vperm.xlu1 %5958, %v5366_v36  }
 0xeec   : > { %5526 = vperm.xlu1 %5958, %v5368_v59  }
 0xeed   : > { %5521 = vperm.xlu0 %5957, %v5367_v7  }
 0xef0   : > { %5540 = vperm.xlu1 %5958, %v5370_v40  }
 0xef1   : > { %5531 = vperm.xlu0 %5957, %v5369_v41  }
 0xef5   : > { %5545 = vperm.xlu0 %5957, %v5371_v35  }
 0xf60   : > { %v5442_v26 = vpop.xlane.xlu1 %5441  ;;  %v5445_v19 = vpop.xlane.xlu0 %5444 }
 0xf61   : > { %v5446_v62 = vadd.f32 %v5445_v19, %v5442_v26 }
 0xf63   : > { %v5447_v21 = vrot.slane %v5446_v62, 4 }
 0xf64   : > { %v5465_v45 = vpop.xlane.xlu1 %5464  ;;  %v5462_v0 = vpop.xlane.xlu0 %5461 }
 0xf65   : > { %v5448_v24 = vadd.f32 %v5447_v21, %v5446_v62  ;;  %v5466_v14 = vadd.f32 %v5465_v45, %v5462_v0 }
 0xf67   : > { %v5449_v13 = vrot.slane %v5448_v24, 2  ;;  %v5467_v42 = vrot.slane %v5466_v14, 4 }
 0xf68   : > { %v5517_v33 = vpop.permute.xlu1 %5516 }
 0xf69   : > { %v5450_v47 = vadd.f32 %v5449_v13, %v5448_v24  ;;  %v5468_v48 = vadd.f32 %v5467_v42, %v5466_v14 }
 0xf6b   : > { %v5451_v55 = vrot.slane %v5450_v47, 1  ;;  %v5469_v2 = vrot.slane %v5468_v48, 2 }
 0xf6c   : > { %v5522_v27 = vpop.permute.xlu0 %5521  ;;  %v5527_v22 = vpop.permute.xlu1 %5526 }
 0xf6d   : > { %v5452_v12 = vadd.f32 %v5451_v55, %v5450_v47  ;;  %v5470_v46 = vadd.f32 %v5469_v2, %v5468_v48 }
 0xf6f   : > { %v5471_v61 = vrot.slane %v5470_v46, 1  ;;  %v5453_v58 = vmul.f32 0.00390625, %v5452_v12 }
 0xf70   : > { %v5532_v52 = vpop.permute.xlu0 %5531  ;;  %v5541_v59 = vpop.permute.xlu1 %5540 }
 0xf71   : > { %v5472_v5 = vadd.f32 %v5471_v61, %v5470_v46  ;;  %v5454_v51 = vmul.f32 %v5453_v58, %v7438_v54  ;;  %v5455_v31 = vmul.f32 %v5453_v58, %v7428_v49  ;;  %v5457_v9 = vmul.f32 %v5453_v58, %v7467_v38  ;;  %v5372_v38 = vld [vmem:[%s7642_s14 + $0x10] sm:$0xff] }
 0xf72   : > { %v5456_v15 = vmul.f32 %v5453_v58, %v7462_v44  ;;  %v5373_v44 = vld [vmem:[%s7642_s14 + $0x18] sm:$0xff] }
 0xf73   : > { %v5473_v8 = vmul.f32 0.00390625, %v5472_v5 }
 0xf74   : > { %v5546_v36 = vpop.permute.xlu0 %5545 }
 0xf75   : > { %v5474_v11 = vmul.f32 %v7443_v3, %v5473_v8  ;;  %v5475_v23 = vmul.f32 %v7433_v50, %v5473_v8  ;;  %v5476_v1 = vmul.f32 %v7448_v56, %v5473_v8  ;;  %v5477_v18 = vmul.f32 %v7453_v57, %v5473_v8 }
 0xf77   : > { %v5478_v34 = vadd.f32 %v5474_v11, %v5454_v51  ;;  %v5479_v25 = vadd.f32 %v5475_v23, %v5455_v31  ;;  %v5481_v29 = vadd.f32 %v5477_v18, %v5457_v9  ;;  %v5480_v30 = vadd.f32 %v5476_v1, %v5456_v15 }
 0xf79   : > { %v5482_v20 = vadd.f32 1e-05, %v5478_v34  ;;  %v5483_v54 = vadd.f32 1e-05, %v5479_v25  ;;  %v5485_v32 = vadd.f32 1e-05, %v5481_v29 }
 0xf7a   : > { %v5484_v49 = vadd.f32 1e-05, %v5480_v30 }
 0xf7b   : > { %5984 = vrsqrt.f32 %v5482_v20 }
 0xf7c   : > { %5986 = vrsqrt.f32 %v5483_v54 }
 0xf7d   : > { %5988 = vrsqrt.f32 %v5485_v32 }
 0xf7e   : > { %5990 = vrsqrt.f32 %v5484_v49 }
 0xf85   : > { %v5985_v3 = vpop.eup %5984 }
 0xf86   : > { %v5987_v50 = vpop.eup %5986  ;;  %5492 = vperm.xlu0 %5957, %v5985_v3  }
 0xf87   : > { %5497 = vperm.xlu1 %5958, %v5987_v50   ;;  %v5989_v56 = vpop.eup %5988 }
 0xf88   : > { %v5991_v57 = vpop.eup %5990 }
 0xf8a   : > { %5507 = vperm.xlu0 %5957, %v5989_v56  }
 0xf8b   : > { %5502 = vperm.xlu1 %5958, %v5991_v57  }
 0xf8e   : > { %5555 = vperm.xlu0 %5957, %v5373_v44  }
 0xf8f   : > { %5550 = vperm.xlu1 %5958, %v5372_v38  }
0x1005   : > { %v5493_v7 = vpop.permute.xlu0 %5492 }
0x1006   : > { %v5498_v40 = vpop.permute.xlu1 %5497  ;;  %v5510_v41 = vmul.f32 %v5493_v7, %v7554_v53 }
0x1007   : > { %v5511_v35 = vmul.f32 %v5498_v40, %v7552_v37 }
0x1008   : > { %v5534_v26 = vmul.f32 %v5517_v33, %v5510_v41 }
0x1009   : > { %v5535_v19 = vmul.f32 %v5522_v27, %v5511_v35  ;;  %v5508_v62 = vpop.permute.xlu0 %5507 }
0x100a   : > { %v5558_v21 = vadd.f32 %v5541_v59, %v5534_v26  ;;  %v5503_v45 = vpop.permute.xlu1 %5502  ;;  %v5513_v0 = vmul.f32 %v5508_v62, %v7562_v60 }
0x100b   : > { %v5559_v24 = vadd.f32 %v5546_v36, %v5535_v19  ;;  %v5512_v14 = vmul.f32 %v5503_v45, %v7560_v28 }
0x100c   : > { %v5562_v13 = vmax.f32 %v5558_v21, 0.0  ;;  %v5537_v42 = vmul.f32 %v5532_v52, %v5513_v0 }
0x100d   : > { %v5563_v53 = vmax.f32 %v5559_v24, 0.0  ;;  %v5536_v47 = vmul.f32 %v5527_v22, %v5512_v14  ;;  %v5556_v37 = vpop.permute.xlu0 %5555 }
0x100e   : > { %v5566_v48 = vadd.f32 %v5562_v13, %v5021_v4  ;;  %v5551_v55 = vpop.permute.xlu1 %5550  ;;  %v5561_v2 = vadd.f32 %v5556_v37, %v5537_v42 }
0x100f   : > { %v5567_v60 = vadd.f32 %v5563_v53, %v5022_v43  ;;  %v5560_v12 = vadd.f32 %v5551_v55, %v5536_v47 }
0x1010   : > { %5570 = vst.msk [vmem:[%s494_s21] sm:$0xff] %vm2498_vm11, %v5566_v48  ;;  %v5565_v28 = vmax.f32 %v5561_v2, 0.0 }
0x1011   : > { %5571 = vst.msk [vmem:[%s494_s21 + $0x8] sm:$0xff] %vm2498_vm11, %v5567_v60  ;;  %v5564_v46 = vmax.f32 %v5560_v12, 0.0 }
0x1012   : > { %v5569_v61 = vadd.f32 %v5565_v28, %v5024_v39 }
0x1013   : > { %v5568_v58 = vadd.f32 %v5564_v46, %v5023_v17 }
0x1014   : > { %5573 = vst.msk [vmem:[%s494_s21 + $0x18] sm:$0xff] %vm2498_vm11, %v5569_v61 }
0x1015   : > { %5572 = vst.msk [vmem:[%s494_s21 + $0x10] sm:$0xff] %vm2498_vm11, %v5568_v58 }
0x1016 PF: > { %s25_s18 = sadd.s32 1, %s6006_s18  }
0x1017   : > { %p22_p4 = scmp.ge.s32.totalorder %s25_s18, 4  }
0x1019   :  { %24 = sbr.rel (!%p22_p4) target bundleno = 1 (0x1), region = 116 }

</bundles_post_ra>
